<compile_context>
chip_gen: v6e
topology: v6e:2x2x1
jax: 0.10.0
libtpu: 0.0.40
codegen_flags: <defaults>
</compile_context>

<pallas_src>
import functools

import jax
import jax.numpy as jnp
from jax.experimental import pallas as pl
from jax.experimental.pallas import tpu as pltpu


_OFF = 8  # sublane-aligned start row of real data inside the padded scratch


# ----------------------------------------------------------------------------
# Helpers
# ----------------------------------------------------------------------------

def _resident(a):
    """Whole array resident in VMEM (same block for every grid step)."""
    return pl.BlockSpec(a.shape, lambda *_, nd=a.ndim: (0,) * nd)


def _per_batch(a):
    """One batch element per step along grid axis 0."""
    return pl.BlockSpec((1,) + tuple(a.shape[1:]),
                        lambda n, *_, nd=a.ndim: (n,) + (0,) * (nd - 1))


def _nbytes(a):
    return a.size * a.dtype.itemsize


def _compiler_params(semantics, need_bytes):
    # Explicit scoped-VMEM budget: >= default on v5e/v6e/v7x, <= v7x physical.
    limit = int(min(max(int(need_bytes) + (16 << 20), 32 << 20), 64 << 20))
    return pltpu.CompilerParams(dimension_semantics=semantics,
                                vmem_limit_bytes=limit)


# ----------------------------------------------------------------------------
# Pallas kernels
# ----------------------------------------------------------------------------

def _layer1_kernel(x_ref, w_ref, s_ref, sh_ref, o_ref, xpad_ref, *, pad, dil):
    """Conv1d(K, pad, dil) -> ReLU -> BN(eval) for one batch element.

    x_ref: (1, T, Cin) bf16   w_ref: (K, Cin, Cout) bf16   s/sh: (1, Cout) f32
    o_ref: (1, T, Cout) bf16  xpad_ref: (T + 16, Cin) f32 scratch.
    """
    T, Cout = o_ref.shape[1], o_ref.shape[2]
    K = w_ref.shape[0]
    Cin = xpad_ref.shape[1]

    # Zero only the border rows; interior rows are fully overwritten below.
    xpad_ref[:_OFF, :] = jnp.zeros((_OFF, Cin), xpad_ref.dtype)
    xpad_ref[_OFF + T:, :] = jnp.zeros((_OFF, Cin), xpad_ref.dtype)
    xpad_ref[_OFF:_OFF + T, :] = x_ref[0].astype(jnp.float32)

    acc = jnp.zeros((T, Cout), jnp.float32)
    for k in range(K):                               # static tap loop
        lo = _OFF - pad + k * dil
        acc = acc + jnp.dot(xpad_ref[lo:lo + T, :].astype(jnp.bfloat16),
                            w_ref[k], preferred_element_type=jnp.float32)
    y = jnp.maximum(acc, 0.0) * s_ref[...] + sh_ref[...]   # ReLU -> BN epilogue
    o_ref[0] = y.astype(o_ref.dtype)


def _se_res2_kernel(*args, dil, pad, groups, want_sum):
    """Fused SE_Res2Block for one batch element.

    out     = SE(conv2(Res2(conv1(s)))) + s        (module output of the layer)
    sum_out = s + out                              (next cumulative residual)
    All intermediates stay in VMEM; MXU matmuls run in bf16, f32 accumulate.
    """
    (s_ref,
     c1w_ref, c1s_ref, c1sh_ref,
     r2w_ref, r2s_ref, r2sh_ref,
     c2w_ref, c2s_ref, c2sh_ref,
     w1_ref, b1_ref, w2_ref, b2_ref) = args[:14]
    if want_sum:
        o_ref, sum_ref, xpad_ref, r2out_ref = args[14:]
    else:
        o_ref, xpad_ref, r2out_ref = args[14:]
        sum_ref = None

    T, C = o_ref.shape[1], o_ref.shape[2]
    width = C // groups
    nums = groups if groups == 1 else groups - 1
    K = r2w_ref.shape[1]

    # conv1 (1x1, bf16 MXU) -> ReLU -> BN.  r2out holds the Res2 state: it
    # starts as conv1's output; each group's slice is overwritten with that
    # group's output after its input slice has been read, and the last
    # (passthrough) slice is never touched, so after the loop it holds the
    # channel-concat of the Res2 outputs without any XLA concat.
    h = jnp.dot(s_ref[0], c1w_ref[...], preferred_element_type=jnp.float32)
    r2out_ref[...] = jnp.maximum(h, 0.0) * c1s_ref[...] + c1sh_ref[...]

    # Zero only the border rows of the padded scratch (once per kernel).
    xpad_ref[:_OFF, :] = jnp.zeros((_OFF, width), xpad_ref.dtype)
    xpad_ref[_OFF + T:, :] = jnp.zeros((_OFF, width), xpad_ref.dtype)

    for i in range(nums):
        # Re-read group input from the scratch (short live ranges).
        inp = r2out_ref[:, i * width:(i + 1) * width]              # spx[i]
        if i > 0:
            inp = inp + r2out_ref[:, (i - 1) * width:i * width]    # + prev out
        xpad_ref[_OFF:_OFF + T, :] = inp
        acc = jnp.zeros((T, width), jnp.float32)
        for k in range(K):                                         # static taps
            lo = _OFF - pad + k * dil
            acc = acc + jnp.dot(xpad_ref[lo:lo + T, :].astype(jnp.bfloat16),
                                r2w_ref[i, k],
                                preferred_element_type=jnp.float32)
        r2out_ref[:, i * width:(i + 1) * width] = (
            jnp.maximum(acc, 0.0) * r2s_ref[i] + r2sh_ref[i])

    # conv2 (1x1) -> ReLU -> BN : single lane-dense bf16 matmul, contraction C.
    h2 = jnp.dot(r2out_ref[...].astype(jnp.bfloat16), c2w_ref[...],
                 preferred_element_type=jnp.float32)
    h2 = jnp.maximum(h2, 0.0) * c2s_ref[...] + c2sh_ref[...]

    # SE gate (kept in f32): mean over time -> linear -> ReLU -> linear -> sigmoid.
    m = jnp.mean(h2, axis=0, keepdims=True)                        # (1, C)
    z = jnp.maximum(
        jnp.dot(m, w1_ref[...], preferred_element_type=jnp.float32)
        + b1_ref[...], 0.0)                                        # (1, C//4)
    g = jax.nn.sigmoid(
        jnp.dot(z, w2_ref[...], preferred_element_type=jnp.float32)
        + b2_ref[...])                                             # (1, C)

    # Gate + residual.  The residual block is re-read here (still in VMEM)
    # instead of being held live from the top of the kernel.
    xres = s_ref[0].astype(jnp.float32)
    out = h2 * g + xres
    o_ref[0] = out.astype(o_ref.dtype)
    if want_sum:
        sum_ref[0] = (out + xres).astype(sum_ref.dtype)


def _final_kernel(o2_ref, o3_ref, o4_ref, w2t_ref, w3t_ref, w4t_ref,
                  b_ref, s_ref, sh_ref, o_ref):
    """Final 1x1 conv over the virtual concat [out2|out3|out4] -> ReLU -> BN.

    The (3C,3C) weight is pre-split / pre-transposed into three (3C, C)
    pieces whose A @ B^T matmuls accumulate, so the concat is never
    materialised and the result lands directly in channel-major (N, 3C, T)
    layout -- no trailing HBM transpose pass.

    o*_ref: (1, tile_t, C) bf16   w*t_ref: (3C, C) bf16   b/s/sh: (3C, 1) f32
    o_ref:  (1, 3C, tile_t) f32
    """
    nt = (((1,), (1,)), ((), ()))            # contract both minor dims (A @ B^T)
    acc = jax.lax.dot_general(w2t_ref[...], o2_ref[0], nt,
                              preferred_element_type=jnp.float32)
    acc = acc + jax.lax.dot_general(w3t_ref[...], o3_ref[0], nt,
                                    preferred_element_type=jnp.float32)
    acc = acc + jax.lax.dot_general(w4t_ref[...], o4_ref[0], nt,
                                    preferred_element_type=jnp.float32)
    y = jnp.maximum(acc + b_ref[...], 0.0) * s_ref[...] + sh_ref[...]
    o_ref[0] = y.astype(o_ref.dtype)


# ----------------------------------------------------------------------------
# Kernel wrappers
# ----------------------------------------------------------------------------

def layer1_forward(x_ntc, w, s, sh, *, pad, dil=1):
    N, T, Cin = x_ntc.shape
    K, _, Cout = w.shape
    assert pad <= _OFF and (K - 1) * dil - pad <= _OFF
    kern = functools.partial(_layer1_kernel, pad=pad, dil=dil)
    blk_bytes = T * Cin * 2 + T * Cout * 2
    wgt_bytes = _nbytes(w) + _nbytes(s) + _nbytes(sh)
    need = 2 * (blk_bytes + wgt_bytes) + (T + 2 * _OFF) * Cin * 4
    return pl.pallas_call(
        kern,
        grid=(N,),
        out_shape=jax.ShapeDtypeStruct((N, T, Cout), x_ntc.dtype),
        in_specs=[_per_batch(x_ntc), _resident(w), _resident(s), _resident(sh)],
        out_specs=pl.BlockSpec((1, T, Cout), lambda n: (n, 0, 0)),
        scratch_shapes=[pltpu.VMEM((T + 2 * _OFF, Cin), jnp.float32)],
        compiler_params=_compiler_params(("parallel",), need),
    )(x_ntc, w, s, sh)


def se_res2_forward(s_in, p, *, dil, pad, groups, want_sum):
    """One SE_Res2Block.  Returns out (= block(s_in) + s_in) and optionally
    the next cumulative residual sum (= s_in + out)."""
    N, T, C = s_in.shape
    width = C // groups
    K = p['r2w'].shape[1]
    assert pad <= _OFF and (K - 1) * dil - pad <= _OFF
    weights = [p['c1w'], p['c1s'], p['c1sh'],
               p['r2w'], p['r2s'], p['r2sh'],
               p['c2w'], p['c2s'], p['c2sh'],
               p['w1'], p['b1'], p['w2'], p['b2']]
    kern = functools.partial(_se_res2_kernel, dil=dil, pad=pad,
                             groups=groups, want_sum=want_sum)
    n_out = 2 if want_sum else 1
    out_block = pl.BlockSpec((1, T, C), lambda n: (n, 0, 0))
    blk_bytes = (1 + n_out) * T * C * 2
    wgt_bytes = sum(_nbytes(w) for w in weights)
    scratch_bytes = (T + 2 * _OFF) * width * 4 + T * C * 4
    need = 2 * (blk_bytes + wgt_bytes) + scratch_bytes
    outs = pl.pallas_call(
        kern,
        grid=(N,),
        out_shape=tuple(jax.ShapeDtypeStruct((N, T, C), s_in.dtype)
                        for _ in range(n_out)),
        in_specs=[_per_batch(s_in)] + [_resident(w) for w in weights],
        out_specs=tuple(out_block for _ in range(n_out)),
        scratch_shapes=[pltpu.VMEM((T + 2 * _OFF, width), jnp.float32),
                        pltpu.VMEM((T, C), jnp.float32)],
        compiler_params=_compiler_params(("parallel",), need),
    )(s_in, *weights)
    if want_sum:
        return outs[0], outs[1]
    return outs[0] if isinstance(outs, (tuple, list)) else outs


def final_forward(o2, o3, o4, fp):
    N, T, C = o2.shape
    C3 = fp['w'].shape[1]
    # Split + transpose the (3C,3C) weight into three (3C, C) pieces (bf16).
    w2t = jnp.transpose(fp['w'][:C])
    w3t = jnp.transpose(fp['w'][C:2 * C])
    w4t = jnp.transpose(fp['w'][2 * C:])
    b = fp['b'].reshape(C3, 1)
    s = fp['s'].reshape(C3, 1)
    sh = fp['sh'].reshape(C3, 1)

    tile_t = T
    for cand in (256, 128):            # cap time tiles for v5e/v7x VMEM budgets
        if T % cand == 0:
            tile_t = cand
            break
    act_spec = pl.BlockSpec((1, tile_t, C), lambda n, t: (n, t, 0))
    blk_bytes = 3 * tile_t * C * 2 + C3 * tile_t * 4
    wgt_bytes = 3 * _nbytes(w2t) + 3 * _nbytes(b)
    need = 2 * (blk_bytes + wgt_bytes)
    return pl.pallas_call(
        _final_kernel,
        grid=(N, T // tile_t),
        out_shape=jax.ShapeDtypeStruct((N, C3, T), jnp.float32),
        in_specs=[act_spec, act_spec, act_spec,
                  _resident(w2t), _resident(w3t), _resident(w4t),
                  _resident(b), _resident(s), _resident(sh)],
        out_specs=pl.BlockSpec((1, C3, tile_t), lambda n, t: (n, 0, t)),
        compiler_params=_compiler_params(("parallel", "parallel"), need),
    )(o2, o3, o4, w2t, w3t, w4t, b, s, sh)


# ----------------------------------------------------------------------------
# Model composition (mirrors the PyTorch module)
# ----------------------------------------------------------------------------

def ecapa_forward(params, x_nct, *, groups=8):
    # PyTorch (N, C_in, T) -> channel-last (N, T, C_in) bf16 so channels sit on
    # the 128-wide lane axis and the MXU matmuls run in bf16.
    x = jnp.transpose(x_nct, (0, 2, 1)).astype(jnp.bfloat16)
    out1 = layer1_forward(x, params['l1_w'], params['l1_s'], params['l1_sh'], pad=2)
    # Each block consumes the pre-summed residual and also emits the next
    # cumulative residual sum, so no activation is re-read from HBM.
    out2, s2 = se_res2_forward(out1, params['layer2'], dil=2, pad=2,
                               groups=groups, want_sum=True)
    out3, s3 = se_res2_forward(s2, params['layer3'], dil=3, pad=3,
                               groups=groups, want_sum=True)
    out4 = se_res2_forward(s3, params['layer4'], dil=4, pad=4,
                           groups=groups, want_sum=False)
    return final_forward(out2, out3, out4, params['final'])   # (N, 3C, T) f32


# ----------------------------------------------------------------------------
# Pure-JAX reference (same math, f32 XLA ops) for correctness checking
# ----------------------------------------------------------------------------

_HI = jax.lax.Precision.HIGHEST


def _f32(a):
    return a.astype(jnp.float32)


def _ref_conv_bn(x, w, s, sh, pad, dil):
    N, T, _ = x.shape
    K = w.shape[0]
    xp = jnp.pad(x, ((0, 0), (pad, pad), (0, 0))) if pad else x
    y = jnp.zeros((N, T, w.shape[2]), jnp.float32)
    for k in range(K):
        y = y + jnp.einsum('ntc,cd->ntd', xp[:, k * dil:k * dil + T, :],
                           _f32(w[k]), precision=_HI)
    return jnp.maximum(y, 0.0) * s + sh


def _ref_block(p, x, pad, dil, groups):
    N, T, C = x.shape
    width = C // groups
    nums = groups if groups == 1 else groups - 1
    h = jnp.einsum('ntc,cd->ntd', x, _f32(p['c1w']), precision=_HI)
    h = jnp.maximum(h, 0.0) * p['c1s'] + p['c1sh']
    outs, sp = [], None
    for i in range(nums):
        xi = h[:, :, i * width:(i + 1) * width]
        sp = xi if i == 0 else sp + xi
        sp = _ref_conv_bn(sp, p['r2w'][i], p['r2s'][i], p['r2sh'][i], pad, dil)
        outs.append(sp)
    if groups != 1:
        outs.append(h[:, :, nums * width:])
    r2 = jnp.concatenate(outs, axis=-1)
    h2 = jnp.einsum('ntc,cd->ntd', r2, _f32(p['c2w']), precision=_HI)
    h2 = jnp.maximum(h2, 0.0) * p['c2s'] + p['c2sh']
    m = jnp.mean(h2, axis=1)
    z = jnp.maximum(jnp.dot(m, p['w1'], precision=_HI) + p['b1'], 0.0)
    g = jax.nn.sigmoid(jnp.dot(z, p['w2'], precision=_HI) + p['b2'])
    return h2 * g[:, None, :]


def ecapa_reference(params, x_nct, groups=8):
    x = jnp.transpose(x_nct, (0, 2, 1)).astype(jnp.float32)
    o1 = _ref_conv_bn(x, params['l1_w'], params['l1_s'], params['l1_sh'], 2, 1)
    o2 = _ref_block(params['layer2'], o1, 2, 2, groups) + o1
    o3 = _ref_block(params['layer3'], o1 + o2, 3, 3, groups) + o1 + o2
    o4 = _ref_block(params['layer4'], o1 + o2 + o3, 4, 4, groups) + o1 + o2 + o3
    cat = jnp.concatenate([o2, o3, o4], axis=-1)
    y = jnp.einsum('ntc,cd->ntd', cat, _f32(params['final']['w']), precision=_HI)
    y = y + params['final']['b']
    y = jnp.maximum(y, 0.0) * params['final']['s'] + params['final']['sh']
    return jnp.transpose(y, (0, 2, 1))


# ----------------------------------------------------------------------------
# Deterministic synthetic parameter initialization (eval-mode BN folded).
# Matmul weights are stored in bf16 (MXU-native); BN/bias/SE params in f32.
# ----------------------------------------------------------------------------

def _init_bn(key, c, eps=1e-5):
    k1, k2, k3, k4 = jax.random.split(key, 4)
    gamma = 1.0 + 0.1 * jax.random.normal(k1, (c,), jnp.float32)
    beta = 0.1 * jax.random.normal(k2, (c,), jnp.float32)
    mean = 0.1 * jax.random.normal(k3, (c,), jnp.float32)
    var = 1.0 + 0.1 * jax.random.uniform(k4, (c,), jnp.float32)
    scale = gamma / jnp.sqrt(var + eps)
    shift = beta - mean * scale
    return scale.reshape(1, c), shift.reshape(1, c)


def _init_block(key, channels, ksize, groups):
    width = channels // groups
    nums = groups if groups == 1 else groups - 1
    keys = jax.random.split(key, 8 + 2 * nums)
    p = {'c1w': (jax.random.normal(keys[0], (channels, channels), jnp.float32)
                 / channels ** 0.5).astype(jnp.bfloat16)}
    p['c1s'], p['c1sh'] = _init_bn(keys[1], channels)
    r2w, r2s, r2sh = [], [], []
    for i in range(nums):
        r2w.append(jax.random.normal(keys[8 + i], (ksize, width, width),
                                     jnp.float32) / (width * ksize) ** 0.5)
        s_, sh_ = _init_bn(keys[8 + nums + i], width)
        r2s.append(s_)
        r2sh.append(sh_)
    p['r2w'] = jnp.stack(r2w).astype(jnp.bfloat16)   # (nums, K, width, width)
    p['r2s'] = jnp.stack(r2s)                        # (nums, 1, width) f32
    p['r2sh'] = jnp.stack(r2sh)
    p['c2w'] = (jax.random.normal(keys[2], (channels, channels), jnp.float32)
                / channels ** 0.5).astype(jnp.bfloat16)
    p['c2s'], p['c2sh'] = _init_bn(keys[3], channels)
    p['w1'] = jax.random.normal(keys[4], (channels, channels // 4),
                                jnp.float32) / channels ** 0.5
    p['b1'] = 0.1 * jax.random.normal(keys[5], (1, channels // 4), jnp.float32)
    p['w2'] = jax.random.normal(keys[6], (channels // 4, channels),
                                jnp.float32) / (channels // 4) ** 0.5
    p['b2'] = 0.1 * jax.random.normal(keys[7], (1, channels), jnp.float32)
    return p


def init_ecapa(key, inputs_dim, channels, groups=8):
    k1, k2, k3, k4, k5 = jax.random.split(key, 5)
    k1a, k1b = jax.random.split(k1)
    params = {'l1_w': (jax.random.normal(k1a, (5, inputs_dim, channels),
                                         jnp.float32)
                       / (inputs_dim * 5) ** 0.5).astype(jnp.bfloat16)}
    params['l1_s'], params['l1_sh'] = _init_bn(k1b, channels)
    params['layer2'] = _init_block(k2, channels, 3, groups)
    params['layer3'] = _init_block(k3, channels, 3, groups)
    params['layer4'] = _init_block(k4, channels, 3, groups)
    c3 = 3 * channels
    kf1, kf2, kf3 = jax.random.split(k5, 3)
    final = {'w': (jax.random.normal(kf1, (c3, c3), jnp.float32)
                   / c3 ** 0.5).astype(jnp.bfloat16),
             'b': 0.1 * jax.random.normal(kf2, (1, c3), jnp.float32)}
    final['s'], final['sh'] = _init_bn(kf3, c3)
    params['final'] = final
    return params


# ----------------------------------------------------------------------------
# Main
# ----------------------------------------------------------------------------

if __name__ == "__main__":
    key = jax.random.PRNGKey(0)
    k_params, k_x = jax.random.split(key)

    N, inputs_dim, T = 2, 32, 16
    channels = 64                      # divisible by 8 (Res2 groups) and 4 (SE)

    params = init_ecapa(k_params, inputs_dim, channels)
    x = jax.random.normal(k_x, (N, inputs_dim, T), jnp.float32)   # PyTorch NCT

    out = jax.jit(ecapa_forward)(params, x)
    out = jax.block_until_ready(out)

    assert out.shape == (N, 3 * channels, T), out.shape
    assert bool(jnp.all(jnp.isfinite(out)))

    # Correctness vs. a pure-JAX f32 (HIGHEST precision) reference.  The
    # kernel path uses bf16 MXU matmuls and bf16 inter-block activations, so
    # the tolerance is loose-but-meaningful.
    ref = ecapa_reference(params, x)
    assert jnp.allclose(out, ref, rtol=5e-2, atol=1e-1), \
        float(jnp.max(jnp.abs(out - ref)))

    print("KERNEL_OK")
</pallas_src>

<mosaic_0001>
module attributes {stable_mosaic.version = 11 : i64} {
  func.func @_layer1_kernel(%arg0: i32, %arg1: memref<1x16x32xbf16, #tpu.memory_space<vmem>>, %arg2: memref<5x32x64xbf16, #tpu.memory_space<vmem>>, %arg3: memref<1x64xf32, #tpu.memory_space<vmem>>, %arg4: memref<1x64xf32, #tpu.memory_space<vmem>>, %arg5: memref<1x16x64xbf16, #tpu.memory_space<vmem>>, %arg6: memref<32x32xf32, #tpu.memory_space<vmem>>) attributes {dimension_semantics = [#tpu.dimension_semantics<parallel>], iteration_bounds = array<i64: 2>, scalar_prefetch = 0 : i64, scratch_operands = 1 : i64, tpu.core_type = #tpu.core_type<tc>, window_params = [{transform_indices = @transform_0, window_bounds = array<i64: 1, 16, 32>}, {pipeline_mode = #tpu.pipeline_mode<synchronous>, transform_indices = @transform_1, window_bounds = array<i64: 5, 32, 64>}, {pipeline_mode = #tpu.pipeline_mode<synchronous>, transform_indices = @transform_2, window_bounds = array<i64: 1, 64>}, {pipeline_mode = #tpu.pipeline_mode<synchronous>, transform_indices = @transform_3, window_bounds = array<i64: 1, 64>}, {transform_indices = @transform_4, window_bounds = array<i64: 1, 16, 64>}]} {
    %cst = arith.constant 0.000000e+00 : f32
    %0 = vector.broadcast %cst : f32 to vector<8x32xf32>
    %c0 = arith.constant 0 : index
    %c0_0 = arith.constant 0 : index
    %1 = vector.load %arg6[%c0, %c0_0] : memref<32x32xf32, #tpu.memory_space<vmem>>, vector<8x32xf32>
    tpu.vector_store %arg6[%c0, %c0_0], %0 {strides = array<i32>} : memref<32x32xf32, #tpu.memory_space<vmem>>, vector<8x32xf32>,
    %cst_1 = arith.constant 0.000000e+00 : f32
    %2 = vector.broadcast %cst_1 : f32 to vector<8x32xf32>
    %c24 = arith.constant 24 : index
    %c0_2 = arith.constant 0 : index
    %3 = vector.load %arg6[%c24, %c0_2] : memref<32x32xf32, #tpu.memory_space<vmem>>, vector<8x32xf32>
    tpu.vector_store %arg6[%c24, %c0_2], %2 {strides = array<i32>} : memref<32x32xf32, #tpu.memory_space<vmem>>, vector<8x32xf32>,
    %c0_3 = arith.constant 0 : index
    %c0_4 = arith.constant 0 : index
    %c0_5 = arith.constant 0 : index
    %4 = vector.load %arg1[%c0_3, %c0_4, %c0_5] : memref<1x16x32xbf16, #tpu.memory_space<vmem>>, vector<1x16x32xbf16>
    %5 = vector.shape_cast %4 : vector<1x16x32xbf16> to vector<16x32xbf16>
    %6 = arith.extf %5 : vector<16x32xbf16> to vector<16x32xf32>
    %c8 = arith.constant 8 : index
    %c0_6 = arith.constant 0 : index
    %7 = vector.load %arg6[%c8, %c0_6] : memref<32x32xf32, #tpu.memory_space<vmem>>, vector<16x32xf32>
    tpu.vector_store %arg6[%c8, %c0_6], %6 {strides = array<i32>} : memref<32x32xf32, #tpu.memory_space<vmem>>, vector<16x32xf32>,
    %cst_7 = arith.constant 0.000000e+00 : f32
    %8 = vector.broadcast %cst_7 : f32 to vector<16x64xf32>
    %c6 = arith.constant 6 : index
    %c0_8 = arith.constant 0 : index
    %9 = vector.load %arg6[%c6, %c0_8] : memref<32x32xf32, #tpu.memory_space<vmem>>, vector<16x32xf32>
    %10 = arith.truncf %9 : vector<16x32xf32> to vector<16x32xbf16>
    %c0_9 = arith.constant 0 : index
    %c0_10 = arith.constant 0 : index
    %c0_11 = arith.constant 0 : index
    %11 = vector.load %arg2[%c0_9, %c0_10, %c0_11] : memref<5x32x64xbf16, #tpu.memory_space<vmem>>, vector<1x32x64xbf16>
    %12 = vector.shape_cast %11 : vector<1x32x64xbf16> to vector<32x64xbf16>
    %cst_12 = arith.constant dense<0.000000e+00> : vector<16x64xf32>
    %13 = tpu.matmul %10, %12, %cst_12 {dimension_numbers = #tpu.dot_dimension_numbers<[1], [0], [0], [1], [0, 0, 1, 1], [], []>} : vector<16x32xbf16>, vector<32x64xbf16>, vector<16x64xf32> -> vector<16x64xf32>
    %14 = arith.addf %8, %13 : vector<16x64xf32>
    %c7 = arith.constant 7 : index
    %c0_13 = arith.constant 0 : index
    %15 = vector.load %arg6[%c7, %c0_13] : memref<32x32xf32, #tpu.memory_space<vmem>>, vector<16x32xf32>
    %16 = arith.truncf %15 : vector<16x32xf32> to vector<16x32xbf16>
    %c1 = arith.constant 1 : index
    %c0_14 = arith.constant 0 : index
    %c0_15 = arith.constant 0 : index
    %17 = vector.load %arg2[%c1, %c0_14, %c0_15] : memref<5x32x64xbf16, #tpu.memory_space<vmem>>, vector<1x32x64xbf16>
    %18 = vector.shape_cast %17 : vector<1x32x64xbf16> to vector<32x64xbf16>
    %cst_16 = arith.constant dense<0.000000e+00> : vector<16x64xf32>
    %19 = tpu.matmul %16, %18, %cst_16 {dimension_numbers = #tpu.dot_dimension_numbers<[1], [0], [0], [1], [0, 0, 1, 1], [], []>} : vector<16x32xbf16>, vector<32x64xbf16>, vector<16x64xf32> -> vector<16x64xf32>
    %20 = arith.addf %14, %19 : vector<16x64xf32>
    %c8_17 = arith.constant 8 : index
    %c0_18 = arith.constant 0 : index
    %21 = vector.load %arg6[%c8_17, %c0_18] : memref<32x32xf32, #tpu.memory_space<vmem>>, vector<16x32xf32>
    %22 = arith.truncf %21 : vector<16x32xf32> to vector<16x32xbf16>
    %c2 = arith.constant 2 : index
    %c0_19 = arith.constant 0 : index
    %c0_20 = arith.constant 0 : index
    %23 = vector.load %arg2[%c2, %c0_19, %c0_20] : memref<5x32x64xbf16, #tpu.memory_space<vmem>>, vector<1x32x64xbf16>
    %24 = vector.shape_cast %23 : vector<1x32x64xbf16> to vector<32x64xbf16>
    %cst_21 = arith.constant dense<0.000000e+00> : vector<16x64xf32>
    %25 = tpu.matmul %22, %24, %cst_21 {dimension_numbers = #tpu.dot_dimension_numbers<[1], [0], [0], [1], [0, 0, 1, 1], [], []>} : vector<16x32xbf16>, vector<32x64xbf16>, vector<16x64xf32> -> vector<16x64xf32>
    %26 = arith.addf %20, %25 : vector<16x64xf32>
    %c9 = arith.constant 9 : index
    %c0_22 = arith.constant 0 : index
    %27 = vector.load %arg6[%c9, %c0_22] : memref<32x32xf32, #tpu.memory_space<vmem>>, vector<16x32xf32>
    %28 = arith.truncf %27 : vector<16x32xf32> to vector<16x32xbf16>
    %c3 = arith.constant 3 : index
    %c0_23 = arith.constant 0 : index
    %c0_24 = arith.constant 0 : index
    %29 = vector.load %arg2[%c3, %c0_23, %c0_24] : memref<5x32x64xbf16, #tpu.memory_space<vmem>>, vector<1x32x64xbf16>
    %30 = vector.shape_cast %29 : vector<1x32x64xbf16> to vector<32x64xbf16>
    %cst_25 = arith.constant dense<0.000000e+00> : vector<16x64xf32>
    %31 = tpu.matmul %28, %30, %cst_25 {dimension_numbers = #tpu.dot_dimension_numbers<[1], [0], [0], [1], [0, 0, 1, 1], [], []>} : vector<16x32xbf16>, vector<32x64xbf16>, vector<16x64xf32> -> vector<16x64xf32>
    %32 = arith.addf %26, %31 : vector<16x64xf32>
    %c10 = arith.constant 10 : index
    %c0_26 = arith.constant 0 : index
    %33 = vector.load %arg6[%c10, %c0_26] : memref<32x32xf32, #tpu.memory_space<vmem>>, vector<16x32xf32>
    %34 = arith.truncf %33 : vector<16x32xf32> to vector<16x32xbf16>
    %c4 = arith.constant 4 : index
    %c0_27 = arith.constant 0 : index
    %c0_28 = arith.constant 0 : index
    %35 = vector.load %arg2[%c4, %c0_27, %c0_28] : memref<5x32x64xbf16, #tpu.memory_space<vmem>>, vector<1x32x64xbf16>
    %36 = vector.shape_cast %35 : vector<1x32x64xbf16> to vector<32x64xbf16>
    %cst_29 = arith.constant dense<0.000000e+00> : vector<16x64xf32>
    %37 = tpu.matmul %34, %36, %cst_29 {dimension_numbers = #tpu.dot_dimension_numbers<[1], [0], [0], [1], [0, 0, 1, 1], [], []>} : vector<16x32xbf16>, vector<32x64xbf16>, vector<16x64xf32> -> vector<16x64xf32>
    %38 = arith.addf %32, %37 : vector<16x64xf32>
    %cst_30 = arith.constant 0.000000e+00 : f32
    %39 = vector.broadcast %cst_30 : f32 to vector<16x64xf32>
    %40 = arith.maximumf %38, %39 : vector<16x64xf32>
    %c0_31 = arith.constant 0 : index
    %c0_32 = arith.constant 0 : index
    %41 = vector.load %arg3[%c0_31, %c0_32] : memref<1x64xf32, #tpu.memory_space<vmem>>, vector<1x64xf32>
    %42 = vector.broadcast %41 : vector<1x64xf32> to vector<16x64xf32>
    %43 = arith.mulf %40, %42 : vector<16x64xf32>
    %c0_33 = arith.constant 0 : index
    %c0_34 = arith.constant 0 : index
    %44 = vector.load %arg4[%c0_33, %c0_34] : memref<1x64xf32, #tpu.memory_space<vmem>>, vector<1x64xf32>
    %45 = vector.broadcast %44 : vector<1x64xf32> to vector<16x64xf32>
    %46 = arith.addf %43, %45 : vector<16x64xf32>
    %47 = arith.truncf %46 : vector<16x64xf32> to vector<16x64xbf16>
    %c0_35 = arith.constant 0 : index
    %c0_36 = arith.constant 0 : index
    %c0_37 = arith.constant 0 : index
    %48 = vector.load %arg5[%c0_35, %c0_36, %c0_37] : memref<1x16x64xbf16, #tpu.memory_space<vmem>>, vector<1x16x64xbf16>
    %49 = vector.shape_cast %48 : vector<1x16x64xbf16> to vector<16x64xbf16>
    %50 = vector.shape_cast %47 : vector<16x64xbf16> to vector<1x16x64xbf16>
    tpu.vector_store %arg5[%c0_35, %c0_36, %c0_37], %50 {strides = array<i32>} : memref<1x16x64xbf16, #tpu.memory_space<vmem>>, vector<1x16x64xbf16>,
    return
  }
  func.func @transform_0(%arg0: i32) -> (i32, i32, i32) {
    %c0_i32 = arith.constant 0 : i32
    %c0_i32_0 = arith.constant 0 : i32
    %c0_i32_1 = arith.constant 0 : i32
    return %arg0, %c0_i32, %c0_i32_0 : i32, i32, i32
  }
  func.func @transform_1(%arg0: i32) -> (i32, i32, i32) {
    %c0_i32 = arith.constant 0 : i32
    %c0_i32_0 = arith.constant 0 : i32
    %c0_i32_1 = arith.constant 0 : i32
    %c0_i32_2 = arith.constant 0 : i32
    return %c0_i32, %c0_i32_0, %c0_i32_1 : i32, i32, i32
  }
  func.func @transform_2(%arg0: i32) -> (i32, i32) {
    %c0_i32 = arith.constant 0 : i32
    %c0_i32_0 = arith.constant 0 : i32
    %c0_i32_1 = arith.constant 0 : i32
    return %c0_i32, %c0_i32_0 : i32, i32
  }
  func.func @transform_3(%arg0: i32) -> (i32, i32) {
    %c0_i32 = arith.constant 0 : i32
    %c0_i32_0 = arith.constant 0 : i32
    %c0_i32_1 = arith.constant 0 : i32
    return %c0_i32, %c0_i32_0 : i32, i32
  }
  func.func @transform_4(%arg0: i32) -> (i32, i32, i32) {
    %c0_i32 = arith.constant 0 : i32
    %c0_i32_0 = arith.constant 0 : i32
    %c0_i32_1 = arith.constant 0 : i32
    return %arg0, %c0_i32, %c0_i32_0 : i32, i32, i32
  }
}

module attributes {stable_mosaic.version = 11 : i64} {
  func.func @_se_res2_kernel(%arg0: i32, %arg1: memref<1x16x64xbf16, #tpu.memory_space<vmem>>, %arg2: memref<64x64xbf16, #tpu.memory_space<vmem>>, %arg3: memref<1x64xf32, #tpu.memory_space<vmem>>, %arg4: memref<1x64xf32, #tpu.memory_space<vmem>>, %arg5: memref<7x3x8x8xbf16, #tpu.memory_space<vmem>>, %arg6: memref<7x1x8xf32, #tpu.memory_space<vmem>>, %arg7: memref<7x1x8xf32, #tpu.memory_space<vmem>>, %arg8: memref<64x64xbf16, #tpu.memory_space<vmem>>, %arg9: memref<1x64xf32, #tpu.memory_space<vmem>>, %arg10: memref<1x64xf32, #tpu.memory_space<vmem>>, %arg11: memref<64x16xf32, #tpu.memory_space<vmem>>, %arg12: memref<1x16xf32, #tpu.memory_space<vmem>>, %arg13: memref<16x64xf32, #tpu.memory_space<vmem>>, %arg14: memref<1x64xf32, #tpu.memory_space<vmem>>, %arg15: memref<1x16x64xbf16, #tpu.memory_space<vmem>>, %arg16: memref<1x16x64xbf16, #tpu.memory_space<vmem>>, %arg17: memref<32x8xf32, #tpu.memory_space<vmem>>, %arg18: memref<16x64xf32, #tpu.memory_space<vmem>>) attributes {dimension_semantics = [#tpu.dimension_semantics<parallel>], iteration_bounds = array<i64: 2>, scalar_prefetch = 0 : i64, scratch_operands = 2 : i64, tpu.core_type = #tpu.core_type<tc>, window_params = [{transform_indices = @transform_0, window_bounds = array<i64: 1, 16, 64>}, {pipeline_mode = #tpu.pipeline_mode<synchronous>, transform_indices = @transform_1, window_bounds = array<i64: 64, 64>}, {pipeline_mode = #tpu.pipeline_mode<synchronous>, transform_indices = @transform_2, window_bounds = array<i64: 1, 64>}, {pipeline_mode = #tpu.pipeline_mode<synchronous>, transform_indices = @transform_3, window_bounds = array<i64: 1, 64>}, {pipeline_mode = #tpu.pipeline_mode<synchronous>, transform_indices = @transform_4, window_bounds = array<i64: 7, 3, 8, 8>}, {pipeline_mode = #tpu.pipeline_mode<synchronous>, transform_indices = @transform_5, window_bounds = array<i64: 7, 1, 8>}, {pipeline_mode = #tpu.pipeline_mode<synchronous>, transform_indices = @transform_6, window_bounds = array<i64: 7, 1, 8>}, {pipeline_mode = #tpu.pipeline_mode<synchronous>, transform_indices = @transform_7, window_bounds = array<i64: 64, 64>}, {pipeline_mode = #tpu.pipeline_mode<synchronous>, transform_indices = @transform_8, window_bounds = array<i64: 1, 64>}, {pipeline_mode = #tpu.pipeline_mode<synchronous>, transform_indices = @transform_9, window_bounds = array<i64: 1, 64>}, {pipeline_mode = #tpu.pipeline_mode<synchronous>, transform_indices = @transform_10, window_bounds = array<i64: 64, 16>}, {pipeline_mode = #tpu.pipeline_mode<synchronous>, transform_indices = @transform_11, window_bounds = array<i64: 1, 16>}, {pipeline_mode = #tpu.pipeline_mode<synchronous>, transform_indices = @transform_12, window_bounds = array<i64: 16, 64>}, {pipeline_mode = #tpu.pipeline_mode<synchronous>, transform_indices = @transform_13, window_bounds = array<i64: 1, 64>}, {transform_indices = @transform_14, window_bounds = array<i64: 1, 16, 64>}, {transform_indices = @transform_15, window_bounds = array<i64: 1, 16, 64>}]} {
    %c0 = arith.constant 0 : index
    %c0_0 = arith.constant 0 : index
    %c0_1 = arith.constant 0 : index
    %0 = vector.load %arg1[%c0, %c0_0, %c0_1] : memref<1x16x64xbf16, #tpu.memory_space<vmem>>, vector<1x16x64xbf16>
    %1 = vector.shape_cast %0 : vector<1x16x64xbf16> to vector<16x64xbf16>
    %c0_2 = arith.constant 0 : index
    %c0_3 = arith.constant 0 : index
    %2 = vector.load %arg2[%c0_2, %c0_3] : memref<64x64xbf16, #tpu.memory_space<vmem>>, vector<64x64xbf16>
    %cst = arith.constant dense<0.000000e+00> : vector<16x64xf32>
    %3 = tpu.matmul %1, %2, %cst {dimension_numbers = #tpu.dot_dimension_numbers<[1], [0], [0], [1], [0, 0, 1, 1], [], []>} : vector<16x64xbf16>, vector<64x64xbf16>, vector<16x64xf32> -> vector<16x64xf32>
    %cst_4 = arith.constant 0.000000e+00 : f32
    %4 = vector.broadcast %cst_4 : f32 to vector<16x64xf32>
    %5 = arith.maximumf %3, %4 : vector<16x64xf32>
    %c0_5 = arith.constant 0 : index
    %c0_6 = arith.constant 0 : index
    %6 = vector.load %arg3[%c0_5, %c0_6] : memref<1x64xf32, #tpu.memory_space<vmem>>, vector<1x64xf32>
    %7 = vector.broadcast %6 : vector<1x64xf32> to vector<16x64xf32>
    %8 = arith.mulf %5, %7 : vector<16x64xf32>
    %c0_7 = arith.constant 0 : index
    %c0_8 = arith.constant 0 : index
    %9 = vector.load %arg4[%c0_7, %c0_8] : memref<1x64xf32, #tpu.memory_space<vmem>>, vector<1x64xf32>
    %10 = vector.broadcast %9 : vector<1x64xf32> to vector<16x64xf32>
    %11 = arith.addf %8, %10 : vector<16x64xf32>
    %c0_9 = arith.constant 0 : index
    %c0_10 = arith.constant 0 : index
    %12 = vector.load %arg18[%c0_9, %c0_10] : memref<16x64xf32, #tpu.memory_space<vmem>>, vector<16x64xf32>
    tpu.vector_store %arg18[%c0_9, %c0_10], %11 {strides = array<i32>} : memref<16x64xf32, #tpu.memory_space<vmem>>, vector<16x64xf32>,
    %cst_11 = arith.constant 0.000000e+00 : f32
    %13 = vector.broadcast %cst_11 : f32 to vector<8x8xf32>
    %c0_12 = arith.constant 0 : index
    %c0_13 = arith.constant 0 : index
    %14 = vector.load %arg17[%c0_12, %c0_13] : memref<32x8xf32, #tpu.memory_space<vmem>>, vector<8x8xf32>
    tpu.vector_store %arg17[%c0_12, %c0_13], %13 {strides = array<i32>} : memref<32x8xf32, #tpu.memory_space<vmem>>, vector<8x8xf32>,
    %cst_14 = arith.constant 0.000000e+00 : f32
    %15 = vector.broadcast %cst_14 : f32 to vector<8x8xf32>
    %c24 = arith.constant 24 : index
    %c0_15 = arith.constant 0 : index
    %16 = vector.load %arg17[%c24, %c0_15] : memref<32x8xf32, #tpu.memory_space<vmem>>, vector<8x8xf32>
    tpu.vector_store %arg17[%c24, %c0_15], %15 {strides = array<i32>} : memref<32x8xf32, #tpu.memory_space<vmem>>, vector<8x8xf32>,
    %c0_16 = arith.constant 0 : index
    %c0_17 = arith.constant 0 : index
    %17 = vector.load %arg18[%c0_16, %c0_17] : memref<16x64xf32, #tpu.memory_space<vmem>>, vector<16x8xf32>
    %c8 = arith.constant 8 : index
    %c0_18 = arith.constant 0 : index
    %18 = vector.load %arg17[%c8, %c0_18] : memref<32x8xf32, #tpu.memory_space<vmem>>, vector<16x8xf32>
    tpu.vector_store %arg17[%c8, %c0_18], %17 {strides = array<i32>} : memref<32x8xf32, #tpu.memory_space<vmem>>, vector<16x8xf32>,
    %cst_19 = arith.constant 0.000000e+00 : f32
    %19 = vector.broadcast %cst_19 : f32 to vector<16x8xf32>
    %c6 = arith.constant 6 : index
    %c0_20 = arith.constant 0 : index
    %20 = vector.load %arg17[%c6, %c0_20] : memref<32x8xf32, #tpu.memory_space<vmem>>, vector<16x8xf32>
    %21 = arith.truncf %20 : vector<16x8xf32> to vector<16x8xbf16>
    %c0_21 = arith.constant 0 : index
    %c0_22 = arith.constant 0 : index
    %c0_23 = arith.constant 0 : index
    %c0_24 = arith.constant 0 : index
    %22 = vector.load %arg5[%c0_21, %c0_22, %c0_23, %c0_24] : memref<7x3x8x8xbf16, #tpu.memory_space<vmem>>, vector<1x1x8x8xbf16>
    %23 = vector.shape_cast %22 : vector<1x1x8x8xbf16> to vector<8x8xbf16>
    %cst_25 = arith.constant dense<0.000000e+00> : vector<16x8xf32>
    %24 = tpu.matmul %21, %23, %cst_25 {dimension_numbers = #tpu.dot_dimension_numbers<[1], [0], [0], [1], [0, 0, 1, 1], [], []>} : vector<16x8xbf16>, vector<8x8xbf16>, vector<16x8xf32> -> vector<16x8xf32>
    %25 = arith.addf %19, %24 : vector<16x8xf32>
    %c8_26 = arith.constant 8 : index
    %c0_27 = arith.constant 0 : index
    %26 = vector.load %arg17[%c8_26, %c0_27] : memref<32x8xf32, #tpu.memory_space<vmem>>, vector<16x8xf32>
    %27 = arith.truncf %26 : vector<16x8xf32> to vector<16x8xbf16>
    %c0_28 = arith.constant 0 : index
    %c1 = arith.constant 1 : index
    %c0_29 = arith.constant 0 : index
    %c0_30 = arith.constant 0 : index
    %28 = vector.load %arg5[%c0_28, %c1, %c0_29, %c0_30] : memref<7x3x8x8xbf16, #tpu.memory_space<vmem>>, vector<1x1x8x8xbf16>
    %29 = vector.shape_cast %28 : vector<1x1x8x8xbf16> to vector<8x8xbf16>
    %cst_31 = arith.constant dense<0.000000e+00> : vector<16x8xf32>
    %30 = tpu.matmul %27, %29, %cst_31 {dimension_numbers = #tpu.dot_dimension_numbers<[1], [0], [0], [1], [0, 0, 1, 1], [], []>} : vector<16x8xbf16>, vector<8x8xbf16>, vector<16x8xf32> -> vector<16x8xf32>
    %31 = arith.addf %25, %30 : vector<16x8xf32>
    %c10 = arith.constant 10 : index
    %c0_32 = arith.constant 0 : index
    %32 = vector.load %arg17[%c10, %c0_32] : memref<32x8xf32, #tpu.memory_space<vmem>>, vector<16x8xf32>
    %33 = arith.truncf %32 : vector<16x8xf32> to vector<16x8xbf16>
    %c0_33 = arith.constant 0 : index
    %c2 = arith.constant 2 : index
    %c0_34 = arith.constant 0 : index
    %c0_35 = arith.constant 0 : index
    %34 = vector.load %arg5[%c0_33, %c2, %c0_34, %c0_35] : memref<7x3x8x8xbf16, #tpu.memory_space<vmem>>, vector<1x1x8x8xbf16>
    %35 = vector.shape_cast %34 : vector<1x1x8x8xbf16> to vector<8x8xbf16>
    %cst_36 = arith.constant dense<0.000000e+00> : vector<16x8xf32>
    %36 = tpu.matmul %33, %35, %cst_36 {dimension_numbers = #tpu.dot_dimension_numbers<[1], [0], [0], [1], [0, 0, 1, 1], [], []>} : vector<16x8xbf16>, vector<8x8xbf16>, vector<16x8xf32> -> vector<16x8xf32>
    %37 = arith.addf %31, %36 : vector<16x8xf32>
    %cst_37 = arith.constant 0.000000e+00 : f32
    %38 = vector.broadcast %cst_37 : f32 to vector<16x8xf32>
    %39 = arith.maximumf %37, %38 : vector<16x8xf32>
    %c0_38 = arith.constant 0 : index
    %c0_39 = arith.constant 0 : index
    %c0_40 = arith.constant 0 : index
    %40 = vector.load %arg6[%c0_38, %c0_39, %c0_40] : memref<7x1x8xf32, #tpu.memory_space<vmem>>, vector<1x1x8xf32>
    %41 = vector.shape_cast %40 : vector<1x1x8xf32> to vector<1x8xf32>
    %42 = vector.broadcast %41 : vector<1x8xf32> to vector<16x8xf32>
    %43 = arith.mulf %39, %42 : vector<16x8xf32>
    %c0_41 = arith.constant 0 : index
    %c0_42 = arith.constant 0 : index
    %c0_43 = arith.constant 0 : index
    %44 = vector.load %arg7[%c0_41, %c0_42, %c0_43] : memref<7x1x8xf32, #tpu.memory_space<vmem>>, vector<1x1x8xf32>
    %45 = vector.shape_cast %44 : vector<1x1x8xf32> to vector<1x8xf32>
    %46 = vector.broadcast %45 : vector<1x8xf32> to vector<16x8xf32>
    %47 = arith.addf %43, %46 : vector<16x8xf32>
    %c0_44 = arith.constant 0 : index
    %c0_45 = arith.constant 0 : index
    %48 = vector.load %arg18[%c0_44, %c0_45] : memref<16x64xf32, #tpu.memory_space<vmem>>, vector<16x8xf32>
    tpu.vector_store %arg18[%c0_44, %c0_45], %47 {strides = array<i32>} : memref<16x64xf32, #tpu.memory_space<vmem>>, vector<16x8xf32>,
    %c0_46 = arith.constant 0 : index
    %c8_47 = arith.constant 8 : index
    %49 = vector.load %arg18[%c0_46, %c8_47] : memref<16x64xf32, #tpu.memory_space<vmem>>, vector<16x8xf32>
    %c0_48 = arith.constant 0 : index
    %c0_49 = arith.constant 0 : index
    %50 = vector.load %arg18[%c0_48, %c0_49] : memref<16x64xf32, #tpu.memory_space<vmem>>, vector<16x8xf32>
    %51 = arith.addf %49, %50 : vector<16x8xf32>
    %c8_50 = arith.constant 8 : index
    %c0_51 = arith.constant 0 : index
    %52 = vector.load %arg17[%c8_50, %c0_51] : memref<32x8xf32, #tpu.memory_space<vmem>>, vector<16x8xf32>
    tpu.vector_store %arg17[%c8_50, %c0_51], %51 {strides = array<i32>} : memref<32x8xf32, #tpu.memory_space<vmem>>, vector<16x8xf32>,
    %cst_52 = arith.constant 0.000000e+00 : f32
    %53 = vector.broadcast %cst_52 : f32 to vector<16x8xf32>
    %c6_53 = arith.constant 6 : index
    %c0_54 = arith.constant 0 : index
    %54 = vector.load %arg17[%c6_53, %c0_54] : memref<32x8xf32, #tpu.memory_space<vmem>>, vector<16x8xf32>
    %55 = arith.truncf %54 : vector<16x8xf32> to vector<16x8xbf16>
    %c1_55 = arith.constant 1 : index
    %c0_56 = arith.constant 0 : index
    %c0_57 = arith.constant 0 : index
    %c0_58 = arith.constant 0 : index
    %56 = vector.load %arg5[%c1_55, %c0_56, %c0_57, %c0_58] : memref<7x3x8x8xbf16, #tpu.memory_space<vmem>>, vector<1x1x8x8xbf16>
    %57 = vector.shape_cast %56 : vector<1x1x8x8xbf16> to vector<8x8xbf16>
    %cst_59 = arith.constant dense<0.000000e+00> : vector<16x8xf32>
    %58 = tpu.matmul %55, %57, %cst_59 {dimension_numbers = #tpu.dot_dimension_numbers<[1], [0], [0], [1], [0, 0, 1, 1], [], []>} : vector<16x8xbf16>, vector<8x8xbf16>, vector<16x8xf32> -> vector<16x8xf32>
    %59 = arith.addf %53, %58 : vector<16x8xf32>
    %c8_60 = arith.constant 8 : index
    %c0_61 = arith.constant 0 : index
    %60 = vector.load %arg17[%c8_60, %c0_61] : memref<32x8xf32, #tpu.memory_space<vmem>>, vector<16x8xf32>
    %61 = arith.truncf %60 : vector<16x8xf32> to vector<16x8xbf16>
    %c1_62 = arith.constant 1 : index
    %c1_63 = arith.constant 1 : index
    %c0_64 = arith.constant 0 : index
    %c0_65 = arith.constant 0 : index
    %62 = vector.load %arg5[%c1_62, %c1_63, %c0_64, %c0_65] : memref<7x3x8x8xbf16, #tpu.memory_space<vmem>>, vector<1x1x8x8xbf16>
    %63 = vector.shape_cast %62 : vector<1x1x8x8xbf16> to vector<8x8xbf16>
    %cst_66 = arith.constant dense<0.000000e+00> : vector<16x8xf32>
    %64 = tpu.matmul %61, %63, %cst_66 {dimension_numbers = #tpu.dot_dimension_numbers<[1], [0], [0], [1], [0, 0, 1, 1], [], []>} : vector<16x8xbf16>, vector<8x8xbf16>, vector<16x8xf32> -> vector<16x8xf32>
    %65 = arith.addf %59, %64 : vector<16x8xf32>
    %c10_67 = arith.constant 10 : index
    %c0_68 = arith.constant 0 : index
    %66 = vector.load %arg17[%c10_67, %c0_68] : memref<32x8xf32, #tpu.memory_space<vmem>>, vector<16x8xf32>
    %67 = arith.truncf %66 : vector<16x8xf32> to vector<16x8xbf16>
    %c1_69 = arith.constant 1 : index
    %c2_70 = arith.constant 2 : index
    %c0_71 = arith.constant 0 : index
    %c0_72 = arith.constant 0 : index
    %68 = vector.load %arg5[%c1_69, %c2_70, %c0_71, %c0_72] : memref<7x3x8x8xbf16, #tpu.memory_space<vmem>>, vector<1x1x8x8xbf16>
    %69 = vector.shape_cast %68 : vector<1x1x8x8xbf16> to vector<8x8xbf16>
    %cst_73 = arith.constant dense<0.000000e+00> : vector<16x8xf32>
    %70 = tpu.matmul %67, %69, %cst_73 {dimension_numbers = #tpu.dot_dimension_numbers<[1], [0], [0], [1], [0, 0, 1, 1], [], []>} : vector<16x8xbf16>, vector<8x8xbf16>, vector<16x8xf32> -> vector<16x8xf32>
    %71 = arith.addf %65, %70 : vector<16x8xf32>
    %cst_74 = arith.constant 0.000000e+00 : f32
    %72 = vector.broadcast %cst_74 : f32 to vector<16x8xf32>
    %73 = arith.maximumf %71, %72 : vector<16x8xf32>
    %c1_75 = arith.constant 1 : index
    %c0_76 = arith.constant 0 : index
    %c0_77 = arith.constant 0 : index
    %74 = vector.load %arg6[%c1_75, %c0_76, %c0_77] : memref<7x1x8xf32, #tpu.memory_space<vmem>>, vector<1x1x8xf32>
    %75 = vector.shape_cast %74 : vector<1x1x8xf32> to vector<1x8xf32>
    %76 = vector.broadcast %75 : vector<1x8xf32> to vector<16x8xf32>
    %77 = arith.mulf %73, %76 : vector<16x8xf32>
    %c1_78 = arith.constant 1 : index
    %c0_79 = arith.constant 0 : index
    %c0_80 = arith.constant 0 : index
    %78 = vector.load %arg7[%c1_78, %c0_79, %c0_80] : memref<7x1x8xf32, #tpu.memory_space<vmem>>, vector<1x1x8xf32>
    %79 = vector.shape_cast %78 : vector<1x1x8xf32> to vector<1x8xf32>
    %80 = vector.broadcast %79 : vector<1x8xf32> to vector<16x8xf32>
    %81 = arith.addf %77, %80 : vector<16x8xf32>
    %c0_81 = arith.constant 0 : index
    %c8_82 = arith.constant 8 : index
    %82 = vector.load %arg18[%c0_81, %c8_82] : memref<16x64xf32, #tpu.memory_space<vmem>>, vector<16x8xf32>
    tpu.vector_store %arg18[%c0_81, %c8_82], %81 {strides = array<i32>} : memref<16x64xf32, #tpu.memory_space<vmem>>, vector<16x8xf32>,
    %c0_83 = arith.constant 0 : index
    %c16 = arith.constant 16 : index
    %83 = vector.load %arg18[%c0_83, %c16] : memref<16x64xf32, #tpu.memory_space<vmem>>, vector<16x8xf32>
    %c0_84 = arith.constant 0 : index
    %c8_85 = arith.constant 8 : index
    %84 = vector.load %arg18[%c0_84, %c8_85] : memref<16x64xf32, #tpu.memory_space<vmem>>, vector<16x8xf32>
    %85 = arith.addf %83, %84 : vector<16x8xf32>
    %c8_86 = arith.constant 8 : index
    %c0_87 = arith.constant 0 : index
    %86 = vector.load %arg17[%c8_86, %c0_87] : memref<32x8xf32, #tpu.memory_space<vmem>>, vector<16x8xf32>
    tpu.vector_store %arg17[%c8_86, %c0_87], %85 {strides = array<i32>} : memref<32x8xf32, #tpu.memory_space<vmem>>, vector<16x8xf32>,
    %cst_88 = arith.constant 0.000000e+00 : f32
    %87 = vector.broadcast %cst_88 : f32 to vector<16x8xf32>
    %c6_89 = arith.constant 6 : index
    %c0_90 = arith.constant 0 : index
    %88 = vector.load %arg17[%c6_89, %c0_90] : memref<32x8xf32, #tpu.memory_space<vmem>>, vector<16x8xf32>
    %89 = arith.truncf %88 : vector<16x8xf32> to vector<16x8xbf16>
    %c2_91 = arith.constant 2 : index
    %c0_92 = arith.constant 0 : index
    %c0_93 = arith.constant 0 : index
    %c0_94 = arith.constant 0 : index
    %90 = vector.load %arg5[%c2_91, %c0_92, %c0_93, %c0_94] : memref<7x3x8x8xbf16, #tpu.memory_space<vmem>>, vector<1x1x8x8xbf16>
    %91 = vector.shape_cast %90 : vector<1x1x8x8xbf16> to vector<8x8xbf16>
    %cst_95 = arith.constant dense<0.000000e+00> : vector<16x8xf32>
    %92 = tpu.matmul %89, %91, %cst_95 {dimension_numbers = #tpu.dot_dimension_numbers<[1], [0], [0], [1], [0, 0, 1, 1], [], []>} : vector<16x8xbf16>, vector<8x8xbf16>, vector<16x8xf32> -> vector<16x8xf32>
    %93 = arith.addf %87, %92 : vector<16x8xf32>
    %c8_96 = arith.constant 8 : index
    %c0_97 = arith.constant 0 : index
    %94 = vector.load %arg17[%c8_96, %c0_97] : memref<32x8xf32, #tpu.memory_space<vmem>>, vector<16x8xf32>
    %95 = arith.truncf %94 : vector<16x8xf32> to vector<16x8xbf16>
    %c2_98 = arith.constant 2 : index
    %c1_99 = arith.constant 1 : index
    %c0_100 = arith.constant 0 : index
    %c0_101 = arith.constant 0 : index
    %96 = vector.load %arg5[%c2_98, %c1_99, %c0_100, %c0_101] : memref<7x3x8x8xbf16, #tpu.memory_space<vmem>>, vector<1x1x8x8xbf16>
    %97 = vector.shape_cast %96 : vector<1x1x8x8xbf16> to vector<8x8xbf16>
    %cst_102 = arith.constant dense<0.000000e+00> : vector<16x8xf32>
    %98 = tpu.matmul %95, %97, %cst_102 {dimension_numbers = #tpu.dot_dimension_numbers<[1], [0], [0], [1], [0, 0, 1, 1], [], []>} : vector<16x8xbf16>, vector<8x8xbf16>, vector<16x8xf32> -> vector<16x8xf32>
    %99 = arith.addf %93, %98 : vector<16x8xf32>
    %c10_103 = arith.constant 10 : index
    %c0_104 = arith.constant 0 : index
    %100 = vector.load %arg17[%c10_103, %c0_104] : memref<32x8xf32, #tpu.memory_space<vmem>>, vector<16x8xf32>
    %101 = arith.truncf %100 : vector<16x8xf32> to vector<16x8xbf16>
    %c2_105 = arith.constant 2 : index
    %c2_106 = arith.constant 2 : index
    %c0_107 = arith.constant 0 : index
    %c0_108 = arith.constant 0 : index
    %102 = vector.load %arg5[%c2_105, %c2_106, %c0_107, %c0_108] : memref<7x3x8x8xbf16, #tpu.memory_space<vmem>>, vector<1x1x8x8xbf16>
    %103 = vector.shape_cast %102 : vector<1x1x8x8xbf16> to vector<8x8xbf16>
    %cst_109 = arith.constant dense<0.000000e+00> : vector<16x8xf32>
    %104 = tpu.matmul %101, %103, %cst_109 {dimension_numbers = #tpu.dot_dimension_numbers<[1], [0], [0], [1], [0, 0, 1, 1], [], []>} : vector<16x8xbf16>, vector<8x8xbf16>, vector<16x8xf32> -> vector<16x8xf32>
    %105 = arith.addf %99, %104 : vector<16x8xf32>
    %cst_110 = arith.constant 0.000000e+00 : f32
    %106 = vector.broadcast %cst_110 : f32 to vector<16x8xf32>
    %107 = arith.maximumf %105, %106 : vector<16x8xf32>
    %c2_111 = arith.constant 2 : index
    %c0_112 = arith.constant 0 : index
    %c0_113 = arith.constant 0 : index
    %108 = vector.load %arg6[%c2_111, %c0_112, %c0_113] : memref<7x1x8xf32, #tpu.memory_space<vmem>>, vector<1x1x8xf32>
    %109 = vector.shape_cast %108 : vector<1x1x8xf32> to vector<1x8xf32>
    %110 = vector.broadcast %109 : vector<1x8xf32> to vector<16x8xf32>
    %111 = arith.mulf %107, %110 : vector<16x8xf32>
    %c2_114 = arith.constant 2 : index
    %c0_115 = arith.constant 0 : index
    %c0_116 = arith.constant 0 : index
    %112 = vector.load %arg7[%c2_114, %c0_115, %c0_116] : memref<7x1x8xf32, #tpu.memory_space<vmem>>, vector<1x1x8xf32>
    %113 = vector.shape_cast %112 : vector<1x1x8xf32> to vector<1x8xf32>
    %114 = vector.broadcast %113 : vector<1x8xf32> to vector<16x8xf32>
    %115 = arith.addf %111, %114 : vector<16x8xf32>
    %c0_117 = arith.constant 0 : index
    %c16_118 = arith.constant 16 : index
    %116 = vector.load %arg18[%c0_117, %c16_118] : memref<16x64xf32, #tpu.memory_space<vmem>>, vector<16x8xf32>
    tpu.vector_store %arg18[%c0_117, %c16_118], %115 {strides = array<i32>} : memref<16x64xf32, #tpu.memory_space<vmem>>, vector<16x8xf32>,
    %c0_119 = arith.constant 0 : index
    %c24_120 = arith.constant 24 : index
    %117 = vector.load %arg18[%c0_119, %c24_120] : memref<16x64xf32, #tpu.memory_space<vmem>>, vector<16x8xf32>
    %c0_121 = arith.constant 0 : index
    %c16_122 = arith.constant 16 : index
    %118 = vector.load %arg18[%c0_121, %c16_122] : memref<16x64xf32, #tpu.memory_space<vmem>>, vector<16x8xf32>
    %119 = arith.addf %117, %118 : vector<16x8xf32>
    %c8_123 = arith.constant 8 : index
    %c0_124 = arith.constant 0 : index
    %120 = vector.load %arg17[%c8_123, %c0_124] : memref<32x8xf32, #tpu.memory_space<vmem>>, vector<16x8xf32>
    tpu.vector_store %arg17[%c8_123, %c0_124], %119 {strides = array<i32>} : memref<32x8xf32, #tpu.memory_space<vmem>>, vector<16x8xf32>,
    %cst_125 = arith.constant 0.000000e+00 : f32
    %121 = vector.broadcast %cst_125 : f32 to vector<16x8xf32>
    %c6_126 = arith.constant 6 : index
    %c0_127 = arith.constant 0 : index
    %122 = vector.load %arg17[%c6_126, %c0_127] : memref<32x8xf32, #tpu.memory_space<vmem>>, vector<16x8xf32>
    %123 = arith.truncf %122 : vector<16x8xf32> to vector<16x8xbf16>
    %c3 = arith.constant 3 : index
    %c0_128 = arith.constant 0 : index
    %c0_129 = arith.constant 0 : index
    %c0_130 = arith.constant 0 : index
    %124 = vector.load %arg5[%c3, %c0_128, %c0_129, %c0_130] : memref<7x3x8x8xbf16, #tpu.memory_space<vmem>>, vector<1x1x8x8xbf16>
    %125 = vector.shape_cast %124 : vector<1x1x8x8xbf16> to vector<8x8xbf16>
    %cst_131 = arith.constant dense<0.000000e+00> : vector<16x8xf32>
    %126 = tpu.matmul %123, %125, %cst_131 {dimension_numbers = #tpu.dot_dimension_numbers<[1], [0], [0], [1], [0, 0, 1, 1], [], []>} : vector<16x8xbf16>, vector<8x8xbf16>, vector<16x8xf32> -> vector<16x8xf32>
    %127 = arith.addf %121, %126 : vector<16x8xf32>
    %c8_132 = arith.constant 8 : index
    %c0_133 = arith.constant 0 : index
    %128 = vector.load %arg17[%c8_132, %c0_133] : memref<32x8xf32, #tpu.memory_space<vmem>>, vector<16x8xf32>
    %129 = arith.truncf %128 : vector<16x8xf32> to vector<16x8xbf16>
    %c3_134 = arith.constant 3 : index
    %c1_135 = arith.constant 1 : index
    %c0_136 = arith.constant 0 : index
    %c0_137 = arith.constant 0 : index
    %130 = vector.load %arg5[%c3_134, %c1_135, %c0_136, %c0_137] : memref<7x3x8x8xbf16, #tpu.memory_space<vmem>>, vector<1x1x8x8xbf16>
    %131 = vector.shape_cast %130 : vector<1x1x8x8xbf16> to vector<8x8xbf16>
    %cst_138 = arith.constant dense<0.000000e+00> : vector<16x8xf32>
    %132 = tpu.matmul %129, %131, %cst_138 {dimension_numbers = #tpu.dot_dimension_numbers<[1], [0], [0], [1], [0, 0, 1, 1], [], []>} : vector<16x8xbf16>, vector<8x8xbf16>, vector<16x8xf32> -> vector<16x8xf32>
    %133 = arith.addf %127, %132 : vector<16x8xf32>
    %c10_139 = arith.constant 10 : index
    %c0_140 = arith.constant 0 : index
    %134 = vector.load %arg17[%c10_139, %c0_140] : memref<32x8xf32, #tpu.memory_space<vmem>>, vector<16x8xf32>
    %135 = arith.truncf %134 : vector<16x8xf32> to vector<16x8xbf16>
    %c3_141 = arith.constant 3 : index
    %c2_142 = arith.constant 2 : index
    %c0_143 = arith.constant 0 : index
    %c0_144 = arith.constant 0 : index
    %136 = vector.load %arg5[%c3_141, %c2_142, %c0_143, %c0_144] : memref<7x3x8x8xbf16, #tpu.memory_space<vmem>>, vector<1x1x8x8xbf16>
    %137 = vector.shape_cast %136 : vector<1x1x8x8xbf16> to vector<8x8xbf16>
    %cst_145 = arith.constant dense<0.000000e+00> : vector<16x8xf32>
    %138 = tpu.matmul %135, %137, %cst_145 {dimension_numbers = #tpu.dot_dimension_numbers<[1], [0], [0], [1], [0, 0, 1, 1], [], []>} : vector<16x8xbf16>, vector<8x8xbf16>, vector<16x8xf32> -> vector<16x8xf32>
    %139 = arith.addf %133, %138 : vector<16x8xf32>
    %cst_146 = arith.constant 0.000000e+00 : f32
    %140 = vector.broadcast %cst_146 : f32 to vector<16x8xf32>
    %141 = arith.maximumf %139, %140 : vector<16x8xf32>
    %c3_147 = arith.constant 3 : index
    %c0_148 = arith.constant 0 : index
    %c0_149 = arith.constant 0 : index
    %142 = vector.load %arg6[%c3_147, %c0_148, %c0_149] : memref<7x1x8xf32, #tpu.memory_space<vmem>>, vector<1x1x8xf32>
    %143 = vector.shape_cast %142 : vector<1x1x8xf32> to vector<1x8xf32>
    %144 = vector.broadcast %143 : vector<1x8xf32> to vector<16x8xf32>
    %145 = arith.mulf %141, %144 : vector<16x8xf32>
    %c3_150 = arith.constant 3 : index
    %c0_151 = arith.constant 0 : index
    %c0_152 = arith.constant 0 : index
    %146 = vector.load %arg7[%c3_150, %c0_151, %c0_152] : memref<7x1x8xf32, #tpu.memory_space<vmem>>, vector<1x1x8xf32>
    %147 = vector.shape_cast %146 : vector<1x1x8xf32> to vector<1x8xf32>
    %148 = vector.broadcast %147 : vector<1x8xf32> to vector<16x8xf32>
    %149 = arith.addf %145, %148 : vector<16x8xf32>
    %c0_153 = arith.constant 0 : index
    %c24_154 = arith.constant 24 : index
    %150 = vector.load %arg18[%c0_153, %c24_154] : memref<16x64xf32, #tpu.memory_space<vmem>>, vector<16x8xf32>
    tpu.vector_store %arg18[%c0_153, %c24_154], %149 {strides = array<i32>} : memref<16x64xf32, #tpu.memory_space<vmem>>, vector<16x8xf32>,
    %c0_155 = arith.constant 0 : index
    %c32 = arith.constant 32 : index
    %151 = vector.load %arg18[%c0_155, %c32] : memref<16x64xf32, #tpu.memory_space<vmem>>, vector<16x8xf32>
    %c0_156 = arith.constant 0 : index
    %c24_157 = arith.constant 24 : index
    %152 = vector.load %arg18[%c0_156, %c24_157] : memref<16x64xf32, #tpu.memory_space<vmem>>, vector<16x8xf32>
    %153 = arith.addf %151, %152 : vector<16x8xf32>
    %c8_158 = arith.constant 8 : index
    %c0_159 = arith.constant 0 : index
    %154 = vector.load %arg17[%c8_158, %c0_159] : memref<32x8xf32, #tpu.memory_space<vmem>>, vector<16x8xf32>
    tpu.vector_store %arg17[%c8_158, %c0_159], %153 {strides = array<i32>} : memref<32x8xf32, #tpu.memory_space<vmem>>, vector<16x8xf32>,
    %cst_160 = arith.constant 0.000000e+00 : f32
    %155 = vector.broadcast %cst_160 : f32 to vector<16x8xf32>
    %c6_161 = arith.constant 6 : index
    %c0_162 = arith.constant 0 : index
    %156 = vector.load %arg17[%c6_161, %c0_162] : memref<32x8xf32, #tpu.memory_space<vmem>>, vector<16x8xf32>
    %157 = arith.truncf %156 : vector<16x8xf32> to vector<16x8xbf16>
    %c4 = arith.constant 4 : index
    %c0_163 = arith.constant 0 : index
    %c0_164 = arith.constant 0 : index
    %c0_165 = arith.constant 0 : index
    %158 = vector.load %arg5[%c4, %c0_163, %c0_164, %c0_165] : memref<7x3x8x8xbf16, #tpu.memory_space<vmem>>, vector<1x1x8x8xbf16>
    %159 = vector.shape_cast %158 : vector<1x1x8x8xbf16> to vector<8x8xbf16>
    %cst_166 = arith.constant dense<0.000000e+00> : vector<16x8xf32>
    %160 = tpu.matmul %157, %159, %cst_166 {dimension_numbers = #tpu.dot_dimension_numbers<[1], [0], [0], [1], [0, 0, 1, 1], [], []>} : vector<16x8xbf16>, vector<8x8xbf16>, vector<16x8xf32> -> vector<16x8xf32>
    %161 = arith.addf %155, %160 : vector<16x8xf32>
    %c8_167 = arith.constant 8 : index
    %c0_168 = arith.constant 0 : index
    %162 = vector.load %arg17[%c8_167, %c0_168] : memref<32x8xf32, #tpu.memory_space<vmem>>, vector<16x8xf32>
    %163 = arith.truncf %162 : vector<16x8xf32> to vector<16x8xbf16>
    %c4_169 = arith.constant 4 : index
    %c1_170 = arith.constant 1 : index
    %c0_171 = arith.constant 0 : index
    %c0_172 = arith.constant 0 : index
    %164 = vector.load %arg5[%c4_169, %c1_170, %c0_171, %c0_172] : memref<7x3x8x8xbf16, #tpu.memory_space<vmem>>, vector<1x1x8x8xbf16>
    %165 = vector.shape_cast %164 : vector<1x1x8x8xbf16> to vector<8x8xbf16>
    %cst_173 = arith.constant dense<0.000000e+00> : vector<16x8xf32>
    %166 = tpu.matmul %163, %165, %cst_173 {dimension_numbers = #tpu.dot_dimension_numbers<[1], [0], [0], [1], [0, 0, 1, 1], [], []>} : vector<16x8xbf16>, vector<8x8xbf16>, vector<16x8xf32> -> vector<16x8xf32>
    %167 = arith.addf %161, %166 : vector<16x8xf32>
    %c10_174 = arith.constant 10 : index
    %c0_175 = arith.constant 0 : index
    %168 = vector.load %arg17[%c10_174, %c0_175] : memref<32x8xf32, #tpu.memory_space<vmem>>, vector<16x8xf32>
    %169 = arith.truncf %168 : vector<16x8xf32> to vector<16x8xbf16>
    %c4_176 = arith.constant 4 : index
    %c2_177 = arith.constant 2 : index
    %c0_178 = arith.constant 0 : index
    %c0_179 = arith.constant 0 : index
    %170 = vector.load %arg5[%c4_176, %c2_177, %c0_178, %c0_179] : memref<7x3x8x8xbf16, #tpu.memory_space<vmem>>, vector<1x1x8x8xbf16>
    %171 = vector.shape_cast %170 : vector<1x1x8x8xbf16> to vector<8x8xbf16>
    %cst_180 = arith.constant dense<0.000000e+00> : vector<16x8xf32>
    %172 = tpu.matmul %169, %171, %cst_180 {dimension_numbers = #tpu.dot_dimension_numbers<[1], [0], [0], [1], [0, 0, 1, 1], [], []>} : vector<16x8xbf16>, vector<8x8xbf16>, vector<16x8xf32> -> vector<16x8xf32>
    %173 = arith.addf %167, %172 : vector<16x8xf32>
    %cst_181 = arith.constant 0.000000e+00 : f32
    %174 = vector.broadcast %cst_181 : f32 to vector<16x8xf32>
    %175 = arith.maximumf %173, %174 : vector<16x8xf32>
    %c4_182 = arith.constant 4 : index
    %c0_183 = arith.constant 0 : index
    %c0_184 = arith.constant 0 : index
    %176 = vector.load %arg6[%c4_182, %c0_183, %c0_184] : memref<7x1x8xf32, #tpu.memory_space<vmem>>, vector<1x1x8xf32>
    %177 = vector.shape_cast %176 : vector<1x1x8xf32> to vector<1x8xf32>
    %178 = vector.broadcast %177 : vector<1x8xf32> to vector<16x8xf32>
    %179 = arith.mulf %175, %178 : vector<16x8xf32>
    %c4_185 = arith.constant 4 : index
    %c0_186 = arith.constant 0 : index
    %c0_187 = arith.constant 0 : index
    %180 = vector.load %arg7[%c4_185, %c0_186, %c0_187] : memref<7x1x8xf32, #tpu.memory_space<vmem>>, vector<1x1x8xf32>
    %181 = vector.shape_cast %180 : vector<1x1x8xf32> to vector<1x8xf32>
    %182 = vector.broadcast %181 : vector<1x8xf32> to vector<16x8xf32>
    %183 = arith.addf %179, %182 : vector<16x8xf32>
    %c0_188 = arith.constant 0 : index
    %c32_189 = arith.constant 32 : index
    %184 = vector.load %arg18[%c0_188, %c32_189] : memref<16x64xf32, #tpu.memory_space<vmem>>, vector<16x8xf32>
    tpu.vector_store %arg18[%c0_188, %c32_189], %183 {strides = array<i32>} : memref<16x64xf32, #tpu.memory_space<vmem>>, vector<16x8xf32>,
    %c0_190 = arith.constant 0 : index
    %c40 = arith.constant 40 : index
    %185 = vector.load %arg18[%c0_190, %c40] : memref<16x64xf32, #tpu.memory_space<vmem>>, vector<16x8xf32>
    %c0_191 = arith.constant 0 : index
    %c32_192 = arith.constant 32 : index
    %186 = vector.load %arg18[%c0_191, %c32_192] : memref<16x64xf32, #tpu.memory_space<vmem>>, vector<16x8xf32>
    %187 = arith.addf %185, %186 : vector<16x8xf32>
    %c8_193 = arith.constant 8 : index
    %c0_194 = arith.constant 0 : index
    %188 = vector.load %arg17[%c8_193, %c0_194] : memref<32x8xf32, #tpu.memory_space<vmem>>, vector<16x8xf32>
    tpu.vector_store %arg17[%c8_193, %c0_194], %187 {strides = array<i32>} : memref<32x8xf32, #tpu.memory_space<vmem>>, vector<16x8xf32>,
    %cst_195 = arith.constant 0.000000e+00 : f32
    %189 = vector.broadcast %cst_195 : f32 to vector<16x8xf32>
    %c6_196 = arith.constant 6 : index
    %c0_197 = arith.constant 0 : index
    %190 = vector.load %arg17[%c6_196, %c0_197] : memref<32x8xf32, #tpu.memory_space<vmem>>, vector<16x8xf32>
    %191 = arith.truncf %190 : vector<16x8xf32> to vector<16x8xbf16>
    %c5 = arith.constant 5 : index
    %c0_198 = arith.constant 0 : index
    %c0_199 = arith.constant 0 : index
    %c0_200 = arith.constant 0 : index
    %192 = vector.load %arg5[%c5, %c0_198, %c0_199, %c0_200] : memref<7x3x8x8xbf16, #tpu.memory_space<vmem>>, vector<1x1x8x8xbf16>
    %193 = vector.shape_cast %192 : vector<1x1x8x8xbf16> to vector<8x8xbf16>
    %cst_201 = arith.constant dense<0.000000e+00> : vector<16x8xf32>
    %194 = tpu.matmul %191, %193, %cst_201 {dimension_numbers = #tpu.dot_dimension_numbers<[1], [0], [0], [1], [0, 0, 1, 1], [], []>} : vector<16x8xbf16>, vector<8x8xbf16>, vector<16x8xf32> -> vector<16x8xf32>
    %195 = arith.addf %189, %194 : vector<16x8xf32>
    %c8_202 = arith.constant 8 : index
    %c0_203 = arith.constant 0 : index
    %196 = vector.load %arg17[%c8_202, %c0_203] : memref<32x8xf32, #tpu.memory_space<vmem>>, vector<16x8xf32>
    %197 = arith.truncf %196 : vector<16x8xf32> to vector<16x8xbf16>
    %c5_204 = arith.constant 5 : index
    %c1_205 = arith.constant 1 : index
    %c0_206 = arith.constant 0 : index
    %c0_207 = arith.constant 0 : index
    %198 = vector.load %arg5[%c5_204, %c1_205, %c0_206, %c0_207] : memref<7x3x8x8xbf16, #tpu.memory_space<vmem>>, vector<1x1x8x8xbf16>
    %199 = vector.shape_cast %198 : vector<1x1x8x8xbf16> to vector<8x8xbf16>
    %cst_208 = arith.constant dense<0.000000e+00> : vector<16x8xf32>
    %200 = tpu.matmul %197, %199, %cst_208 {dimension_numbers = #tpu.dot_dimension_numbers<[1], [0], [0], [1], [0, 0, 1, 1], [], []>} : vector<16x8xbf16>, vector<8x8xbf16>, vector<16x8xf32> -> vector<16x8xf32>
    %201 = arith.addf %195, %200 : vector<16x8xf32>
    %c10_209 = arith.constant 10 : index
    %c0_210 = arith.constant 0 : index
    %202 = vector.load %arg17[%c10_209, %c0_210] : memref<32x8xf32, #tpu.memory_space<vmem>>, vector<16x8xf32>
    %203 = arith.truncf %202 : vector<16x8xf32> to vector<16x8xbf16>
    %c5_211 = arith.constant 5 : index
    %c2_212 = arith.constant 2 : index
    %c0_213 = arith.constant 0 : index
    %c0_214 = arith.constant 0 : index
    %204 = vector.load %arg5[%c5_211, %c2_212, %c0_213, %c0_214] : memref<7x3x8x8xbf16, #tpu.memory_space<vmem>>, vector<1x1x8x8xbf16>
    %205 = vector.shape_cast %204 : vector<1x1x8x8xbf16> to vector<8x8xbf16>
    %cst_215 = arith.constant dense<0.000000e+00> : vector<16x8xf32>
    %206 = tpu.matmul %203, %205, %cst_215 {dimension_numbers = #tpu.dot_dimension_numbers<[1], [0], [0], [1], [0, 0, 1, 1], [], []>} : vector<16x8xbf16>, vector<8x8xbf16>, vector<16x8xf32> -> vector<16x8xf32>
    %207 = arith.addf %201, %206 : vector<16x8xf32>
    %cst_216 = arith.constant 0.000000e+00 : f32
    %208 = vector.broadcast %cst_216 : f32 to vector<16x8xf32>
    %209 = arith.maximumf %207, %208 : vector<16x8xf32>
    %c5_217 = arith.constant 5 : index
    %c0_218 = arith.constant 0 : index
    %c0_219 = arith.constant 0 : index
    %210 = vector.load %arg6[%c5_217, %c0_218, %c0_219] : memref<7x1x8xf32, #tpu.memory_space<vmem>>, vector<1x1x8xf32>
    %211 = vector.shape_cast %210 : vector<1x1x8xf32> to vector<1x8xf32>
    %212 = vector.broadcast %211 : vector<1x8xf32> to vector<16x8xf32>
    %213 = arith.mulf %209, %212 : vector<16x8xf32>
    %c5_220 = arith.constant 5 : index
    %c0_221 = arith.constant 0 : index
    %c0_222 = arith.constant 0 : index
    %214 = vector.load %arg7[%c5_220, %c0_221, %c0_222] : memref<7x1x8xf32, #tpu.memory_space<vmem>>, vector<1x1x8xf32>
    %215 = vector.shape_cast %214 : vector<1x1x8xf32> to vector<1x8xf32>
    %216 = vector.broadcast %215 : vector<1x8xf32> to vector<16x8xf32>
    %217 = arith.addf %213, %216 : vector<16x8xf32>
    %c0_223 = arith.constant 0 : index
    %c40_224 = arith.constant 40 : index
    %218 = vector.load %arg18[%c0_223, %c40_224] : memref<16x64xf32, #tpu.memory_space<vmem>>, vector<16x8xf32>
    tpu.vector_store %arg18[%c0_223, %c40_224], %217 {strides = array<i32>} : memref<16x64xf32, #tpu.memory_space<vmem>>, vector<16x8xf32>,
    %c0_225 = arith.constant 0 : index
    %c48 = arith.constant 48 : index
    %219 = vector.load %arg18[%c0_225, %c48] : memref<16x64xf32, #tpu.memory_space<vmem>>, vector<16x8xf32>
    %c0_226 = arith.constant 0 : index
    %c40_227 = arith.constant 40 : index
    %220 = vector.load %arg18[%c0_226, %c40_227] : memref<16x64xf32, #tpu.memory_space<vmem>>, vector<16x8xf32>
    %221 = arith.addf %219, %220 : vector<16x8xf32>
    %c8_228 = arith.constant 8 : index
    %c0_229 = arith.constant 0 : index
    %222 = vector.load %arg17[%c8_228, %c0_229] : memref<32x8xf32, #tpu.memory_space<vmem>>, vector<16x8xf32>
    tpu.vector_store %arg17[%c8_228, %c0_229], %221 {strides = array<i32>} : memref<32x8xf32, #tpu.memory_space<vmem>>, vector<16x8xf32>,
    %cst_230 = arith.constant 0.000000e+00 : f32
    %223 = vector.broadcast %cst_230 : f32 to vector<16x8xf32>
    %c6_231 = arith.constant 6 : index
    %c0_232 = arith.constant 0 : index
    %224 = vector.load %arg17[%c6_231, %c0_232] : memref<32x8xf32, #tpu.memory_space<vmem>>, vector<16x8xf32>
    %225 = arith.truncf %224 : vector<16x8xf32> to vector<16x8xbf16>
    %c6_233 = arith.constant 6 : index
    %c0_234 = arith.constant 0 : index
    %c0_235 = arith.constant 0 : index
    %c0_236 = arith.constant 0 : index
    %226 = vector.load %arg5[%c6_233, %c0_234, %c0_235, %c0_236] : memref<7x3x8x8xbf16, #tpu.memory_space<vmem>>, vector<1x1x8x8xbf16>
    %227 = vector.shape_cast %226 : vector<1x1x8x8xbf16> to vector<8x8xbf16>
    %cst_237 = arith.constant dense<0.000000e+00> : vector<16x8xf32>
    %228 = tpu.matmul %225, %227, %cst_237 {dimension_numbers = #tpu.dot_dimension_numbers<[1], [0], [0], [1], [0, 0, 1, 1], [], []>} : vector<16x8xbf16>, vector<8x8xbf16>, vector<16x8xf32> -> vector<16x8xf32>
    %229 = arith.addf %223, %228 : vector<16x8xf32>
    %c8_238 = arith.constant 8 : index
    %c0_239 = arith.constant 0 : index
    %230 = vector.load %arg17[%c8_238, %c0_239] : memref<32x8xf32, #tpu.memory_space<vmem>>, vector<16x8xf32>
    %231 = arith.truncf %230 : vector<16x8xf32> to vector<16x8xbf16>
    %c6_240 = arith.constant 6 : index
    %c1_241 = arith.constant 1 : index
    %c0_242 = arith.constant 0 : index
    %c0_243 = arith.constant 0 : index
    %232 = vector.load %arg5[%c6_240, %c1_241, %c0_242, %c0_243] : memref<7x3x8x8xbf16, #tpu.memory_space<vmem>>, vector<1x1x8x8xbf16>
    %233 = vector.shape_cast %232 : vector<1x1x8x8xbf16> to vector<8x8xbf16>
    %cst_244 = arith.constant dense<0.000000e+00> : vector<16x8xf32>
    %234 = tpu.matmul %231, %233, %cst_244 {dimension_numbers = #tpu.dot_dimension_numbers<[1], [0], [0], [1], [0, 0, 1, 1], [], []>} : vector<16x8xbf16>, vector<8x8xbf16>, vector<16x8xf32> -> vector<16x8xf32>
    %235 = arith.addf %229, %234 : vector<16x8xf32>
    %c10_245 = arith.constant 10 : index
    %c0_246 = arith.constant 0 : index
    %236 = vector.load %arg17[%c10_245, %c0_246] : memref<32x8xf32, #tpu.memory_space<vmem>>, vector<16x8xf32>
    %237 = arith.truncf %236 : vector<16x8xf32> to vector<16x8xbf16>
    %c6_247 = arith.constant 6 : index
    %c2_248 = arith.constant 2 : index
    %c0_249 = arith.constant 0 : index
    %c0_250 = arith.constant 0 : index
    %238 = vector.load %arg5[%c6_247, %c2_248, %c0_249, %c0_250] : memref<7x3x8x8xbf16, #tpu.memory_space<vmem>>, vector<1x1x8x8xbf16>
    %239 = vector.shape_cast %238 : vector<1x1x8x8xbf16> to vector<8x8xbf16>
    %cst_251 = arith.constant dense<0.000000e+00> : vector<16x8xf32>
    %240 = tpu.matmul %237, %239, %cst_251 {dimension_numbers = #tpu.dot_dimension_numbers<[1], [0], [0], [1], [0, 0, 1, 1], [], []>} : vector<16x8xbf16>, vector<8x8xbf16>, vector<16x8xf32> -> vector<16x8xf32>
    %241 = arith.addf %235, %240 : vector<16x8xf32>
    %cst_252 = arith.constant 0.000000e+00 : f32
    %242 = vector.broadcast %cst_252 : f32 to vector<16x8xf32>
    %243 = arith.maximumf %241, %242 : vector<16x8xf32>
    %c6_253 = arith.constant 6 : index
    %c0_254 = arith.constant 0 : index
    %c0_255 = arith.constant 0 : index
    %244 = vector.load %arg6[%c6_253, %c0_254, %c0_255] : memref<7x1x8xf32, #tpu.memory_space<vmem>>, vector<1x1x8xf32>
    %245 = vector.shape_cast %244 : vector<1x1x8xf32> to vector<1x8xf32>
    %246 = vector.broadcast %245 : vector<1x8xf32> to vector<16x8xf32>
    %247 = arith.mulf %243, %246 : vector<16x8xf32>
    %c6_256 = arith.constant 6 : index
    %c0_257 = arith.constant 0 : index
    %c0_258 = arith.constant 0 : index
    %248 = vector.load %arg7[%c6_256, %c0_257, %c0_258] : memref<7x1x8xf32, #tpu.memory_space<vmem>>, vector<1x1x8xf32>
    %249 = vector.shape_cast %248 : vector<1x1x8xf32> to vector<1x8xf32>
    %250 = vector.broadcast %249 : vector<1x8xf32> to vector<16x8xf32>
    %251 = arith.addf %247, %250 : vector<16x8xf32>
    %c0_259 = arith.constant 0 : index
    %c48_260 = arith.constant 48 : index
    %252 = vector.load %arg18[%c0_259, %c48_260] : memref<16x64xf32, #tpu.memory_space<vmem>>, vector<16x8xf32>
    tpu.vector_store %arg18[%c0_259, %c48_260], %251 {strides = array<i32>} : memref<16x64xf32, #tpu.memory_space<vmem>>, vector<16x8xf32>,
    %c0_261 = arith.constant 0 : index
    %c0_262 = arith.constant 0 : index
    %253 = vector.load %arg18[%c0_261, %c0_262] : memref<16x64xf32, #tpu.memory_space<vmem>>, vector<16x64xf32>
    %254 = arith.truncf %253 : vector<16x64xf32> to vector<16x64xbf16>
    %c0_263 = arith.constant 0 : index
    %c0_264 = arith.constant 0 : index
    %255 = vector.load %arg8[%c0_263, %c0_264] : memref<64x64xbf16, #tpu.memory_space<vmem>>, vector<64x64xbf16>
    %cst_265 = arith.constant dense<0.000000e+00> : vector<16x64xf32>
    %256 = tpu.matmul %254, %255, %cst_265 {dimension_numbers = #tpu.dot_dimension_numbers<[1], [0], [0], [1], [0, 0, 1, 1], [], []>} : vector<16x64xbf16>, vector<64x64xbf16>, vector<16x64xf32> -> vector<16x64xf32>
    %cst_266 = arith.constant 0.000000e+00 : f32
    %257 = vector.broadcast %cst_266 : f32 to vector<16x64xf32>
    %258 = arith.maximumf %256, %257 : vector<16x64xf32>
    %c0_267 = arith.constant 0 : index
    %c0_268 = arith.constant 0 : index
    %259 = vector.load %arg9[%c0_267, %c0_268] : memref<1x64xf32, #tpu.memory_space<vmem>>, vector<1x64xf32>
    %260 = vector.broadcast %259 : vector<1x64xf32> to vector<16x64xf32>
    %261 = arith.mulf %258, %260 : vector<16x64xf32>
    %c0_269 = arith.constant 0 : index
    %c0_270 = arith.constant 0 : index
    %262 = vector.load %arg10[%c0_269, %c0_270] : memref<1x64xf32, #tpu.memory_space<vmem>>, vector<1x64xf32>
    %263 = vector.broadcast %262 : vector<1x64xf32> to vector<16x64xf32>
    %264 = arith.addf %261, %263 : vector<16x64xf32>
    %cst_271 = arith.constant dense<0.000000e+00> : vector<64xf32>
    %265 = vector.multi_reduction <add>, %264, %cst_271 [0] : vector<16x64xf32> to vector<64xf32>
    %266 = vector.shape_cast %265 : vector<64xf32> to vector<1x64xf32>
    %cst_272 = arith.constant 1.600000e+01 : f32
    %267 = vector.broadcast %cst_272 : f32 to vector<1x64xf32>
    %268 = arith.divf %266, %267 : vector<1x64xf32>
    %c0_273 = arith.constant 0 : index
    %c0_274 = arith.constant 0 : index
    %269 = vector.load %arg11[%c0_273, %c0_274] : memref<64x16xf32, #tpu.memory_space<vmem>>, vector<64x16xf32>
    %cst_275 = arith.constant dense<0.000000e+00> : vector<1x16xf32>
    %270 = tpu.matmul %268, %269, %cst_275 {dimension_numbers = #tpu.dot_dimension_numbers<[1], [0], [0], [1], [0, 0, 1, 1], [], []>} : vector<1x64xf32>, vector<64x16xf32>, vector<1x16xf32> -> vector<1x16xf32>
    %c0_276 = arith.constant 0 : index
    %c0_277 = arith.constant 0 : index
    %271 = vector.load %arg12[%c0_276, %c0_277] : memref<1x16xf32, #tpu.memory_space<vmem>>, vector<1x16xf32>
    %272 = arith.addf %270, %271 : vector<1x16xf32>
    %cst_278 = arith.constant 0.000000e+00 : f32
    %273 = vector.broadcast %cst_278 : f32 to vector<1x16xf32>
    %274 = arith.maximumf %272, %273 : vector<1x16xf32>
    %c0_279 = arith.constant 0 : index
    %c0_280 = arith.constant 0 : index
    %275 = vector.load %arg13[%c0_279, %c0_280] : memref<16x64xf32, #tpu.memory_space<vmem>>, vector<16x64xf32>
    %cst_281 = arith.constant dense<0.000000e+00> : vector<1x64xf32>
    %276 = tpu.matmul %274, %275, %cst_281 {dimension_numbers = #tpu.dot_dimension_numbers<[1], [0], [0], [1], [0, 0, 1, 1], [], []>} : vector<1x16xf32>, vector<16x64xf32>, vector<1x64xf32> -> vector<1x64xf32>
    %c0_282 = arith.constant 0 : index
    %c0_283 = arith.constant 0 : index
    %277 = vector.load %arg14[%c0_282, %c0_283] : memref<1x64xf32, #tpu.memory_space<vmem>>, vector<1x64xf32>
    %278 = arith.addf %276, %277 : vector<1x64xf32>
    %279 = arith.negf %278 : vector<1x64xf32>
    %280 = math.exp %279 : vector<1x64xf32>
    %cst_284 = arith.constant 1.000000e+00 : f32
    %281 = vector.broadcast %cst_284 : f32 to vector<1x64xf32>
    %282 = arith.addf %281, %280 : vector<1x64xf32>
    %283 = arith.divf %281, %282 : vector<1x64xf32>
    %c0_285 = arith.constant 0 : index
    %c0_286 = arith.constant 0 : index
    %c0_287 = arith.constant 0 : index
    %284 = vector.load %arg1[%c0_285, %c0_286, %c0_287] : memref<1x16x64xbf16, #tpu.memory_space<vmem>>, vector<1x16x64xbf16>
    %285 = vector.shape_cast %284 : vector<1x16x64xbf16> to vector<16x64xbf16>
    %286 = arith.extf %285 : vector<16x64xbf16> to vector<16x64xf32>
    %287 = vector.broadcast %283 : vector<1x64xf32> to vector<16x64xf32>
    %288 = arith.mulf %264, %287 : vector<16x64xf32>
    %289 = arith.addf %288, %286 : vector<16x64xf32>
    %290 = arith.truncf %289 : vector<16x64xf32> to vector<16x64xbf16>
    %c0_288 = arith.constant 0 : index
    %c0_289 = arith.constant 0 : index
    %c0_290 = arith.constant 0 : index
    %291 = vector.load %arg15[%c0_288, %c0_289, %c0_290] : memref<1x16x64xbf16, #tpu.memory_space<vmem>>, vector<1x16x64xbf16>
    %292 = vector.shape_cast %291 : vector<1x16x64xbf16> to vector<16x64xbf16>
    %293 = vector.shape_cast %290 : vector<16x64xbf16> to vector<1x16x64xbf16>
    tpu.vector_store %arg15[%c0_288, %c0_289, %c0_290], %293 {strides = array<i32>} : memref<1x16x64xbf16, #tpu.memory_space<vmem>>, vector<1x16x64xbf16>,
    %294 = arith.addf %289, %286 : vector<16x64xf32>
    %295 = arith.truncf %294 : vector<16x64xf32> to vector<16x64xbf16>
    %c0_291 = arith.constant 0 : index
    %c0_292 = arith.constant 0 : index
    %c0_293 = arith.constant 0 : index
    %296 = vector.load %arg16[%c0_291, %c0_292, %c0_293] : memref<1x16x64xbf16, #tpu.memory_space<vmem>>, vector<1x16x64xbf16>
    %297 = vector.shape_cast %296 : vector<1x16x64xbf16> to vector<16x64xbf16>
    %298 = vector.shape_cast %295 : vector<16x64xbf16> to vector<1x16x64xbf16>
    tpu.vector_store %arg16[%c0_291, %c0_292, %c0_293], %298 {strides = array<i32>} : memref<1x16x64xbf16, #tpu.memory_space<vmem>>, vector<1x16x64xbf16>,
    return
  }
  func.func @transform_0(%arg0: i32) -> (i32, i32, i32) {
    %c0_i32 = arith.constant 0 : i32
    %c0_i32_0 = arith.constant 0 : i32
    %c0_i32_1 = arith.constant 0 : i32
    return %arg0, %c0_i32, %c0_i32_0 : i32, i32, i32
  }
  func.func @transform_1(%arg0: i32) -> (i32, i32) {
    %c0_i32 = arith.constant 0 : i32
    %c0_i32_0 = arith.constant 0 : i32
    %c0_i32_1 = arith.constant 0 : i32
    return %c0_i32, %c0_i32_0 : i32, i32
  }
  func.func @transform_2(%arg0: i32) -> (i32, i32) {
    %c0_i32 = arith.constant 0 : i32
    %c0_i32_0 = arith.constant 0 : i32
    %c0_i32_1 = arith.constant 0 : i32
    return %c0_i32, %c0_i32_0 : i32, i32
  }
  func.func @transform_3(%arg0: i32) -> (i32, i32) {
    %c0_i32 = arith.constant 0 : i32
    %c0_i32_0 = arith.constant 0 : i32
    %c0_i32_1 = arith.constant 0 : i32
    return %c0_i32, %c0_i32_0 : i32, i32
  }
  func.func @transform_4(%arg0: i32) -> (i32, i32, i32, i32) {
    %c0_i32 = arith.constant 0 : i32
    %c0_i32_0 = arith.constant 0 : i32
    %c0_i32_1 = arith.constant 0 : i32
    %c0_i32_2 = arith.constant 0 : i32
    %c0_i32_3 = arith.constant 0 : i32
    return %c0_i32, %c0_i32_0, %c0_i32_1, %c0_i32_2 : i32, i32, i32, i32
  }
  func.func @transform_5(%arg0: i32) -> (i32, i32, i32) {
    %c0_i32 = arith.constant 0 : i32
    %c0_i32_0 = arith.constant 0 : i32
    %c0_i32_1 = arith.constant 0 : i32
    %c0_i32_2 = arith.constant 0 : i32
    return %c0_i32, %c0_i32_0, %c0_i32_1 : i32, i32, i32
  }
  func.func @transform_6(%arg0: i32) -> (i32, i32, i32) {
    %c0_i32 = arith.constant 0 : i32
    %c0_i32_0 = arith.constant 0 : i32
    %c0_i32_1 = arith.constant 0 : i32
    %c0_i32_2 = arith.constant 0 : i32
    return %c0_i32, %c0_i32_0, %c0_i32_1 : i32, i32, i32
  }
  func.func @transform_7(%arg0: i32) -> (i32, i32) {
    %c0_i32 = arith.constant 0 : i32
    %c0_i32_0 = arith.constant 0 : i32
    %c0_i32_1 = arith.constant 0 : i32
    return %c0_i32, %c0_i32_0 : i32, i32
  }
  func.func @transform_8(%arg0: i32) -> (i32, i32) {
    %c0_i32 = arith.constant 0 : i32
    %c0_i32_0 = arith.constant 0 : i32
    %c0_i32_1 = arith.constant 0 : i32
    return %c0_i32, %c0_i32_0 : i32, i32
  }
  func.func @transform_9(%arg0: i32) -> (i32, i32) {
    %c0_i32 = arith.constant 0 : i32
    %c0_i32_0 = arith.constant 0 : i32
    %c0_i32_1 = arith.constant 0 : i32
    return %c0_i32, %c0_i32_0 : i32, i32
  }
  func.func @transform_10(%arg0: i32) -> (i32, i32) {
    %c0_i32 = arith.constant 0 : i32
    %c0_i32_0 = arith.constant 0 : i32
    %c0_i32_1 = arith.constant 0 : i32
    return %c0_i32, %c0_i32_0 : i32, i32
  }
  func.func @transform_11(%arg0: i32) -> (i32, i32) {
    %c0_i32 = arith.constant 0 : i32
    %c0_i32_0 = arith.constant 0 : i32
    %c0_i32_1 = arith.constant 0 : i32
    return %c0_i32, %c0_i32_0 : i32, i32
  }
  func.func @transform_12(%arg0: i32) -> (i32, i32) {
    %c0_i32 = arith.constant 0 : i32
    %c0_i32_0 = arith.constant 0 : i32
    %c0_i32_1 = arith.constant 0 : i32
    return %c0_i32, %c0_i32_0 : i32, i32
  }
  func.func @transform_13(%arg0: i32) -> (i32, i32) {
    %c0_i32 = arith.constant 0 : i32
    %c0_i32_0 = arith.constant 0 : i32
    %c0_i32_1 = arith.constant 0 : i32
    return %c0_i32, %c0_i32_0 : i32, i32
  }
  func.func @transform_14(%arg0: i32) -> (i32, i32, i32) {
    %c0_i32 = arith.constant 0 : i32
    %c0_i32_0 = arith.constant 0 : i32
    %c0_i32_1 = arith.constant 0 : i32
    return %arg0, %c0_i32, %c0_i32_0 : i32, i32, i32
  }
  func.func @transform_15(%arg0: i32) -> (i32, i32, i32) {
    %c0_i32 = arith.constant 0 : i32
    %c0_i32_0 = arith.constant 0 : i32
    %c0_i32_1 = arith.constant 0 : i32
    return %arg0, %c0_i32, %c0_i32_0 : i32, i32, i32
  }
}

module attributes {stable_mosaic.version = 11 : i64} {
  func.func @_se_res2_kernel(%arg0: i32, %arg1: memref<1x16x64xbf16, #tpu.memory_space<vmem>>, %arg2: memref<64x64xbf16, #tpu.memory_space<vmem>>, %arg3: memref<1x64xf32, #tpu.memory_space<vmem>>, %arg4: memref<1x64xf32, #tpu.memory_space<vmem>>, %arg5: memref<7x3x8x8xbf16, #tpu.memory_space<vmem>>, %arg6: memref<7x1x8xf32, #tpu.memory_space<vmem>>, %arg7: memref<7x1x8xf32, #tpu.memory_space<vmem>>, %arg8: memref<64x64xbf16, #tpu.memory_space<vmem>>, %arg9: memref<1x64xf32, #tpu.memory_space<vmem>>, %arg10: memref<1x64xf32, #tpu.memory_space<vmem>>, %arg11: memref<64x16xf32, #tpu.memory_space<vmem>>, %arg12: memref<1x16xf32, #tpu.memory_space<vmem>>, %arg13: memref<16x64xf32, #tpu.memory_space<vmem>>, %arg14: memref<1x64xf32, #tpu.memory_space<vmem>>, %arg15: memref<1x16x64xbf16, #tpu.memory_space<vmem>>, %arg16: memref<1x16x64xbf16, #tpu.memory_space<vmem>>, %arg17: memref<32x8xf32, #tpu.memory_space<vmem>>, %arg18: memref<16x64xf32, #tpu.memory_space<vmem>>) attributes {dimension_semantics = [#tpu.dimension_semantics<parallel>], iteration_bounds = array<i64: 2>, scalar_prefetch = 0 : i64, scratch_operands = 2 : i64, tpu.core_type = #tpu.core_type<tc>, window_params = [{transform_indices = @transform_0, window_bounds = array<i64: 1, 16, 64>}, {pipeline_mode = #tpu.pipeline_mode<synchronous>, transform_indices = @transform_1, window_bounds = array<i64: 64, 64>}, {pipeline_mode = #tpu.pipeline_mode<synchronous>, transform_indices = @transform_2, window_bounds = array<i64: 1, 64>}, {pipeline_mode = #tpu.pipeline_mode<synchronous>, transform_indices = @transform_3, window_bounds = array<i64: 1, 64>}, {pipeline_mode = #tpu.pipeline_mode<synchronous>, transform_indices = @transform_4, window_bounds = array<i64: 7, 3, 8, 8>}, {pipeline_mode = #tpu.pipeline_mode<synchronous>, transform_indices = @transform_5, window_bounds = array<i64: 7, 1, 8>}, {pipeline_mode = #tpu.pipeline_mode<synchronous>, transform_indices = @transform_6, window_bounds = array<i64: 7, 1, 8>}, {pipeline_mode = #tpu.pipeline_mode<synchronous>, transform_indices = @transform_7, window_bounds = array<i64: 64, 64>}, {pipeline_mode = #tpu.pipeline_mode<synchronous>, transform_indices = @transform_8, window_bounds = array<i64: 1, 64>}, {pipeline_mode = #tpu.pipeline_mode<synchronous>, transform_indices = @transform_9, window_bounds = array<i64: 1, 64>}, {pipeline_mode = #tpu.pipeline_mode<synchronous>, transform_indices = @transform_10, window_bounds = array<i64: 64, 16>}, {pipeline_mode = #tpu.pipeline_mode<synchronous>, transform_indices = @transform_11, window_bounds = array<i64: 1, 16>}, {pipeline_mode = #tpu.pipeline_mode<synchronous>, transform_indices = @transform_12, window_bounds = array<i64: 16, 64>}, {pipeline_mode = #tpu.pipeline_mode<synchronous>, transform_indices = @transform_13, window_bounds = array<i64: 1, 64>}, {transform_indices = @transform_14, window_bounds = array<i64: 1, 16, 64>}, {transform_indices = @transform_15, window_bounds = array<i64: 1, 16, 64>}]} {
    %c0 = arith.constant 0 : index
    %c0_0 = arith.constant 0 : index
    %c0_1 = arith.constant 0 : index
    %0 = vector.load %arg1[%c0, %c0_0, %c0_1] : memref<1x16x64xbf16, #tpu.memory_space<vmem>>, vector<1x16x64xbf16>
    %1 = vector.shape_cast %0 : vector<1x16x64xbf16> to vector<16x64xbf16>
    %c0_2 = arith.constant 0 : index
    %c0_3 = arith.constant 0 : index
    %2 = vector.load %arg2[%c0_2, %c0_3] : memref<64x64xbf16, #tpu.memory_space<vmem>>, vector<64x64xbf16>
    %cst = arith.constant dense<0.000000e+00> : vector<16x64xf32>
    %3 = tpu.matmul %1, %2, %cst {dimension_numbers = #tpu.dot_dimension_numbers<[1], [0], [0], [1], [0, 0, 1, 1], [], []>} : vector<16x64xbf16>, vector<64x64xbf16>, vector<16x64xf32> -> vector<16x64xf32>
    %cst_4 = arith.constant 0.000000e+00 : f32
    %4 = vector.broadcast %cst_4 : f32 to vector<16x64xf32>
    %5 = arith.maximumf %3, %4 : vector<16x64xf32>
    %c0_5 = arith.constant 0 : index
    %c0_6 = arith.constant 0 : index
    %6 = vector.load %arg3[%c0_5, %c0_6] : memref<1x64xf32, #tpu.memory_space<vmem>>, vector<1x64xf32>
    %7 = vector.broadcast %6 : vector<1x64xf32> to vector<16x64xf32>
    %8 = arith.mulf %5, %7 : vector<16x64xf32>
    %c0_7 = arith.constant 0 : index
    %c0_8 = arith.constant 0 : index
    %9 = vector.load %arg4[%c0_7, %c0_8] : memref<1x64xf32, #tpu.memory_space<vmem>>, vector<1x64xf32>
    %10 = vector.broadcast %9 : vector<1x64xf32> to vector<16x64xf32>
    %11 = arith.addf %8, %10 : vector<16x64xf32>
    %c0_9 = arith.constant 0 : index
    %c0_10 = arith.constant 0 : index
    %12 = vector.load %arg18[%c0_9, %c0_10] : memref<16x64xf32, #tpu.memory_space<vmem>>, vector<16x64xf32>
    tpu.vector_store %arg18[%c0_9, %c0_10], %11 {strides = array<i32>} : memref<16x64xf32, #tpu.memory_space<vmem>>, vector<16x64xf32>,
    %cst_11 = arith.constant 0.000000e+00 : f32
    %13 = vector.broadcast %cst_11 : f32 to vector<8x8xf32>
    %c0_12 = arith.constant 0 : index
    %c0_13 = arith.constant 0 : index
    %14 = vector.load %arg17[%c0_12, %c0_13] : memref<32x8xf32, #tpu.memory_space<vmem>>, vector<8x8xf32>
    tpu.vector_store %arg17[%c0_12, %c0_13], %13 {strides = array<i32>} : memref<32x8xf32, #tpu.memory_space<vmem>>, vector<8x8xf32>,
    %cst_14 = arith.constant 0.000000e+00 : f32
    %15 = vector.broadcast %cst_14 : f32 to vector<8x8xf32>
    %c24 = arith.constant 24 : index
    %c0_15 = arith.constant 0 : index
    %16 = vector.load %arg17[%c24, %c0_15] : memref<32x8xf32, #tpu.memory_space<vmem>>, vector<8x8xf32>
    tpu.vector_store %arg17[%c24, %c0_15], %15 {strides = array<i32>} : memref<32x8xf32, #tpu.memory_space<vmem>>, vector<8x8xf32>,
    %c0_16 = arith.constant 0 : index
    %c0_17 = arith.constant 0 : index
    %17 = vector.load %arg18[%c0_16, %c0_17] : memref<16x64xf32, #tpu.memory_space<vmem>>, vector<16x8xf32>
    %c8 = arith.constant 8 : index
    %c0_18 = arith.constant 0 : index
    %18 = vector.load %arg17[%c8, %c0_18] : memref<32x8xf32, #tpu.memory_space<vmem>>, vector<16x8xf32>
    tpu.vector_store %arg17[%c8, %c0_18], %17 {strides = array<i32>} : memref<32x8xf32, #tpu.memory_space<vmem>>, vector<16x8xf32>,
    %cst_19 = arith.constant 0.000000e+00 : f32
    %19 = vector.broadcast %cst_19 : f32 to vector<16x8xf32>
    %c5 = arith.constant 5 : index
    %c0_20 = arith.constant 0 : index
    %20 = vector.load %arg17[%c5, %c0_20] : memref<32x8xf32, #tpu.memory_space<vmem>>, vector<16x8xf32>
    %21 = arith.truncf %20 : vector<16x8xf32> to vector<16x8xbf16>
    %c0_21 = arith.constant 0 : index
    %c0_22 = arith.constant 0 : index
    %c0_23 = arith.constant 0 : index
    %c0_24 = arith.constant 0 : index
    %22 = vector.load %arg5[%c0_21, %c0_22, %c0_23, %c0_24] : memref<7x3x8x8xbf16, #tpu.memory_space<vmem>>, vector<1x1x8x8xbf16>
    %23 = vector.shape_cast %22 : vector<1x1x8x8xbf16> to vector<8x8xbf16>
    %cst_25 = arith.constant dense<0.000000e+00> : vector<16x8xf32>
    %24 = tpu.matmul %21, %23, %cst_25 {dimension_numbers = #tpu.dot_dimension_numbers<[1], [0], [0], [1], [0, 0, 1, 1], [], []>} : vector<16x8xbf16>, vector<8x8xbf16>, vector<16x8xf32> -> vector<16x8xf32>
    %25 = arith.addf %19, %24 : vector<16x8xf32>
    %c8_26 = arith.constant 8 : index
    %c0_27 = arith.constant 0 : index
    %26 = vector.load %arg17[%c8_26, %c0_27] : memref<32x8xf32, #tpu.memory_space<vmem>>, vector<16x8xf32>
    %27 = arith.truncf %26 : vector<16x8xf32> to vector<16x8xbf16>
    %c0_28 = arith.constant 0 : index
    %c1 = arith.constant 1 : index
    %c0_29 = arith.constant 0 : index
    %c0_30 = arith.constant 0 : index
    %28 = vector.load %arg5[%c0_28, %c1, %c0_29, %c0_30] : memref<7x3x8x8xbf16, #tpu.memory_space<vmem>>, vector<1x1x8x8xbf16>
    %29 = vector.shape_cast %28 : vector<1x1x8x8xbf16> to vector<8x8xbf16>
    %cst_31 = arith.constant dense<0.000000e+00> : vector<16x8xf32>
    %30 = tpu.matmul %27, %29, %cst_31 {dimension_numbers = #tpu.dot_dimension_numbers<[1], [0], [0], [1], [0, 0, 1, 1], [], []>} : vector<16x8xbf16>, vector<8x8xbf16>, vector<16x8xf32> -> vector<16x8xf32>
    %31 = arith.addf %25, %30 : vector<16x8xf32>
    %c11 = arith.constant 11 : index
    %c0_32 = arith.constant 0 : index
    %32 = vector.load %arg17[%c11, %c0_32] : memref<32x8xf32, #tpu.memory_space<vmem>>, vector<16x8xf32>
    %33 = arith.truncf %32 : vector<16x8xf32> to vector<16x8xbf16>
    %c0_33 = arith.constant 0 : index
    %c2 = arith.constant 2 : index
    %c0_34 = arith.constant 0 : index
    %c0_35 = arith.constant 0 : index
    %34 = vector.load %arg5[%c0_33, %c2, %c0_34, %c0_35] : memref<7x3x8x8xbf16, #tpu.memory_space<vmem>>, vector<1x1x8x8xbf16>
    %35 = vector.shape_cast %34 : vector<1x1x8x8xbf16> to vector<8x8xbf16>
    %cst_36 = arith.constant dense<0.000000e+00> : vector<16x8xf32>
    %36 = tpu.matmul %33, %35, %cst_36 {dimension_numbers = #tpu.dot_dimension_numbers<[1], [0], [0], [1], [0, 0, 1, 1], [], []>} : vector<16x8xbf16>, vector<8x8xbf16>, vector<16x8xf32> -> vector<16x8xf32>
    %37 = arith.addf %31, %36 : vector<16x8xf32>
    %cst_37 = arith.constant 0.000000e+00 : f32
    %38 = vector.broadcast %cst_37 : f32 to vector<16x8xf32>
    %39 = arith.maximumf %37, %38 : vector<16x8xf32>
    %c0_38 = arith.constant 0 : index
    %c0_39 = arith.constant 0 : index
    %c0_40 = arith.constant 0 : index
    %40 = vector.load %arg6[%c0_38, %c0_39, %c0_40] : memref<7x1x8xf32, #tpu.memory_space<vmem>>, vector<1x1x8xf32>
    %41 = vector.shape_cast %40 : vector<1x1x8xf32> to vector<1x8xf32>
    %42 = vector.broadcast %41 : vector<1x8xf32> to vector<16x8xf32>
    %43 = arith.mulf %39, %42 : vector<16x8xf32>
    %c0_41 = arith.constant 0 : index
    %c0_42 = arith.constant 0 : index
    %c0_43 = arith.constant 0 : index
    %44 = vector.load %arg7[%c0_41, %c0_42, %c0_43] : memref<7x1x8xf32, #tpu.memory_space<vmem>>, vector<1x1x8xf32>
    %45 = vector.shape_cast %44 : vector<1x1x8xf32> to vector<1x8xf32>
    %46 = vector.broadcast %45 : vector<1x8xf32> to vector<16x8xf32>
    %47 = arith.addf %43, %46 : vector<16x8xf32>
    %c0_44 = arith.constant 0 : index
    %c0_45 = arith.constant 0 : index
    %48 = vector.load %arg18[%c0_44, %c0_45] : memref<16x64xf32, #tpu.memory_space<vmem>>, vector<16x8xf32>
    tpu.vector_store %arg18[%c0_44, %c0_45], %47 {strides = array<i32>} : memref<16x64xf32, #tpu.memory_space<vmem>>, vector<16x8xf32>,
    %c0_46 = arith.constant 0 : index
    %c8_47 = arith.constant 8 : index
    %49 = vector.load %arg18[%c0_46, %c8_47] : memref<16x64xf32, #tpu.memory_space<vmem>>, vector<16x8xf32>
    %c0_48 = arith.constant 0 : index
    %c0_49 = arith.constant 0 : index
    %50 = vector.load %arg18[%c0_48, %c0_49] : memref<16x64xf32, #tpu.memory_space<vmem>>, vector<16x8xf32>
    %51 = arith.addf %49, %50 : vector<16x8xf32>
    %c8_50 = arith.constant 8 : index
    %c0_51 = arith.constant 0 : index
    %52 = vector.load %arg17[%c8_50, %c0_51] : memref<32x8xf32, #tpu.memory_space<vmem>>, vector<16x8xf32>
    tpu.vector_store %arg17[%c8_50, %c0_51], %51 {strides = array<i32>} : memref<32x8xf32, #tpu.memory_space<vmem>>, vector<16x8xf32>,
    %cst_52 = arith.constant 0.000000e+00 : f32
    %53 = vector.broadcast %cst_52 : f32 to vector<16x8xf32>
    %c5_53 = arith.constant 5 : index
    %c0_54 = arith.constant 0 : index
    %54 = vector.load %arg17[%c5_53, %c0_54] : memref<32x8xf32, #tpu.memory_space<vmem>>, vector<16x8xf32>
    %55 = arith.truncf %54 : vector<16x8xf32> to vector<16x8xbf16>
    %c1_55 = arith.constant 1 : index
    %c0_56 = arith.constant 0 : index
    %c0_57 = arith.constant 0 : index
    %c0_58 = arith.constant 0 : index
    %56 = vector.load %arg5[%c1_55, %c0_56, %c0_57, %c0_58] : memref<7x3x8x8xbf16, #tpu.memory_space<vmem>>, vector<1x1x8x8xbf16>
    %57 = vector.shape_cast %56 : vector<1x1x8x8xbf16> to vector<8x8xbf16>
    %cst_59 = arith.constant dense<0.000000e+00> : vector<16x8xf32>
    %58 = tpu.matmul %55, %57, %cst_59 {dimension_numbers = #tpu.dot_dimension_numbers<[1], [0], [0], [1], [0, 0, 1, 1], [], []>} : vector<16x8xbf16>, vector<8x8xbf16>, vector<16x8xf32> -> vector<16x8xf32>
    %59 = arith.addf %53, %58 : vector<16x8xf32>
    %c8_60 = arith.constant 8 : index
    %c0_61 = arith.constant 0 : index
    %60 = vector.load %arg17[%c8_60, %c0_61] : memref<32x8xf32, #tpu.memory_space<vmem>>, vector<16x8xf32>
    %61 = arith.truncf %60 : vector<16x8xf32> to vector<16x8xbf16>
    %c1_62 = arith.constant 1 : index
    %c1_63 = arith.constant 1 : index
    %c0_64 = arith.constant 0 : index
    %c0_65 = arith.constant 0 : index
    %62 = vector.load %arg5[%c1_62, %c1_63, %c0_64, %c0_65] : memref<7x3x8x8xbf16, #tpu.memory_space<vmem>>, vector<1x1x8x8xbf16>
    %63 = vector.shape_cast %62 : vector<1x1x8x8xbf16> to vector<8x8xbf16>
    %cst_66 = arith.constant dense<0.000000e+00> : vector<16x8xf32>
    %64 = tpu.matmul %61, %63, %cst_66 {dimension_numbers = #tpu.dot_dimension_numbers<[1], [0], [0], [1], [0, 0, 1, 1], [], []>} : vector<16x8xbf16>, vector<8x8xbf16>, vector<16x8xf32> -> vector<16x8xf32>
    %65 = arith.addf %59, %64 : vector<16x8xf32>
    %c11_67 = arith.constant 11 : index
    %c0_68 = arith.constant 0 : index
    %66 = vector.load %arg17[%c11_67, %c0_68] : memref<32x8xf32, #tpu.memory_space<vmem>>, vector<16x8xf32>
    %67 = arith.truncf %66 : vector<16x8xf32> to vector<16x8xbf16>
    %c1_69 = arith.constant 1 : index
    %c2_70 = arith.constant 2 : index
    %c0_71 = arith.constant 0 : index
    %c0_72 = arith.constant 0 : index
    %68 = vector.load %arg5[%c1_69, %c2_70, %c0_71, %c0_72] : memref<7x3x8x8xbf16, #tpu.memory_space<vmem>>, vector<1x1x8x8xbf16>
    %69 = vector.shape_cast %68 : vector<1x1x8x8xbf16> to vector<8x8xbf16>
    %cst_73 = arith.constant dense<0.000000e+00> : vector<16x8xf32>
    %70 = tpu.matmul %67, %69, %cst_73 {dimension_numbers = #tpu.dot_dimension_numbers<[1], [0], [0], [1], [0, 0, 1, 1], [], []>} : vector<16x8xbf16>, vector<8x8xbf16>, vector<16x8xf32> -> vector<16x8xf32>
    %71 = arith.addf %65, %70 : vector<16x8xf32>
    %cst_74 = arith.constant 0.000000e+00 : f32
    %72 = vector.broadcast %cst_74 : f32 to vector<16x8xf32>
    %73 = arith.maximumf %71, %72 : vector<16x8xf32>
    %c1_75 = arith.constant 1 : index
    %c0_76 = arith.constant 0 : index
    %c0_77 = arith.constant 0 : index
    %74 = vector.load %arg6[%c1_75, %c0_76, %c0_77] : memref<7x1x8xf32, #tpu.memory_space<vmem>>, vector<1x1x8xf32>
    %75 = vector.shape_cast %74 : vector<1x1x8xf32> to vector<1x8xf32>
    %76 = vector.broadcast %75 : vector<1x8xf32> to vector<16x8xf32>
    %77 = arith.mulf %73, %76 : vector<16x8xf32>
    %c1_78 = arith.constant 1 : index
    %c0_79 = arith.constant 0 : index
    %c0_80 = arith.constant 0 : index
    %78 = vector.load %arg7[%c1_78, %c0_79, %c0_80] : memref<7x1x8xf32, #tpu.memory_space<vmem>>, vector<1x1x8xf32>
    %79 = vector.shape_cast %78 : vector<1x1x8xf32> to vector<1x8xf32>
    %80 = vector.broadcast %79 : vector<1x8xf32> to vector<16x8xf32>
    %81 = arith.addf %77, %80 : vector<16x8xf32>
    %c0_81 = arith.constant 0 : index
    %c8_82 = arith.constant 8 : index
    %82 = vector.load %arg18[%c0_81, %c8_82] : memref<16x64xf32, #tpu.memory_space<vmem>>, vector<16x8xf32>
    tpu.vector_store %arg18[%c0_81, %c8_82], %81 {strides = array<i32>} : memref<16x64xf32, #tpu.memory_space<vmem>>, vector<16x8xf32>,
    %c0_83 = arith.constant 0 : index
    %c16 = arith.constant 16 : index
    %83 = vector.load %arg18[%c0_83, %c16] : memref<16x64xf32, #tpu.memory_space<vmem>>, vector<16x8xf32>
    %c0_84 = arith.constant 0 : index
    %c8_85 = arith.constant 8 : index
    %84 = vector.load %arg18[%c0_84, %c8_85] : memref<16x64xf32, #tpu.memory_space<vmem>>, vector<16x8xf32>
    %85 = arith.addf %83, %84 : vector<16x8xf32>
    %c8_86 = arith.constant 8 : index
    %c0_87 = arith.constant 0 : index
    %86 = vector.load %arg17[%c8_86, %c0_87] : memref<32x8xf32, #tpu.memory_space<vmem>>, vector<16x8xf32>
    tpu.vector_store %arg17[%c8_86, %c0_87], %85 {strides = array<i32>} : memref<32x8xf32, #tpu.memory_space<vmem>>, vector<16x8xf32>,
    %cst_88 = arith.constant 0.000000e+00 : f32
    %87 = vector.broadcast %cst_88 : f32 to vector<16x8xf32>
    %c5_89 = arith.constant 5 : index
    %c0_90 = arith.constant 0 : index
    %88 = vector.load %arg17[%c5_89, %c0_90] : memref<32x8xf32, #tpu.memory_space<vmem>>, vector<16x8xf32>
    %89 = arith.truncf %88 : vector<16x8xf32> to vector<16x8xbf16>
    %c2_91 = arith.constant 2 : index
    %c0_92 = arith.constant 0 : index
    %c0_93 = arith.constant 0 : index
    %c0_94 = arith.constant 0 : index
    %90 = vector.load %arg5[%c2_91, %c0_92, %c0_93, %c0_94] : memref<7x3x8x8xbf16, #tpu.memory_space<vmem>>, vector<1x1x8x8xbf16>
    %91 = vector.shape_cast %90 : vector<1x1x8x8xbf16> to vector<8x8xbf16>
    %cst_95 = arith.constant dense<0.000000e+00> : vector<16x8xf32>
    %92 = tpu.matmul %89, %91, %cst_95 {dimension_numbers = #tpu.dot_dimension_numbers<[1], [0], [0], [1], [0, 0, 1, 1], [], []>} : vector<16x8xbf16>, vector<8x8xbf16>, vector<16x8xf32> -> vector<16x8xf32>
    %93 = arith.addf %87, %92 : vector<16x8xf32>
    %c8_96 = arith.constant 8 : index
    %c0_97 = arith.constant 0 : index
    %94 = vector.load %arg17[%c8_96, %c0_97] : memref<32x8xf32, #tpu.memory_space<vmem>>, vector<16x8xf32>
    %95 = arith.truncf %94 : vector<16x8xf32> to vector<16x8xbf16>
    %c2_98 = arith.constant 2 : index
    %c1_99 = arith.constant 1 : index
    %c0_100 = arith.constant 0 : index
    %c0_101 = arith.constant 0 : index
    %96 = vector.load %arg5[%c2_98, %c1_99, %c0_100, %c0_101] : memref<7x3x8x8xbf16, #tpu.memory_space<vmem>>, vector<1x1x8x8xbf16>
    %97 = vector.shape_cast %96 : vector<1x1x8x8xbf16> to vector<8x8xbf16>
    %cst_102 = arith.constant dense<0.000000e+00> : vector<16x8xf32>
    %98 = tpu.matmul %95, %97, %cst_102 {dimension_numbers = #tpu.dot_dimension_numbers<[1], [0], [0], [1], [0, 0, 1, 1], [], []>} : vector<16x8xbf16>, vector<8x8xbf16>, vector<16x8xf32> -> vector<16x8xf32>
    %99 = arith.addf %93, %98 : vector<16x8xf32>
    %c11_103 = arith.constant 11 : index
    %c0_104 = arith.constant 0 : index
    %100 = vector.load %arg17[%c11_103, %c0_104] : memref<32x8xf32, #tpu.memory_space<vmem>>, vector<16x8xf32>
    %101 = arith.truncf %100 : vector<16x8xf32> to vector<16x8xbf16>
    %c2_105 = arith.constant 2 : index
    %c2_106 = arith.constant 2 : index
    %c0_107 = arith.constant 0 : index
    %c0_108 = arith.constant 0 : index
    %102 = vector.load %arg5[%c2_105, %c2_106, %c0_107, %c0_108] : memref<7x3x8x8xbf16, #tpu.memory_space<vmem>>, vector<1x1x8x8xbf16>
    %103 = vector.shape_cast %102 : vector<1x1x8x8xbf16> to vector<8x8xbf16>
    %cst_109 = arith.constant dense<0.000000e+00> : vector<16x8xf32>
    %104 = tpu.matmul %101, %103, %cst_109 {dimension_numbers = #tpu.dot_dimension_numbers<[1], [0], [0], [1], [0, 0, 1, 1], [], []>} : vector<16x8xbf16>, vector<8x8xbf16>, vector<16x8xf32> -> vector<16x8xf32>
    %105 = arith.addf %99, %104 : vector<16x8xf32>
    %cst_110 = arith.constant 0.000000e+00 : f32
    %106 = vector.broadcast %cst_110 : f32 to vector<16x8xf32>
    %107 = arith.maximumf %105, %106 : vector<16x8xf32>
    %c2_111 = arith.constant 2 : index
    %c0_112 = arith.constant 0 : index
    %c0_113 = arith.constant 0 : index
    %108 = vector.load %arg6[%c2_111, %c0_112, %c0_113] : memref<7x1x8xf32, #tpu.memory_space<vmem>>, vector<1x1x8xf32>
    %109 = vector.shape_cast %108 : vector<1x1x8xf32> to vector<1x8xf32>
    %110 = vector.broadcast %109 : vector<1x8xf32> to vector<16x8xf32>
    %111 = arith.mulf %107, %110 : vector<16x8xf32>
    %c2_114 = arith.constant 2 : index
    %c0_115 = arith.constant 0 : index
    %c0_116 = arith.constant 0 : index
    %112 = vector.load %arg7[%c2_114, %c0_115, %c0_116] : memref<7x1x8xf32, #tpu.memory_space<vmem>>, vector<1x1x8xf32>
    %113 = vector.shape_cast %112 : vector<1x1x8xf32> to vector<1x8xf32>
    %114 = vector.broadcast %113 : vector<1x8xf32> to vector<16x8xf32>
    %115 = arith.addf %111, %114 : vector<16x8xf32>
    %c0_117 = arith.constant 0 : index
    %c16_118 = arith.constant 16 : index
    %116 = vector.load %arg18[%c0_117, %c16_118] : memref<16x64xf32, #tpu.memory_space<vmem>>, vector<16x8xf32>
    tpu.vector_store %arg18[%c0_117, %c16_118], %115 {strides = array<i32>} : memref<16x64xf32, #tpu.memory_space<vmem>>, vector<16x8xf32>,
    %c0_119 = arith.constant 0 : index
    %c24_120 = arith.constant 24 : index
    %117 = vector.load %arg18[%c0_119, %c24_120] : memref<16x64xf32, #tpu.memory_space<vmem>>, vector<16x8xf32>
    %c0_121 = arith.constant 0 : index
    %c16_122 = arith.constant 16 : index
    %118 = vector.load %arg18[%c0_121, %c16_122] : memref<16x64xf32, #tpu.memory_space<vmem>>, vector<16x8xf32>
    %119 = arith.addf %117, %118 : vector<16x8xf32>
    %c8_123 = arith.constant 8 : index
    %c0_124 = arith.constant 0 : index
    %120 = vector.load %arg17[%c8_123, %c0_124] : memref<32x8xf32, #tpu.memory_space<vmem>>, vector<16x8xf32>
    tpu.vector_store %arg17[%c8_123, %c0_124], %119 {strides = array<i32>} : memref<32x8xf32, #tpu.memory_space<vmem>>, vector<16x8xf32>,
    %cst_125 = arith.constant 0.000000e+00 : f32
    %121 = vector.broadcast %cst_125 : f32 to vector<16x8xf32>
    %c5_126 = arith.constant 5 : index
    %c0_127 = arith.constant 0 : index
    %122 = vector.load %arg17[%c5_126, %c0_127] : memref<32x8xf32, #tpu.memory_space<vmem>>, vector<16x8xf32>
    %123 = arith.truncf %122 : vector<16x8xf32> to vector<16x8xbf16>
    %c3 = arith.constant 3 : index
    %c0_128 = arith.constant 0 : index
    %c0_129 = arith.constant 0 : index
    %c0_130 = arith.constant 0 : index
    %124 = vector.load %arg5[%c3, %c0_128, %c0_129, %c0_130] : memref<7x3x8x8xbf16, #tpu.memory_space<vmem>>, vector<1x1x8x8xbf16>
    %125 = vector.shape_cast %124 : vector<1x1x8x8xbf16> to vector<8x8xbf16>
    %cst_131 = arith.constant dense<0.000000e+00> : vector<16x8xf32>
    %126 = tpu.matmul %123, %125, %cst_131 {dimension_numbers = #tpu.dot_dimension_numbers<[1], [0], [0], [1], [0, 0, 1, 1], [], []>} : vector<16x8xbf16>, vector<8x8xbf16>, vector<16x8xf32> -> vector<16x8xf32>
    %127 = arith.addf %121, %126 : vector<16x8xf32>
    %c8_132 = arith.constant 8 : index
    %c0_133 = arith.constant 0 : index
    %128 = vector.load %arg17[%c8_132, %c0_133] : memref<32x8xf32, #tpu.memory_space<vmem>>, vector<16x8xf32>
    %129 = arith.truncf %128 : vector<16x8xf32> to vector<16x8xbf16>
    %c3_134 = arith.constant 3 : index
    %c1_135 = arith.constant 1 : index
    %c0_136 = arith.constant 0 : index
    %c0_137 = arith.constant 0 : index
    %130 = vector.load %arg5[%c3_134, %c1_135, %c0_136, %c0_137] : memref<7x3x8x8xbf16, #tpu.memory_space<vmem>>, vector<1x1x8x8xbf16>
    %131 = vector.shape_cast %130 : vector<1x1x8x8xbf16> to vector<8x8xbf16>
    %cst_138 = arith.constant dense<0.000000e+00> : vector<16x8xf32>
    %132 = tpu.matmul %129, %131, %cst_138 {dimension_numbers = #tpu.dot_dimension_numbers<[1], [0], [0], [1], [0, 0, 1, 1], [], []>} : vector<16x8xbf16>, vector<8x8xbf16>, vector<16x8xf32> -> vector<16x8xf32>
    %133 = arith.addf %127, %132 : vector<16x8xf32>
    %c11_139 = arith.constant 11 : index
    %c0_140 = arith.constant 0 : index
    %134 = vector.load %arg17[%c11_139, %c0_140] : memref<32x8xf32, #tpu.memory_space<vmem>>, vector<16x8xf32>
    %135 = arith.truncf %134 : vector<16x8xf32> to vector<16x8xbf16>
    %c3_141 = arith.constant 3 : index
    %c2_142 = arith.constant 2 : index
    %c0_143 = arith.constant 0 : index
    %c0_144 = arith.constant 0 : index
    %136 = vector.load %arg5[%c3_141, %c2_142, %c0_143, %c0_144] : memref<7x3x8x8xbf16, #tpu.memory_space<vmem>>, vector<1x1x8x8xbf16>
    %137 = vector.shape_cast %136 : vector<1x1x8x8xbf16> to vector<8x8xbf16>
    %cst_145 = arith.constant dense<0.000000e+00> : vector<16x8xf32>
    %138 = tpu.matmul %135, %137, %cst_145 {dimension_numbers = #tpu.dot_dimension_numbers<[1], [0], [0], [1], [0, 0, 1, 1], [], []>} : vector<16x8xbf16>, vector<8x8xbf16>, vector<16x8xf32> -> vector<16x8xf32>
    %139 = arith.addf %133, %138 : vector<16x8xf32>
    %cst_146 = arith.constant 0.000000e+00 : f32
    %140 = vector.broadcast %cst_146 : f32 to vector<16x8xf32>
    %141 = arith.maximumf %139, %140 : vector<16x8xf32>
    %c3_147 = arith.constant 3 : index
    %c0_148 = arith.constant 0 : index
    %c0_149 = arith.constant 0 : index
    %142 = vector.load %arg6[%c3_147, %c0_148, %c0_149] : memref<7x1x8xf32, #tpu.memory_space<vmem>>, vector<1x1x8xf32>
    %143 = vector.shape_cast %142 : vector<1x1x8xf32> to vector<1x8xf32>
    %144 = vector.broadcast %143 : vector<1x8xf32> to vector<16x8xf32>
    %145 = arith.mulf %141, %144 : vector<16x8xf32>
    %c3_150 = arith.constant 3 : index
    %c0_151 = arith.constant 0 : index
    %c0_152 = arith.constant 0 : index
    %146 = vector.load %arg7[%c3_150, %c0_151, %c0_152] : memref<7x1x8xf32, #tpu.memory_space<vmem>>, vector<1x1x8xf32>
    %147 = vector.shape_cast %146 : vector<1x1x8xf32> to vector<1x8xf32>
    %148 = vector.broadcast %147 : vector<1x8xf32> to vector<16x8xf32>
    %149 = arith.addf %145, %148 : vector<16x8xf32>
    %c0_153 = arith.constant 0 : index
    %c24_154 = arith.constant 24 : index
    %150 = vector.load %arg18[%c0_153, %c24_154] : memref<16x64xf32, #tpu.memory_space<vmem>>, vector<16x8xf32>
    tpu.vector_store %arg18[%c0_153, %c24_154], %149 {strides = array<i32>} : memref<16x64xf32, #tpu.memory_space<vmem>>, vector<16x8xf32>,
    %c0_155 = arith.constant 0 : index
    %c32 = arith.constant 32 : index
    %151 = vector.load %arg18[%c0_155, %c32] : memref<16x64xf32, #tpu.memory_space<vmem>>, vector<16x8xf32>
    %c0_156 = arith.constant 0 : index
    %c24_157 = arith.constant 24 : index
    %152 = vector.load %arg18[%c0_156, %c24_157] : memref<16x64xf32, #tpu.memory_space<vmem>>, vector<16x8xf32>
    %153 = arith.addf %151, %152 : vector<16x8xf32>
    %c8_158 = arith.constant 8 : index
    %c0_159 = arith.constant 0 : index
    %154 = vector.load %arg17[%c8_158, %c0_159] : memref<32x8xf32, #tpu.memory_space<vmem>>, vector<16x8xf32>
    tpu.vector_store %arg17[%c8_158, %c0_159], %153 {strides = array<i32>} : memref<32x8xf32, #tpu.memory_space<vmem>>, vector<16x8xf32>,
    %cst_160 = arith.constant 0.000000e+00 : f32
    %155 = vector.broadcast %cst_160 : f32 to vector<16x8xf32>
    %c5_161 = arith.constant 5 : index
    %c0_162 = arith.constant 0 : index
    %156 = vector.load %arg17[%c5_161, %c0_162] : memref<32x8xf32, #tpu.memory_space<vmem>>, vector<16x8xf32>
    %157 = arith.truncf %156 : vector<16x8xf32> to vector<16x8xbf16>
    %c4 = arith.constant 4 : index
    %c0_163 = arith.constant 0 : index
    %c0_164 = arith.constant 0 : index
    %c0_165 = arith.constant 0 : index
    %158 = vector.load %arg5[%c4, %c0_163, %c0_164, %c0_165] : memref<7x3x8x8xbf16, #tpu.memory_space<vmem>>, vector<1x1x8x8xbf16>
    %159 = vector.shape_cast %158 : vector<1x1x8x8xbf16> to vector<8x8xbf16>
    %cst_166 = arith.constant dense<0.000000e+00> : vector<16x8xf32>
    %160 = tpu.matmul %157, %159, %cst_166 {dimension_numbers = #tpu.dot_dimension_numbers<[1], [0], [0], [1], [0, 0, 1, 1], [], []>} : vector<16x8xbf16>, vector<8x8xbf16>, vector<16x8xf32> -> vector<16x8xf32>
    %161 = arith.addf %155, %160 : vector<16x8xf32>
    %c8_167 = arith.constant 8 : index
    %c0_168 = arith.constant 0 : index
    %162 = vector.load %arg17[%c8_167, %c0_168] : memref<32x8xf32, #tpu.memory_space<vmem>>, vector<16x8xf32>
    %163 = arith.truncf %162 : vector<16x8xf32> to vector<16x8xbf16>
    %c4_169 = arith.constant 4 : index
    %c1_170 = arith.constant 1 : index
    %c0_171 = arith.constant 0 : index
    %c0_172 = arith.constant 0 : index
    %164 = vector.load %arg5[%c4_169, %c1_170, %c0_171, %c0_172] : memref<7x3x8x8xbf16, #tpu.memory_space<vmem>>, vector<1x1x8x8xbf16>
    %165 = vector.shape_cast %164 : vector<1x1x8x8xbf16> to vector<8x8xbf16>
    %cst_173 = arith.constant dense<0.000000e+00> : vector<16x8xf32>
    %166 = tpu.matmul %163, %165, %cst_173 {dimension_numbers = #tpu.dot_dimension_numbers<[1], [0], [0], [1], [0, 0, 1, 1], [], []>} : vector<16x8xbf16>, vector<8x8xbf16>, vector<16x8xf32> -> vector<16x8xf32>
    %167 = arith.addf %161, %166 : vector<16x8xf32>
    %c11_174 = arith.constant 11 : index
    %c0_175 = arith.constant 0 : index
    %168 = vector.load %arg17[%c11_174, %c0_175] : memref<32x8xf32, #tpu.memory_space<vmem>>, vector<16x8xf32>
    %169 = arith.truncf %168 : vector<16x8xf32> to vector<16x8xbf16>
    %c4_176 = arith.constant 4 : index
    %c2_177 = arith.constant 2 : index
    %c0_178 = arith.constant 0 : index
    %c0_179 = arith.constant 0 : index
    %170 = vector.load %arg5[%c4_176, %c2_177, %c0_178, %c0_179] : memref<7x3x8x8xbf16, #tpu.memory_space<vmem>>, vector<1x1x8x8xbf16>
    %171 = vector.shape_cast %170 : vector<1x1x8x8xbf16> to vector<8x8xbf16>
    %cst_180 = arith.constant dense<0.000000e+00> : vector<16x8xf32>
    %172 = tpu.matmul %169, %171, %cst_180 {dimension_numbers = #tpu.dot_dimension_numbers<[1], [0], [0], [1], [0, 0, 1, 1], [], []>} : vector<16x8xbf16>, vector<8x8xbf16>, vector<16x8xf32> -> vector<16x8xf32>
    %173 = arith.addf %167, %172 : vector<16x8xf32>
    %cst_181 = arith.constant 0.000000e+00 : f32
    %174 = vector.broadcast %cst_181 : f32 to vector<16x8xf32>
    %175 = arith.maximumf %173, %174 : vector<16x8xf32>
    %c4_182 = arith.constant 4 : index
    %c0_183 = arith.constant 0 : index
    %c0_184 = arith.constant 0 : index
    %176 = vector.load %arg6[%c4_182, %c0_183, %c0_184] : memref<7x1x8xf32, #tpu.memory_space<vmem>>, vector<1x1x8xf32>
    %177 = vector.shape_cast %176 : vector<1x1x8xf32> to vector<1x8xf32>
    %178 = vector.broadcast %177 : vector<1x8xf32> to vector<16x8xf32>
    %179 = arith.mulf %175, %178 : vector<16x8xf32>
    %c4_185 = arith.constant 4 : index
    %c0_186 = arith.constant 0 : index
    %c0_187 = arith.constant 0 : index
    %180 = vector.load %arg7[%c4_185, %c0_186, %c0_187] : memref<7x1x8xf32, #tpu.memory_space<vmem>>, vector<1x1x8xf32>
    %181 = vector.shape_cast %180 : vector<1x1x8xf32> to vector<1x8xf32>
    %182 = vector.broadcast %181 : vector<1x8xf32> to vector<16x8xf32>
    %183 = arith.addf %179, %182 : vector<16x8xf32>
    %c0_188 = arith.constant 0 : index
    %c32_189 = arith.constant 32 : index
    %184 = vector.load %arg18[%c0_188, %c32_189] : memref<16x64xf32, #tpu.memory_space<vmem>>, vector<16x8xf32>
    tpu.vector_store %arg18[%c0_188, %c32_189], %183 {strides = array<i32>} : memref<16x64xf32, #tpu.memory_space<vmem>>, vector<16x8xf32>,
    %c0_190 = arith.constant 0 : index
    %c40 = arith.constant 40 : index
    %185 = vector.load %arg18[%c0_190, %c40] : memref<16x64xf32, #tpu.memory_space<vmem>>, vector<16x8xf32>
    %c0_191 = arith.constant 0 : index
    %c32_192 = arith.constant 32 : index
    %186 = vector.load %arg18[%c0_191, %c32_192] : memref<16x64xf32, #tpu.memory_space<vmem>>, vector<16x8xf32>
    %187 = arith.addf %185, %186 : vector<16x8xf32>
    %c8_193 = arith.constant 8 : index
    %c0_194 = arith.constant 0 : index
    %188 = vector.load %arg17[%c8_193, %c0_194] : memref<32x8xf32, #tpu.memory_space<vmem>>, vector<16x8xf32>
    tpu.vector_store %arg17[%c8_193, %c0_194], %187 {strides = array<i32>} : memref<32x8xf32, #tpu.memory_space<vmem>>, vector<16x8xf32>,
    %cst_195 = arith.constant 0.000000e+00 : f32
    %189 = vector.broadcast %cst_195 : f32 to vector<16x8xf32>
    %c5_196 = arith.constant 5 : index
    %c0_197 = arith.constant 0 : index
    %190 = vector.load %arg17[%c5_196, %c0_197] : memref<32x8xf32, #tpu.memory_space<vmem>>, vector<16x8xf32>
    %191 = arith.truncf %190 : vector<16x8xf32> to vector<16x8xbf16>
    %c5_198 = arith.constant 5 : index
    %c0_199 = arith.constant 0 : index
    %c0_200 = arith.constant 0 : index
    %c0_201 = arith.constant 0 : index
    %192 = vector.load %arg5[%c5_198, %c0_199, %c0_200, %c0_201] : memref<7x3x8x8xbf16, #tpu.memory_space<vmem>>, vector<1x1x8x8xbf16>
    %193 = vector.shape_cast %192 : vector<1x1x8x8xbf16> to vector<8x8xbf16>
    %cst_202 = arith.constant dense<0.000000e+00> : vector<16x8xf32>
    %194 = tpu.matmul %191, %193, %cst_202 {dimension_numbers = #tpu.dot_dimension_numbers<[1], [0], [0], [1], [0, 0, 1, 1], [], []>} : vector<16x8xbf16>, vector<8x8xbf16>, vector<16x8xf32> -> vector<16x8xf32>
    %195 = arith.addf %189, %194 : vector<16x8xf32>
    %c8_203 = arith.constant 8 : index
    %c0_204 = arith.constant 0 : index
    %196 = vector.load %arg17[%c8_203, %c0_204] : memref<32x8xf32, #tpu.memory_space<vmem>>, vector<16x8xf32>
    %197 = arith.truncf %196 : vector<16x8xf32> to vector<16x8xbf16>
    %c5_205 = arith.constant 5 : index
    %c1_206 = arith.constant 1 : index
    %c0_207 = arith.constant 0 : index
    %c0_208 = arith.constant 0 : index
    %198 = vector.load %arg5[%c5_205, %c1_206, %c0_207, %c0_208] : memref<7x3x8x8xbf16, #tpu.memory_space<vmem>>, vector<1x1x8x8xbf16>
    %199 = vector.shape_cast %198 : vector<1x1x8x8xbf16> to vector<8x8xbf16>
    %cst_209 = arith.constant dense<0.000000e+00> : vector<16x8xf32>
    %200 = tpu.matmul %197, %199, %cst_209 {dimension_numbers = #tpu.dot_dimension_numbers<[1], [0], [0], [1], [0, 0, 1, 1], [], []>} : vector<16x8xbf16>, vector<8x8xbf16>, vector<16x8xf32> -> vector<16x8xf32>
    %201 = arith.addf %195, %200 : vector<16x8xf32>
    %c11_210 = arith.constant 11 : index
    %c0_211 = arith.constant 0 : index
    %202 = vector.load %arg17[%c11_210, %c0_211] : memref<32x8xf32, #tpu.memory_space<vmem>>, vector<16x8xf32>
    %203 = arith.truncf %202 : vector<16x8xf32> to vector<16x8xbf16>
    %c5_212 = arith.constant 5 : index
    %c2_213 = arith.constant 2 : index
    %c0_214 = arith.constant 0 : index
    %c0_215 = arith.constant 0 : index
    %204 = vector.load %arg5[%c5_212, %c2_213, %c0_214, %c0_215] : memref<7x3x8x8xbf16, #tpu.memory_space<vmem>>, vector<1x1x8x8xbf16>
    %205 = vector.shape_cast %204 : vector<1x1x8x8xbf16> to vector<8x8xbf16>
    %cst_216 = arith.constant dense<0.000000e+00> : vector<16x8xf32>
    %206 = tpu.matmul %203, %205, %cst_216 {dimension_numbers = #tpu.dot_dimension_numbers<[1], [0], [0], [1], [0, 0, 1, 1], [], []>} : vector<16x8xbf16>, vector<8x8xbf16>, vector<16x8xf32> -> vector<16x8xf32>
    %207 = arith.addf %201, %206 : vector<16x8xf32>
    %cst_217 = arith.constant 0.000000e+00 : f32
    %208 = vector.broadcast %cst_217 : f32 to vector<16x8xf32>
    %209 = arith.maximumf %207, %208 : vector<16x8xf32>
    %c5_218 = arith.constant 5 : index
    %c0_219 = arith.constant 0 : index
    %c0_220 = arith.constant 0 : index
    %210 = vector.load %arg6[%c5_218, %c0_219, %c0_220] : memref<7x1x8xf32, #tpu.memory_space<vmem>>, vector<1x1x8xf32>
    %211 = vector.shape_cast %210 : vector<1x1x8xf32> to vector<1x8xf32>
    %212 = vector.broadcast %211 : vector<1x8xf32> to vector<16x8xf32>
    %213 = arith.mulf %209, %212 : vector<16x8xf32>
    %c5_221 = arith.constant 5 : index
    %c0_222 = arith.constant 0 : index
    %c0_223 = arith.constant 0 : index
    %214 = vector.load %arg7[%c5_221, %c0_222, %c0_223] : memref<7x1x8xf32, #tpu.memory_space<vmem>>, vector<1x1x8xf32>
    %215 = vector.shape_cast %214 : vector<1x1x8xf32> to vector<1x8xf32>
    %216 = vector.broadcast %215 : vector<1x8xf32> to vector<16x8xf32>
    %217 = arith.addf %213, %216 : vector<16x8xf32>
    %c0_224 = arith.constant 0 : index
    %c40_225 = arith.constant 40 : index
    %218 = vector.load %arg18[%c0_224, %c40_225] : memref<16x64xf32, #tpu.memory_space<vmem>>, vector<16x8xf32>
    tpu.vector_store %arg18[%c0_224, %c40_225], %217 {strides = array<i32>} : memref<16x64xf32, #tpu.memory_space<vmem>>, vector<16x8xf32>,
    %c0_226 = arith.constant 0 : index
    %c48 = arith.constant 48 : index
    %219 = vector.load %arg18[%c0_226, %c48] : memref<16x64xf32, #tpu.memory_space<vmem>>, vector<16x8xf32>
    %c0_227 = arith.constant 0 : index
    %c40_228 = arith.constant 40 : index
    %220 = vector.load %arg18[%c0_227, %c40_228] : memref<16x64xf32, #tpu.memory_space<vmem>>, vector<16x8xf32>
    %221 = arith.addf %219, %220 : vector<16x8xf32>
    %c8_229 = arith.constant 8 : index
    %c0_230 = arith.constant 0 : index
    %222 = vector.load %arg17[%c8_229, %c0_230] : memref<32x8xf32, #tpu.memory_space<vmem>>, vector<16x8xf32>
    tpu.vector_store %arg17[%c8_229, %c0_230], %221 {strides = array<i32>} : memref<32x8xf32, #tpu.memory_space<vmem>>, vector<16x8xf32>,
    %cst_231 = arith.constant 0.000000e+00 : f32
    %223 = vector.broadcast %cst_231 : f32 to vector<16x8xf32>
    %c5_232 = arith.constant 5 : index
    %c0_233 = arith.constant 0 : index
    %224 = vector.load %arg17[%c5_232, %c0_233] : memref<32x8xf32, #tpu.memory_space<vmem>>, vector<16x8xf32>
    %225 = arith.truncf %224 : vector<16x8xf32> to vector<16x8xbf16>
    %c6 = arith.constant 6 : index
    %c0_234 = arith.constant 0 : index
    %c0_235 = arith.constant 0 : index
    %c0_236 = arith.constant 0 : index
    %226 = vector.load %arg5[%c6, %c0_234, %c0_235, %c0_236] : memref<7x3x8x8xbf16, #tpu.memory_space<vmem>>, vector<1x1x8x8xbf16>
    %227 = vector.shape_cast %226 : vector<1x1x8x8xbf16> to vector<8x8xbf16>
    %cst_237 = arith.constant dense<0.000000e+00> : vector<16x8xf32>
    %228 = tpu.matmul %225, %227, %cst_237 {dimension_numbers = #tpu.dot_dimension_numbers<[1], [0], [0], [1], [0, 0, 1, 1], [], []>} : vector<16x8xbf16>, vector<8x8xbf16>, vector<16x8xf32> -> vector<16x8xf32>
    %229 = arith.addf %223, %228 : vector<16x8xf32>
    %c8_238 = arith.constant 8 : index
    %c0_239 = arith.constant 0 : index
    %230 = vector.load %arg17[%c8_238, %c0_239] : memref<32x8xf32, #tpu.memory_space<vmem>>, vector<16x8xf32>
    %231 = arith.truncf %230 : vector<16x8xf32> to vector<16x8xbf16>
    %c6_240 = arith.constant 6 : index
    %c1_241 = arith.constant 1 : index
    %c0_242 = arith.constant 0 : index
    %c0_243 = arith.constant 0 : index
    %232 = vector.load %arg5[%c6_240, %c1_241, %c0_242, %c0_243] : memref<7x3x8x8xbf16, #tpu.memory_space<vmem>>, vector<1x1x8x8xbf16>
    %233 = vector.shape_cast %232 : vector<1x1x8x8xbf16> to vector<8x8xbf16>
    %cst_244 = arith.constant dense<0.000000e+00> : vector<16x8xf32>
    %234 = tpu.matmul %231, %233, %cst_244 {dimension_numbers = #tpu.dot_dimension_numbers<[1], [0], [0], [1], [0, 0, 1, 1], [], []>} : vector<16x8xbf16>, vector<8x8xbf16>, vector<16x8xf32> -> vector<16x8xf32>
    %235 = arith.addf %229, %234 : vector<16x8xf32>
    %c11_245 = arith.constant 11 : index
    %c0_246 = arith.constant 0 : index
    %236 = vector.load %arg17[%c11_245, %c0_246] : memref<32x8xf32, #tpu.memory_space<vmem>>, vector<16x8xf32>
    %237 = arith.truncf %236 : vector<16x8xf32> to vector<16x8xbf16>
    %c6_247 = arith.constant 6 : index
    %c2_248 = arith.constant 2 : index
    %c0_249 = arith.constant 0 : index
    %c0_250 = arith.constant 0 : index
    %238 = vector.load %arg5[%c6_247, %c2_248, %c0_249, %c0_250] : memref<7x3x8x8xbf16, #tpu.memory_space<vmem>>, vector<1x1x8x8xbf16>
    %239 = vector.shape_cast %238 : vector<1x1x8x8xbf16> to vector<8x8xbf16>
    %cst_251 = arith.constant dense<0.000000e+00> : vector<16x8xf32>
    %240 = tpu.matmul %237, %239, %cst_251 {dimension_numbers = #tpu.dot_dimension_numbers<[1], [0], [0], [1], [0, 0, 1, 1], [], []>} : vector<16x8xbf16>, vector<8x8xbf16>, vector<16x8xf32> -> vector<16x8xf32>
    %241 = arith.addf %235, %240 : vector<16x8xf32>
    %cst_252 = arith.constant 0.000000e+00 : f32
    %242 = vector.broadcast %cst_252 : f32 to vector<16x8xf32>
    %243 = arith.maximumf %241, %242 : vector<16x8xf32>
    %c6_253 = arith.constant 6 : index
    %c0_254 = arith.constant 0 : index
    %c0_255 = arith.constant 0 : index
    %244 = vector.load %arg6[%c6_253, %c0_254, %c0_255] : memref<7x1x8xf32, #tpu.memory_space<vmem>>, vector<1x1x8xf32>
    %245 = vector.shape_cast %244 : vector<1x1x8xf32> to vector<1x8xf32>
    %246 = vector.broadcast %245 : vector<1x8xf32> to vector<16x8xf32>
    %247 = arith.mulf %243, %246 : vector<16x8xf32>
    %c6_256 = arith.constant 6 : index
    %c0_257 = arith.constant 0 : index
    %c0_258 = arith.constant 0 : index
    %248 = vector.load %arg7[%c6_256, %c0_257, %c0_258] : memref<7x1x8xf32, #tpu.memory_space<vmem>>, vector<1x1x8xf32>
    %249 = vector.shape_cast %248 : vector<1x1x8xf32> to vector<1x8xf32>
    %250 = vector.broadcast %249 : vector<1x8xf32> to vector<16x8xf32>
    %251 = arith.addf %247, %250 : vector<16x8xf32>
    %c0_259 = arith.constant 0 : index
    %c48_260 = arith.constant 48 : index
    %252 = vector.load %arg18[%c0_259, %c48_260] : memref<16x64xf32, #tpu.memory_space<vmem>>, vector<16x8xf32>
    tpu.vector_store %arg18[%c0_259, %c48_260], %251 {strides = array<i32>} : memref<16x64xf32, #tpu.memory_space<vmem>>, vector<16x8xf32>,
    %c0_261 = arith.constant 0 : index
    %c0_262 = arith.constant 0 : index
    %253 = vector.load %arg18[%c0_261, %c0_262] : memref<16x64xf32, #tpu.memory_space<vmem>>, vector<16x64xf32>
    %254 = arith.truncf %253 : vector<16x64xf32> to vector<16x64xbf16>
    %c0_263 = arith.constant 0 : index
    %c0_264 = arith.constant 0 : index
    %255 = vector.load %arg8[%c0_263, %c0_264] : memref<64x64xbf16, #tpu.memory_space<vmem>>, vector<64x64xbf16>
    %cst_265 = arith.constant dense<0.000000e+00> : vector<16x64xf32>
    %256 = tpu.matmul %254, %255, %cst_265 {dimension_numbers = #tpu.dot_dimension_numbers<[1], [0], [0], [1], [0, 0, 1, 1], [], []>} : vector<16x64xbf16>, vector<64x64xbf16>, vector<16x64xf32> -> vector<16x64xf32>
    %cst_266 = arith.constant 0.000000e+00 : f32
    %257 = vector.broadcast %cst_266 : f32 to vector<16x64xf32>
    %258 = arith.maximumf %256, %257 : vector<16x64xf32>
    %c0_267 = arith.constant 0 : index
    %c0_268 = arith.constant 0 : index
    %259 = vector.load %arg9[%c0_267, %c0_268] : memref<1x64xf32, #tpu.memory_space<vmem>>, vector<1x64xf32>
    %260 = vector.broadcast %259 : vector<1x64xf32> to vector<16x64xf32>
    %261 = arith.mulf %258, %260 : vector<16x64xf32>
    %c0_269 = arith.constant 0 : index
    %c0_270 = arith.constant 0 : index
    %262 = vector.load %arg10[%c0_269, %c0_270] : memref<1x64xf32, #tpu.memory_space<vmem>>, vector<1x64xf32>
    %263 = vector.broadcast %262 : vector<1x64xf32> to vector<16x64xf32>
    %264 = arith.addf %261, %263 : vector<16x64xf32>
    %cst_271 = arith.constant dense<0.000000e+00> : vector<64xf32>
    %265 = vector.multi_reduction <add>, %264, %cst_271 [0] : vector<16x64xf32> to vector<64xf32>
    %266 = vector.shape_cast %265 : vector<64xf32> to vector<1x64xf32>
    %cst_272 = arith.constant 1.600000e+01 : f32
    %267 = vector.broadcast %cst_272 : f32 to vector<1x64xf32>
    %268 = arith.divf %266, %267 : vector<1x64xf32>
    %c0_273 = arith.constant 0 : index
    %c0_274 = arith.constant 0 : index
    %269 = vector.load %arg11[%c0_273, %c0_274] : memref<64x16xf32, #tpu.memory_space<vmem>>, vector<64x16xf32>
    %cst_275 = arith.constant dense<0.000000e+00> : vector<1x16xf32>
    %270 = tpu.matmul %268, %269, %cst_275 {dimension_numbers = #tpu.dot_dimension_numbers<[1], [0], [0], [1], [0, 0, 1, 1], [], []>} : vector<1x64xf32>, vector<64x16xf32>, vector<1x16xf32> -> vector<1x16xf32>
    %c0_276 = arith.constant 0 : index
    %c0_277 = arith.constant 0 : index
    %271 = vector.load %arg12[%c0_276, %c0_277] : memref<1x16xf32, #tpu.memory_space<vmem>>, vector<1x16xf32>
    %272 = arith.addf %270, %271 : vector<1x16xf32>
    %cst_278 = arith.constant 0.000000e+00 : f32
    %273 = vector.broadcast %cst_278 : f32 to vector<1x16xf32>
    %274 = arith.maximumf %272, %273 : vector<1x16xf32>
    %c0_279 = arith.constant 0 : index
    %c0_280 = arith.constant 0 : index
    %275 = vector.load %arg13[%c0_279, %c0_280] : memref<16x64xf32, #tpu.memory_space<vmem>>, vector<16x64xf32>
    %cst_281 = arith.constant dense<0.000000e+00> : vector<1x64xf32>
    %276 = tpu.matmul %274, %275, %cst_281 {dimension_numbers = #tpu.dot_dimension_numbers<[1], [0], [0], [1], [0, 0, 1, 1], [], []>} : vector<1x16xf32>, vector<16x64xf32>, vector<1x64xf32> -> vector<1x64xf32>
    %c0_282 = arith.constant 0 : index
    %c0_283 = arith.constant 0 : index
    %277 = vector.load %arg14[%c0_282, %c0_283] : memref<1x64xf32, #tpu.memory_space<vmem>>, vector<1x64xf32>
    %278 = arith.addf %276, %277 : vector<1x64xf32>
    %279 = arith.negf %278 : vector<1x64xf32>
    %280 = math.exp %279 : vector<1x64xf32>
    %cst_284 = arith.constant 1.000000e+00 : f32
    %281 = vector.broadcast %cst_284 : f32 to vector<1x64xf32>
    %282 = arith.addf %281, %280 : vector<1x64xf32>
    %283 = arith.divf %281, %282 : vector<1x64xf32>
    %c0_285 = arith.constant 0 : index
    %c0_286 = arith.constant 0 : index
    %c0_287 = arith.constant 0 : index
    %284 = vector.load %arg1[%c0_285, %c0_286, %c0_287] : memref<1x16x64xbf16, #tpu.memory_space<vmem>>, vector<1x16x64xbf16>
    %285 = vector.shape_cast %284 : vector<1x16x64xbf16> to vector<16x64xbf16>
    %286 = arith.extf %285 : vector<16x64xbf16> to vector<16x64xf32>
    %287 = vector.broadcast %283 : vector<1x64xf32> to vector<16x64xf32>
    %288 = arith.mulf %264, %287 : vector<16x64xf32>
    %289 = arith.addf %288, %286 : vector<16x64xf32>
    %290 = arith.truncf %289 : vector<16x64xf32> to vector<16x64xbf16>
    %c0_288 = arith.constant 0 : index
    %c0_289 = arith.constant 0 : index
    %c0_290 = arith.constant 0 : index
    %291 = vector.load %arg15[%c0_288, %c0_289, %c0_290] : memref<1x16x64xbf16, #tpu.memory_space<vmem>>, vector<1x16x64xbf16>
    %292 = vector.shape_cast %291 : vector<1x16x64xbf16> to vector<16x64xbf16>
    %293 = vector.shape_cast %290 : vector<16x64xbf16> to vector<1x16x64xbf16>
    tpu.vector_store %arg15[%c0_288, %c0_289, %c0_290], %293 {strides = array<i32>} : memref<1x16x64xbf16, #tpu.memory_space<vmem>>, vector<1x16x64xbf16>,
    %294 = arith.addf %289, %286 : vector<16x64xf32>
    %295 = arith.truncf %294 : vector<16x64xf32> to vector<16x64xbf16>
    %c0_291 = arith.constant 0 : index
    %c0_292 = arith.constant 0 : index
    %c0_293 = arith.constant 0 : index
    %296 = vector.load %arg16[%c0_291, %c0_292, %c0_293] : memref<1x16x64xbf16, #tpu.memory_space<vmem>>, vector<1x16x64xbf16>
    %297 = vector.shape_cast %296 : vector<1x16x64xbf16> to vector<16x64xbf16>
    %298 = vector.shape_cast %295 : vector<16x64xbf16> to vector<1x16x64xbf16>
    tpu.vector_store %arg16[%c0_291, %c0_292, %c0_293], %298 {strides = array<i32>} : memref<1x16x64xbf16, #tpu.memory_space<vmem>>, vector<1x16x64xbf16>,
    return
  }
  func.func @transform_0(%arg0: i32) -> (i32, i32, i32) {
    %c0_i32 = arith.constant 0 : i32
    %c0_i32_0 = arith.constant 0 : i32
    %c0_i32_1 = arith.constant 0 : i32
    return %arg0, %c0_i32, %c0_i32_0 : i32, i32, i32
  }
  func.func @transform_1(%arg0: i32) -> (i32, i32) {
    %c0_i32 = arith.constant 0 : i32
    %c0_i32_0 = arith.constant 0 : i32
    %c0_i32_1 = arith.constant 0 : i32
    return %c0_i32, %c0_i32_0 : i32, i32
  }
  func.func @transform_2(%arg0: i32) -> (i32, i32) {
    %c0_i32 = arith.constant 0 : i32
    %c0_i32_0 = arith.constant 0 : i32
    %c0_i32_1 = arith.constant 0 : i32
    return %c0_i32, %c0_i32_0 : i32, i32
  }
  func.func @transform_3(%arg0: i32) -> (i32, i32) {
    %c0_i32 = arith.constant 0 : i32
    %c0_i32_0 = arith.constant 0 : i32
    %c0_i32_1 = arith.constant 0 : i32
    return %c0_i32, %c0_i32_0 : i32, i32
  }
  func.func @transform_4(%arg0: i32) -> (i32, i32, i32, i32) {
    %c0_i32 = arith.constant 0 : i32
    %c0_i32_0 = arith.constant 0 : i32
    %c0_i32_1 = arith.constant 0 : i32
    %c0_i32_2 = arith.constant 0 : i32
    %c0_i32_3 = arith.constant 0 : i32
    return %c0_i32, %c0_i32_0, %c0_i32_1, %c0_i32_2 : i32, i32, i32, i32
  }
  func.func @transform_5(%arg0: i32) -> (i32, i32, i32) {
    %c0_i32 = arith.constant 0 : i32
    %c0_i32_0 = arith.constant 0 : i32
    %c0_i32_1 = arith.constant 0 : i32
    %c0_i32_2 = arith.constant 0 : i32
    return %c0_i32, %c0_i32_0, %c0_i32_1 : i32, i32, i32
  }
  func.func @transform_6(%arg0: i32) -> (i32, i32, i32) {
    %c0_i32 = arith.constant 0 : i32
    %c0_i32_0 = arith.constant 0 : i32
    %c0_i32_1 = arith.constant 0 : i32
    %c0_i32_2 = arith.constant 0 : i32
    return %c0_i32, %c0_i32_0, %c0_i32_1 : i32, i32, i32
  }
  func.func @transform_7(%arg0: i32) -> (i32, i32) {
    %c0_i32 = arith.constant 0 : i32
    %c0_i32_0 = arith.constant 0 : i32
    %c0_i32_1 = arith.constant 0 : i32
    return %c0_i32, %c0_i32_0 : i32, i32
  }
  func.func @transform_8(%arg0: i32) -> (i32, i32) {
    %c0_i32 = arith.constant 0 : i32
    %c0_i32_0 = arith.constant 0 : i32
    %c0_i32_1 = arith.constant 0 : i32
    return %c0_i32, %c0_i32_0 : i32, i32
  }
  func.func @transform_9(%arg0: i32) -> (i32, i32) {
    %c0_i32 = arith.constant 0 : i32
    %c0_i32_0 = arith.constant 0 : i32
    %c0_i32_1 = arith.constant 0 : i32
    return %c0_i32, %c0_i32_0 : i32, i32
  }
  func.func @transform_10(%arg0: i32) -> (i32, i32) {
    %c0_i32 = arith.constant 0 : i32
    %c0_i32_0 = arith.constant 0 : i32
    %c0_i32_1 = arith.constant 0 : i32
    return %c0_i32, %c0_i32_0 : i32, i32
  }
  func.func @transform_11(%arg0: i32) -> (i32, i32) {
    %c0_i32 = arith.constant 0 : i32
    %c0_i32_0 = arith.constant 0 : i32
    %c0_i32_1 = arith.constant 0 : i32
    return %c0_i32, %c0_i32_0 : i32, i32
  }
  func.func @transform_12(%arg0: i32) -> (i32, i32) {
    %c0_i32 = arith.constant 0 : i32
    %c0_i32_0 = arith.constant 0 : i32
    %c0_i32_1 = arith.constant 0 : i32
    return %c0_i32, %c0_i32_0 : i32, i32
  }
  func.func @transform_13(%arg0: i32) -> (i32, i32) {
    %c0_i32 = arith.constant 0 : i32
    %c0_i32_0 = arith.constant 0 : i32
    %c0_i32_1 = arith.constant 0 : i32
    return %c0_i32, %c0_i32_0 : i32, i32
  }
  func.func @transform_14(%arg0: i32) -> (i32, i32, i32) {
    %c0_i32 = arith.constant 0 : i32
    %c0_i32_0 = arith.constant 0 : i32
    %c0_i32_1 = arith.constant 0 : i32
    return %arg0, %c0_i32, %c0_i32_0 : i32, i32, i32
  }
  func.func @transform_15(%arg0: i32) -> (i32, i32, i32) {
    %c0_i32 = arith.constant 0 : i32
    %c0_i32_0 = arith.constant 0 : i32
    %c0_i32_1 = arith.constant 0 : i32
    return %arg0, %c0_i32, %c0_i32_0 : i32, i32, i32
  }
}

module attributes {stable_mosaic.version = 11 : i64} {
  func.func @_se_res2_kernel(%arg0: i32, %arg1: memref<1x16x64xbf16, #tpu.memory_space<vmem>>, %arg2: memref<64x64xbf16, #tpu.memory_space<vmem>>, %arg3: memref<1x64xf32, #tpu.memory_space<vmem>>, %arg4: memref<1x64xf32, #tpu.memory_space<vmem>>, %arg5: memref<7x3x8x8xbf16, #tpu.memory_space<vmem>>, %arg6: memref<7x1x8xf32, #tpu.memory_space<vmem>>, %arg7: memref<7x1x8xf32, #tpu.memory_space<vmem>>, %arg8: memref<64x64xbf16, #tpu.memory_space<vmem>>, %arg9: memref<1x64xf32, #tpu.memory_space<vmem>>, %arg10: memref<1x64xf32, #tpu.memory_space<vmem>>, %arg11: memref<64x16xf32, #tpu.memory_space<vmem>>, %arg12: memref<1x16xf32, #tpu.memory_space<vmem>>, %arg13: memref<16x64xf32, #tpu.memory_space<vmem>>, %arg14: memref<1x64xf32, #tpu.memory_space<vmem>>, %arg15: memref<1x16x64xbf16, #tpu.memory_space<vmem>>, %arg16: memref<32x8xf32, #tpu.memory_space<vmem>>, %arg17: memref<16x64xf32, #tpu.memory_space<vmem>>) attributes {dimension_semantics = [#tpu.dimension_semantics<parallel>], iteration_bounds = array<i64: 2>, scalar_prefetch = 0 : i64, scratch_operands = 2 : i64, tpu.core_type = #tpu.core_type<tc>, window_params = [{transform_indices = @transform_0, window_bounds = array<i64: 1, 16, 64>}, {pipeline_mode = #tpu.pipeline_mode<synchronous>, transform_indices = @transform_1, window_bounds = array<i64: 64, 64>}, {pipeline_mode = #tpu.pipeline_mode<synchronous>, transform_indices = @transform_2, window_bounds = array<i64: 1, 64>}, {pipeline_mode = #tpu.pipeline_mode<synchronous>, transform_indices = @transform_3, window_bounds = array<i64: 1, 64>}, {pipeline_mode = #tpu.pipeline_mode<synchronous>, transform_indices = @transform_4, window_bounds = array<i64: 7, 3, 8, 8>}, {pipeline_mode = #tpu.pipeline_mode<synchronous>, transform_indices = @transform_5, window_bounds = array<i64: 7, 1, 8>}, {pipeline_mode = #tpu.pipeline_mode<synchronous>, transform_indices = @transform_6, window_bounds = array<i64: 7, 1, 8>}, {pipeline_mode = #tpu.pipeline_mode<synchronous>, transform_indices = @transform_7, window_bounds = array<i64: 64, 64>}, {pipeline_mode = #tpu.pipeline_mode<synchronous>, transform_indices = @transform_8, window_bounds = array<i64: 1, 64>}, {pipeline_mode = #tpu.pipeline_mode<synchronous>, transform_indices = @transform_9, window_bounds = array<i64: 1, 64>}, {pipeline_mode = #tpu.pipeline_mode<synchronous>, transform_indices = @transform_10, window_bounds = array<i64: 64, 16>}, {pipeline_mode = #tpu.pipeline_mode<synchronous>, transform_indices = @transform_11, window_bounds = array<i64: 1, 16>}, {pipeline_mode = #tpu.pipeline_mode<synchronous>, transform_indices = @transform_12, window_bounds = array<i64: 16, 64>}, {pipeline_mode = #tpu.pipeline_mode<synchronous>, transform_indices = @transform_13, window_bounds = array<i64: 1, 64>}, {transform_indices = @transform_14, window_bounds = array<i64: 1, 16, 64>}]} {
    %c0 = arith.constant 0 : index
    %c0_0 = arith.constant 0 : index
    %c0_1 = arith.constant 0 : index
    %0 = vector.load %arg1[%c0, %c0_0, %c0_1] : memref<1x16x64xbf16, #tpu.memory_space<vmem>>, vector<1x16x64xbf16>
    %1 = vector.shape_cast %0 : vector<1x16x64xbf16> to vector<16x64xbf16>
    %c0_2 = arith.constant 0 : index
    %c0_3 = arith.constant 0 : index
    %2 = vector.load %arg2[%c0_2, %c0_3] : memref<64x64xbf16, #tpu.memory_space<vmem>>, vector<64x64xbf16>
    %cst = arith.constant dense<0.000000e+00> : vector<16x64xf32>
    %3 = tpu.matmul %1, %2, %cst {dimension_numbers = #tpu.dot_dimension_numbers<[1], [0], [0], [1], [0, 0, 1, 1], [], []>} : vector<16x64xbf16>, vector<64x64xbf16>, vector<16x64xf32> -> vector<16x64xf32>
    %cst_4 = arith.constant 0.000000e+00 : f32
    %4 = vector.broadcast %cst_4 : f32 to vector<16x64xf32>
    %5 = arith.maximumf %3, %4 : vector<16x64xf32>
    %c0_5 = arith.constant 0 : index
    %c0_6 = arith.constant 0 : index
    %6 = vector.load %arg3[%c0_5, %c0_6] : memref<1x64xf32, #tpu.memory_space<vmem>>, vector<1x64xf32>
    %7 = vector.broadcast %6 : vector<1x64xf32> to vector<16x64xf32>
    %8 = arith.mulf %5, %7 : vector<16x64xf32>
    %c0_7 = arith.constant 0 : index
    %c0_8 = arith.constant 0 : index
    %9 = vector.load %arg4[%c0_7, %c0_8] : memref<1x64xf32, #tpu.memory_space<vmem>>, vector<1x64xf32>
    %10 = vector.broadcast %9 : vector<1x64xf32> to vector<16x64xf32>
    %11 = arith.addf %8, %10 : vector<16x64xf32>
    %c0_9 = arith.constant 0 : index
    %c0_10 = arith.constant 0 : index
    %12 = vector.load %arg17[%c0_9, %c0_10] : memref<16x64xf32, #tpu.memory_space<vmem>>, vector<16x64xf32>
    tpu.vector_store %arg17[%c0_9, %c0_10], %11 {strides = array<i32>} : memref<16x64xf32, #tpu.memory_space<vmem>>, vector<16x64xf32>,
    %cst_11 = arith.constant 0.000000e+00 : f32
    %13 = vector.broadcast %cst_11 : f32 to vector<8x8xf32>
    %c0_12 = arith.constant 0 : index
    %c0_13 = arith.constant 0 : index
    %14 = vector.load %arg16[%c0_12, %c0_13] : memref<32x8xf32, #tpu.memory_space<vmem>>, vector<8x8xf32>
    tpu.vector_store %arg16[%c0_12, %c0_13], %13 {strides = array<i32>} : memref<32x8xf32, #tpu.memory_space<vmem>>, vector<8x8xf32>,
    %cst_14 = arith.constant 0.000000e+00 : f32
    %15 = vector.broadcast %cst_14 : f32 to vector<8x8xf32>
    %c24 = arith.constant 24 : index
    %c0_15 = arith.constant 0 : index
    %16 = vector.load %arg16[%c24, %c0_15] : memref<32x8xf32, #tpu.memory_space<vmem>>, vector<8x8xf32>
    tpu.vector_store %arg16[%c24, %c0_15], %15 {strides = array<i32>} : memref<32x8xf32, #tpu.memory_space<vmem>>, vector<8x8xf32>,
    %c0_16 = arith.constant 0 : index
    %c0_17 = arith.constant 0 : index
    %17 = vector.load %arg17[%c0_16, %c0_17] : memref<16x64xf32, #tpu.memory_space<vmem>>, vector<16x8xf32>
    %c8 = arith.constant 8 : index
    %c0_18 = arith.constant 0 : index
    %18 = vector.load %arg16[%c8, %c0_18] : memref<32x8xf32, #tpu.memory_space<vmem>>, vector<16x8xf32>
    tpu.vector_store %arg16[%c8, %c0_18], %17 {strides = array<i32>} : memref<32x8xf32, #tpu.memory_space<vmem>>, vector<16x8xf32>,
    %cst_19 = arith.constant 0.000000e+00 : f32
    %19 = vector.broadcast %cst_19 : f32 to vector<16x8xf32>
    %c4 = arith.constant 4 : index
    %c0_20 = arith.constant 0 : index
    %20 = vector.load %arg16[%c4, %c0_20] : memref<32x8xf32, #tpu.memory_space<vmem>>, vector<16x8xf32>
    %21 = arith.truncf %20 : vector<16x8xf32> to vector<16x8xbf16>
    %c0_21 = arith.constant 0 : index
    %c0_22 = arith.constant 0 : index
    %c0_23 = arith.constant 0 : index
    %c0_24 = arith.constant 0 : index
    %22 = vector.load %arg5[%c0_21, %c0_22, %c0_23, %c0_24] : memref<7x3x8x8xbf16, #tpu.memory_space<vmem>>, vector<1x1x8x8xbf16>
    %23 = vector.shape_cast %22 : vector<1x1x8x8xbf16> to vector<8x8xbf16>
    %cst_25 = arith.constant dense<0.000000e+00> : vector<16x8xf32>
    %24 = tpu.matmul %21, %23, %cst_25 {dimension_numbers = #tpu.dot_dimension_numbers<[1], [0], [0], [1], [0, 0, 1, 1], [], []>} : vector<16x8xbf16>, vector<8x8xbf16>, vector<16x8xf32> -> vector<16x8xf32>
    %25 = arith.addf %19, %24 : vector<16x8xf32>
    %c8_26 = arith.constant 8 : index
    %c0_27 = arith.constant 0 : index
    %26 = vector.load %arg16[%c8_26, %c0_27] : memref<32x8xf32, #tpu.memory_space<vmem>>, vector<16x8xf32>
    %27 = arith.truncf %26 : vector<16x8xf32> to vector<16x8xbf16>
    %c0_28 = arith.constant 0 : index
    %c1 = arith.constant 1 : index
    %c0_29 = arith.constant 0 : index
    %c0_30 = arith.constant 0 : index
    %28 = vector.load %arg5[%c0_28, %c1, %c0_29, %c0_30] : memref<7x3x8x8xbf16, #tpu.memory_space<vmem>>, vector<1x1x8x8xbf16>
    %29 = vector.shape_cast %28 : vector<1x1x8x8xbf16> to vector<8x8xbf16>
    %cst_31 = arith.constant dense<0.000000e+00> : vector<16x8xf32>
    %30 = tpu.matmul %27, %29, %cst_31 {dimension_numbers = #tpu.dot_dimension_numbers<[1], [0], [0], [1], [0, 0, 1, 1], [], []>} : vector<16x8xbf16>, vector<8x8xbf16>, vector<16x8xf32> -> vector<16x8xf32>
    %31 = arith.addf %25, %30 : vector<16x8xf32>
    %c12 = arith.constant 12 : index
    %c0_32 = arith.constant 0 : index
    %32 = vector.load %arg16[%c12, %c0_32] : memref<32x8xf32, #tpu.memory_space<vmem>>, vector<16x8xf32>
    %33 = arith.truncf %32 : vector<16x8xf32> to vector<16x8xbf16>
    %c0_33 = arith.constant 0 : index
    %c2 = arith.constant 2 : index
    %c0_34 = arith.constant 0 : index
    %c0_35 = arith.constant 0 : index
    %34 = vector.load %arg5[%c0_33, %c2, %c0_34, %c0_35] : memref<7x3x8x8xbf16, #tpu.memory_space<vmem>>, vector<1x1x8x8xbf16>
    %35 = vector.shape_cast %34 : vector<1x1x8x8xbf16> to vector<8x8xbf16>
    %cst_36 = arith.constant dense<0.000000e+00> : vector<16x8xf32>
    %36 = tpu.matmul %33, %35, %cst_36 {dimension_numbers = #tpu.dot_dimension_numbers<[1], [0], [0], [1], [0, 0, 1, 1], [], []>} : vector<16x8xbf16>, vector<8x8xbf16>, vector<16x8xf32> -> vector<16x8xf32>
    %37 = arith.addf %31, %36 : vector<16x8xf32>
    %cst_37 = arith.constant 0.000000e+00 : f32
    %38 = vector.broadcast %cst_37 : f32 to vector<16x8xf32>
    %39 = arith.maximumf %37, %38 : vector<16x8xf32>
    %c0_38 = arith.constant 0 : index
    %c0_39 = arith.constant 0 : index
    %c0_40 = arith.constant 0 : index
    %40 = vector.load %arg6[%c0_38, %c0_39, %c0_40] : memref<7x1x8xf32, #tpu.memory_space<vmem>>, vector<1x1x8xf32>
    %41 = vector.shape_cast %40 : vector<1x1x8xf32> to vector<1x8xf32>
    %42 = vector.broadcast %41 : vector<1x8xf32> to vector<16x8xf32>
    %43 = arith.mulf %39, %42 : vector<16x8xf32>
    %c0_41 = arith.constant 0 : index
    %c0_42 = arith.constant 0 : index
    %c0_43 = arith.constant 0 : index
    %44 = vector.load %arg7[%c0_41, %c0_42, %c0_43] : memref<7x1x8xf32, #tpu.memory_space<vmem>>, vector<1x1x8xf32>
    %45 = vector.shape_cast %44 : vector<1x1x8xf32> to vector<1x8xf32>
    %46 = vector.broadcast %45 : vector<1x8xf32> to vector<16x8xf32>
    %47 = arith.addf %43, %46 : vector<16x8xf32>
    %c0_44 = arith.constant 0 : index
    %c0_45 = arith.constant 0 : index
    %48 = vector.load %arg17[%c0_44, %c0_45] : memref<16x64xf32, #tpu.memory_space<vmem>>, vector<16x8xf32>
    tpu.vector_store %arg17[%c0_44, %c0_45], %47 {strides = array<i32>} : memref<16x64xf32, #tpu.memory_space<vmem>>, vector<16x8xf32>,
    %c0_46 = arith.constant 0 : index
    %c8_47 = arith.constant 8 : index
    %49 = vector.load %arg17[%c0_46, %c8_47] : memref<16x64xf32, #tpu.memory_space<vmem>>, vector<16x8xf32>
    %c0_48 = arith.constant 0 : index
    %c0_49 = arith.constant 0 : index
    %50 = vector.load %arg17[%c0_48, %c0_49] : memref<16x64xf32, #tpu.memory_space<vmem>>, vector<16x8xf32>
    %51 = arith.addf %49, %50 : vector<16x8xf32>
    %c8_50 = arith.constant 8 : index
    %c0_51 = arith.constant 0 : index
    %52 = vector.load %arg16[%c8_50, %c0_51] : memref<32x8xf32, #tpu.memory_space<vmem>>, vector<16x8xf32>
    tpu.vector_store %arg16[%c8_50, %c0_51], %51 {strides = array<i32>} : memref<32x8xf32, #tpu.memory_space<vmem>>, vector<16x8xf32>,
    %cst_52 = arith.constant 0.000000e+00 : f32
    %53 = vector.broadcast %cst_52 : f32 to vector<16x8xf32>
    %c4_53 = arith.constant 4 : index
    %c0_54 = arith.constant 0 : index
    %54 = vector.load %arg16[%c4_53, %c0_54] : memref<32x8xf32, #tpu.memory_space<vmem>>, vector<16x8xf32>
    %55 = arith.truncf %54 : vector<16x8xf32> to vector<16x8xbf16>
    %c1_55 = arith.constant 1 : index
    %c0_56 = arith.constant 0 : index
    %c0_57 = arith.constant 0 : index
    %c0_58 = arith.constant 0 : index
    %56 = vector.load %arg5[%c1_55, %c0_56, %c0_57, %c0_58] : memref<7x3x8x8xbf16, #tpu.memory_space<vmem>>, vector<1x1x8x8xbf16>
    %57 = vector.shape_cast %56 : vector<1x1x8x8xbf16> to vector<8x8xbf16>
    %cst_59 = arith.constant dense<0.000000e+00> : vector<16x8xf32>
    %58 = tpu.matmul %55, %57, %cst_59 {dimension_numbers = #tpu.dot_dimension_numbers<[1], [0], [0], [1], [0, 0, 1, 1], [], []>} : vector<16x8xbf16>, vector<8x8xbf16>, vector<16x8xf32> -> vector<16x8xf32>
    %59 = arith.addf %53, %58 : vector<16x8xf32>
    %c8_60 = arith.constant 8 : index
    %c0_61 = arith.constant 0 : index
    %60 = vector.load %arg16[%c8_60, %c0_61] : memref<32x8xf32, #tpu.memory_space<vmem>>, vector<16x8xf32>
    %61 = arith.truncf %60 : vector<16x8xf32> to vector<16x8xbf16>
    %c1_62 = arith.constant 1 : index
    %c1_63 = arith.constant 1 : index
    %c0_64 = arith.constant 0 : index
    %c0_65 = arith.constant 0 : index
    %62 = vector.load %arg5[%c1_62, %c1_63, %c0_64, %c0_65] : memref<7x3x8x8xbf16, #tpu.memory_space<vmem>>, vector<1x1x8x8xbf16>
    %63 = vector.shape_cast %62 : vector<1x1x8x8xbf16> to vector<8x8xbf16>
    %cst_66 = arith.constant dense<0.000000e+00> : vector<16x8xf32>
    %64 = tpu.matmul %61, %63, %cst_66 {dimension_numbers = #tpu.dot_dimension_numbers<[1], [0], [0], [1], [0, 0, 1, 1], [], []>} : vector<16x8xbf16>, vector<8x8xbf16>, vector<16x8xf32> -> vector<16x8xf32>
    %65 = arith.addf %59, %64 : vector<16x8xf32>
    %c12_67 = arith.constant 12 : index
    %c0_68 = arith.constant 0 : index
    %66 = vector.load %arg16[%c12_67, %c0_68] : memref<32x8xf32, #tpu.memory_space<vmem>>, vector<16x8xf32>
    %67 = arith.truncf %66 : vector<16x8xf32> to vector<16x8xbf16>
    %c1_69 = arith.constant 1 : index
    %c2_70 = arith.constant 2 : index
    %c0_71 = arith.constant 0 : index
    %c0_72 = arith.constant 0 : index
    %68 = vector.load %arg5[%c1_69, %c2_70, %c0_71, %c0_72] : memref<7x3x8x8xbf16, #tpu.memory_space<vmem>>, vector<1x1x8x8xbf16>
    %69 = vector.shape_cast %68 : vector<1x1x8x8xbf16> to vector<8x8xbf16>
    %cst_73 = arith.constant dense<0.000000e+00> : vector<16x8xf32>
    %70 = tpu.matmul %67, %69, %cst_73 {dimension_numbers = #tpu.dot_dimension_numbers<[1], [0], [0], [1], [0, 0, 1, 1], [], []>} : vector<16x8xbf16>, vector<8x8xbf16>, vector<16x8xf32> -> vector<16x8xf32>
    %71 = arith.addf %65, %70 : vector<16x8xf32>
    %cst_74 = arith.constant 0.000000e+00 : f32
    %72 = vector.broadcast %cst_74 : f32 to vector<16x8xf32>
    %73 = arith.maximumf %71, %72 : vector<16x8xf32>
    %c1_75 = arith.constant 1 : index
    %c0_76 = arith.constant 0 : index
    %c0_77 = arith.constant 0 : index
    %74 = vector.load %arg6[%c1_75, %c0_76, %c0_77] : memref<7x1x8xf32, #tpu.memory_space<vmem>>, vector<1x1x8xf32>
    %75 = vector.shape_cast %74 : vector<1x1x8xf32> to vector<1x8xf32>
    %76 = vector.broadcast %75 : vector<1x8xf32> to vector<16x8xf32>
    %77 = arith.mulf %73, %76 : vector<16x8xf32>
    %c1_78 = arith.constant 1 : index
    %c0_79 = arith.constant 0 : index
    %c0_80 = arith.constant 0 : index
    %78 = vector.load %arg7[%c1_78, %c0_79, %c0_80] : memref<7x1x8xf32, #tpu.memory_space<vmem>>, vector<1x1x8xf32>
    %79 = vector.shape_cast %78 : vector<1x1x8xf32> to vector<1x8xf32>
    %80 = vector.broadcast %79 : vector<1x8xf32> to vector<16x8xf32>
    %81 = arith.addf %77, %80 : vector<16x8xf32>
    %c0_81 = arith.constant 0 : index
    %c8_82 = arith.constant 8 : index
    %82 = vector.load %arg17[%c0_81, %c8_82] : memref<16x64xf32, #tpu.memory_space<vmem>>, vector<16x8xf32>
    tpu.vector_store %arg17[%c0_81, %c8_82], %81 {strides = array<i32>} : memref<16x64xf32, #tpu.memory_space<vmem>>, vector<16x8xf32>,
    %c0_83 = arith.constant 0 : index
    %c16 = arith.constant 16 : index
    %83 = vector.load %arg17[%c0_83, %c16] : memref<16x64xf32, #tpu.memory_space<vmem>>, vector<16x8xf32>
    %c0_84 = arith.constant 0 : index
    %c8_85 = arith.constant 8 : index
    %84 = vector.load %arg17[%c0_84, %c8_85] : memref<16x64xf32, #tpu.memory_space<vmem>>, vector<16x8xf32>
    %85 = arith.addf %83, %84 : vector<16x8xf32>
    %c8_86 = arith.constant 8 : index
    %c0_87 = arith.constant 0 : index
    %86 = vector.load %arg16[%c8_86, %c0_87] : memref<32x8xf32, #tpu.memory_space<vmem>>, vector<16x8xf32>
    tpu.vector_store %arg16[%c8_86, %c0_87], %85 {strides = array<i32>} : memref<32x8xf32, #tpu.memory_space<vmem>>, vector<16x8xf32>,
    %cst_88 = arith.constant 0.000000e+00 : f32
    %87 = vector.broadcast %cst_88 : f32 to vector<16x8xf32>
    %c4_89 = arith.constant 4 : index
    %c0_90 = arith.constant 0 : index
    %88 = vector.load %arg16[%c4_89, %c0_90] : memref<32x8xf32, #tpu.memory_space<vmem>>, vector<16x8xf32>
    %89 = arith.truncf %88 : vector<16x8xf32> to vector<16x8xbf16>
    %c2_91 = arith.constant 2 : index
    %c0_92 = arith.constant 0 : index
    %c0_93 = arith.constant 0 : index
    %c0_94 = arith.constant 0 : index
    %90 = vector.load %arg5[%c2_91, %c0_92, %c0_93, %c0_94] : memref<7x3x8x8xbf16, #tpu.memory_space<vmem>>, vector<1x1x8x8xbf16>
    %91 = vector.shape_cast %90 : vector<1x1x8x8xbf16> to vector<8x8xbf16>
    %cst_95 = arith.constant dense<0.000000e+00> : vector<16x8xf32>
    %92 = tpu.matmul %89, %91, %cst_95 {dimension_numbers = #tpu.dot_dimension_numbers<[1], [0], [0], [1], [0, 0, 1, 1], [], []>} : vector<16x8xbf16>, vector<8x8xbf16>, vector<16x8xf32> -> vector<16x8xf32>
    %93 = arith.addf %87, %92 : vector<16x8xf32>
    %c8_96 = arith.constant 8 : index
    %c0_97 = arith.constant 0 : index
    %94 = vector.load %arg16[%c8_96, %c0_97] : memref<32x8xf32, #tpu.memory_space<vmem>>, vector<16x8xf32>
    %95 = arith.truncf %94 : vector<16x8xf32> to vector<16x8xbf16>
    %c2_98 = arith.constant 2 : index
    %c1_99 = arith.constant 1 : index
    %c0_100 = arith.constant 0 : index
    %c0_101 = arith.constant 0 : index
    %96 = vector.load %arg5[%c2_98, %c1_99, %c0_100, %c0_101] : memref<7x3x8x8xbf16, #tpu.memory_space<vmem>>, vector<1x1x8x8xbf16>
    %97 = vector.shape_cast %96 : vector<1x1x8x8xbf16> to vector<8x8xbf16>
    %cst_102 = arith.constant dense<0.000000e+00> : vector<16x8xf32>
    %98 = tpu.matmul %95, %97, %cst_102 {dimension_numbers = #tpu.dot_dimension_numbers<[1], [0], [0], [1], [0, 0, 1, 1], [], []>} : vector<16x8xbf16>, vector<8x8xbf16>, vector<16x8xf32> -> vector<16x8xf32>
    %99 = arith.addf %93, %98 : vector<16x8xf32>
    %c12_103 = arith.constant 12 : index
    %c0_104 = arith.constant 0 : index
    %100 = vector.load %arg16[%c12_103, %c0_104] : memref<32x8xf32, #tpu.memory_space<vmem>>, vector<16x8xf32>
    %101 = arith.truncf %100 : vector<16x8xf32> to vector<16x8xbf16>
    %c2_105 = arith.constant 2 : index
    %c2_106 = arith.constant 2 : index
    %c0_107 = arith.constant 0 : index
    %c0_108 = arith.constant 0 : index
    %102 = vector.load %arg5[%c2_105, %c2_106, %c0_107, %c0_108] : memref<7x3x8x8xbf16, #tpu.memory_space<vmem>>, vector<1x1x8x8xbf16>
    %103 = vector.shape_cast %102 : vector<1x1x8x8xbf16> to vector<8x8xbf16>
    %cst_109 = arith.constant dense<0.000000e+00> : vector<16x8xf32>
    %104 = tpu.matmul %101, %103, %cst_109 {dimension_numbers = #tpu.dot_dimension_numbers<[1], [0], [0], [1], [0, 0, 1, 1], [], []>} : vector<16x8xbf16>, vector<8x8xbf16>, vector<16x8xf32> -> vector<16x8xf32>
    %105 = arith.addf %99, %104 : vector<16x8xf32>
    %cst_110 = arith.constant 0.000000e+00 : f32
    %106 = vector.broadcast %cst_110 : f32 to vector<16x8xf32>
    %107 = arith.maximumf %105, %106 : vector<16x8xf32>
    %c2_111 = arith.constant 2 : index
    %c0_112 = arith.constant 0 : index
    %c0_113 = arith.constant 0 : index
    %108 = vector.load %arg6[%c2_111, %c0_112, %c0_113] : memref<7x1x8xf32, #tpu.memory_space<vmem>>, vector<1x1x8xf32>
    %109 = vector.shape_cast %108 : vector<1x1x8xf32> to vector<1x8xf32>
    %110 = vector.broadcast %109 : vector<1x8xf32> to vector<16x8xf32>
    %111 = arith.mulf %107, %110 : vector<16x8xf32>
    %c2_114 = arith.constant 2 : index
    %c0_115 = arith.constant 0 : index
    %c0_116 = arith.constant 0 : index
    %112 = vector.load %arg7[%c2_114, %c0_115, %c0_116] : memref<7x1x8xf32, #tpu.memory_space<vmem>>, vector<1x1x8xf32>
    %113 = vector.shape_cast %112 : vector<1x1x8xf32> to vector<1x8xf32>
    %114 = vector.broadcast %113 : vector<1x8xf32> to vector<16x8xf32>
    %115 = arith.addf %111, %114 : vector<16x8xf32>
    %c0_117 = arith.constant 0 : index
    %c16_118 = arith.constant 16 : index
    %116 = vector.load %arg17[%c0_117, %c16_118] : memref<16x64xf32, #tpu.memory_space<vmem>>, vector<16x8xf32>
    tpu.vector_store %arg17[%c0_117, %c16_118], %115 {strides = array<i32>} : memref<16x64xf32, #tpu.memory_space<vmem>>, vector<16x8xf32>,
    %c0_119 = arith.constant 0 : index
    %c24_120 = arith.constant 24 : index
    %117 = vector.load %arg17[%c0_119, %c24_120] : memref<16x64xf32, #tpu.memory_space<vmem>>, vector<16x8xf32>
    %c0_121 = arith.constant 0 : index
    %c16_122 = arith.constant 16 : index
    %118 = vector.load %arg17[%c0_121, %c16_122] : memref<16x64xf32, #tpu.memory_space<vmem>>, vector<16x8xf32>
    %119 = arith.addf %117, %118 : vector<16x8xf32>
    %c8_123 = arith.constant 8 : index
    %c0_124 = arith.constant 0 : index
    %120 = vector.load %arg16[%c8_123, %c0_124] : memref<32x8xf32, #tpu.memory_space<vmem>>, vector<16x8xf32>
    tpu.vector_store %arg16[%c8_123, %c0_124], %119 {strides = array<i32>} : memref<32x8xf32, #tpu.memory_space<vmem>>, vector<16x8xf32>,
    %cst_125 = arith.constant 0.000000e+00 : f32
    %121 = vector.broadcast %cst_125 : f32 to vector<16x8xf32>
    %c4_126 = arith.constant 4 : index
    %c0_127 = arith.constant 0 : index
    %122 = vector.load %arg16[%c4_126, %c0_127] : memref<32x8xf32, #tpu.memory_space<vmem>>, vector<16x8xf32>
    %123 = arith.truncf %122 : vector<16x8xf32> to vector<16x8xbf16>
    %c3 = arith.constant 3 : index
    %c0_128 = arith.constant 0 : index
    %c0_129 = arith.constant 0 : index
    %c0_130 = arith.constant 0 : index
    %124 = vector.load %arg5[%c3, %c0_128, %c0_129, %c0_130] : memref<7x3x8x8xbf16, #tpu.memory_space<vmem>>, vector<1x1x8x8xbf16>
    %125 = vector.shape_cast %124 : vector<1x1x8x8xbf16> to vector<8x8xbf16>
    %cst_131 = arith.constant dense<0.000000e+00> : vector<16x8xf32>
    %126 = tpu.matmul %123, %125, %cst_131 {dimension_numbers = #tpu.dot_dimension_numbers<[1], [0], [0], [1], [0, 0, 1, 1], [], []>} : vector<16x8xbf16>, vector<8x8xbf16>, vector<16x8xf32> -> vector<16x8xf32>
    %127 = arith.addf %121, %126 : vector<16x8xf32>
    %c8_132 = arith.constant 8 : index
    %c0_133 = arith.constant 0 : index
    %128 = vector.load %arg16[%c8_132, %c0_133] : memref<32x8xf32, #tpu.memory_space<vmem>>, vector<16x8xf32>
    %129 = arith.truncf %128 : vector<16x8xf32> to vector<16x8xbf16>
    %c3_134 = arith.constant 3 : index
    %c1_135 = arith.constant 1 : index
    %c0_136 = arith.constant 0 : index
    %c0_137 = arith.constant 0 : index
    %130 = vector.load %arg5[%c3_134, %c1_135, %c0_136, %c0_137] : memref<7x3x8x8xbf16, #tpu.memory_space<vmem>>, vector<1x1x8x8xbf16>
    %131 = vector.shape_cast %130 : vector<1x1x8x8xbf16> to vector<8x8xbf16>
    %cst_138 = arith.constant dense<0.000000e+00> : vector<16x8xf32>
    %132 = tpu.matmul %129, %131, %cst_138 {dimension_numbers = #tpu.dot_dimension_numbers<[1], [0], [0], [1], [0, 0, 1, 1], [], []>} : vector<16x8xbf16>, vector<8x8xbf16>, vector<16x8xf32> -> vector<16x8xf32>
    %133 = arith.addf %127, %132 : vector<16x8xf32>
    %c12_139 = arith.constant 12 : index
    %c0_140 = arith.constant 0 : index
    %134 = vector.load %arg16[%c12_139, %c0_140] : memref<32x8xf32, #tpu.memory_space<vmem>>, vector<16x8xf32>
    %135 = arith.truncf %134 : vector<16x8xf32> to vector<16x8xbf16>
    %c3_141 = arith.constant 3 : index
    %c2_142 = arith.constant 2 : index
    %c0_143 = arith.constant 0 : index
    %c0_144 = arith.constant 0 : index
    %136 = vector.load %arg5[%c3_141, %c2_142, %c0_143, %c0_144] : memref<7x3x8x8xbf16, #tpu.memory_space<vmem>>, vector<1x1x8x8xbf16>
    %137 = vector.shape_cast %136 : vector<1x1x8x8xbf16> to vector<8x8xbf16>
    %cst_145 = arith.constant dense<0.000000e+00> : vector<16x8xf32>
    %138 = tpu.matmul %135, %137, %cst_145 {dimension_numbers = #tpu.dot_dimension_numbers<[1], [0], [0], [1], [0, 0, 1, 1], [], []>} : vector<16x8xbf16>, vector<8x8xbf16>, vector<16x8xf32> -> vector<16x8xf32>
    %139 = arith.addf %133, %138 : vector<16x8xf32>
    %cst_146 = arith.constant 0.000000e+00 : f32
    %140 = vector.broadcast %cst_146 : f32 to vector<16x8xf32>
    %141 = arith.maximumf %139, %140 : vector<16x8xf32>
    %c3_147 = arith.constant 3 : index
    %c0_148 = arith.constant 0 : index
    %c0_149 = arith.constant 0 : index
    %142 = vector.load %arg6[%c3_147, %c0_148, %c0_149] : memref<7x1x8xf32, #tpu.memory_space<vmem>>, vector<1x1x8xf32>
    %143 = vector.shape_cast %142 : vector<1x1x8xf32> to vector<1x8xf32>
    %144 = vector.broadcast %143 : vector<1x8xf32> to vector<16x8xf32>
    %145 = arith.mulf %141, %144 : vector<16x8xf32>
    %c3_150 = arith.constant 3 : index
    %c0_151 = arith.constant 0 : index
    %c0_152 = arith.constant 0 : index
    %146 = vector.load %arg7[%c3_150, %c0_151, %c0_152] : memref<7x1x8xf32, #tpu.memory_space<vmem>>, vector<1x1x8xf32>
    %147 = vector.shape_cast %146 : vector<1x1x8xf32> to vector<1x8xf32>
    %148 = vector.broadcast %147 : vector<1x8xf32> to vector<16x8xf32>
    %149 = arith.addf %145, %148 : vector<16x8xf32>
    %c0_153 = arith.constant 0 : index
    %c24_154 = arith.constant 24 : index
    %150 = vector.load %arg17[%c0_153, %c24_154] : memref<16x64xf32, #tpu.memory_space<vmem>>, vector<16x8xf32>
    tpu.vector_store %arg17[%c0_153, %c24_154], %149 {strides = array<i32>} : memref<16x64xf32, #tpu.memory_space<vmem>>, vector<16x8xf32>,
    %c0_155 = arith.constant 0 : index
    %c32 = arith.constant 32 : index
    %151 = vector.load %arg17[%c0_155, %c32] : memref<16x64xf32, #tpu.memory_space<vmem>>, vector<16x8xf32>
    %c0_156 = arith.constant 0 : index
    %c24_157 = arith.constant 24 : index
    %152 = vector.load %arg17[%c0_156, %c24_157] : memref<16x64xf32, #tpu.memory_space<vmem>>, vector<16x8xf32>
    %153 = arith.addf %151, %152 : vector<16x8xf32>
    %c8_158 = arith.constant 8 : index
    %c0_159 = arith.constant 0 : index
    %154 = vector.load %arg16[%c8_158, %c0_159] : memref<32x8xf32, #tpu.memory_space<vmem>>, vector<16x8xf32>
    tpu.vector_store %arg16[%c8_158, %c0_159], %153 {strides = array<i32>} : memref<32x8xf32, #tpu.memory_space<vmem>>, vector<16x8xf32>,
    %cst_160 = arith.constant 0.000000e+00 : f32
    %155 = vector.broadcast %cst_160 : f32 to vector<16x8xf32>
    %c4_161 = arith.constant 4 : index
    %c0_162 = arith.constant 0 : index
    %156 = vector.load %arg16[%c4_161, %c0_162] : memref<32x8xf32, #tpu.memory_space<vmem>>, vector<16x8xf32>
    %157 = arith.truncf %156 : vector<16x8xf32> to vector<16x8xbf16>
    %c4_163 = arith.constant 4 : index
    %c0_164 = arith.constant 0 : index
    %c0_165 = arith.constant 0 : index
    %c0_166 = arith.constant 0 : index
    %158 = vector.load %arg5[%c4_163, %c0_164, %c0_165, %c0_166] : memref<7x3x8x8xbf16, #tpu.memory_space<vmem>>, vector<1x1x8x8xbf16>
    %159 = vector.shape_cast %158 : vector<1x1x8x8xbf16> to vector<8x8xbf16>
    %cst_167 = arith.constant dense<0.000000e+00> : vector<16x8xf32>
    %160 = tpu.matmul %157, %159, %cst_167 {dimension_numbers = #tpu.dot_dimension_numbers<[1], [0], [0], [1], [0, 0, 1, 1], [], []>} : vector<16x8xbf16>, vector<8x8xbf16>, vector<16x8xf32> -> vector<16x8xf32>
    %161 = arith.addf %155, %160 : vector<16x8xf32>
    %c8_168 = arith.constant 8 : index
    %c0_169 = arith.constant 0 : index
    %162 = vector.load %arg16[%c8_168, %c0_169] : memref<32x8xf32, #tpu.memory_space<vmem>>, vector<16x8xf32>
    %163 = arith.truncf %162 : vector<16x8xf32> to vector<16x8xbf16>
    %c4_170 = arith.constant 4 : index
    %c1_171 = arith.constant 1 : index
    %c0_172 = arith.constant 0 : index
    %c0_173 = arith.constant 0 : index
    %164 = vector.load %arg5[%c4_170, %c1_171, %c0_172, %c0_173] : memref<7x3x8x8xbf16, #tpu.memory_space<vmem>>, vector<1x1x8x8xbf16>
    %165 = vector.shape_cast %164 : vector<1x1x8x8xbf16> to vector<8x8xbf16>
    %cst_174 = arith.constant dense<0.000000e+00> : vector<16x8xf32>
    %166 = tpu.matmul %163, %165, %cst_174 {dimension_numbers = #tpu.dot_dimension_numbers<[1], [0], [0], [1], [0, 0, 1, 1], [], []>} : vector<16x8xbf16>, vector<8x8xbf16>, vector<16x8xf32> -> vector<16x8xf32>
    %167 = arith.addf %161, %166 : vector<16x8xf32>
    %c12_175 = arith.constant 12 : index
    %c0_176 = arith.constant 0 : index
    %168 = vector.load %arg16[%c12_175, %c0_176] : memref<32x8xf32, #tpu.memory_space<vmem>>, vector<16x8xf32>
    %169 = arith.truncf %168 : vector<16x8xf32> to vector<16x8xbf16>
    %c4_177 = arith.constant 4 : index
    %c2_178 = arith.constant 2 : index
    %c0_179 = arith.constant 0 : index
    %c0_180 = arith.constant 0 : index
    %170 = vector.load %arg5[%c4_177, %c2_178, %c0_179, %c0_180] : memref<7x3x8x8xbf16, #tpu.memory_space<vmem>>, vector<1x1x8x8xbf16>
    %171 = vector.shape_cast %170 : vector<1x1x8x8xbf16> to vector<8x8xbf16>
    %cst_181 = arith.constant dense<0.000000e+00> : vector<16x8xf32>
    %172 = tpu.matmul %169, %171, %cst_181 {dimension_numbers = #tpu.dot_dimension_numbers<[1], [0], [0], [1], [0, 0, 1, 1], [], []>} : vector<16x8xbf16>, vector<8x8xbf16>, vector<16x8xf32> -> vector<16x8xf32>
    %173 = arith.addf %167, %172 : vector<16x8xf32>
    %cst_182 = arith.constant 0.000000e+00 : f32
    %174 = vector.broadcast %cst_182 : f32 to vector<16x8xf32>
    %175 = arith.maximumf %173, %174 : vector<16x8xf32>
    %c4_183 = arith.constant 4 : index
    %c0_184 = arith.constant 0 : index
    %c0_185 = arith.constant 0 : index
    %176 = vector.load %arg6[%c4_183, %c0_184, %c0_185] : memref<7x1x8xf32, #tpu.memory_space<vmem>>, vector<1x1x8xf32>
    %177 = vector.shape_cast %176 : vector<1x1x8xf32> to vector<1x8xf32>
    %178 = vector.broadcast %177 : vector<1x8xf32> to vector<16x8xf32>
    %179 = arith.mulf %175, %178 : vector<16x8xf32>
    %c4_186 = arith.constant 4 : index
    %c0_187 = arith.constant 0 : index
    %c0_188 = arith.constant 0 : index
    %180 = vector.load %arg7[%c4_186, %c0_187, %c0_188] : memref<7x1x8xf32, #tpu.memory_space<vmem>>, vector<1x1x8xf32>
    %181 = vector.shape_cast %180 : vector<1x1x8xf32> to vector<1x8xf32>
    %182 = vector.broadcast %181 : vector<1x8xf32> to vector<16x8xf32>
    %183 = arith.addf %179, %182 : vector<16x8xf32>
    %c0_189 = arith.constant 0 : index
    %c32_190 = arith.constant 32 : index
    %184 = vector.load %arg17[%c0_189, %c32_190] : memref<16x64xf32, #tpu.memory_space<vmem>>, vector<16x8xf32>
    tpu.vector_store %arg17[%c0_189, %c32_190], %183 {strides = array<i32>} : memref<16x64xf32, #tpu.memory_space<vmem>>, vector<16x8xf32>,
    %c0_191 = arith.constant 0 : index
    %c40 = arith.constant 40 : index
    %185 = vector.load %arg17[%c0_191, %c40] : memref<16x64xf32, #tpu.memory_space<vmem>>, vector<16x8xf32>
    %c0_192 = arith.constant 0 : index
    %c32_193 = arith.constant 32 : index
    %186 = vector.load %arg17[%c0_192, %c32_193] : memref<16x64xf32, #tpu.memory_space<vmem>>, vector<16x8xf32>
    %187 = arith.addf %185, %186 : vector<16x8xf32>
    %c8_194 = arith.constant 8 : index
    %c0_195 = arith.constant 0 : index
    %188 = vector.load %arg16[%c8_194, %c0_195] : memref<32x8xf32, #tpu.memory_space<vmem>>, vector<16x8xf32>
    tpu.vector_store %arg16[%c8_194, %c0_195], %187 {strides = array<i32>} : memref<32x8xf32, #tpu.memory_space<vmem>>, vector<16x8xf32>,
    %cst_196 = arith.constant 0.000000e+00 : f32
    %189 = vector.broadcast %cst_196 : f32 to vector<16x8xf32>
    %c4_197 = arith.constant 4 : index
    %c0_198 = arith.constant 0 : index
    %190 = vector.load %arg16[%c4_197, %c0_198] : memref<32x8xf32, #tpu.memory_space<vmem>>, vector<16x8xf32>
    %191 = arith.truncf %190 : vector<16x8xf32> to vector<16x8xbf16>
    %c5 = arith.constant 5 : index
    %c0_199 = arith.constant 0 : index
    %c0_200 = arith.constant 0 : index
    %c0_201 = arith.constant 0 : index
    %192 = vector.load %arg5[%c5, %c0_199, %c0_200, %c0_201] : memref<7x3x8x8xbf16, #tpu.memory_space<vmem>>, vector<1x1x8x8xbf16>
    %193 = vector.shape_cast %192 : vector<1x1x8x8xbf16> to vector<8x8xbf16>
    %cst_202 = arith.constant dense<0.000000e+00> : vector<16x8xf32>
    %194 = tpu.matmul %191, %193, %cst_202 {dimension_numbers = #tpu.dot_dimension_numbers<[1], [0], [0], [1], [0, 0, 1, 1], [], []>} : vector<16x8xbf16>, vector<8x8xbf16>, vector<16x8xf32> -> vector<16x8xf32>
    %195 = arith.addf %189, %194 : vector<16x8xf32>
    %c8_203 = arith.constant 8 : index
    %c0_204 = arith.constant 0 : index
    %196 = vector.load %arg16[%c8_203, %c0_204] : memref<32x8xf32, #tpu.memory_space<vmem>>, vector<16x8xf32>
    %197 = arith.truncf %196 : vector<16x8xf32> to vector<16x8xbf16>
    %c5_205 = arith.constant 5 : index
    %c1_206 = arith.constant 1 : index
    %c0_207 = arith.constant 0 : index
    %c0_208 = arith.constant 0 : index
    %198 = vector.load %arg5[%c5_205, %c1_206, %c0_207, %c0_208] : memref<7x3x8x8xbf16, #tpu.memory_space<vmem>>, vector<1x1x8x8xbf16>
    %199 = vector.shape_cast %198 : vector<1x1x8x8xbf16> to vector<8x8xbf16>
    %cst_209 = arith.constant dense<0.000000e+00> : vector<16x8xf32>
    %200 = tpu.matmul %197, %199, %cst_209 {dimension_numbers = #tpu.dot_dimension_numbers<[1], [0], [0], [1], [0, 0, 1, 1], [], []>} : vector<16x8xbf16>, vector<8x8xbf16>, vector<16x8xf32> -> vector<16x8xf32>
    %201 = arith.addf %195, %200 : vector<16x8xf32>
    %c12_210 = arith.constant 12 : index
    %c0_211 = arith.constant 0 : index
    %202 = vector.load %arg16[%c12_210, %c0_211] : memref<32x8xf32, #tpu.memory_space<vmem>>, vector<16x8xf32>
    %203 = arith.truncf %202 : vector<16x8xf32> to vector<16x8xbf16>
    %c5_212 = arith.constant 5 : index
    %c2_213 = arith.constant 2 : index
    %c0_214 = arith.constant 0 : index
    %c0_215 = arith.constant 0 : index
    %204 = vector.load %arg5[%c5_212, %c2_213, %c0_214, %c0_215] : memref<7x3x8x8xbf16, #tpu.memory_space<vmem>>, vector<1x1x8x8xbf16>
    %205 = vector.shape_cast %204 : vector<1x1x8x8xbf16> to vector<8x8xbf16>
    %cst_216 = arith.constant dense<0.000000e+00> : vector<16x8xf32>
    %206 = tpu.matmul %203, %205, %cst_216 {dimension_numbers = #tpu.dot_dimension_numbers<[1], [0], [0], [1], [0, 0, 1, 1], [], []>} : vector<16x8xbf16>, vector<8x8xbf16>, vector<16x8xf32> -> vector<16x8xf32>
    %207 = arith.addf %201, %206 : vector<16x8xf32>
    %cst_217 = arith.constant 0.000000e+00 : f32
    %208 = vector.broadcast %cst_217 : f32 to vector<16x8xf32>
    %209 = arith.maximumf %207, %208 : vector<16x8xf32>
    %c5_218 = arith.constant 5 : index
    %c0_219 = arith.constant 0 : index
    %c0_220 = arith.constant 0 : index
    %210 = vector.load %arg6[%c5_218, %c0_219, %c0_220] : memref<7x1x8xf32, #tpu.memory_space<vmem>>, vector<1x1x8xf32>
    %211 = vector.shape_cast %210 : vector<1x1x8xf32> to vector<1x8xf32>
    %212 = vector.broadcast %211 : vector<1x8xf32> to vector<16x8xf32>
    %213 = arith.mulf %209, %212 : vector<16x8xf32>
    %c5_221 = arith.constant 5 : index
    %c0_222 = arith.constant 0 : index
    %c0_223 = arith.constant 0 : index
    %214 = vector.load %arg7[%c5_221, %c0_222, %c0_223] : memref<7x1x8xf32, #tpu.memory_space<vmem>>, vector<1x1x8xf32>
    %215 = vector.shape_cast %214 : vector<1x1x8xf32> to vector<1x8xf32>
    %216 = vector.broadcast %215 : vector<1x8xf32> to vector<16x8xf32>
    %217 = arith.addf %213, %216 : vector<16x8xf32>
    %c0_224 = arith.constant 0 : index
    %c40_225 = arith.constant 40 : index
    %218 = vector.load %arg17[%c0_224, %c40_225] : memref<16x64xf32, #tpu.memory_space<vmem>>, vector<16x8xf32>
    tpu.vector_store %arg17[%c0_224, %c40_225], %217 {strides = array<i32>} : memref<16x64xf32, #tpu.memory_space<vmem>>, vector<16x8xf32>,
    %c0_226 = arith.constant 0 : index
    %c48 = arith.constant 48 : index
    %219 = vector.load %arg17[%c0_226, %c48] : memref<16x64xf32, #tpu.memory_space<vmem>>, vector<16x8xf32>
    %c0_227 = arith.constant 0 : index
    %c40_228 = arith.constant 40 : index
    %220 = vector.load %arg17[%c0_227, %c40_228] : memref<16x64xf32, #tpu.memory_space<vmem>>, vector<16x8xf32>
    %221 = arith.addf %219, %220 : vector<16x8xf32>
    %c8_229 = arith.constant 8 : index
    %c0_230 = arith.constant 0 : index
    %222 = vector.load %arg16[%c8_229, %c0_230] : memref<32x8xf32, #tpu.memory_space<vmem>>, vector<16x8xf32>
    tpu.vector_store %arg16[%c8_229, %c0_230], %221 {strides = array<i32>} : memref<32x8xf32, #tpu.memory_space<vmem>>, vector<16x8xf32>,
    %cst_231 = arith.constant 0.000000e+00 : f32
    %223 = vector.broadcast %cst_231 : f32 to vector<16x8xf32>
    %c4_232 = arith.constant 4 : index
    %c0_233 = arith.constant 0 : index
    %224 = vector.load %arg16[%c4_232, %c0_233] : memref<32x8xf32, #tpu.memory_space<vmem>>, vector<16x8xf32>
    %225 = arith.truncf %224 : vector<16x8xf32> to vector<16x8xbf16>
    %c6 = arith.constant 6 : index
    %c0_234 = arith.constant 0 : index
    %c0_235 = arith.constant 0 : index
    %c0_236 = arith.constant 0 : index
    %226 = vector.load %arg5[%c6, %c0_234, %c0_235, %c0_236] : memref<7x3x8x8xbf16, #tpu.memory_space<vmem>>, vector<1x1x8x8xbf16>
    %227 = vector.shape_cast %226 : vector<1x1x8x8xbf16> to vector<8x8xbf16>
    %cst_237 = arith.constant dense<0.000000e+00> : vector<16x8xf32>
    %228 = tpu.matmul %225, %227, %cst_237 {dimension_numbers = #tpu.dot_dimension_numbers<[1], [0], [0], [1], [0, 0, 1, 1], [], []>} : vector<16x8xbf16>, vector<8x8xbf16>, vector<16x8xf32> -> vector<16x8xf32>
    %229 = arith.addf %223, %228 : vector<16x8xf32>
    %c8_238 = arith.constant 8 : index
    %c0_239 = arith.constant 0 : index
    %230 = vector.load %arg16[%c8_238, %c0_239] : memref<32x8xf32, #tpu.memory_space<vmem>>, vector<16x8xf32>
    %231 = arith.truncf %230 : vector<16x8xf32> to vector<16x8xbf16>
    %c6_240 = arith.constant 6 : index
    %c1_241 = arith.constant 1 : index
    %c0_242 = arith.constant 0 : index
    %c0_243 = arith.constant 0 : index
    %232 = vector.load %arg5[%c6_240, %c1_241, %c0_242, %c0_243] : memref<7x3x8x8xbf16, #tpu.memory_space<vmem>>, vector<1x1x8x8xbf16>
    %233 = vector.shape_cast %232 : vector<1x1x8x8xbf16> to vector<8x8xbf16>
    %cst_244 = arith.constant dense<0.000000e+00> : vector<16x8xf32>
    %234 = tpu.matmul %231, %233, %cst_244 {dimension_numbers = #tpu.dot_dimension_numbers<[1], [0], [0], [1], [0, 0, 1, 1], [], []>} : vector<16x8xbf16>, vector<8x8xbf16>, vector<16x8xf32> -> vector<16x8xf32>
    %235 = arith.addf %229, %234 : vector<16x8xf32>
    %c12_245 = arith.constant 12 : index
    %c0_246 = arith.constant 0 : index
    %236 = vector.load %arg16[%c12_245, %c0_246] : memref<32x8xf32, #tpu.memory_space<vmem>>, vector<16x8xf32>
    %237 = arith.truncf %236 : vector<16x8xf32> to vector<16x8xbf16>
    %c6_247 = arith.constant 6 : index
    %c2_248 = arith.constant 2 : index
    %c0_249 = arith.constant 0 : index
    %c0_250 = arith.constant 0 : index
    %238 = vector.load %arg5[%c6_247, %c2_248, %c0_249, %c0_250] : memref<7x3x8x8xbf16, #tpu.memory_space<vmem>>, vector<1x1x8x8xbf16>
    %239 = vector.shape_cast %238 : vector<1x1x8x8xbf16> to vector<8x8xbf16>
    %cst_251 = arith.constant dense<0.000000e+00> : vector<16x8xf32>
    %240 = tpu.matmul %237, %239, %cst_251 {dimension_numbers = #tpu.dot_dimension_numbers<[1], [0], [0], [1], [0, 0, 1, 1], [], []>} : vector<16x8xbf16>, vector<8x8xbf16>, vector<16x8xf32> -> vector<16x8xf32>
    %241 = arith.addf %235, %240 : vector<16x8xf32>
    %cst_252 = arith.constant 0.000000e+00 : f32
    %242 = vector.broadcast %cst_252 : f32 to vector<16x8xf32>
    %243 = arith.maximumf %241, %242 : vector<16x8xf32>
    %c6_253 = arith.constant 6 : index
    %c0_254 = arith.constant 0 : index
    %c0_255 = arith.constant 0 : index
    %244 = vector.load %arg6[%c6_253, %c0_254, %c0_255] : memref<7x1x8xf32, #tpu.memory_space<vmem>>, vector<1x1x8xf32>
    %245 = vector.shape_cast %244 : vector<1x1x8xf32> to vector<1x8xf32>
    %246 = vector.broadcast %245 : vector<1x8xf32> to vector<16x8xf32>
    %247 = arith.mulf %243, %246 : vector<16x8xf32>
    %c6_256 = arith.constant 6 : index
    %c0_257 = arith.constant 0 : index
    %c0_258 = arith.constant 0 : index
    %248 = vector.load %arg7[%c6_256, %c0_257, %c0_258] : memref<7x1x8xf32, #tpu.memory_space<vmem>>, vector<1x1x8xf32>
    %249 = vector.shape_cast %248 : vector<1x1x8xf32> to vector<1x8xf32>
    %250 = vector.broadcast %249 : vector<1x8xf32> to vector<16x8xf32>
    %251 = arith.addf %247, %250 : vector<16x8xf32>
    %c0_259 = arith.constant 0 : index
    %c48_260 = arith.constant 48 : index
    %252 = vector.load %arg17[%c0_259, %c48_260] : memref<16x64xf32, #tpu.memory_space<vmem>>, vector<16x8xf32>
    tpu.vector_store %arg17[%c0_259, %c48_260], %251 {strides = array<i32>} : memref<16x64xf32, #tpu.memory_space<vmem>>, vector<16x8xf32>,
    %c0_261 = arith.constant 0 : index
    %c0_262 = arith.constant 0 : index
    %253 = vector.load %arg17[%c0_261, %c0_262] : memref<16x64xf32, #tpu.memory_space<vmem>>, vector<16x64xf32>
    %254 = arith.truncf %253 : vector<16x64xf32> to vector<16x64xbf16>
    %c0_263 = arith.constant 0 : index
    %c0_264 = arith.constant 0 : index
    %255 = vector.load %arg8[%c0_263, %c0_264] : memref<64x64xbf16, #tpu.memory_space<vmem>>, vector<64x64xbf16>
    %cst_265 = arith.constant dense<0.000000e+00> : vector<16x64xf32>
    %256 = tpu.matmul %254, %255, %cst_265 {dimension_numbers = #tpu.dot_dimension_numbers<[1], [0], [0], [1], [0, 0, 1, 1], [], []>} : vector<16x64xbf16>, vector<64x64xbf16>, vector<16x64xf32> -> vector<16x64xf32>
    %cst_266 = arith.constant 0.000000e+00 : f32
    %257 = vector.broadcast %cst_266 : f32 to vector<16x64xf32>
    %258 = arith.maximumf %256, %257 : vector<16x64xf32>
    %c0_267 = arith.constant 0 : index
    %c0_268 = arith.constant 0 : index
    %259 = vector.load %arg9[%c0_267, %c0_268] : memref<1x64xf32, #tpu.memory_space<vmem>>, vector<1x64xf32>
    %260 = vector.broadcast %259 : vector<1x64xf32> to vector<16x64xf32>
    %261 = arith.mulf %258, %260 : vector<16x64xf32>
    %c0_269 = arith.constant 0 : index
    %c0_270 = arith.constant 0 : index
    %262 = vector.load %arg10[%c0_269, %c0_270] : memref<1x64xf32, #tpu.memory_space<vmem>>, vector<1x64xf32>
    %263 = vector.broadcast %262 : vector<1x64xf32> to vector<16x64xf32>
    %264 = arith.addf %261, %263 : vector<16x64xf32>
    %cst_271 = arith.constant dense<0.000000e+00> : vector<64xf32>
    %265 = vector.multi_reduction <add>, %264, %cst_271 [0] : vector<16x64xf32> to vector<64xf32>
    %266 = vector.shape_cast %265 : vector<64xf32> to vector<1x64xf32>
    %cst_272 = arith.constant 1.600000e+01 : f32
    %267 = vector.broadcast %cst_272 : f32 to vector<1x64xf32>
    %268 = arith.divf %266, %267 : vector<1x64xf32>
    %c0_273 = arith.constant 0 : index
    %c0_274 = arith.constant 0 : index
    %269 = vector.load %arg11[%c0_273, %c0_274] : memref<64x16xf32, #tpu.memory_space<vmem>>, vector<64x16xf32>
    %cst_275 = arith.constant dense<0.000000e+00> : vector<1x16xf32>
    %270 = tpu.matmul %268, %269, %cst_275 {dimension_numbers = #tpu.dot_dimension_numbers<[1], [0], [0], [1], [0, 0, 1, 1], [], []>} : vector<1x64xf32>, vector<64x16xf32>, vector<1x16xf32> -> vector<1x16xf32>
    %c0_276 = arith.constant 0 : index
    %c0_277 = arith.constant 0 : index
    %271 = vector.load %arg12[%c0_276, %c0_277] : memref<1x16xf32, #tpu.memory_space<vmem>>, vector<1x16xf32>
    %272 = arith.addf %270, %271 : vector<1x16xf32>
    %cst_278 = arith.constant 0.000000e+00 : f32
    %273 = vector.broadcast %cst_278 : f32 to vector<1x16xf32>
    %274 = arith.maximumf %272, %273 : vector<1x16xf32>
    %c0_279 = arith.constant 0 : index
    %c0_280 = arith.constant 0 : index
    %275 = vector.load %arg13[%c0_279, %c0_280] : memref<16x64xf32, #tpu.memory_space<vmem>>, vector<16x64xf32>
    %cst_281 = arith.constant dense<0.000000e+00> : vector<1x64xf32>
    %276 = tpu.matmul %274, %275, %cst_281 {dimension_numbers = #tpu.dot_dimension_numbers<[1], [0], [0], [1], [0, 0, 1, 1], [], []>} : vector<1x16xf32>, vector<16x64xf32>, vector<1x64xf32> -> vector<1x64xf32>
    %c0_282 = arith.constant 0 : index
    %c0_283 = arith.constant 0 : index
    %277 = vector.load %arg14[%c0_282, %c0_283] : memref<1x64xf32, #tpu.memory_space<vmem>>, vector<1x64xf32>
    %278 = arith.addf %276, %277 : vector<1x64xf32>
    %279 = arith.negf %278 : vector<1x64xf32>
    %280 = math.exp %279 : vector<1x64xf32>
    %cst_284 = arith.constant 1.000000e+00 : f32
    %281 = vector.broadcast %cst_284 : f32 to vector<1x64xf32>
    %282 = arith.addf %281, %280 : vector<1x64xf32>
    %283 = arith.divf %281, %282 : vector<1x64xf32>
    %c0_285 = arith.constant 0 : index
    %c0_286 = arith.constant 0 : index
    %c0_287 = arith.constant 0 : index
    %284 = vector.load %arg1[%c0_285, %c0_286, %c0_287] : memref<1x16x64xbf16, #tpu.memory_space<vmem>>, vector<1x16x64xbf16>
    %285 = vector.shape_cast %284 : vector<1x16x64xbf16> to vector<16x64xbf16>
    %286 = arith.extf %285 : vector<16x64xbf16> to vector<16x64xf32>
    %287 = vector.broadcast %283 : vector<1x64xf32> to vector<16x64xf32>
    %288 = arith.mulf %264, %287 : vector<16x64xf32>
    %289 = arith.addf %288, %286 : vector<16x64xf32>
    %290 = arith.truncf %289 : vector<16x64xf32> to vector<16x64xbf16>
    %c0_288 = arith.constant 0 : index
    %c0_289 = arith.constant 0 : index
    %c0_290 = arith.constant 0 : index
    %291 = vector.load %arg15[%c0_288, %c0_289, %c0_290] : memref<1x16x64xbf16, #tpu.memory_space<vmem>>, vector<1x16x64xbf16>
    %292 = vector.shape_cast %291 : vector<1x16x64xbf16> to vector<16x64xbf16>
    %293 = vector.shape_cast %290 : vector<16x64xbf16> to vector<1x16x64xbf16>
    tpu.vector_store %arg15[%c0_288, %c0_289, %c0_290], %293 {strides = array<i32>} : memref<1x16x64xbf16, #tpu.memory_space<vmem>>, vector<1x16x64xbf16>,
    return
  }
  func.func @transform_0(%arg0: i32) -> (i32, i32, i32) {
    %c0_i32 = arith.constant 0 : i32
    %c0_i32_0 = arith.constant 0 : i32
    %c0_i32_1 = arith.constant 0 : i32
    return %arg0, %c0_i32, %c0_i32_0 : i32, i32, i32
  }
  func.func @transform_1(%arg0: i32) -> (i32, i32) {
    %c0_i32 = arith.constant 0 : i32
    %c0_i32_0 = arith.constant 0 : i32
    %c0_i32_1 = arith.constant 0 : i32
    return %c0_i32, %c0_i32_0 : i32, i32
  }
  func.func @transform_2(%arg0: i32) -> (i32, i32) {
    %c0_i32 = arith.constant 0 : i32
    %c0_i32_0 = arith.constant 0 : i32
    %c0_i32_1 = arith.constant 0 : i32
    return %c0_i32, %c0_i32_0 : i32, i32
  }
  func.func @transform_3(%arg0: i32) -> (i32, i32) {
    %c0_i32 = arith.constant 0 : i32
    %c0_i32_0 = arith.constant 0 : i32
    %c0_i32_1 = arith.constant 0 : i32
    return %c0_i32, %c0_i32_0 : i32, i32
  }
  func.func @transform_4(%arg0: i32) -> (i32, i32, i32, i32) {
    %c0_i32 = arith.constant 0 : i32
    %c0_i32_0 = arith.constant 0 : i32
    %c0_i32_1 = arith.constant 0 : i32
    %c0_i32_2 = arith.constant 0 : i32
    %c0_i32_3 = arith.constant 0 : i32
    return %c0_i32, %c0_i32_0, %c0_i32_1, %c0_i32_2 : i32, i32, i32, i32
  }
  func.func @transform_5(%arg0: i32) -> (i32, i32, i32) {
    %c0_i32 = arith.constant 0 : i32
    %c0_i32_0 = arith.constant 0 : i32
    %c0_i32_1 = arith.constant 0 : i32
    %c0_i32_2 = arith.constant 0 : i32
    return %c0_i32, %c0_i32_0, %c0_i32_1 : i32, i32, i32
  }
  func.func @transform_6(%arg0: i32) -> (i32, i32, i32) {
    %c0_i32 = arith.constant 0 : i32
    %c0_i32_0 = arith.constant 0 : i32
    %c0_i32_1 = arith.constant 0 : i32
    %c0_i32_2 = arith.constant 0 : i32
    return %c0_i32, %c0_i32_0, %c0_i32_1 : i32, i32, i32
  }
  func.func @transform_7(%arg0: i32) -> (i32, i32) {
    %c0_i32 = arith.constant 0 : i32
    %c0_i32_0 = arith.constant 0 : i32
    %c0_i32_1 = arith.constant 0 : i32
    return %c0_i32, %c0_i32_0 : i32, i32
  }
  func.func @transform_8(%arg0: i32) -> (i32, i32) {
    %c0_i32 = arith.constant 0 : i32
    %c0_i32_0 = arith.constant 0 : i32
    %c0_i32_1 = arith.constant 0 : i32
    return %c0_i32, %c0_i32_0 : i32, i32
  }
  func.func @transform_9(%arg0: i32) -> (i32, i32) {
    %c0_i32 = arith.constant 0 : i32
    %c0_i32_0 = arith.constant 0 : i32
    %c0_i32_1 = arith.constant 0 : i32
    return %c0_i32, %c0_i32_0 : i32, i32
  }
  func.func @transform_10(%arg0: i32) -> (i32, i32) {
    %c0_i32 = arith.constant 0 : i32
    %c0_i32_0 = arith.constant 0 : i32
    %c0_i32_1 = arith.constant 0 : i32
    return %c0_i32, %c0_i32_0 : i32, i32
  }
  func.func @transform_11(%arg0: i32) -> (i32, i32) {
    %c0_i32 = arith.constant 0 : i32
    %c0_i32_0 = arith.constant 0 : i32
    %c0_i32_1 = arith.constant 0 : i32
    return %c0_i32, %c0_i32_0 : i32, i32
  }
  func.func @transform_12(%arg0: i32) -> (i32, i32) {
    %c0_i32 = arith.constant 0 : i32
    %c0_i32_0 = arith.constant 0 : i32
    %c0_i32_1 = arith.constant 0 : i32
    return %c0_i32, %c0_i32_0 : i32, i32
  }
  func.func @transform_13(%arg0: i32) -> (i32, i32) {
    %c0_i32 = arith.constant 0 : i32
    %c0_i32_0 = arith.constant 0 : i32
    %c0_i32_1 = arith.constant 0 : i32
    return %c0_i32, %c0_i32_0 : i32, i32
  }
  func.func @transform_14(%arg0: i32) -> (i32, i32, i32) {
    %c0_i32 = arith.constant 0 : i32
    %c0_i32_0 = arith.constant 0 : i32
    %c0_i32_1 = arith.constant 0 : i32
    return %arg0, %c0_i32, %c0_i32_0 : i32, i32, i32
  }
}

module attributes {stable_mosaic.version = 11 : i64} {
  func.func @_final_kernel(%arg0: i32, %arg1: i32, %arg2: memref<1x16x64xbf16, #tpu.memory_space<vmem>>, %arg3: memref<1x16x64xbf16, #tpu.memory_space<vmem>>, %arg4: memref<1x16x64xbf16, #tpu.memory_space<vmem>>, %arg5: memref<192x64xbf16, #tpu.memory_space<vmem>>, %arg6: memref<192x64xbf16, #tpu.memory_space<vmem>>, %arg7: memref<192x64xbf16, #tpu.memory_space<vmem>>, %arg8: memref<192x1xf32, #tpu.memory_space<vmem>>, %arg9: memref<192x1xf32, #tpu.memory_space<vmem>>, %arg10: memref<192x1xf32, #tpu.memory_space<vmem>>, %arg11: memref<1x192x16xf32, #tpu.memory_space<vmem>>) attributes {dimension_semantics = [#tpu.dimension_semantics<parallel>, #tpu.dimension_semantics<parallel>], iteration_bounds = array<i64: 2, 1>, scalar_prefetch = 0 : i64, scratch_operands = 0 : i64, tpu.core_type = #tpu.core_type<tc>, window_params = [{transform_indices = @transform_0, window_bounds = array<i64: 1, 16, 64>}, {transform_indices = @transform_1, window_bounds = array<i64: 1, 16, 64>}, {transform_indices = @transform_2, window_bounds = array<i64: 1, 16, 64>}, {pipeline_mode = #tpu.pipeline_mode<synchronous>, transform_indices = @transform_3, window_bounds = array<i64: 192, 64>}, {pipeline_mode = #tpu.pipeline_mode<synchronous>, transform_indices = @transform_4, window_bounds = array<i64: 192, 64>}, {pipeline_mode = #tpu.pipeline_mode<synchronous>, transform_indices = @transform_5, window_bounds = array<i64: 192, 64>}, {pipeline_mode = #tpu.pipeline_mode<synchronous>, transform_indices = @transform_6, window_bounds = array<i64: 192, 1>}, {pipeline_mode = #tpu.pipeline_mode<synchronous>, transform_indices = @transform_7, window_bounds = array<i64: 192, 1>}, {pipeline_mode = #tpu.pipeline_mode<synchronous>, transform_indices = @transform_8, window_bounds = array<i64: 192, 1>}, {transform_indices = @transform_9, window_bounds = array<i64: 1, 192, 16>}]} {
    %c0 = arith.constant 0 : index
    %c0_0 = arith.constant 0 : index
    %0 = vector.load %arg5[%c0, %c0_0] : memref<192x64xbf16, #tpu.memory_space<vmem>>, vector<192x64xbf16>
    %c0_1 = arith.constant 0 : index
    %c0_2 = arith.constant 0 : index
    %c0_3 = arith.constant 0 : index
    %1 = vector.load %arg2[%c0_1, %c0_2, %c0_3] : memref<1x16x64xbf16, #tpu.memory_space<vmem>>, vector<1x16x64xbf16>
    %2 = vector.shape_cast %1 : vector<1x16x64xbf16> to vector<16x64xbf16>
    %cst = arith.constant dense<0.000000e+00> : vector<192x16xf32>
    %3 = tpu.matmul %0, %2, %cst {dimension_numbers = #tpu.dot_dimension_numbers<[1], [1], [0], [0], [0, 0, 1, 0], [], []>} : vector<192x64xbf16>, vector<16x64xbf16>, vector<192x16xf32> -> vector<192x16xf32>
    %c0_4 = arith.constant 0 : index
    %c0_5 = arith.constant 0 : index
    %4 = vector.load %arg6[%c0_4, %c0_5] : memref<192x64xbf16, #tpu.memory_space<vmem>>, vector<192x64xbf16>
    %c0_6 = arith.constant 0 : index
    %c0_7 = arith.constant 0 : index
    %c0_8 = arith.constant 0 : index
    %5 = vector.load %arg3[%c0_6, %c0_7, %c0_8] : memref<1x16x64xbf16, #tpu.memory_space<vmem>>, vector<1x16x64xbf16>
    %6 = vector.shape_cast %5 : vector<1x16x64xbf16> to vector<16x64xbf16>
    %cst_9 = arith.constant dense<0.000000e+00> : vector<192x16xf32>
    %7 = tpu.matmul %4, %6, %cst_9 {dimension_numbers = #tpu.dot_dimension_numbers<[1], [1], [0], [0], [0, 0, 1, 0], [], []>} : vector<192x64xbf16>, vector<16x64xbf16>, vector<192x16xf32> -> vector<192x16xf32>
    %8 = arith.addf %3, %7 : vector<192x16xf32>
    %c0_10 = arith.constant 0 : index
    %c0_11 = arith.constant 0 : index
    %9 = vector.load %arg7[%c0_10, %c0_11] : memref<192x64xbf16, #tpu.memory_space<vmem>>, vector<192x64xbf16>
    %c0_12 = arith.constant 0 : index
    %c0_13 = arith.constant 0 : index
    %c0_14 = arith.constant 0 : index
    %10 = vector.load %arg4[%c0_12, %c0_13, %c0_14] : memref<1x16x64xbf16, #tpu.memory_space<vmem>>, vector<1x16x64xbf16>
    %11 = vector.shape_cast %10 : vector<1x16x64xbf16> to vector<16x64xbf16>
    %cst_15 = arith.constant dense<0.000000e+00> : vector<192x16xf32>
    %12 = tpu.matmul %9, %11, %cst_15 {dimension_numbers = #tpu.dot_dimension_numbers<[1], [1], [0], [0], [0, 0, 1, 0], [], []>} : vector<192x64xbf16>, vector<16x64xbf16>, vector<192x16xf32> -> vector<192x16xf32>
    %13 = arith.addf %8, %12 : vector<192x16xf32>
    %c0_16 = arith.constant 0 : index
    %c0_17 = arith.constant 0 : index
    %14 = vector.load %arg8[%c0_16, %c0_17] : memref<192x1xf32, #tpu.memory_space<vmem>>, vector<192x1xf32>
    %15 = vector.broadcast %14 : vector<192x1xf32> to vector<192x16xf32>
    %16 = arith.addf %13, %15 : vector<192x16xf32>
    %cst_18 = arith.constant 0.000000e+00 : f32
    %17 = vector.broadcast %cst_18 : f32 to vector<192x16xf32>
    %18 = arith.maximumf %16, %17 : vector<192x16xf32>
    %c0_19 = arith.constant 0 : index
    %c0_20 = arith.constant 0 : index
    %19 = vector.load %arg9[%c0_19, %c0_20] : memref<192x1xf32, #tpu.memory_space<vmem>>, vector<192x1xf32>
    %20 = vector.broadcast %19 : vector<192x1xf32> to vector<192x16xf32>
    %21 = arith.mulf %18, %20 : vector<192x16xf32>
    %c0_21 = arith.constant 0 : index
    %c0_22 = arith.constant 0 : index
    %22 = vector.load %arg10[%c0_21, %c0_22] : memref<192x1xf32, #tpu.memory_space<vmem>>, vector<192x1xf32>
    %23 = vector.broadcast %22 : vector<192x1xf32> to vector<192x16xf32>
    %24 = arith.addf %21, %23 : vector<192x16xf32>
    %c0_23 = arith.constant 0 : index
    %c0_24 = arith.constant 0 : index
    %c0_25 = arith.constant 0 : index
    %25 = vector.load %arg11[%c0_23, %c0_24, %c0_25] : memref<1x192x16xf32, #tpu.memory_space<vmem>>, vector<1x192x16xf32>
    %26 = vector.shape_cast %25 : vector<1x192x16xf32> to vector<192x16xf32>
    %27 = vector.shape_cast %24 : vector<192x16xf32> to vector<1x192x16xf32>
    tpu.vector_store %arg11[%c0_23, %c0_24, %c0_25], %27 {strides = array<i32>} : memref<1x192x16xf32, #tpu.memory_space<vmem>>, vector<1x192x16xf32>,
    return
  }
  func.func @transform_0(%arg0: i32, %arg1: i32) -> (i32, i32, i32) {
    %c0_i32 = arith.constant 0 : i32
    %c0_i32_0 = arith.constant 0 : i32
    return %arg0, %arg1, %c0_i32 : i32, i32, i32
  }
  func.func @transform_1(%arg0: i32, %arg1: i32) -> (i32, i32, i32) {
    %c0_i32 = arith.constant 0 : i32
    %c0_i32_0 = arith.constant 0 : i32
    return %arg0, %arg1, %c0_i32 : i32, i32, i32
  }
  func.func @transform_2(%arg0: i32, %arg1: i32) -> (i32, i32, i32) {
    %c0_i32 = arith.constant 0 : i32
    %c0_i32_0 = arith.constant 0 : i32
    return %arg0, %arg1, %c0_i32 : i32, i32, i32
  }
  func.func @transform_3(%arg0: i32, %arg1: i32) -> (i32, i32) {
    %c0_i32 = arith.constant 0 : i32
    %c0_i32_0 = arith.constant 0 : i32
    %c0_i32_1 = arith.constant 0 : i32
    return %c0_i32, %c0_i32_0 : i32, i32
  }
  func.func @transform_4(%arg0: i32, %arg1: i32) -> (i32, i32) {
    %c0_i32 = arith.constant 0 : i32
    %c0_i32_0 = arith.constant 0 : i32
    %c0_i32_1 = arith.constant 0 : i32
    return %c0_i32, %c0_i32_0 : i32, i32
  }
  func.func @transform_5(%arg0: i32, %arg1: i32) -> (i32, i32) {
    %c0_i32 = arith.constant 0 : i32
    %c0_i32_0 = arith.constant 0 : i32
    %c0_i32_1 = arith.constant 0 : i32
    return %c0_i32, %c0_i32_0 : i32, i32
  }
  func.func @transform_6(%arg0: i32, %arg1: i32) -> (i32, i32) {
    %c0_i32 = arith.constant 0 : i32
    %c0_i32_0 = arith.constant 0 : i32
    %c0_i32_1 = arith.constant 0 : i32
    return %c0_i32, %c0_i32_0 : i32, i32
  }
  func.func @transform_7(%arg0: i32, %arg1: i32) -> (i32, i32) {
    %c0_i32 = arith.constant 0 : i32
    %c0_i32_0 = arith.constant 0 : i32
    %c0_i32_1 = arith.constant 0 : i32
    return %c0_i32, %c0_i32_0 : i32, i32
  }
  func.func @transform_8(%arg0: i32, %arg1: i32) -> (i32, i32) {
    %c0_i32 = arith.constant 0 : i32
    %c0_i32_0 = arith.constant 0 : i32
    %c0_i32_1 = arith.constant 0 : i32
    return %c0_i32, %c0_i32_0 : i32, i32
  }
  func.func @transform_9(%arg0: i32, %arg1: i32) -> (i32, i32, i32) {
    %c0_i32 = arith.constant 0 : i32
    %c0_i32_0 = arith.constant 0 : i32
    return %arg0, %c0_i32, %arg1 : i32, i32, i32
  }
}

</mosaic_0001>

<bundles_post_ra>
// kernel: ecapa_forward.5
= control target key start
LH: loop header
LB: loop body
LE: loop exit
PB: predicated region body
PF: predicated region fallthrough
CT: control target
= control target key end

     0   :  { %9 = vsyncpa [#allocation4], 0  ;;  %s842_s15 = smov 0   ;;  %s925_s0 = inlined_call_operand.vmem [shape: bf16[2,16,32], index: 0, kind: input, shape index: {}]   ;;  %s926_s1 = inlined_call_operand.hbm [shape: bf16[5,32,64], index: 1, kind: input, shape index: {}]   ;;  %s927_s2 = inlined_call_operand.vmem [shape: f32[1,64], index: 2, kind: input, shape index: {}]   ;;  %s928_s3 = inlined_call_operand.vmem [shape: f32[1,64], index: 3, kind: input, shape index: {}]   ;;  %s929_s4 = inlined_call_operand.vmem [shape: bf16[2,16,64], index: 4, kind: output, shape index: {}]  }
   0x1 LB: > { %s848_s16 = sadd.s32 4294967295, %s810_s15   ;;  %p648_p0 = scmp.ge.s32.totalorder %s810_s15, 1  ;;  %s810_s15 = sphi %s842_s15, %s15_s15  }
   0x2   : > { %p135_p1 = scmp.lt.s32.totalorder %s810_s15, 3  ;;  %s812_s17 = smov [#allocation3]  }
   0x3   : > { %s147_s18 = sshll.u32 %s812_s17, 4  ;;  %p749_p3 = scmp.eq.s32.totalorder %s848_s16, 0  ;;  %s148_s18 = int_to_ptr.vmem [resolvable:$true] %s147_s18 }
   0x4   : > { %p852_p2 = pnand %p648_p0, %p135_p1  ;;  %s785_s20 = scalar_lea.vmem %s148_s18, 1280 }
   0x5   : > { %p786_p7 = scmp.ne.s32.totalorder %s148_s18, %s785_s20  ;;  %p793_p10 = scmp.lt.s32.totalorder %s148_s18, %s148_s18 }
   0x6   : > { %p745_p4 = pneg %p852_p2  ;;  %p794_p11 = scmp.lt.s32.totalorder %s785_s20, %s785_s20 }
   0x8   : > { %p746_p5 = pnand %p749_p3, %p745_p4  ;;  %p795_p12 = por %p794_p11, %p793_p10 }
   0xa   : > { %p776_p6 = pneg %p746_p5 }
   0xc   : > { %p788_p8 = pnand %p786_p7, %p776_p6 }
   0xe   : > { %p789_p9 = pneg %p788_p8 }
  0x10   : > { %p796_p13 = pnand %p795_p12, %p789_p9 }
  0x12   : > { %799 = shalt.err (!%p796_p13)
}
  0x13   : > { %s813_s21 = smov 64   ;;  %s814_s22 = smov 4  }
  0x14   : > { %748 = dma.hbm_to_vmem [thread:$0]  (!%p746_p5), %s926_s1, 1280, %s148_s18, [#allocation4], %s813_s21, %s813_s21, %s814_s22  }
  0x15   : > { %177 = sbr.rel (%p852_p2) target bundleno = 269 (0x10d), region = 36 }
  0x1a   : > { %805 = dma.done.wait (%p749_p3), [#allocation4], 1280  }
  0x1b   : > { %807 = vsyncadd (%p749_p3), [#allocation4], 4294966016  ;;  %p203_p0 = scmp.lt.s32.totalorder %s848_s16, 1  ;;  %vm214_vm0 = vcmask 261120   ;;  %v815_v0 = vmov 0.0   ;;  %vm816_vm1 = vmmov 0  }
  0x1c   : > { %701 = vmatprep.subr.bf16.mxu0 %v815_v0  ;;  %709 = vmatprep.subr.bf16.mxu1 %v815_v0  ;;  %215 = vst.msk [vmem:[#allocation2] sm:$0xff] %vm214_vm0, %v815_v0  ;;  %216 = vst.msk [vmem:[#allocation2 + $0x18] sm:$0xff] %vm214_vm0, %v815_v0  ;;  %v764_v1 = vld [vmem:[#allocation3 + $0x18] sm:$0xff]   ;;  %v765_v2 = vld [vmem:[#allocation3 + $0x8] sm:$0xff]   ;;  %vm576_vm2 = vcmask 519168  }
  0x1d   : > { %705 = vmatprep.mubr.msk.bf16.mxu0 %vm816_vm1, %v815_v0  ;;  %713 = vmatprep.mubr.msk.bf16.mxu1 %vm816_vm1, %v815_v0  ;;  %s932_s16 = smov (!%p203_p0, %s848_s16), 1  ;;  %v766_v3 = vld [vmem:[#allocation3 + $0x10] sm:$0xff]   ;;  %v767_v4 = vld [vmem:[#allocation3] sm:$0xff]   ;;  %v768_v8 = vld [vmem:[#allocation3 + $0x28] sm:$0xff]  }
  0x1e   : > { %s678_s25 = sshll.u32 %s932_s16, 3  ;;  %702 = vmatpush3.bf16.msra.mxu0 %v764_v1  ;;  %710 = vmatpush3.bf16.msra.mxu1 %v765_v2  ;;  %v769_v14 = vld [vmem:[#allocation3 + $0x38] sm:$0xff]   ;;  %v770_v16 = vld [vmem:[#allocation3 + $0x20] sm:$0xff]   ;;  %v771_v19 = vld [vmem:[#allocation3 + $0x30] sm:$0xff]  }
  0x1f   : > { %s207_s28 = scalar_lea.vmem %s925_s0, %s678_s25  ;;  %703 = vmatprep.subr.bf16.mxu0 %v815_v0  ;;  %711 = vmatprep.subr.bf16.mxu1 %v815_v0  ;;  %v772_v24 = vld [vmem:[#allocation3 + $0x48] sm:$0xff]   ;;  %v773_v25 = vld [vmem:[#allocation3 + $0x40] sm:$0xff]   ;;  %s212_s9 = scalar_lea.vmem %s929_s4, %s678_s25 }
  0x20   : > { %v683_v5 = vld [vmem:[%s207_s28] sm:$0xff]  }
  0x21   : > { %v684_v6 = vunpack.c.l.bf16 %v683_v5  ;;  %v685_v7 = vunpack.c.h.bf16 %v683_v5  ;;  %v672_v52 = vld [vmem:[%s927_s2] ss:$0 sm:$0xff] }
  0x22   : > { %704 = vmatpush3.bf16.msra.mxu0 %v766_v3  ;;  %712 = vmatpush3.bf16.msra.mxu1 %v767_v4  ;;  %v673_v56 = vld [vmem:[%s928_s3] ss:$0 sm:$0xff] }
  0x23   : > { %717 = vmatprep.subr.bf16.mxu0 %v815_v0  ;;  %221 = vst.msk [vmem:[#allocation2 + $0x8] sm:$0xff] %vm214_vm0, %v684_v6  ;;  %222 = vst.msk [vmem:[#allocation2 + $0x10] sm:$0xff] %vm214_vm0, %v685_v7  ;;  %725 = vmatprep.subr.bf16.mxu1 %v815_v0 }
  0x2a   : > { %v230_v9 = vld [vmem:[#allocation2 + $0x7] sm:$0xff]  ;;  %v231_v10 = vld [vmem:[#allocation2 + $0xf] sm:$0xff] }
  0x2b   : > { %v223_v11 = vld [vmem:[#allocation2 + $0x6] sm:$0xff]  ;;  %v232_v12 = vpack.c.bf16 %v231_v10, %v230_v9  ;;  %v224_v13 = vld [vmem:[#allocation2 + $0xe] sm:$0xff] }
  0x2c   : > { %v225_v15 = vpack.c.bf16 %v224_v13, %v223_v11  ;;  %v350_v17 = vld [vmem:[#allocation2 + $0x8] sm:$0xff]  ;;  %v351_v18 = vld [vmem:[#allocation2 + $0x10] sm:$0xff] }
  0x2d   : > { %706 = vmatmul.mubr.msk.bf16.vlgmr.msra.gmra.mxu0 %vm214_vm0, %v232_v12  ;;  %v416_v20 = vld [vmem:[#allocation2 + $0x9] sm:$0xff]  ;;  %v417_v21 = vld [vmem:[#allocation2 + $0x11] sm:$0xff]  ;;  %v352_v22 = vpack.c.bf16 %v351_v18, %v350_v17 }
  0x2e   : > { %714 = vmatmul.mubr.msk.bf16.vlgmr.msra.gmra.mxu1 %vm214_vm0, %v225_v15  ;;  %718 = vmatpush3.bf16.msra.mxu0 %v768_v8  ;;  %v418_v23 = vpack.c.bf16 %v417_v21, %v416_v20  ;;  %v482_v26 = vld [vmem:[#allocation2 + $0xa] sm:$0xff]  ;;  %v483_v27 = vld [vmem:[#allocation2 + $0x12] sm:$0xff] }
  0x2f   : > { %726 = vmatpush3.bf16.msra.mxu1 %v769_v14  ;;  %719 = vmatprep.subr.bf16.mxu0 %v815_v0  ;;  %v484_v28 = vpack.c.bf16 %v483_v27, %v482_v26 }
  0x30   : > { %727 = vmatprep.subr.bf16.mxu1 %v815_v0  ;;  %721 = vmatprep.mubr.msk.bf16.mxu0 %vm816_vm1, %v815_v0 }
  0x31   : > { %729 = vmatprep.mubr.msk.bf16.mxu1 %vm816_vm1, %v815_v0 }
  0x32   : > { %720 = vmatpush3.bf16.msra.mxu0 %v770_v16 }
  0x33   : > { %728 = vmatpush3.bf16.msra.mxu1 %v771_v19  ;;  %733 = vmatprep.subr.bf16.mxu0 %v815_v0 }
  0x35   : > { %722 = vmatmul.mubr.msk.bf16.vlgmr.msra.gmra.mxu0 %vm214_vm0, %v352_v22 }
  0x36   : > { %730 = vmatmul.mubr.msk.bf16.vlgmr.msra.gmra.mxu1 %vm214_vm0, %v418_v23  ;;  %734 = vmatpush3.bf16.msra.mxu0 %v772_v24 }
  0x37   : > { %735 = vmatprep.subr.bf16.mxu0 %v815_v0  ;;  %737 = vmatprep.mubr.msk.bf16.mxu0 %vm816_vm1, %v815_v0 }
  0x3a   : > { %736 = vmatpush3.bf16.msra.mxu0 %v773_v25 }
  0x3d   : > { %738 = vmatmul.mubr.msk.bf16.vlgmr.msra.gmra.mxu0 %vm214_vm0, %v484_v28 }
  0xed   : > { %v287_v29 = vpop.f32.mrf.mxu0 }
  0xee   : > { %v343_v30 = vpop.f32.mrf.mxu1 }
  0xef   : > { %v707_v31 = vpop.f32.mrf.mxu0  ;;  %v344_v38 = vadd.f32 %v343_v30, %v287_v29 }
  0xf0   : > { %v715_v32 = vpop.f32.mrf.mxu1 }
  0xf1   : > { %v290_v33 = vpop.f32.mrf.mxu0 }
  0xf2   : > { %v346_v34 = vpop.f32.mrf.mxu1 }
  0xf3   : > { %v708_v35 = vpop.f32.mrf.mxu0  ;;  %v347_v44 = vadd.f32 %v346_v34, %v290_v33 }
  0xf4   : > { %v716_v36 = vpop.f32.mrf.mxu1 }
  0xf5   : > { %v407_v37 = vpop.f32.mrf.mxu0 }
  0xf6   : > { %v473_v39 = vpop.f32.mrf.mxu1  ;;  %v414_v41 = vadd.f32 %v407_v37, %v344_v38 }
  0xf7   : > { %v723_v40 = vpop.f32.mrf.mxu0 }
  0xf8   : > { %v731_v42 = vpop.f32.mrf.mxu1  ;;  %v480_v47 = vadd.f32 %v473_v39, %v414_v41 }
  0xf9   : > { %v410_v43 = vpop.f32.mrf.mxu0 }
  0xfa   : > { %v476_v45 = vpop.f32.mrf.mxu1  ;;  %v415_v48 = vadd.f32 %v410_v43, %v347_v44 }
  0xfb   : > { %v724_v46 = vpop.f32.mrf.mxu0 }
  0xfc   : > { %v732_v49 = vpop.f32.mrf.mxu1  ;;  %v481_v54 = vadd.f32 %v476_v45, %v415_v48 }
  0xfd   : > { %v539_v50 = vpop.f32.mrf.mxu0 }
  0xfe   : > { %v546_v51 = vadd.f32 %v539_v50, %v480_v47 }
  0xff   : > { %v739_v53 = vpop.f32.mrf.mxu0 }
 0x100   : > { %v548_v55 = vmax.f32 %v546_v51, 0.0 }
 0x101   : > { %v542_v57 = vpop.f32.mrf.mxu0 }
 0x102   : > { %v557_v58 = vmul.f32 %v672_v52, %v548_v55  ;;  %v547_v59 = vadd.f32 %v542_v57, %v481_v54 }
 0x103   : > { %v740_v60 = vpop.f32.mrf.mxu0 }
 0x104   : > { %v566_v61 = vadd.f32 %v673_v56, %v557_v58  ;;  %v549_v62 = vmax.f32 %v547_v59, 0.0 }
 0x106   : > { %v680_v63 = vpack.c.bf16 %v566_v61, %v566_v61  ;;  %v558_v0 = vmul.f32 %v672_v52, %v549_v62 }
 0x108   : > { %577 = vst.msk [vmem:[%s212_s9] sm:$0xf] %vm576_vm2, %v680_v63  ;;  %v567_v1 = vadd.f32 %v673_v56, %v558_v0 }
 0x10a   : > { %v681_v2 = vpack.c.bf16 %v567_v1, %v567_v1 }
 0x10c   : > { %578 = vst.msk [vmem:[%s212_s9 + $0x4] sm:$0xf] %vm576_vm2, %v681_v2 }
 0x10d PF: > { %s15_s15 = sadd.s32 1, %s810_s15  }
 0x10e   : > { %p12_p1 = scmp.ge.s32.totalorder %s15_s15, 4  }
 0x110   :  { %14 = sbr.rel (!%p12_p1) target bundleno = 1 (0x1), region = 75 }
 0x115   :  { %600 = vsyncpa [#allocation4], 1 }
 0x116   :  { %602 = vsyncpa [#allocation4 + $0x1], 1 }

// kernel: ecapa_forward.6
= control target key start
LH: loop header
LB: loop body
LE: loop exit
PB: predicated region body
PF: predicated region fallthrough
CT: control target
= control target key end

     0   :  { %s2969_s18 = smov 0   ;;  %s3347_s0 = inlined_call_operand.vmem [shape: bf16[2,16,64], index: 0, kind: input, shape index: {}]   ;;  %s3348_s1 = inlined_call_operand.vmem [shape: bf16[64,64], index: 1, kind: input, shape index: {}]   ;;  %s3349_s2 = inlined_call_operand.vmem [shape: f32[1,64], index: 2, kind: input, shape index: {}]   ;;  %s3350_s3 = inlined_call_operand.vmem [shape: f32[1,64], index: 3, kind: input, shape index: {}]   ;;  %s3351_s4 = inlined_call_operand.vmem [shape: bf16[7,3,8,8], index: 4, kind: input, shape index: {}]   ;;  %s3352_s5 = inlined_call_operand.vmem [shape: f32[7,1,8], index: 5, kind: input, shape index: {}]   ;;  %s3353_s6 = inlined_call_operand.vmem [shape: f32[7,1,8], index: 6, kind: input, shape index: {}]   ;;  %s3354_s7 = inlined_call_operand.vmem [shape: bf16[64,64], index: 7, kind: input, shape index: {}]   ;;  %s3355_s8 = inlined_call_operand.vmem [shape: f32[1,64], index: 8, kind: input, shape index: {}]   ;;  %s3356_s9 = inlined_call_operand.vmem [shape: f32[1,64], index: 9, kind: input, shape index: {}]   ;;  %s3357_s10 = inlined_call_operand.vmem [shape: f32[64,16], index: 10, kind: input, shape index: {}]   ;;  %s3358_s11 = inlined_call_operand.vmem [shape: f32[1,16], index: 11, kind: input, shape index: {}]   ;;  %s3359_s12 = inlined_call_operand.vmem [shape: f32[16,64], index: 12, kind: input, shape index: {}]   ;;  %s3360_s13 = inlined_call_operand.vmem [shape: f32[1,64], index: 13, kind: input, shape index: {}]   ;;  %s3361_s14 = inlined_call_operand.vmem [shape: bf16[2,16,64], index: 14, kind: output, shape index: {0}]   ;;  %s3362_s15 = inlined_call_operand.vmem [shape: bf16[2,16,64], index: 15, kind: output, shape index: {1}]  }
   0x1 LB: > { %s2479_s19 = sadd.s32 4294967295, %s2873_s18   ;;  %p2483_p0 = scmp.ge.s32.totalorder %s2873_s18, 1  ;;  %s2873_s18 = sphi %s2969_s18, %s26_s18  }
   0x2   : > { %p440_p1 = scmp.lt.s32.totalorder %s2873_s18, 3 }
   0x4   : > { %p441_p2 = pnand %p2483_p0, %p440_p1 }
   0x5   : > { %p493_p3 = scmp.lt.s32.totalorder (!%p441_p2), %s2479_s19, 1  ;;  %s2877_s20 = smov (!%p441_p2), 8  }
   0x6   : > { %444 = sbr.rel (%p441_p2) target bundleno = 4603 (0x11fb), region = 76  ;;  %s2878_s25 = smov (!%p441_p2), 120  }
   0x7   : > { %s2880_s21 = smov (!%p441_p2), 16   ;;  %s2881_s27 = smov (!%p441_p2), 104  }
   0x8   : > { %s2882_s22 = smov (!%p441_p2), 24   ;;  %s2883_s28 = smov (!%p441_p2), 96  }
   0x9   : > { %s2884_s23 = smov (!%p441_p2), 32   ;;  %s2885_s30 = smov (!%p441_p2), 88  }
   0xa   : > { %s2886_s24 = smov (!%p441_p2), 40  }
   0xb   : > { %v2854_v0 = vld [vmem:[%s3348_s1 + $0x18] sm:$0xff]   ;;  %v2875_v1 = vmov 0.0   ;;  %v2855_v2 = vld [vmem:[%s3348_s1 + $0x10] sm:$0xff]   ;;  %vm2876_vm0 = vmmov 0   ;;  %s3364_s19 = smov (!%p493_p3, %s2479_s19), 1  ;;  %v2856_v3 = vld [vmem:[%s3348_s1 + $0x8] sm:$0xff]  }
   0xc   : > { %2656 = vmatprep.subr.bf16.mxu0 %v2875_v1  ;;  %2668 = vmatprep.subr.bf16.mxu1 %v2875_v1  ;;  %s2993_s26 = sshll.u32 %s3364_s19, 3  ;;  %v2857_v4 = vld [vmem:[%s3348_s1] sm:$0xff]   ;;  %vm548_vm1 = vcmask 523264   ;;  %vm615_vm2 = vcmask 64512   ;;  %vm634_vm3 = vcmask 1043456   ;;  %vm1012_vm4 = vcmask 130112  }
   0xd   : > { %2657 = vmatpush3.bf16.msra.mxu0 %v2854_v0  ;;  %2664 = vmatprep.mubr.msk.bf16.mxu0 %vm2876_vm0, %v2875_v1  ;;  %s3000_s29 = scalar_lea.vmem %s3347_s0, %s2993_s26  ;;  %616 = vst.msk [vmem:[#allocation2] sm:$0xff] %vm615_vm2, %v2875_v1  ;;  %617 = vst.msk [vmem:[#allocation2 + $0x18] sm:$0xff] %vm615_vm2, %v2875_v1  ;;  %v2498_v6 = vld [vmem:[%s3351_s4 + $0x4] sm:$0xf]  ;;  %v2496_v9 = vld [vmem:[%s3349_s2] ss:$0 sm:$0xff] }
   0xe   : > { %2658 = vmatprep.subr.bf16.mxu0 %v2875_v1  ;;  %2670 = vmatprep.mubr.msk.bf16.mxu1 %vm2876_vm0, %v2875_v1  ;;  %v2858_v5 = vld [vmem:[%s3000_s29] sm:$0xff]   ;;  %v636_v7 = vsel %vm634_vm3, %v2498_v6, 0  ;;  %v2501_v28 = vld [vmem:[%s3351_s4 + $0x8] sm:$0xf]  ;;  %v2506_v61 = vld [vmem:[%s3351_s4 + $0x10] sm:$0xf] }
   0xf   : > { %2669 = vmatpush3.bf16.msra.mxu1 %v636_v7  ;;  %v2497_v11 = vld [vmem:[%s3350_s3] ss:$0 sm:$0xff]  ;;  %v735_v31 = vsel %vm634_vm3, %v2501_v28, 0  ;;  %v2505_v62 = vld [vmem:[%s3351_s4 + $0xc] sm:$0xf]  ;;  %v838_v63 = vsel %vm634_vm3, %v2506_v61, 0 }
  0x10   : > { %2674 = vmatprep.subr.bf16.mxu1 %v2875_v1  ;;  %v625_v22 = vld [vmem:[%s3351_s4] sm:$0xf]  ;;  %v885_v0 = vsel %vm634_vm3, %v2505_v62, 0  ;;  %vm1225_vm5 = vcmask 195712   ;;  %vm1438_vm6 = vcmask 261312   ;;  %vm1651_vm7 = vcmask 326912  }
  0x11   : > { %2659 = vmatpush3.bf16.msra.mxu0 %v2855_v2  ;;  %v683_v26 = vsel %vm634_vm3, %v625_v22, 0  ;;  %v2503_v46 = vld [vmem:[%s3352_s5] ss:$0 sm:$0xff]  ;;  %vm1864_vm8 = vcmask 392512   ;;  %s2888_s19 = smov 48   ;;  %vm2077_vm9 = vcmask 458112  }
  0x12   : > { %2660 = vmatprep.subr.bf16.mxu0 %v2875_v1  ;;  %v2504_v50 = vld [vmem:[%s3353_s6] ss:$0 sm:$0xff]  ;;  %vm2276_vm10 = vcmask 130048   ;;  %vm2376_vm11 = vcmask 519168  }
  0x15   : > { %2661 = vmatpush3.bf16.msra.mxu0 %v2856_v3 }
  0x16   : > { %2662 = vmatprep.subr.bf16.mxu0 %v2875_v1 }
  0x19   : > { %2663 = vmatpush3.bf16.msra.mxu0 %v2857_v4 }
  0x1a   : > { %2686 = vmatprep.subr.bf16.mxu0 %v2875_v1 }
  0x1c   : > { %2665 = vmatmul.mubr.msk.bf16.vlgmr.msra.gmra.mxu0 %vm548_vm1, %v2858_v5 }
  0x1d   : > { %2688 = vmatprep.mubr.msk.bf16.mxu0 %vm2876_vm0, %v2875_v1  ;;  %2687 = vmatpush3.bf16.msra.mxu0 %v838_v63 }
  0x1e   : > { %2698 = vmatprep.subr.bf16.mxu0 %v2875_v1 }
  0xdc   : > { %v586_v8 = vpop.f32.mrf.mxu0 }
  0xdd   : > { %v593_v10 = vmax.f32 %v586_v8, 0.0  ;;  %v2509_v8 = vld [vmem:[%s3351_s4 + $0x14] sm:$0xf] }
  0xde   : > { %v2666_v12 = vpop.f32.mrf.mxu0 }
  0xdf   : > { %v602_v13 = vmul.f32 %v2496_v9, %v593_v10 }
  0xe0   : > { %v589_v14 = vpop.f32.mrf.mxu0 }
  0xe1   : > { %v611_v15 = vadd.f32 %v2497_v11, %v602_v13  ;;  %v594_v16 = vmax.f32 %v589_v14, 0.0 }
  0xe2   : > { %v2667_v17 = vpop.f32.mrf.mxu0 }
  0xe3   : > { %613 = vst.msk [vmem:[#allocation3] sm:$0xff] %vm548_vm1, %v611_v15  ;;  %v603_v18 = vmul.f32 %v2496_v9, %v594_v16  ;;  %v937_v15 = vsel %vm634_vm3, %v2509_v8, 0 }
  0xe5   : > { %v612_v19 = vadd.f32 %v2497_v11, %v603_v18 }
  0xe7   : > { %614 = vst.msk [vmem:[#allocation3 + $0x8] sm:$0xff] %vm548_vm1, %v612_v19 }
  0xea   : > { %v618_v20 = vld [vmem:[#allocation3] sm:$0xff] }
  0xeb   : > { %620 = vst.msk [vmem:[#allocation2 + $0x8] sm:$0xff] %vm615_vm2, %v618_v20 }
  0xee   : > { %v619_v21 = vld [vmem:[#allocation3 + $0x8] sm:$0xff] }
  0xef   : > { %621 = vst.msk [vmem:[#allocation2 + $0x10] sm:$0xff] %vm615_vm2, %v619_v21 }
  0xf2   : > { %v626_v23 = vld [vmem:[#allocation2 + $0x8] sm:$0xff] }
  0xf3   : > { %v622_v29 = vld [vmem:[#allocation2 + $0x6] sm:$0xff] }
  0xf6   : > { %v627_v24 = vld [vmem:[#allocation2 + $0x10] sm:$0xff] }
  0xf7   : > { %v628_v25 = vpack.c.bf16 %v627_v24, %v626_v23  ;;  %v623_v27 = vld [vmem:[#allocation2 + $0xe] sm:$0xff] }
  0xf8   : > { %v624_v30 = vpack.c.bf16 %v623_v27, %v622_v29  ;;  %v726_v32 = vld [vmem:[#allocation2 + $0xa] sm:$0xff]  ;;  %v727_v33 = vld [vmem:[#allocation2 + $0x12] sm:$0xff] }
  0xf9   : > { %2671 = vmatmul.mubr.msk.bf16.vlgmr.msra.gmra.mxu1 %vm615_vm2, %v628_v25  ;;  %v728_v34 = vpack.c.bf16 %v727_v33, %v726_v32 }
  0xfa   : > { %2675 = vmatpush3.bf16.msra.mxu1 %v683_v26  ;;  %2676 = vmatprep.mubr.msk.bf16.mxu1 %vm2876_vm0, %v2875_v1 }
  0xfb   : > { %2680 = vmatprep.subr.bf16.mxu1 %v2875_v1 }
 0x101   : > { %2677 = vmatmul.mubr.msk.bf16.vlgmr.msra.gmra.mxu1 %vm615_vm2, %v624_v30  ;;  %v2512_v30 = vld [vmem:[%s3352_s5 + $0x1] ss:$0 sm:$0xff] }
 0x102   : > { %2681 = vmatpush3.bf16.msra.mxu1 %v735_v31  ;;  %2682 = vmatprep.mubr.msk.bf16.mxu1 %vm2876_vm0, %v2875_v1 }
 0x103   : > { %2692 = vmatprep.subr.bf16.mxu1 %v2875_v1 }
 0x109   : > { %2683 = vmatmul.mubr.msk.bf16.vlgmr.msra.gmra.mxu1 %vm615_vm2, %v728_v34 }
 0x10a   : > { %2694 = vmatprep.mubr.msk.bf16.mxu1 %vm2876_vm0, %v2875_v1  ;;  %2693 = vmatpush3.bf16.msra.mxu1 %v885_v0 }
 0x10b   : > { %2704 = vmatprep.subr.bf16.mxu1 %v2875_v1 }
 0x1b9   : > { %v672_v35 = vpop.f32.mrf.mxu1 }
 0x1bb   : > { %v2672_v36 = vpop.f32.mrf.mxu1 }
 0x1bd   : > { %v675_v37 = vpop.f32.mrf.mxu1 }
 0x1bf   : > { %v2673_v38 = vpop.f32.mrf.mxu1 }
 0x1c1   : > { %v719_v39 = vpop.f32.mrf.mxu1 }
 0x1c2   : > { %v720_v43 = vadd.f32 %v719_v39, %v672_v35  ;;  %v2514_v35 = vld [vmem:[%s3353_s6 + $0x1] ss:$0 sm:$0xff] }
 0x1c3   : > { %v2678_v40 = vpop.f32.mrf.mxu1 }
 0x1c5   : > { %v722_v41 = vpop.f32.mrf.mxu1 }
 0x1c6   : > { %v723_v48 = vadd.f32 %v722_v41, %v675_v37 }
 0x1c7   : > { %v2679_v42 = vpop.f32.mrf.mxu1 }
 0x1c9   : > { %v771_v44 = vpop.f32.mrf.mxu1 }
 0x1ca   : > { %v778_v45 = vadd.f32 %v771_v44, %v720_v43 }
 0x1cb   : > { %v2684_v47 = vpop.f32.mrf.mxu1 }
 0x1cc   : > { %v780_v49 = vmax.f32 %v778_v45, 0.0  ;;  %v2516_v47 = vld [vmem:[%s3351_s4 + $0x1c] sm:$0xf] }
 0x1cd   : > { %v774_v51 = vpop.f32.mrf.mxu1 }
 0x1ce   : > { %v789_v52 = vmul.f32 %v2503_v46, %v780_v49  ;;  %v779_v53 = vadd.f32 %v774_v51, %v723_v48  ;;  %v2515_v48 = vld [vmem:[%s3351_s4 + $0x18] sm:$0xf]  ;;  %v1051_v49 = vsel %vm634_vm3, %v2516_v47, 0 }
 0x1cf   : > { %v2685_v54 = vpop.f32.mrf.mxu1 }
 0x1d0   : > { %v798_v55 = vadd.f32 %v2504_v50, %v789_v52  ;;  %v781_v56 = vmax.f32 %v779_v53, 0.0 }
 0x1d2   : > { %800 = vst.msk [vmem:[#allocation3] sm:$0xff] %vm615_vm2, %v798_v55  ;;  %v790_v57 = vmul.f32 %v2503_v46, %v781_v56 }
 0x1d4   : > { %v799_v58 = vadd.f32 %v2504_v50, %v790_v57  ;;  %v1098_v50 = vsel %vm634_vm3, %v2515_v48, 0  ;;  %v2519_v57 = vld [vmem:[%s3351_s4 + $0x20] sm:$0xf] }
 0x1d5   : > { %v1150_v0 = vsel %vm634_vm3, %v2519_v57, 0 }
 0x1d6   : > { %801 = vst.msk [vmem:[#allocation3 + $0x8] sm:$0xff] %vm615_vm2, %v799_v58 }
 0x1d9   : > { %v802_v59 = vld [vmem:[#allocation3] sm:$0xff] }
 0x1da   : > { %806 = vrot.lane.b32.xlu0 %v802_v59, %s2877_s20 }
 0x1dd   : > { %v803_v60 = vld [vmem:[#allocation3 + $0x8] sm:$0xff] }
 0x1de   : > { %808 = vrot.lane.b32.xlu0 %v803_v60, %s2877_s20 }
 0x24c   : > { %v807_v2 = vpop.permute.xlu0 %806 }
 0x24d   : > { %v812_v3 = vadd.f32 %v807_v2, %v802_v59 }
 0x24f   : > { %816 = vrot.lane.b32.xlu1 %v812_v3, %s2878_s25 }
 0x250   : > { %v809_v4 = vpop.permute.xlu0 %808 }
 0x251   : > { %v813_v5 = vadd.f32 %v809_v4, %v803_v60 }
 0x253   : > { %818 = vrot.lane.b32.xlu1 %v813_v5, %s2878_s25  ;;  %s2879_s25 = smov 112  }
 0x2c1   : > { %v817_v6 = vpop.permute.xlu1 %816 }
 0x2c2   : > { %822 = vst.msk [vmem:[#allocation2 + $0x8] sm:$0xff] %vm615_vm2, %v817_v6 }
 0x2c5   : > { %v819_v7 = vpop.permute.xlu1 %818 }
 0x2c6   : > { %823 = vst.msk [vmem:[#allocation2 + $0x10] sm:$0xff] %vm615_vm2, %v819_v7 }
 0x2c9   : > { %v829_v9 = vld [vmem:[#allocation2 + $0x8] sm:$0xff] }
 0x2ca   : > { %v824_v11 = vld [vmem:[#allocation2 + $0x6] sm:$0xff] }
 0x2cd   : > { %v830_v10 = vld [vmem:[#allocation2 + $0x10] sm:$0xff] }
 0x2ce   : > { %v825_v12 = vld [vmem:[#allocation2 + $0xe] sm:$0xff]  ;;  %v831_v13 = vpack.c.bf16 %v830_v10, %v829_v9 }
 0x2cf   : > { %v826_v14 = vpack.c.bf16 %v825_v12, %v824_v11  ;;  %v928_v16 = vld [vmem:[#allocation2 + $0xa] sm:$0xff]  ;;  %v929_v17 = vld [vmem:[#allocation2 + $0x12] sm:$0xff] }
 0x2d0   : > { %2689 = vmatmul.mubr.msk.bf16.vlgmr.msra.gmra.mxu0 %vm615_vm2, %v831_v13  ;;  %v930_v18 = vpack.c.bf16 %v929_v17, %v928_v16  ;;  %v2522_v16 = vld [vmem:[%s3352_s5 + $0x2] ss:$0 sm:$0xff] }
 0x2d1   : > { %2695 = vmatmul.mubr.msk.bf16.vlgmr.msra.gmra.mxu1 %vm615_vm2, %v826_v14  ;;  %2699 = vmatpush3.bf16.msra.mxu0 %v937_v15 }
 0x2d2   : > { %2700 = vmatprep.mubr.msk.bf16.mxu0 %vm2876_vm0, %v2875_v1  ;;  %2710 = vmatprep.subr.bf16.mxu0 %v2875_v1 }
 0x2d3   : > { %2706 = vmatprep.mubr.msk.bf16.mxu1 %vm2876_vm0, %v2875_v1  ;;  %2705 = vmatpush3.bf16.msra.mxu1 %v1051_v49 }
 0x2d4   : > { %2716 = vmatprep.subr.bf16.mxu1 %v2875_v1 }
 0x2d8   : > { %2701 = vmatmul.mubr.msk.bf16.vlgmr.msra.gmra.mxu0 %vm615_vm2, %v930_v18 }
 0x2d9   : > { %2712 = vmatprep.mubr.msk.bf16.mxu0 %vm2876_vm0, %v2875_v1  ;;  %2711 = vmatpush3.bf16.msra.mxu0 %v1098_v50 }
 0x2da   : > { %2722 = vmatprep.subr.bf16.mxu0 %v2875_v1 }
 0x390   : > { %v874_v19 = vpop.f32.mrf.mxu0 }
 0x391   : > { %v921_v20 = vpop.f32.mrf.mxu1 }
 0x392   : > { %v2690_v21 = vpop.f32.mrf.mxu0  ;;  %v922_v27 = vadd.f32 %v921_v20, %v874_v19 }
 0x393   : > { %v2696_v22 = vpop.f32.mrf.mxu1  ;;  %v2524_v21 = vld [vmem:[%s3353_s6 + $0x2] ss:$0 sm:$0xff] }
 0x394   : > { %v877_v23 = vpop.f32.mrf.mxu0 }
 0x395   : > { %v924_v24 = vpop.f32.mrf.mxu1 }
 0x396   : > { %v2691_v25 = vpop.f32.mrf.mxu0  ;;  %v925_v32 = vadd.f32 %v924_v24, %v877_v23 }
 0x397   : > { %v2697_v26 = vpop.f32.mrf.mxu1 }
 0x398   : > { %v973_v28 = vpop.f32.mrf.mxu0 }
 0x399   : > { %v980_v29 = vadd.f32 %v973_v28, %v922_v27 }
 0x39a   : > { %v2702_v31 = vpop.f32.mrf.mxu0 }
 0x39b   : > { %v982_v33 = vmax.f32 %v980_v29, 0.0 }
 0x39c   : > { %v976_v34 = vpop.f32.mrf.mxu0 }
 0x39d   : > { %v992_v36 = vmul.f32 %v2512_v30, %v982_v33  ;;  %v981_v37 = vadd.f32 %v976_v34, %v925_v32  ;;  %v2526_v33 = vld [vmem:[%s3351_s4 + $0x28] sm:$0xf]  ;;  %v2525_v34 = vld [vmem:[%s3351_s4 + $0x24] sm:$0xf] }
 0x39e   : > { %v2703_v38 = vpop.f32.mrf.mxu0 }
 0x39f   : > { %v983_v39 = vmax.f32 %v981_v37, 0.0  ;;  %v1002_v40 = vadd.f32 %v2514_v35, %v992_v36  ;;  %v1311_v36 = vsel %vm634_vm3, %v2525_v34, 0 }
 0x3a1   : > { %v993_v41 = vmul.f32 %v2512_v30, %v983_v39  ;;  %1006 = vrot.lane.b32.xlu0 %v1002_v40, %s2877_s20 }
 0x3a3   : > { %v1003_v42 = vadd.f32 %v2514_v35, %v993_v41  ;;  %v1264_v35 = vsel %vm634_vm3, %v2526_v33, 0 }
 0x3a5   : > { %1008 = vrot.lane.b32.xlu1 %v1003_v42, %s2877_s20 }
 0x413   : > { %v1007_v43 = vpop.permute.xlu0 %1006 }
 0x414   : > { %1013 = vst.msk [vmem:[#allocation3] sm:$0xff] %vm1012_vm4, %v1007_v43  ;;  %v2529_v43 = vld [vmem:[%s3351_s4 + $0x2c] sm:$0xf] }
 0x415   : > { %v1363_v50 = vsel %vm634_vm3, %v2529_v43, 0 }
 0x417   : > { %v1009_v44 = vpop.permute.xlu1 %1008 }
 0x418   : > { %1014 = vst.msk [vmem:[#allocation3 + $0x8] sm:$0xff] %vm1012_vm4, %v1009_v44 }
 0x41b   : > { %v1015_v45 = vld [vmem:[#allocation3] sm:$0xff] }
 0x41c   : > { %1019 = vrot.lane.b32.xlu0 %v1015_v45, %s2877_s20 }
 0x41f   : > { %v1016_v46 = vld [vmem:[#allocation3 + $0x8] sm:$0xff] }
 0x420   : > { %1021 = vrot.lane.b32.xlu1 %v1016_v46, %s2877_s20 }
 0x48e   : > { %v1020_v51 = vpop.permute.xlu0 %1019 }
 0x48f   : > { %v1025_v52 = vadd.f32 %v1020_v51, %v1015_v45 }
 0x491   : > { %1029 = vrot.lane.b32.xlu0 %v1025_v52, %s2879_s25 }
 0x492   : > { %v1022_v53 = vpop.permute.xlu1 %1021 }
 0x493   : > { %v1026_v54 = vadd.f32 %v1022_v53, %v1016_v46 }
 0x495   : > { %1031 = vrot.lane.b32.xlu1 %v1026_v54, %s2879_s25 }
 0x503   : > { %v1030_v55 = vpop.permute.xlu0 %1029 }
 0x504   : > { %1035 = vst.msk [vmem:[#allocation2 + $0x8] sm:$0xff] %vm615_vm2, %v1030_v55 }
 0x507   : > { %v1032_v56 = vpop.permute.xlu1 %1031 }
 0x508   : > { %1036 = vst.msk [vmem:[#allocation2 + $0x10] sm:$0xff] %vm615_vm2, %v1032_v56 }
 0x50b   : > { %v1042_v58 = vld [vmem:[#allocation2 + $0x8] sm:$0xff] }
 0x50c   : > { %v1037_v60 = vld [vmem:[#allocation2 + $0x6] sm:$0xff] }
 0x50f   : > { %v1043_v59 = vld [vmem:[#allocation2 + $0x10] sm:$0xff] }
 0x510   : > { %v1038_v61 = vld [vmem:[#allocation2 + $0xe] sm:$0xff]  ;;  %v1044_v62 = vpack.c.bf16 %v1043_v59, %v1042_v58 }
 0x511   : > { %v1039_v63 = vpack.c.bf16 %v1038_v61, %v1037_v60  ;;  %v1141_v2 = vld [vmem:[#allocation2 + $0xa] sm:$0xff]  ;;  %v1142_v3 = vld [vmem:[#allocation2 + $0x12] sm:$0xff] }
 0x512   : > { %2707 = vmatmul.mubr.msk.bf16.vlgmr.msra.gmra.mxu1 %vm615_vm2, %v1044_v62  ;;  %v1143_v4 = vpack.c.bf16 %v1142_v3, %v1141_v2  ;;  %v2532_v2 = vld [vmem:[%s3352_s5 + $0x3] ss:$0 sm:$0xff] }
 0x513   : > { %2713 = vmatmul.mubr.msk.bf16.vlgmr.msra.gmra.mxu0 %vm615_vm2, %v1039_v63  ;;  %2717 = vmatpush3.bf16.msra.mxu1 %v1150_v0 }
 0x514   : > { %2718 = vmatprep.mubr.msk.bf16.mxu1 %vm2876_vm0, %v2875_v1  ;;  %2728 = vmatprep.subr.bf16.mxu1 %v2875_v1 }
 0x515   : > { %2724 = vmatprep.mubr.msk.bf16.mxu0 %vm2876_vm0, %v2875_v1  ;;  %2723 = vmatpush3.bf16.msra.mxu0 %v1264_v35 }
 0x516   : > { %2734 = vmatprep.subr.bf16.mxu0 %v2875_v1 }
 0x51a   : > { %2719 = vmatmul.mubr.msk.bf16.vlgmr.msra.gmra.mxu1 %vm615_vm2, %v1143_v4 }
 0x51b   : > { %2730 = vmatprep.mubr.msk.bf16.mxu1 %vm2876_vm0, %v2875_v1  ;;  %2729 = vmatpush3.bf16.msra.mxu1 %v1311_v36 }
 0x51c   : > { %2740 = vmatprep.subr.bf16.mxu1 %v2875_v1 }
 0x5d2   : > { %v1087_v5 = vpop.f32.mrf.mxu1 }
 0x5d3   : > { %v1134_v6 = vpop.f32.mrf.mxu0 }
 0x5d4   : > { %v2708_v7 = vpop.f32.mrf.mxu1  ;;  %v1135_v13 = vadd.f32 %v1134_v6, %v1087_v5 }
 0x5d5   : > { %v2714_v8 = vpop.f32.mrf.mxu0  ;;  %v2534_v7 = vld [vmem:[%s3353_s6 + $0x3] ss:$0 sm:$0xff] }
 0x5d6   : > { %v1090_v9 = vpop.f32.mrf.mxu1 }
 0x5d7   : > { %v1137_v10 = vpop.f32.mrf.mxu0 }
 0x5d8   : > { %v2709_v11 = vpop.f32.mrf.mxu1  ;;  %v1138_v18 = vadd.f32 %v1137_v10, %v1090_v9 }
 0x5d9   : > { %v2715_v12 = vpop.f32.mrf.mxu0 }
 0x5da   : > { %v1186_v14 = vpop.f32.mrf.mxu1 }
 0x5db   : > { %v1193_v15 = vadd.f32 %v1186_v14, %v1135_v13 }
 0x5dc   : > { %v2720_v17 = vpop.f32.mrf.mxu1 }
 0x5dd   : > { %v1195_v19 = vmax.f32 %v1193_v15, 0.0 }
 0x5de   : > { %v1189_v20 = vpop.f32.mrf.mxu1 }
 0x5df   : > { %v1205_v22 = vmul.f32 %v2522_v16, %v1195_v19  ;;  %v1194_v23 = vadd.f32 %v1189_v20, %v1138_v18  ;;  %v2536_v19 = vld [vmem:[%s3351_s4 + $0x34] sm:$0xf]  ;;  %v2535_v20 = vld [vmem:[%s3351_s4 + $0x30] sm:$0xf] }
 0x5e0   : > { %v2721_v24 = vpop.f32.mrf.mxu1 }
 0x5e1   : > { %v1196_v25 = vmax.f32 %v1194_v23, 0.0  ;;  %v1215_v26 = vadd.f32 %v2524_v21, %v1205_v22  ;;  %v1524_v22 = vsel %vm634_vm3, %v2535_v20, 0 }
 0x5e3   : > { %v1206_v27 = vmul.f32 %v2522_v16, %v1196_v25  ;;  %1219 = vrot.lane.b32.xlu0 %v1215_v26, %s2880_s21 }
 0x5e5   : > { %v1216_v28 = vadd.f32 %v2524_v21, %v1206_v27  ;;  %v1477_v21 = vsel %vm634_vm3, %v2536_v19, 0 }
 0x5e7   : > { %1221 = vrot.lane.b32.xlu1 %v1216_v28, %s2880_s21 }
 0x655   : > { %v1220_v29 = vpop.permute.xlu0 %1219 }
 0x656   : > { %1226 = vst.msk [vmem:[#allocation3] sm:$0xff] %vm1225_vm5, %v1220_v29  ;;  %v2539_v29 = vld [vmem:[%s3351_s4 + $0x38] sm:$0xf] }
 0x657   : > { %v1576_v36 = vsel %vm634_vm3, %v2539_v29, 0 }
 0x659   : > { %v1222_v30 = vpop.permute.xlu1 %1221 }
 0x65a   : > { %1227 = vst.msk [vmem:[#allocation3 + $0x8] sm:$0xff] %vm1225_vm5, %v1222_v30 }
 0x65d   : > { %v1228_v31 = vld [vmem:[#allocation3] sm:$0xff] }
 0x65e   : > { %1232 = vrot.lane.b32.xlu0 %v1228_v31, %s2877_s20 }
 0x661   : > { %v1229_v32 = vld [vmem:[#allocation3 + $0x8] sm:$0xff] }
 0x662   : > { %1234 = vrot.lane.b32.xlu1 %v1229_v32, %s2877_s20 }
 0x6d0   : > { %v1233_v37 = vpop.permute.xlu0 %1232 }
 0x6d1   : > { %v1238_v38 = vadd.f32 %v1233_v37, %v1228_v31 }
 0x6d3   : > { %1242 = vrot.lane.b32.xlu0 %v1238_v38, %s2881_s27 }
 0x6d4   : > { %v1235_v39 = vpop.permute.xlu1 %1234 }
 0x6d5   : > { %v1239_v40 = vadd.f32 %v1235_v39, %v1229_v32 }
 0x6d7   : > { %1244 = vrot.lane.b32.xlu1 %v1239_v40, %s2881_s27 }
 0x745   : > { %v1243_v41 = vpop.permute.xlu0 %1242 }
 0x746   : > { %1248 = vst.msk [vmem:[#allocation2 + $0x8] sm:$0xff] %vm615_vm2, %v1243_v41 }
 0x749   : > { %v1245_v42 = vpop.permute.xlu1 %1244 }
 0x74a   : > { %1249 = vst.msk [vmem:[#allocation2 + $0x10] sm:$0xff] %vm615_vm2, %v1245_v42 }
 0x74d   : > { %v1255_v44 = vld [vmem:[#allocation2 + $0x8] sm:$0xff] }
 0x74e   : > { %v1250_v46 = vld [vmem:[#allocation2 + $0x6] sm:$0xff] }
 0x751   : > { %v1256_v45 = vld [vmem:[#allocation2 + $0x10] sm:$0xff] }
 0x752   : > { %v1251_v47 = vld [vmem:[#allocation2 + $0xe] sm:$0xff]  ;;  %v1257_v48 = vpack.c.bf16 %v1256_v45, %v1255_v44 }
 0x753   : > { %v1252_v49 = vpack.c.bf16 %v1251_v47, %v1250_v46  ;;  %v1354_v51 = vld [vmem:[#allocation2 + $0xa] sm:$0xff]  ;;  %v1355_v52 = vld [vmem:[#allocation2 + $0x12] sm:$0xff] }
 0x754   : > { %2725 = vmatmul.mubr.msk.bf16.vlgmr.msra.gmra.mxu0 %vm615_vm2, %v1257_v48  ;;  %v1356_v53 = vpack.c.bf16 %v1355_v52, %v1354_v51  ;;  %v2542_v51 = vld [vmem:[%s3352_s5 + $0x4] ss:$0 sm:$0xff] }
 0x755   : > { %2731 = vmatmul.mubr.msk.bf16.vlgmr.msra.gmra.mxu1 %vm615_vm2, %v1252_v49  ;;  %2735 = vmatpush3.bf16.msra.mxu0 %v1363_v50 }
 0x756   : > { %2736 = vmatprep.mubr.msk.bf16.mxu0 %vm2876_vm0, %v2875_v1  ;;  %2746 = vmatprep.subr.bf16.mxu0 %v2875_v1 }
 0x757   : > { %2742 = vmatprep.mubr.msk.bf16.mxu1 %vm2876_vm0, %v2875_v1  ;;  %2741 = vmatpush3.bf16.msra.mxu1 %v1477_v21 }
 0x758   : > { %2752 = vmatprep.subr.bf16.mxu1 %v2875_v1 }
 0x75c   : > { %2737 = vmatmul.mubr.msk.bf16.vlgmr.msra.gmra.mxu0 %vm615_vm2, %v1356_v53 }
 0x75d   : > { %2748 = vmatprep.mubr.msk.bf16.mxu0 %vm2876_vm0, %v2875_v1  ;;  %2747 = vmatpush3.bf16.msra.mxu0 %v1524_v22 }
 0x75e   : > { %2758 = vmatprep.subr.bf16.mxu0 %v2875_v1 }
 0x814   : > { %v1300_v54 = vpop.f32.mrf.mxu0 }
 0x815   : > { %v1347_v55 = vpop.f32.mrf.mxu1 }
 0x816   : > { %v2726_v56 = vpop.f32.mrf.mxu0  ;;  %v1348_v62 = vadd.f32 %v1347_v55, %v1300_v54 }
 0x817   : > { %v2732_v57 = vpop.f32.mrf.mxu1  ;;  %v2544_v56 = vld [vmem:[%s3353_s6 + $0x4] ss:$0 sm:$0xff] }
 0x818   : > { %v1303_v58 = vpop.f32.mrf.mxu0 }
 0x819   : > { %v1350_v59 = vpop.f32.mrf.mxu1 }
 0x81a   : > { %v2727_v60 = vpop.f32.mrf.mxu0  ;;  %v1351_v4 = vadd.f32 %v1350_v59, %v1303_v58 }
 0x81b   : > { %v2733_v61 = vpop.f32.mrf.mxu1 }
 0x81c   : > { %v1399_v63 = vpop.f32.mrf.mxu0 }
 0x81d   : > { %v1406_v0 = vadd.f32 %v1399_v63, %v1348_v62 }
 0x81e   : > { %v2738_v3 = vpop.f32.mrf.mxu0 }
 0x81f   : > { %v1408_v5 = vmax.f32 %v1406_v0, 0.0 }
 0x820   : > { %v1402_v6 = vpop.f32.mrf.mxu0 }
 0x821   : > { %v1418_v8 = vmul.f32 %v2532_v2, %v1408_v5  ;;  %v1407_v9 = vadd.f32 %v1402_v6, %v1351_v4  ;;  %v2546_v5 = vld [vmem:[%s3351_s4 + $0x40] sm:$0xf]  ;;  %v2545_v6 = vld [vmem:[%s3351_s4 + $0x3c] sm:$0xf] }
 0x822   : > { %v2739_v10 = vpop.f32.mrf.mxu0 }
 0x823   : > { %v1409_v11 = vmax.f32 %v1407_v9, 0.0  ;;  %v1428_v12 = vadd.f32 %v2534_v7, %v1418_v8  ;;  %v1737_v8 = vsel %vm634_vm3, %v2545_v6, 0 }
 0x825   : > { %v1419_v13 = vmul.f32 %v2532_v2, %v1409_v11  ;;  %1432 = vrot.lane.b32.xlu0 %v1428_v12, %s2882_s22 }
 0x827   : > { %v1429_v14 = vadd.f32 %v2534_v7, %v1419_v13  ;;  %v1690_v7 = vsel %vm634_vm3, %v2546_v5, 0 }
 0x829   : > { %1434 = vrot.lane.b32.xlu1 %v1429_v14, %s2882_s22 }
 0x897   : > { %v1433_v15 = vpop.permute.xlu0 %1432 }
 0x898   : > { %1439 = vst.msk [vmem:[#allocation3] sm:$0xff] %vm1438_vm6, %v1433_v15  ;;  %v2549_v15 = vld [vmem:[%s3351_s4 + $0x44] sm:$0xf] }
 0x899   : > { %v1789_v22 = vsel %vm634_vm3, %v2549_v15, 0 }
 0x89b   : > { %v1435_v16 = vpop.permute.xlu1 %1434 }
 0x89c   : > { %1440 = vst.msk [vmem:[#allocation3 + $0x8] sm:$0xff] %vm1438_vm6, %v1435_v16 }
 0x89f   : > { %v1441_v17 = vld [vmem:[#allocation3] sm:$0xff] }
 0x8a0   : > { %1445 = vrot.lane.b32.xlu0 %v1441_v17, %s2877_s20 }
 0x8a3   : > { %v1442_v18 = vld [vmem:[#allocation3 + $0x8] sm:$0xff] }
 0x8a4   : > { %1447 = vrot.lane.b32.xlu1 %v1442_v18, %s2877_s20 }
 0x912   : > { %v1446_v23 = vpop.permute.xlu0 %1445 }
 0x913   : > { %v1451_v24 = vadd.f32 %v1446_v23, %v1441_v17 }
 0x915   : > { %1455 = vrot.lane.b32.xlu0 %v1451_v24, %s2883_s28 }
 0x916   : > { %v1448_v25 = vpop.permute.xlu1 %1447 }
 0x917   : > { %v1452_v26 = vadd.f32 %v1448_v25, %v1442_v18 }
 0x919   : > { %1457 = vrot.lane.b32.xlu1 %v1452_v26, %s2883_s28  ;;  %s502_s28 = scalar_lea.vmem %s3361_s14, %s2993_s26 }
 0x987   : > { %v1456_v27 = vpop.permute.xlu0 %1455 }
 0x988   : > { %1461 = vst.msk [vmem:[#allocation2 + $0x8] sm:$0xff] %vm615_vm2, %v1456_v27 }
 0x98b   : > { %v1458_v28 = vpop.permute.xlu1 %1457 }
 0x98c   : > { %1462 = vst.msk [vmem:[#allocation2 + $0x10] sm:$0xff] %vm615_vm2, %v1458_v28 }
 0x98f   : > { %v1468_v30 = vld [vmem:[#allocation2 + $0x8] sm:$0xff] }
 0x990   : > { %v1463_v32 = vld [vmem:[#allocation2 + $0x6] sm:$0xff] }
 0x993   : > { %v1469_v31 = vld [vmem:[#allocation2 + $0x10] sm:$0xff] }
 0x994   : > { %v1464_v33 = vld [vmem:[#allocation2 + $0xe] sm:$0xff]  ;;  %v1470_v34 = vpack.c.bf16 %v1469_v31, %v1468_v30 }
 0x995   : > { %v1465_v35 = vpack.c.bf16 %v1464_v33, %v1463_v32  ;;  %v1567_v37 = vld [vmem:[#allocation2 + $0xa] sm:$0xff]  ;;  %v1568_v38 = vld [vmem:[#allocation2 + $0x12] sm:$0xff] }
 0x996   : > { %2743 = vmatmul.mubr.msk.bf16.vlgmr.msra.gmra.mxu1 %vm615_vm2, %v1470_v34  ;;  %v1569_v39 = vpack.c.bf16 %v1568_v38, %v1567_v37  ;;  %v2552_v37 = vld [vmem:[%s3352_s5 + $0x5] ss:$0 sm:$0xff] }
 0x997   : > { %2749 = vmatmul.mubr.msk.bf16.vlgmr.msra.gmra.mxu0 %vm615_vm2, %v1465_v35  ;;  %2753 = vmatpush3.bf16.msra.mxu1 %v1576_v36 }
 0x998   : > { %2754 = vmatprep.mubr.msk.bf16.mxu1 %vm2876_vm0, %v2875_v1  ;;  %2764 = vmatprep.subr.bf16.mxu1 %v2875_v1 }
 0x999   : > { %2760 = vmatprep.mubr.msk.bf16.mxu0 %vm2876_vm0, %v2875_v1  ;;  %2759 = vmatpush3.bf16.msra.mxu0 %v1690_v7 }
 0x99a   : > { %2770 = vmatprep.subr.bf16.mxu0 %v2875_v1 }
 0x99e   : > { %2755 = vmatmul.mubr.msk.bf16.vlgmr.msra.gmra.mxu1 %vm615_vm2, %v1569_v39 }
 0x99f   : > { %2766 = vmatprep.mubr.msk.bf16.mxu1 %vm2876_vm0, %v2875_v1  ;;  %2765 = vmatpush3.bf16.msra.mxu1 %v1737_v8 }
 0x9a0   : > { %2776 = vmatprep.subr.bf16.mxu1 %v2875_v1 }
 0xa56   : > { %v1513_v40 = vpop.f32.mrf.mxu1 }
 0xa57   : > { %v1560_v41 = vpop.f32.mrf.mxu0 }
 0xa58   : > { %v2744_v42 = vpop.f32.mrf.mxu1  ;;  %v1561_v48 = vadd.f32 %v1560_v41, %v1513_v40 }
 0xa59   : > { %v2750_v43 = vpop.f32.mrf.mxu0  ;;  %v2554_v42 = vld [vmem:[%s3353_s6 + $0x5] ss:$0 sm:$0xff] }
 0xa5a   : > { %v1516_v44 = vpop.f32.mrf.mxu1 }
 0xa5b   : > { %v1563_v45 = vpop.f32.mrf.mxu0 }
 0xa5c   : > { %v2745_v46 = vpop.f32.mrf.mxu1  ;;  %v1564_v53 = vadd.f32 %v1563_v45, %v1516_v44 }
 0xa5d   : > { %v2751_v47 = vpop.f32.mrf.mxu0 }
 0xa5e   : > { %v1612_v49 = vpop.f32.mrf.mxu1 }
 0xa5f   : > { %v1619_v50 = vadd.f32 %v1612_v49, %v1561_v48 }
 0xa60   : > { %v2756_v52 = vpop.f32.mrf.mxu1 }
 0xa61   : > { %v1621_v54 = vmax.f32 %v1619_v50, 0.0 }
 0xa62   : > { %v1615_v55 = vpop.f32.mrf.mxu1 }
 0xa63   : > { %v1631_v57 = vmul.f32 %v2542_v51, %v1621_v54  ;;  %v1620_v58 = vadd.f32 %v1615_v55, %v1564_v53  ;;  %v2556_v54 = vld [vmem:[%s3351_s4 + $0x4c] sm:$0xf]  ;;  %v2555_v55 = vld [vmem:[%s3351_s4 + $0x48] sm:$0xf] }
 0xa64   : > { %v2757_v59 = vpop.f32.mrf.mxu1 }
 0xa65   : > { %v1622_v60 = vmax.f32 %v1620_v58, 0.0  ;;  %v1641_v61 = vadd.f32 %v2544_v56, %v1631_v57  ;;  %v1950_v57 = vsel %vm634_vm3, %v2555_v55, 0  ;;  %v2570_v55 = vld [vmem:[%s3355_s8] ss:$0 sm:$0xff] }
 0xa67   : > { %v1632_v62 = vmul.f32 %v2542_v51, %v1622_v60  ;;  %1645 = vrot.lane.b32.xlu0 %v1641_v61, %s2884_s23 }
 0xa69   : > { %v1642_v63 = vadd.f32 %v2544_v56, %v1632_v62  ;;  %v1903_v56 = vsel %vm634_vm3, %v2556_v54, 0 }
 0xa6b   : > { %1647 = vrot.lane.b32.xlu1 %v1642_v63, %s2884_s23 }
 0xad9   : > { %v1646_v0 = vpop.permute.xlu0 %1645 }
 0xada   : > { %1652 = vst.msk [vmem:[#allocation3] sm:$0xff] %vm1651_vm7, %v1646_v0  ;;  %v2559_v0 = vld [vmem:[%s3351_s4 + $0x50] sm:$0xf] }
 0xadb   : > { %v2002_v8 = vsel %vm634_vm3, %v2559_v0, 0 }
 0xadd   : > { %v1648_v2 = vpop.permute.xlu1 %1647 }
 0xade   : > { %1653 = vst.msk [vmem:[#allocation3 + $0x8] sm:$0xff] %vm1651_vm7, %v1648_v2 }
 0xae1   : > { %v1654_v3 = vld [vmem:[#allocation3] sm:$0xff] }
 0xae2   : > { %1658 = vrot.lane.b32.xlu0 %v1654_v3, %s2877_s20 }
 0xae5   : > { %v1655_v4 = vld [vmem:[#allocation3 + $0x8] sm:$0xff] }
 0xae6   : > { %1660 = vrot.lane.b32.xlu1 %v1655_v4, %s2877_s20 }
 0xb54   : > { %v1659_v9 = vpop.permute.xlu0 %1658 }
 0xb55   : > { %v1664_v10 = vadd.f32 %v1659_v9, %v1654_v3 }
 0xb57   : > { %1668 = vrot.lane.b32.xlu0 %v1664_v10, %s2885_s30 }
 0xb58   : > { %v1661_v11 = vpop.permute.xlu1 %1660 }
 0xb59   : > { %v1665_v12 = vadd.f32 %v1661_v11, %v1655_v4 }
 0xb5b   : > { %1670 = vrot.lane.b32.xlu1 %v1665_v12, %s2885_s30  ;;  %v2859_v12 = vld [vmem:[%s3354_s7 + $0x18] sm:$0xff]  }
 0xbc9   : > { %v1669_v13 = vpop.permute.xlu0 %1668 }
 0xbca   : > { %1674 = vst.msk [vmem:[#allocation2 + $0x8] sm:$0xff] %vm615_vm2, %v1669_v13 }
 0xbcd   : > { %v1671_v14 = vpop.permute.xlu1 %1670 }
 0xbce   : > { %1675 = vst.msk [vmem:[#allocation2 + $0x10] sm:$0xff] %vm615_vm2, %v1671_v14 }
 0xbd1   : > { %v1681_v16 = vld [vmem:[#allocation2 + $0x8] sm:$0xff] }
 0xbd2   : > { %v1676_v18 = vld [vmem:[#allocation2 + $0x6] sm:$0xff] }
 0xbd5   : > { %v1682_v17 = vld [vmem:[#allocation2 + $0x10] sm:$0xff] }
 0xbd6   : > { %v1677_v19 = vld [vmem:[#allocation2 + $0xe] sm:$0xff]  ;;  %v1683_v20 = vpack.c.bf16 %v1682_v17, %v1681_v16 }
 0xbd7   : > { %v1678_v21 = vpack.c.bf16 %v1677_v19, %v1676_v18  ;;  %v1780_v23 = vld [vmem:[#allocation2 + $0xa] sm:$0xff]  ;;  %v1781_v24 = vld [vmem:[#allocation2 + $0x12] sm:$0xff] }
 0xbd8   : > { %2761 = vmatmul.mubr.msk.bf16.vlgmr.msra.gmra.mxu0 %vm615_vm2, %v1683_v20  ;;  %v1782_v25 = vpack.c.bf16 %v1781_v24, %v1780_v23  ;;  %v2860_v19 = vld [vmem:[%s3354_s7 + $0x10] sm:$0xff]   ;;  %v2861_v24 = vld [vmem:[%s3354_s7 + $0x8] sm:$0xff]  }
 0xbd9   : > { %2767 = vmatmul.mubr.msk.bf16.vlgmr.msra.gmra.mxu1 %vm615_vm2, %v1678_v21  ;;  %2771 = vmatpush3.bf16.msra.mxu0 %v1789_v22 }
 0xbda   : > { %2772 = vmatprep.mubr.msk.bf16.mxu0 %vm2876_vm0, %v2875_v1  ;;  %2782 = vmatprep.subr.bf16.mxu0 %v2875_v1 }
 0xbdb   : > { %2778 = vmatprep.mubr.msk.bf16.mxu1 %vm2876_vm0, %v2875_v1  ;;  %2777 = vmatpush3.bf16.msra.mxu1 %v1903_v56 }
 0xbdc   : > { %2788 = vmatprep.subr.bf16.mxu1 %v2875_v1 }
 0xbe0   : > { %2773 = vmatmul.mubr.msk.bf16.vlgmr.msra.gmra.mxu0 %vm615_vm2, %v1782_v25 }
 0xbe1   : > { %2784 = vmatprep.mubr.msk.bf16.mxu0 %vm2876_vm0, %v2875_v1  ;;  %2783 = vmatpush3.bf16.msra.mxu0 %v1950_v57 }
 0xbe2   : > { %2794 = vmatprep.subr.bf16.mxu0 %v2875_v1 }
 0xc98   : > { %v1726_v26 = vpop.f32.mrf.mxu0 }
 0xc99   : > { %v1773_v27 = vpop.f32.mrf.mxu1 }
 0xc9a   : > { %v2762_v28 = vpop.f32.mrf.mxu0  ;;  %v1774_v34 = vadd.f32 %v1773_v27, %v1726_v26  ;;  %v2562_v26 = vld [vmem:[%s3352_s5 + $0x6] ss:$0 sm:$0xff] }
 0xc9b   : > { %v2768_v29 = vpop.f32.mrf.mxu1  ;;  %v2862_v28 = vld [vmem:[%s3354_s7] sm:$0xff]  }
 0xc9c   : > { %v1729_v30 = vpop.f32.mrf.mxu0 }
 0xc9d   : > { %v1776_v31 = vpop.f32.mrf.mxu1 }
 0xc9e   : > { %v2763_v32 = vpop.f32.mrf.mxu0  ;;  %v1777_v39 = vadd.f32 %v1776_v31, %v1729_v30 }
 0xc9f   : > { %v2769_v33 = vpop.f32.mrf.mxu1  ;;  %v2564_v32 = vld [vmem:[%s3353_s6 + $0x6] ss:$0 sm:$0xff] }
 0xca0   : > { %v1825_v35 = vpop.f32.mrf.mxu0 }
 0xca1   : > { %v1832_v36 = vadd.f32 %v1825_v35, %v1774_v34 }
 0xca2   : > { %v2774_v38 = vpop.f32.mrf.mxu0 }
 0xca3   : > { %v1834_v40 = vmax.f32 %v1832_v36, 0.0 }
 0xca4   : > { %v1828_v41 = vpop.f32.mrf.mxu0 }
 0xca5   : > { %v1844_v43 = vmul.f32 %v2552_v37, %v1834_v40  ;;  %v1833_v44 = vadd.f32 %v1828_v41, %v1777_v39 }
 0xca6   : > { %v2775_v45 = vpop.f32.mrf.mxu0 }
 0xca7   : > { %v1835_v46 = vmax.f32 %v1833_v44, 0.0  ;;  %v1854_v47 = vadd.f32 %v2554_v42, %v1844_v43  ;;  %v2197_v45 = vld [vmem:[%s3357_s10 + $0x38] sm:$0xff] }
 0xca9   : > { %v1845_v48 = vmul.f32 %v2552_v37, %v1835_v46  ;;  %1858 = vrot.lane.b32.xlu0 %v1854_v47, %s2886_s24  ;;  %v2196_v46 = vld [vmem:[%s3357_s10 + $0x30] sm:$0xff]  ;;  %v2195_v47 = vld [vmem:[%s3357_s10 + $0x28] sm:$0xff] }
 0xcab   : > { %v1855_v49 = vadd.f32 %v2554_v42, %v1845_v48  ;;  %v2194_v48 = vld [vmem:[%s3357_s10 + $0x20] sm:$0xff] }
 0xcad   : > { %1860 = vrot.lane.b32.xlu1 %v1855_v49, %s2886_s24  ;;  %v2193_v49 = vld [vmem:[%s3357_s10 + $0x18] sm:$0xff] }
 0xd1b   : > { %v1859_v50 = vpop.permute.xlu0 %1858 }
 0xd1c   : > { %1865 = vst.msk [vmem:[#allocation3] sm:$0xff] %vm1864_vm8, %v1859_v50  ;;  %v2192_v50 = vld [vmem:[%s3357_s10 + $0x10] sm:$0xff] }
 0xd1f   : > { %v1861_v51 = vpop.permute.xlu1 %1860 }
 0xd20   : > { %1866 = vst.msk [vmem:[#allocation3 + $0x8] sm:$0xff] %vm1864_vm8, %v1861_v51  ;;  %v2191_v51 = vld [vmem:[%s3357_s10 + $0x8] sm:$0xff] }
 0xd23   : > { %v1867_v52 = vld [vmem:[#allocation3] sm:$0xff] }
 0xd24   : > { %1871 = vrot.lane.b32.xlu0 %v1867_v52, %s2877_s20 }
 0xd27   : > { %v1868_v53 = vld [vmem:[#allocation3 + $0x8] sm:$0xff] }
 0xd28   : > { %1873 = vrot.lane.b32.xlu1 %v1868_v53, %s2877_s20  ;;  %s2887_s20 = smov 80  }
 0xd96   : > { %v1872_v58 = vpop.permute.xlu0 %1871 }
 0xd97   : > { %v1877_v59 = vadd.f32 %v1872_v58, %v1867_v52  ;;  %v2190_v52 = vld [vmem:[%s3357_s10] sm:$0xff] }
 0xd99   : > { %1881 = vrot.lane.b32.xlu0 %v1877_v59, %s2887_s20  ;;  %v2571_v59 = vld [vmem:[%s3356_s9] ss:$0 sm:$0xff] }
 0xd9a   : > { %v1874_v60 = vpop.permute.xlu1 %1873 }
 0xd9b   : > { %v1878_v61 = vadd.f32 %v1874_v60, %v1868_v53  ;;  %v2274_v53 = vld [vmem:[%s3359_s12 + $0x8] sm:$0xff] }
 0xd9d   : > { %1883 = vrot.lane.b32.xlu1 %v1878_v61, %s2887_s20 }
 0xe0b   : > { %v1882_v62 = vpop.permute.xlu0 %1881 }
 0xe0c   : > { %1887 = vst.msk [vmem:[#allocation2 + $0x8] sm:$0xff] %vm615_vm2, %v1882_v62 }
 0xe0f   : > { %v1884_v63 = vpop.permute.xlu1 %1883 }
 0xe10   : > { %1888 = vst.msk [vmem:[#allocation2 + $0x10] sm:$0xff] %vm615_vm2, %v1884_v63 }
 0xe13   : > { %v1894_v2 = vld [vmem:[#allocation2 + $0x8] sm:$0xff] }
 0xe14   : > { %v1889_v4 = vld [vmem:[#allocation2 + $0x6] sm:$0xff] }
 0xe17   : > { %v1895_v3 = vld [vmem:[#allocation2 + $0x10] sm:$0xff] }
 0xe18   : > { %v1890_v5 = vld [vmem:[#allocation2 + $0xe] sm:$0xff]  ;;  %v1896_v6 = vpack.c.bf16 %v1895_v3, %v1894_v2 }
 0xe19   : > { %v1891_v7 = vpack.c.bf16 %v1890_v5, %v1889_v4  ;;  %v1993_v9 = vld [vmem:[#allocation2 + $0xa] sm:$0xff]  ;;  %v1994_v10 = vld [vmem:[#allocation2 + $0x12] sm:$0xff] }
 0xe1a   : > { %2779 = vmatmul.mubr.msk.bf16.vlgmr.msra.gmra.mxu1 %vm615_vm2, %v1896_v6  ;;  %v1995_v11 = vpack.c.bf16 %v1994_v10, %v1993_v9 }
 0xe1b   : > { %2785 = vmatmul.mubr.msk.bf16.vlgmr.msra.gmra.mxu0 %vm615_vm2, %v1891_v7  ;;  %2789 = vmatpush3.bf16.msra.mxu1 %v2002_v8 }
 0xe1c   : > { %2790 = vmatprep.mubr.msk.bf16.mxu1 %vm2876_vm0, %v2875_v1  ;;  %2802 = vmatprep.mubr.msk.bf16.mxu0 %vm2876_vm0, %v2875_v1 }
 0xe1d   : > { %2806 = vmatprep.subr.mxu1 %v2875_v1  ;;  %2795 = vmatpush3.bf16.msra.mxu0 %v2859_v12  ;;  %v2273_v12 = vld [vmem:[%s3359_s12] sm:$0xff] }
 0xe1e   : > { %2796 = vmatprep.subr.bf16.mxu0 %v2875_v1 }
 0xe21   : > { %2797 = vmatpush3.bf16.msra.mxu0 %v2860_v19 }
 0xe22   : > { %2791 = vmatmul.mubr.msk.bf16.vlgmr.msra.gmra.mxu1 %vm615_vm2, %v1995_v11  ;;  %2798 = vmatprep.subr.bf16.mxu0 %v2875_v1 }
 0xe23   : > { %2822 = vmatprep.mubr.msk.f32.mxu1 %vm2876_vm0, %v2875_v1  ;;  %2807 = vmatpush3.msra.mxu1 %v2197_v45 }
 0xe24   : > { %2808 = vmatprep.subr.mxu1 %v2875_v1 }
 0xe25   : > { %2799 = vmatpush3.bf16.msra.mxu0 %v2861_v24  ;;  %2809 = vmatpush3.msra.mxu1 %v2196_v46 }
 0xe26   : > { %2800 = vmatprep.subr.bf16.mxu0 %v2875_v1  ;;  %2810 = vmatprep.subr.mxu1 %v2875_v1 }
 0xe27   : > { %2811 = vmatpush3.msra.mxu1 %v2195_v47 }
 0xe28   : > { %2812 = vmatprep.subr.mxu1 %v2875_v1 }
 0xe29   : > { %2801 = vmatpush3.bf16.msra.mxu0 %v2862_v28  ;;  %2813 = vmatpush3.msra.mxu1 %v2194_v48  ;;  %v2589_v28 = vld [vmem:[%s3000_s29] sm:$0xff]   ;;  %s507_s29 = scalar_lea.vmem %s3362_s15, %s2993_s26 }
 0xe2a   : > { %2825 = vmatprep.subr.mxu0 %v2875_v1  ;;  %2814 = vmatprep.subr.mxu1 %v2875_v1 }
 0xe2b   : > { %2815 = vmatpush3.msra.mxu1 %v2193_v49 }
 0xe2c   : > { %2816 = vmatprep.subr.mxu1 %v2875_v1 }
 0xe2d   : > { %2817 = vmatpush3.msra.mxu1 %v2192_v50 }
 0xe2e   : > { %2818 = vmatprep.subr.mxu1 %v2875_v1 }
 0xe2f   : > { %2819 = vmatpush3.msra.mxu1 %v2191_v51 }
 0xe30   : > { %2820 = vmatprep.subr.mxu1 %v2875_v1 }
 0xe31   : > { %2821 = vmatpush3.msra.mxu1 %v2190_v52 }
 0xeda   : > { %v1939_v13 = vpop.f32.mrf.mxu1 }
 0xedb   : > { %v1986_v14 = vpop.f32.mrf.mxu0 }
 0xedc   : > { %v2780_v15 = vpop.f32.mrf.mxu1  ;;  %v1987_v22 = vadd.f32 %v1986_v14, %v1939_v13  ;;  %v2198_v13 = vld [vmem:[%s3358_s11] sm:$0x1] }
 0xedd   : > { %v2786_v16 = vpop.f32.mrf.mxu0 }
 0xede   : > { %v1942_v17 = vpop.f32.mrf.mxu1 }
 0xedf   : > { %v1989_v18 = vpop.f32.mrf.mxu0 }
 0xee0   : > { %v2781_v20 = vpop.f32.mrf.mxu1  ;;  %v1990_v29 = vadd.f32 %v1989_v18, %v1942_v17  ;;  %v2275_v18 = vld [vmem:[%s3360_s13] sm:$0x1] }
 0xee1   : > { %v2787_v21 = vpop.f32.mrf.mxu0 }
 0xee2   : > { %v2038_v23 = vpop.f32.mrf.mxu1 }
 0xee3   : > { %v2045_v25 = vadd.f32 %v2038_v23, %v1987_v22 }
 0xee4   : > { %v2792_v27 = vpop.f32.mrf.mxu1 }
 0xee5   : > { %v2047_v30 = vmax.f32 %v2045_v25, 0.0  ;;  %v2360_v25 = vlaneseq }
 0xee6   : > { %v2041_v31 = vpop.f32.mrf.mxu1 }
 0xee7   : > { %v2057_v33 = vmul.f32 %v2562_v26, %v2047_v30  ;;  %v2046_v34 = vadd.f32 %v2041_v31, %v1990_v29  ;;  %v2590_v30 = vunpack.c.l.bf16 %v2589_v28  ;;  %v2591_v31 = vunpack.c.h.bf16 %v2589_v28 }
 0xee8   : > { %v2793_v35 = vpop.f32.mrf.mxu1 }
 0xee9   : > { %v2048_v36 = vmax.f32 %v2046_v34, 0.0  ;;  %v2067_v37 = vadd.f32 %v2564_v32, %v2057_v33 }
 0xeeb   : > { %v2058_v38 = vmul.f32 %v2562_v26, %v2048_v36  ;;  %2071 = vrot.lane.b32.xlu0 %v2067_v37, %s2888_s19  ;;  %v2361_v26 = vshrl.u32 %v2360_v25, 7 }
 0xeed   : > { %v2068_v39 = vadd.f32 %v2564_v32, %v2058_v38  ;;  %v2362_v27 = vsub.s32 0, %v2361_v26 }
 0xeef   : > { %2073 = vrot.lane.b32.xlu1 %v2068_v39, %s2888_s19 }
 0xf5d   : > { %v2072_v40 = vpop.permute.xlu0 %2071 }
 0xf5e   : > { %2078 = vst.msk [vmem:[#allocation3] sm:$0xff] %vm2077_vm9, %v2072_v40 }
 0xf61   : > { %v2074_v41 = vpop.permute.xlu1 %2073 }
 0xf62   : > { %2079 = vst.msk [vmem:[#allocation3 + $0x8] sm:$0xff] %vm2077_vm9, %v2074_v41 }
 0xf65   : > { %v2080_v42 = vld [vmem:[#allocation3] sm:$0xff] }
 0xf69   : > { %v2081_v43 = vld [vmem:[#allocation3 + $0x8] sm:$0xff] }
 0xf6a   : > { %v2082_v44 = vpack.c.bf16 %v2081_v43, %v2080_v42 }
 0xf6c   : > { %2803 = vmatmul.mubr.msk.bf16.vlgmr.msra.gmra.mxu0 %vm548_vm1, %v2082_v44 }
 0xf6d   : > { %2829 = vmatprep.mubr.msk.f32.mxu0 %vm2876_vm0, %v2875_v1  ;;  %2826 = vmatpush3.msra.mxu0 %v2274_v53 }
 0xf6e   : > { %2827 = vmatprep.subr.mxu0 %v2875_v1 }
 0xf6f   : > { %2828 = vmatpush3.msra.mxu0 %v2273_v12 }
0x102c   : > { %v2152_v54 = vpop.f32.mrf.mxu0 }
0x102d   : > { %v2159_v56 = vmax.f32 %v2152_v54, 0.0 }
0x102e   : > { %v2804_v57 = vpop.f32.mrf.mxu0 }
0x102f   : > { %v2168_v58 = vmul.f32 %v2570_v55, %v2159_v56 }
0x1030   : > { %v2155_v60 = vpop.f32.mrf.mxu0 }
0x1031   : > { %v2160_v61 = vmax.f32 %v2155_v60, 0.0  ;;  %v2177_v63 = vadd.f32 %v2571_v59, %v2168_v58 }
0x1032   : > { %v2805_v62 = vpop.f32.mrf.mxu0 }
0x1033   : > { %v2169_v0 = vmul.f32 %v2570_v55, %v2160_v61  ;;  %v2179_v1 = vsel %vm548_vm1, %v2177_v63, 0.0 }
0x1035   : > { %v2178_v2 = vadd.f32 %v2571_v59, %v2169_v0 }
0x1037   : > { %v2180_v3 = vsel %vm548_vm1, %v2178_v2, 0.0 }
0x1038   : > { %v2181_v4 = vadd.f32 %v2180_v3, %v2179_v1 }
0x103a   : > { %v2182_v5 = vrot.slane %v2181_v4, 4 }
0x103c   : > { %v2183_v6 = vadd.f32 %v2182_v5, %v2181_v4 }
0x103e   : > { %v2184_v7 = vrot.slane %v2183_v6, 2 }
0x1040   : > { %v2185_v8 = vadd.f32 %v2184_v7, %v2183_v6 }
0x1042   : > { %v2186_v9 = vrot.slane %v2185_v8, 1 }
0x1044   : > { %v2187_v10 = vadd.f32 %v2186_v9, %v2185_v8 }
0x1046   : > { %v2189_v11 = vmul.f32 0.0625, %v2187_v10 }
0x1048   : > { %2823 = vmatmul.mubr.msk.f32.vlgmr.msra.gmra.mxu1 %vm548_vm1, %v2189_v11 }
0x1108   : > { %v2268_v14 = vpop.f32.mrf.mxu1 }
0x1109   : > { %v2269_v15 = vadd.f32 %v2268_v14, %v2198_v13 }
0x110a   : > { %v2824_v16 = vpop.f32.mrf.mxu1 }
0x110b   : > { %v2272_v17 = vmax.f32 %v2269_v15, 0.0 }
0x110d   : > { %2830 = vmatmul.mubr.msk.f32.vlgmr.msra.gmra.mxu0 %vm2276_vm10, %v2272_v17 }
0x11cd   : > { %v2346_v19 = vpop.f32.mrf.mxu0 }
0x11ce   : > { %v2347_v20 = vadd.f32 %v2346_v19, %v2275_v18 }
0x11cf   : > { %v2831_v21 = vpop.f32.mrf.mxu0 }
0x11d0   : > { %v2574_v22 = vmul.f32 -1.442695, %v2347_v20 }
0x11d2   : > { %2863 = vpow2.f32 %v2574_v22 }
0x11df   : > { %v2864_v23 = vpop.eup %2863 }
0x11e0   : > { %v2353_v24 = vadd.f32 1.0, %v2864_v23 }
0x11e2   : > { %2865 = vrcp.f32 %v2353_v24 }
0x11ef   : > { %v2866_v29 = vpop.eup %2865 }
0x11f0   : > { %v2363_v32 = vrot.slane %v2866_v29, %v2362_v27 }
0x11f2   : > { %v2364_v33 = vmul.f32 %v2363_v32, %v2177_v63  ;;  %v2365_v34 = vmul.f32 %v2363_v32, %v2178_v2 }
0x11f4   : > { %v2366_v35 = vadd.f32 %v2590_v30, %v2364_v33  ;;  %v2367_v36 = vadd.f32 %v2591_v31, %v2365_v34 }
0x11f6   : > { %v2584_v37 = vpack.c.bf16 %v2366_v35, %v2366_v35  ;;  %v2585_v38 = vpack.c.bf16 %v2367_v36, %v2367_v36  ;;  %v2379_v39 = vadd.f32 %v2590_v30, %v2366_v35  ;;  %v2380_v40 = vadd.f32 %v2591_v31, %v2367_v36 }
0x11f8   : > { %2377 = vst.msk [vmem:[%s502_s28] sm:$0xf] %vm2376_vm11, %v2584_v37  ;;  %2378 = vst.msk [vmem:[%s502_s28 + $0x4] sm:$0xf] %vm2376_vm11, %v2585_v38  ;;  %v2586_v41 = vpack.c.bf16 %v2379_v39, %v2379_v39  ;;  %v2587_v42 = vpack.c.bf16 %v2380_v40, %v2380_v40 }
0x11fa   : > { %2389 = vst.msk [vmem:[%s507_s29] sm:$0xf] %vm2376_vm11, %v2586_v41  ;;  %2390 = vst.msk [vmem:[%s507_s29 + $0x4] sm:$0xf] %vm2376_vm11, %v2587_v42 }
0x11fb PF: > { %s26_s18 = sadd.s32 1, %s2873_s18  }
0x11fc   : > { %p23_p4 = scmp.ge.s32.totalorder %s26_s18, 4  }
0x11fe   :  { %25 = sbr.rel (!%p23_p4) target bundleno = 1 (0x1), region = 150 }

// kernel: ecapa_forward.7
= control target key start
LH: loop header
LB: loop body
LE: loop exit
PB: predicated region body
PF: predicated region fallthrough
CT: control target
= control target key end

     0   :  { %s2969_s18 = smov 0   ;;  %s3347_s0 = inlined_call_operand.vmem [shape: bf16[2,16,64], index: 0, kind: input, shape index: {}]   ;;  %s3348_s1 = inlined_call_operand.vmem [shape: bf16[64,64], index: 1, kind: input, shape index: {}]   ;;  %s3349_s2 = inlined_call_operand.vmem [shape: f32[1,64], index: 2, kind: input, shape index: {}]   ;;  %s3350_s3 = inlined_call_operand.vmem [shape: f32[1,64], index: 3, kind: input, shape index: {}]   ;;  %s3351_s4 = inlined_call_operand.vmem [shape: bf16[7,3,8,8], index: 4, kind: input, shape index: {}]   ;;  %s3352_s5 = inlined_call_operand.vmem [shape: f32[7,1,8], index: 5, kind: input, shape index: {}]   ;;  %s3353_s6 = inlined_call_operand.vmem [shape: f32[7,1,8], index: 6, kind: input, shape index: {}]   ;;  %s3354_s7 = inlined_call_operand.vmem [shape: bf16[64,64], index: 7, kind: input, shape index: {}]   ;;  %s3355_s8 = inlined_call_operand.vmem [shape: f32[1,64], index: 8, kind: input, shape index: {}]   ;;  %s3356_s9 = inlined_call_operand.vmem [shape: f32[1,64], index: 9, kind: input, shape index: {}]   ;;  %s3357_s10 = inlined_call_operand.vmem [shape: f32[64,16], index: 10, kind: input, shape index: {}]   ;;  %s3358_s11 = inlined_call_operand.vmem [shape: f32[1,16], index: 11, kind: input, shape index: {}]   ;;  %s3359_s12 = inlined_call_operand.vmem [shape: f32[16,64], index: 12, kind: input, shape index: {}]   ;;  %s3360_s13 = inlined_call_operand.vmem [shape: f32[1,64], index: 13, kind: input, shape index: {}]   ;;  %s3361_s14 = inlined_call_operand.vmem [shape: bf16[2,16,64], index: 14, kind: output, shape index: {0}]   ;;  %s3362_s15 = inlined_call_operand.vmem [shape: bf16[2,16,64], index: 15, kind: output, shape index: {1}]  }
   0x1 LB: > { %s2479_s19 = sadd.s32 4294967295, %s2873_s18   ;;  %p2483_p0 = scmp.ge.s32.totalorder %s2873_s18, 1  ;;  %s2873_s18 = sphi %s2969_s18, %s26_s18  }
   0x2   : > { %p440_p1 = scmp.lt.s32.totalorder %s2873_s18, 3 }
   0x4   : > { %p441_p2 = pnand %p2483_p0, %p440_p1 }
   0x5   : > { %p493_p3 = scmp.lt.s32.totalorder (!%p441_p2), %s2479_s19, 1  ;;  %s2877_s20 = smov (!%p441_p2), 8  }
   0x6   : > { %444 = sbr.rel (%p441_p2) target bundleno = 4603 (0x11fb), region = 76  ;;  %s2878_s25 = smov (!%p441_p2), 120  }
   0x7   : > { %s2880_s21 = smov (!%p441_p2), 16   ;;  %s2881_s27 = smov (!%p441_p2), 104  }
   0x8   : > { %s2882_s22 = smov (!%p441_p2), 24   ;;  %s2883_s28 = smov (!%p441_p2), 96  }
   0x9   : > { %s2884_s23 = smov (!%p441_p2), 32   ;;  %s2885_s30 = smov (!%p441_p2), 88  }
   0xa   : > { %s2886_s24 = smov (!%p441_p2), 40  }
   0xb   : > { %v2854_v0 = vld [vmem:[%s3348_s1 + $0x18] sm:$0xff]   ;;  %v2875_v1 = vmov 0.0   ;;  %v2855_v2 = vld [vmem:[%s3348_s1 + $0x10] sm:$0xff]   ;;  %vm2876_vm0 = vmmov 0   ;;  %s3364_s19 = smov (!%p493_p3, %s2479_s19), 1  ;;  %v2856_v3 = vld [vmem:[%s3348_s1 + $0x8] sm:$0xff]  }
   0xc   : > { %2656 = vmatprep.subr.bf16.mxu0 %v2875_v1  ;;  %2668 = vmatprep.subr.bf16.mxu1 %v2875_v1  ;;  %s2993_s26 = sshll.u32 %s3364_s19, 3  ;;  %v2857_v4 = vld [vmem:[%s3348_s1] sm:$0xff]   ;;  %vm548_vm1 = vcmask 523264   ;;  %vm615_vm2 = vcmask 64512   ;;  %vm634_vm3 = vcmask 1043456   ;;  %vm1012_vm4 = vcmask 130112  }
   0xd   : > { %2657 = vmatpush3.bf16.msra.mxu0 %v2854_v0  ;;  %2664 = vmatprep.mubr.msk.bf16.mxu0 %vm2876_vm0, %v2875_v1  ;;  %s3000_s29 = scalar_lea.vmem %s3347_s0, %s2993_s26  ;;  %616 = vst.msk [vmem:[#allocation2] sm:$0xff] %vm615_vm2, %v2875_v1  ;;  %617 = vst.msk [vmem:[#allocation2 + $0x18] sm:$0xff] %vm615_vm2, %v2875_v1  ;;  %v2498_v6 = vld [vmem:[%s3351_s4 + $0x4] sm:$0xf]  ;;  %v2496_v9 = vld [vmem:[%s3349_s2] ss:$0 sm:$0xff] }
   0xe   : > { %2658 = vmatprep.subr.bf16.mxu0 %v2875_v1  ;;  %2670 = vmatprep.mubr.msk.bf16.mxu1 %vm2876_vm0, %v2875_v1  ;;  %v2858_v5 = vld [vmem:[%s3000_s29] sm:$0xff]   ;;  %v636_v7 = vsel %vm634_vm3, %v2498_v6, 0  ;;  %v2501_v28 = vld [vmem:[%s3351_s4 + $0x8] sm:$0xf]  ;;  %v2506_v61 = vld [vmem:[%s3351_s4 + $0x10] sm:$0xf] }
   0xf   : > { %2669 = vmatpush3.bf16.msra.mxu1 %v636_v7  ;;  %v2497_v11 = vld [vmem:[%s3350_s3] ss:$0 sm:$0xff]  ;;  %v735_v31 = vsel %vm634_vm3, %v2501_v28, 0  ;;  %v2505_v62 = vld [vmem:[%s3351_s4 + $0xc] sm:$0xf]  ;;  %v838_v63 = vsel %vm634_vm3, %v2506_v61, 0 }
  0x10   : > { %2674 = vmatprep.subr.bf16.mxu1 %v2875_v1  ;;  %v625_v22 = vld [vmem:[%s3351_s4] sm:$0xf]  ;;  %v885_v0 = vsel %vm634_vm3, %v2505_v62, 0  ;;  %vm1225_vm5 = vcmask 195712   ;;  %vm1438_vm6 = vcmask 261312   ;;  %vm1651_vm7 = vcmask 326912  }
  0x11   : > { %2659 = vmatpush3.bf16.msra.mxu0 %v2855_v2  ;;  %v683_v26 = vsel %vm634_vm3, %v625_v22, 0  ;;  %v2503_v46 = vld [vmem:[%s3352_s5] ss:$0 sm:$0xff]  ;;  %vm1864_vm8 = vcmask 392512   ;;  %s2888_s19 = smov 48   ;;  %vm2077_vm9 = vcmask 458112  }
  0x12   : > { %2660 = vmatprep.subr.bf16.mxu0 %v2875_v1  ;;  %v2504_v50 = vld [vmem:[%s3353_s6] ss:$0 sm:$0xff]  ;;  %vm2276_vm10 = vcmask 130048   ;;  %vm2376_vm11 = vcmask 519168  }
  0x15   : > { %2661 = vmatpush3.bf16.msra.mxu0 %v2856_v3 }
  0x16   : > { %2662 = vmatprep.subr.bf16.mxu0 %v2875_v1 }
  0x19   : > { %2663 = vmatpush3.bf16.msra.mxu0 %v2857_v4 }
  0x1a   : > { %2686 = vmatprep.subr.bf16.mxu0 %v2875_v1 }
  0x1c   : > { %2665 = vmatmul.mubr.msk.bf16.vlgmr.msra.gmra.mxu0 %vm548_vm1, %v2858_v5 }
  0x1d   : > { %2688 = vmatprep.mubr.msk.bf16.mxu0 %vm2876_vm0, %v2875_v1  ;;  %2687 = vmatpush3.bf16.msra.mxu0 %v838_v63 }
  0x1e   : > { %2698 = vmatprep.subr.bf16.mxu0 %v2875_v1 }
  0xdc   : > { %v586_v8 = vpop.f32.mrf.mxu0 }
  0xdd   : > { %v593_v10 = vmax.f32 %v586_v8, 0.0  ;;  %v2509_v8 = vld [vmem:[%s3351_s4 + $0x14] sm:$0xf] }
  0xde   : > { %v2666_v12 = vpop.f32.mrf.mxu0 }
  0xdf   : > { %v602_v13 = vmul.f32 %v2496_v9, %v593_v10 }
  0xe0   : > { %v589_v14 = vpop.f32.mrf.mxu0 }
  0xe1   : > { %v611_v15 = vadd.f32 %v2497_v11, %v602_v13  ;;  %v594_v16 = vmax.f32 %v589_v14, 0.0 }
  0xe2   : > { %v2667_v17 = vpop.f32.mrf.mxu0 }
  0xe3   : > { %613 = vst.msk [vmem:[#allocation3] sm:$0xff] %vm548_vm1, %v611_v15  ;;  %v603_v18 = vmul.f32 %v2496_v9, %v594_v16  ;;  %v937_v15 = vsel %vm634_vm3, %v2509_v8, 0 }
  0xe5   : > { %v612_v19 = vadd.f32 %v2497_v11, %v603_v18 }
  0xe7   : > { %614 = vst.msk [vmem:[#allocation3 + $0x8] sm:$0xff] %vm548_vm1, %v612_v19 }
  0xea   : > { %v618_v20 = vld [vmem:[#allocation3] sm:$0xff] }
  0xeb   : > { %620 = vst.msk [vmem:[#allocation2 + $0x8] sm:$0xff] %vm615_vm2, %v618_v20 }
  0xee   : > { %v619_v21 = vld [vmem:[#allocation3 + $0x8] sm:$0xff] }
  0xef   : > { %621 = vst.msk [vmem:[#allocation2 + $0x10] sm:$0xff] %vm615_vm2, %v619_v21 }
  0xf2   : > { %v626_v23 = vld [vmem:[#allocation2 + $0x8] sm:$0xff] }
  0xf3   : > { %v622_v29 = vld [vmem:[#allocation2 + $0x5] sm:$0xff] }
  0xf6   : > { %v627_v24 = vld [vmem:[#allocation2 + $0x10] sm:$0xff] }
  0xf7   : > { %v628_v25 = vpack.c.bf16 %v627_v24, %v626_v23  ;;  %v623_v27 = vld [vmem:[#allocation2 + $0xd] sm:$0xff] }
  0xf8   : > { %v624_v30 = vpack.c.bf16 %v623_v27, %v622_v29  ;;  %v726_v32 = vld [vmem:[#allocation2 + $0xb] sm:$0xff]  ;;  %v727_v33 = vld [vmem:[#allocation2 + $0x13] sm:$0xff] }
  0xf9   : > { %2671 = vmatmul.mubr.msk.bf16.vlgmr.msra.gmra.mxu1 %vm615_vm2, %v628_v25  ;;  %v728_v34 = vpack.c.bf16 %v727_v33, %v726_v32 }
  0xfa   : > { %2675 = vmatpush3.bf16.msra.mxu1 %v683_v26  ;;  %2676 = vmatprep.mubr.msk.bf16.mxu1 %vm2876_vm0, %v2875_v1 }
  0xfb   : > { %2680 = vmatprep.subr.bf16.mxu1 %v2875_v1 }
 0x101   : > { %2677 = vmatmul.mubr.msk.bf16.vlgmr.msra.gmra.mxu1 %vm615_vm2, %v624_v30  ;;  %v2512_v30 = vld [vmem:[%s3352_s5 + $0x1] ss:$0 sm:$0xff] }
 0x102   : > { %2681 = vmatpush3.bf16.msra.mxu1 %v735_v31  ;;  %2682 = vmatprep.mubr.msk.bf16.mxu1 %vm2876_vm0, %v2875_v1 }
 0x103   : > { %2692 = vmatprep.subr.bf16.mxu1 %v2875_v1 }
 0x109   : > { %2683 = vmatmul.mubr.msk.bf16.vlgmr.msra.gmra.mxu1 %vm615_vm2, %v728_v34 }
 0x10a   : > { %2694 = vmatprep.mubr.msk.bf16.mxu1 %vm2876_vm0, %v2875_v1  ;;  %2693 = vmatpush3.bf16.msra.mxu1 %v885_v0 }
 0x10b   : > { %2704 = vmatprep.subr.bf16.mxu1 %v2875_v1 }
 0x1b9   : > { %v672_v35 = vpop.f32.mrf.mxu1 }
 0x1bb   : > { %v2672_v36 = vpop.f32.mrf.mxu1 }
 0x1bd   : > { %v675_v37 = vpop.f32.mrf.mxu1 }
 0x1bf   : > { %v2673_v38 = vpop.f32.mrf.mxu1 }
 0x1c1   : > { %v719_v39 = vpop.f32.mrf.mxu1 }
 0x1c2   : > { %v720_v43 = vadd.f32 %v719_v39, %v672_v35  ;;  %v2514_v35 = vld [vmem:[%s3353_s6 + $0x1] ss:$0 sm:$0xff] }
 0x1c3   : > { %v2678_v40 = vpop.f32.mrf.mxu1 }
 0x1c5   : > { %v722_v41 = vpop.f32.mrf.mxu1 }
 0x1c6   : > { %v723_v48 = vadd.f32 %v722_v41, %v675_v37 }
 0x1c7   : > { %v2679_v42 = vpop.f32.mrf.mxu1 }
 0x1c9   : > { %v771_v44 = vpop.f32.mrf.mxu1 }
 0x1ca   : > { %v778_v45 = vadd.f32 %v771_v44, %v720_v43 }
 0x1cb   : > { %v2684_v47 = vpop.f32.mrf.mxu1 }
 0x1cc   : > { %v780_v49 = vmax.f32 %v778_v45, 0.0  ;;  %v2516_v47 = vld [vmem:[%s3351_s4 + $0x1c] sm:$0xf] }
 0x1cd   : > { %v774_v51 = vpop.f32.mrf.mxu1 }
 0x1ce   : > { %v789_v52 = vmul.f32 %v2503_v46, %v780_v49  ;;  %v779_v53 = vadd.f32 %v774_v51, %v723_v48  ;;  %v2515_v48 = vld [vmem:[%s3351_s4 + $0x18] sm:$0xf]  ;;  %v1051_v49 = vsel %vm634_vm3, %v2516_v47, 0 }
 0x1cf   : > { %v2685_v54 = vpop.f32.mrf.mxu1 }
 0x1d0   : > { %v798_v55 = vadd.f32 %v2504_v50, %v789_v52  ;;  %v781_v56 = vmax.f32 %v779_v53, 0.0 }
 0x1d2   : > { %800 = vst.msk [vmem:[#allocation3] sm:$0xff] %vm615_vm2, %v798_v55  ;;  %v790_v57 = vmul.f32 %v2503_v46, %v781_v56 }
 0x1d4   : > { %v799_v58 = vadd.f32 %v2504_v50, %v790_v57  ;;  %v1098_v50 = vsel %vm634_vm3, %v2515_v48, 0  ;;  %v2519_v57 = vld [vmem:[%s3351_s4 + $0x20] sm:$0xf] }
 0x1d5   : > { %v1150_v0 = vsel %vm634_vm3, %v2519_v57, 0 }
 0x1d6   : > { %801 = vst.msk [vmem:[#allocation3 + $0x8] sm:$0xff] %vm615_vm2, %v799_v58 }
 0x1d9   : > { %v802_v59 = vld [vmem:[#allocation3] sm:$0xff] }
 0x1da   : > { %806 = vrot.lane.b32.xlu0 %v802_v59, %s2877_s20 }
 0x1dd   : > { %v803_v60 = vld [vmem:[#allocation3 + $0x8] sm:$0xff] }
 0x1de   : > { %808 = vrot.lane.b32.xlu0 %v803_v60, %s2877_s20 }
 0x24c   : > { %v807_v2 = vpop.permute.xlu0 %806 }
 0x24d   : > { %v812_v3 = vadd.f32 %v807_v2, %v802_v59 }
 0x24f   : > { %816 = vrot.lane.b32.xlu1 %v812_v3, %s2878_s25 }
 0x250   : > { %v809_v4 = vpop.permute.xlu0 %808 }
 0x251   : > { %v813_v5 = vadd.f32 %v809_v4, %v803_v60 }
 0x253   : > { %818 = vrot.lane.b32.xlu1 %v813_v5, %s2878_s25  ;;  %s2879_s25 = smov 112  }
 0x2c1   : > { %v817_v6 = vpop.permute.xlu1 %816 }
 0x2c2   : > { %822 = vst.msk [vmem:[#allocation2 + $0x8] sm:$0xff] %vm615_vm2, %v817_v6 }
 0x2c5   : > { %v819_v7 = vpop.permute.xlu1 %818 }
 0x2c6   : > { %823 = vst.msk [vmem:[#allocation2 + $0x10] sm:$0xff] %vm615_vm2, %v819_v7 }
 0x2c9   : > { %v829_v9 = vld [vmem:[#allocation2 + $0x8] sm:$0xff] }
 0x2ca   : > { %v824_v11 = vld [vmem:[#allocation2 + $0x5] sm:$0xff] }
 0x2cd   : > { %v830_v10 = vld [vmem:[#allocation2 + $0x10] sm:$0xff] }
 0x2ce   : > { %v825_v12 = vld [vmem:[#allocation2 + $0xd] sm:$0xff]  ;;  %v831_v13 = vpack.c.bf16 %v830_v10, %v829_v9 }
 0x2cf   : > { %v826_v14 = vpack.c.bf16 %v825_v12, %v824_v11  ;;  %v928_v16 = vld [vmem:[#allocation2 + $0xb] sm:$0xff]  ;;  %v929_v17 = vld [vmem:[#allocation2 + $0x13] sm:$0xff] }
 0x2d0   : > { %2689 = vmatmul.mubr.msk.bf16.vlgmr.msra.gmra.mxu0 %vm615_vm2, %v831_v13  ;;  %v930_v18 = vpack.c.bf16 %v929_v17, %v928_v16  ;;  %v2522_v16 = vld [vmem:[%s3352_s5 + $0x2] ss:$0 sm:$0xff] }
 0x2d1   : > { %2695 = vmatmul.mubr.msk.bf16.vlgmr.msra.gmra.mxu1 %vm615_vm2, %v826_v14  ;;  %2699 = vmatpush3.bf16.msra.mxu0 %v937_v15 }
 0x2d2   : > { %2700 = vmatprep.mubr.msk.bf16.mxu0 %vm2876_vm0, %v2875_v1  ;;  %2710 = vmatprep.subr.bf16.mxu0 %v2875_v1 }
 0x2d3   : > { %2706 = vmatprep.mubr.msk.bf16.mxu1 %vm2876_vm0, %v2875_v1  ;;  %2705 = vmatpush3.bf16.msra.mxu1 %v1051_v49 }
 0x2d4   : > { %2716 = vmatprep.subr.bf16.mxu1 %v2875_v1 }
 0x2d8   : > { %2701 = vmatmul.mubr.msk.bf16.vlgmr.msra.gmra.mxu0 %vm615_vm2, %v930_v18 }
 0x2d9   : > { %2712 = vmatprep.mubr.msk.bf16.mxu0 %vm2876_vm0, %v2875_v1  ;;  %2711 = vmatpush3.bf16.msra.mxu0 %v1098_v50 }
 0x2da   : > { %2722 = vmatprep.subr.bf16.mxu0 %v2875_v1 }
 0x390   : > { %v874_v19 = vpop.f32.mrf.mxu0 }
 0x391   : > { %v921_v20 = vpop.f32.mrf.mxu1 }
 0x392   : > { %v2690_v21 = vpop.f32.mrf.mxu0  ;;  %v922_v27 = vadd.f32 %v921_v20, %v874_v19 }
 0x393   : > { %v2696_v22 = vpop.f32.mrf.mxu1  ;;  %v2524_v21 = vld [vmem:[%s3353_s6 + $0x2] ss:$0 sm:$0xff] }
 0x394   : > { %v877_v23 = vpop.f32.mrf.mxu0 }
 0x395   : > { %v924_v24 = vpop.f32.mrf.mxu1 }
 0x396   : > { %v2691_v25 = vpop.f32.mrf.mxu0  ;;  %v925_v32 = vadd.f32 %v924_v24, %v877_v23 }
 0x397   : > { %v2697_v26 = vpop.f32.mrf.mxu1 }
 0x398   : > { %v973_v28 = vpop.f32.mrf.mxu0 }
 0x399   : > { %v980_v29 = vadd.f32 %v973_v28, %v922_v27 }
 0x39a   : > { %v2702_v31 = vpop.f32.mrf.mxu0 }
 0x39b   : > { %v982_v33 = vmax.f32 %v980_v29, 0.0 }
 0x39c   : > { %v976_v34 = vpop.f32.mrf.mxu0 }
 0x39d   : > { %v992_v36 = vmul.f32 %v2512_v30, %v982_v33  ;;  %v981_v37 = vadd.f32 %v976_v34, %v925_v32  ;;  %v2526_v33 = vld [vmem:[%s3351_s4 + $0x28] sm:$0xf]  ;;  %v2525_v34 = vld [vmem:[%s3351_s4 + $0x24] sm:$0xf] }
 0x39e   : > { %v2703_v38 = vpop.f32.mrf.mxu0 }
 0x39f   : > { %v983_v39 = vmax.f32 %v981_v37, 0.0  ;;  %v1002_v40 = vadd.f32 %v2514_v35, %v992_v36  ;;  %v1311_v36 = vsel %vm634_vm3, %v2525_v34, 0 }
 0x3a1   : > { %v993_v41 = vmul.f32 %v2512_v30, %v983_v39  ;;  %1006 = vrot.lane.b32.xlu0 %v1002_v40, %s2877_s20 }
 0x3a3   : > { %v1003_v42 = vadd.f32 %v2514_v35, %v993_v41  ;;  %v1264_v35 = vsel %vm634_vm3, %v2526_v33, 0 }
 0x3a5   : > { %1008 = vrot.lane.b32.xlu1 %v1003_v42, %s2877_s20 }
 0x413   : > { %v1007_v43 = vpop.permute.xlu0 %1006 }
 0x414   : > { %1013 = vst.msk [vmem:[#allocation3] sm:$0xff] %vm1012_vm4, %v1007_v43  ;;  %v2529_v43 = vld [vmem:[%s3351_s4 + $0x2c] sm:$0xf] }
 0x415   : > { %v1363_v50 = vsel %vm634_vm3, %v2529_v43, 0 }
 0x417   : > { %v1009_v44 = vpop.permute.xlu1 %1008 }
 0x418   : > { %1014 = vst.msk [vmem:[#allocation3 + $0x8] sm:$0xff] %vm1012_vm4, %v1009_v44 }
 0x41b   : > { %v1015_v45 = vld [vmem:[#allocation3] sm:$0xff] }
 0x41c   : > { %1019 = vrot.lane.b32.xlu0 %v1015_v45, %s2877_s20 }
 0x41f   : > { %v1016_v46 = vld [vmem:[#allocation3 + $0x8] sm:$0xff] }
 0x420   : > { %1021 = vrot.lane.b32.xlu1 %v1016_v46, %s2877_s20 }
 0x48e   : > { %v1020_v51 = vpop.permute.xlu0 %1019 }
 0x48f   : > { %v1025_v52 = vadd.f32 %v1020_v51, %v1015_v45 }
 0x491   : > { %1029 = vrot.lane.b32.xlu0 %v1025_v52, %s2879_s25 }
 0x492   : > { %v1022_v53 = vpop.permute.xlu1 %1021 }
 0x493   : > { %v1026_v54 = vadd.f32 %v1022_v53, %v1016_v46 }
 0x495   : > { %1031 = vrot.lane.b32.xlu1 %v1026_v54, %s2879_s25 }
 0x503   : > { %v1030_v55 = vpop.permute.xlu0 %1029 }
 0x504   : > { %1035 = vst.msk [vmem:[#allocation2 + $0x8] sm:$0xff] %vm615_vm2, %v1030_v55 }
 0x507   : > { %v1032_v56 = vpop.permute.xlu1 %1031 }
 0x508   : > { %1036 = vst.msk [vmem:[#allocation2 + $0x10] sm:$0xff] %vm615_vm2, %v1032_v56 }
 0x50b   : > { %v1042_v58 = vld [vmem:[#allocation2 + $0x8] sm:$0xff] }
 0x50c   : > { %v1037_v60 = vld [vmem:[#allocation2 + $0x5] sm:$0xff] }
 0x50f   : > { %v1043_v59 = vld [vmem:[#allocation2 + $0x10] sm:$0xff] }
 0x510   : > { %v1038_v61 = vld [vmem:[#allocation2 + $0xd] sm:$0xff]  ;;  %v1044_v62 = vpack.c.bf16 %v1043_v59, %v1042_v58 }
 0x511   : > { %v1039_v63 = vpack.c.bf16 %v1038_v61, %v1037_v60  ;;  %v1141_v2 = vld [vmem:[#allocation2 + $0xb] sm:$0xff]  ;;  %v1142_v3 = vld [vmem:[#allocation2 + $0x13] sm:$0xff] }
 0x512   : > { %2707 = vmatmul.mubr.msk.bf16.vlgmr.msra.gmra.mxu1 %vm615_vm2, %v1044_v62  ;;  %v1143_v4 = vpack.c.bf16 %v1142_v3, %v1141_v2  ;;  %v2532_v2 = vld [vmem:[%s3352_s5 + $0x3] ss:$0 sm:$0xff] }
 0x513   : > { %2713 = vmatmul.mubr.msk.bf16.vlgmr.msra.gmra.mxu0 %vm615_vm2, %v1039_v63  ;;  %2717 = vmatpush3.bf16.msra.mxu1 %v1150_v0 }
 0x514   : > { %2718 = vmatprep.mubr.msk.bf16.mxu1 %vm2876_vm0, %v2875_v1  ;;  %2728 = vmatprep.subr.bf16.mxu1 %v2875_v1 }
 0x515   : > { %2724 = vmatprep.mubr.msk.bf16.mxu0 %vm2876_vm0, %v2875_v1  ;;  %2723 = vmatpush3.bf16.msra.mxu0 %v1264_v35 }
 0x516   : > { %2734 = vmatprep.subr.bf16.mxu0 %v2875_v1 }
 0x51a   : > { %2719 = vmatmul.mubr.msk.bf16.vlgmr.msra.gmra.mxu1 %vm615_vm2, %v1143_v4 }
 0x51b   : > { %2730 = vmatprep.mubr.msk.bf16.mxu1 %vm2876_vm0, %v2875_v1  ;;  %2729 = vmatpush3.bf16.msra.mxu1 %v1311_v36 }
 0x51c   : > { %2740 = vmatprep.subr.bf16.mxu1 %v2875_v1 }
 0x5d2   : > { %v1087_v5 = vpop.f32.mrf.mxu1 }
 0x5d3   : > { %v1134_v6 = vpop.f32.mrf.mxu0 }
 0x5d4   : > { %v2708_v7 = vpop.f32.mrf.mxu1  ;;  %v1135_v13 = vadd.f32 %v1134_v6, %v1087_v5 }
 0x5d5   : > { %v2714_v8 = vpop.f32.mrf.mxu0  ;;  %v2534_v7 = vld [vmem:[%s3353_s6 + $0x3] ss:$0 sm:$0xff] }
 0x5d6   : > { %v1090_v9 = vpop.f32.mrf.mxu1 }
 0x5d7   : > { %v1137_v10 = vpop.f32.mrf.mxu0 }
 0x5d8   : > { %v2709_v11 = vpop.f32.mrf.mxu1  ;;  %v1138_v18 = vadd.f32 %v1137_v10, %v1090_v9 }
 0x5d9   : > { %v2715_v12 = vpop.f32.mrf.mxu0 }
 0x5da   : > { %v1186_v14 = vpop.f32.mrf.mxu1 }
 0x5db   : > { %v1193_v15 = vadd.f32 %v1186_v14, %v1135_v13 }
 0x5dc   : > { %v2720_v17 = vpop.f32.mrf.mxu1 }
 0x5dd   : > { %v1195_v19 = vmax.f32 %v1193_v15, 0.0 }
 0x5de   : > { %v1189_v20 = vpop.f32.mrf.mxu1 }
 0x5df   : > { %v1205_v22 = vmul.f32 %v2522_v16, %v1195_v19  ;;  %v1194_v23 = vadd.f32 %v1189_v20, %v1138_v18  ;;  %v2536_v19 = vld [vmem:[%s3351_s4 + $0x34] sm:$0xf]  ;;  %v2535_v20 = vld [vmem:[%s3351_s4 + $0x30] sm:$0xf] }
 0x5e0   : > { %v2721_v24 = vpop.f32.mrf.mxu1 }
 0x5e1   : > { %v1196_v25 = vmax.f32 %v1194_v23, 0.0  ;;  %v1215_v26 = vadd.f32 %v2524_v21, %v1205_v22  ;;  %v1524_v22 = vsel %vm634_vm3, %v2535_v20, 0 }
 0x5e3   : > { %v1206_v27 = vmul.f32 %v2522_v16, %v1196_v25  ;;  %1219 = vrot.lane.b32.xlu0 %v1215_v26, %s2880_s21 }
 0x5e5   : > { %v1216_v28 = vadd.f32 %v2524_v21, %v1206_v27  ;;  %v1477_v21 = vsel %vm634_vm3, %v2536_v19, 0 }
 0x5e7   : > { %1221 = vrot.lane.b32.xlu1 %v1216_v28, %s2880_s21 }
 0x655   : > { %v1220_v29 = vpop.permute.xlu0 %1219 }
 0x656   : > { %1226 = vst.msk [vmem:[#allocation3] sm:$0xff] %vm1225_vm5, %v1220_v29  ;;  %v2539_v29 = vld [vmem:[%s3351_s4 + $0x38] sm:$0xf] }
 0x657   : > { %v1576_v36 = vsel %vm634_vm3, %v2539_v29, 0 }
 0x659   : > { %v1222_v30 = vpop.permute.xlu1 %1221 }
 0x65a   : > { %1227 = vst.msk [vmem:[#allocation3 + $0x8] sm:$0xff] %vm1225_vm5, %v1222_v30 }
 0x65d   : > { %v1228_v31 = vld [vmem:[#allocation3] sm:$0xff] }
 0x65e   : > { %1232 = vrot.lane.b32.xlu0 %v1228_v31, %s2877_s20 }
 0x661   : > { %v1229_v32 = vld [vmem:[#allocation3 + $0x8] sm:$0xff] }
 0x662   : > { %1234 = vrot.lane.b32.xlu1 %v1229_v32, %s2877_s20 }
 0x6d0   : > { %v1233_v37 = vpop.permute.xlu0 %1232 }
 0x6d1   : > { %v1238_v38 = vadd.f32 %v1233_v37, %v1228_v31 }
 0x6d3   : > { %1242 = vrot.lane.b32.xlu0 %v1238_v38, %s2881_s27 }
 0x6d4   : > { %v1235_v39 = vpop.permute.xlu1 %1234 }
 0x6d5   : > { %v1239_v40 = vadd.f32 %v1235_v39, %v1229_v32 }
 0x6d7   : > { %1244 = vrot.lane.b32.xlu1 %v1239_v40, %s2881_s27 }
 0x745   : > { %v1243_v41 = vpop.permute.xlu0 %1242 }
 0x746   : > { %1248 = vst.msk [vmem:[#allocation2 + $0x8] sm:$0xff] %vm615_vm2, %v1243_v41 }
 0x749   : > { %v1245_v42 = vpop.permute.xlu1 %1244 }
 0x74a   : > { %1249 = vst.msk [vmem:[#allocation2 + $0x10] sm:$0xff] %vm615_vm2, %v1245_v42 }
 0x74d   : > { %v1255_v44 = vld [vmem:[#allocation2 + $0x8] sm:$0xff] }
 0x74e   : > { %v1250_v46 = vld [vmem:[#allocation2 + $0x5] sm:$0xff] }
 0x751   : > { %v1256_v45 = vld [vmem:[#allocation2 + $0x10] sm:$0xff] }
 0x752   : > { %v1251_v47 = vld [vmem:[#allocation2 + $0xd] sm:$0xff]  ;;  %v1257_v48 = vpack.c.bf16 %v1256_v45, %v1255_v44 }
 0x753   : > { %v1252_v49 = vpack.c.bf16 %v1251_v47, %v1250_v46  ;;  %v1354_v51 = vld [vmem:[#allocation2 + $0xb] sm:$0xff]  ;;  %v1355_v52 = vld [vmem:[#allocation2 + $0x13] sm:$0xff] }
 0x754   : > { %2725 = vmatmul.mubr.msk.bf16.vlgmr.msra.gmra.mxu0 %vm615_vm2, %v1257_v48  ;;  %v1356_v53 = vpack.c.bf16 %v1355_v52, %v1354_v51  ;;  %v2542_v51 = vld [vmem:[%s3352_s5 + $0x4] ss:$0 sm:$0xff] }
 0x755   : > { %2731 = vmatmul.mubr.msk.bf16.vlgmr.msra.gmra.mxu1 %vm615_vm2, %v1252_v49  ;;  %2735 = vmatpush3.bf16.msra.mxu0 %v1363_v50 }
 0x756   : > { %2736 = vmatprep.mubr.msk.bf16.mxu0 %vm2876_vm0, %v2875_v1  ;;  %2746 = vmatprep.subr.bf16.mxu0 %v2875_v1 }
 0x757   : > { %2742 = vmatprep.mubr.msk.bf16.mxu1 %vm2876_vm0, %v2875_v1  ;;  %2741 = vmatpush3.bf16.msra.mxu1 %v1477_v21 }
 0x758   : > { %2752 = vmatprep.subr.bf16.mxu1 %v2875_v1 }
 0x75c   : > { %2737 = vmatmul.mubr.msk.bf16.vlgmr.msra.gmra.mxu0 %vm615_vm2, %v1356_v53 }
 0x75d   : > { %2748 = vmatprep.mubr.msk.bf16.mxu0 %vm2876_vm0, %v2875_v1  ;;  %2747 = vmatpush3.bf16.msra.mxu0 %v1524_v22 }
 0x75e   : > { %2758 = vmatprep.subr.bf16.mxu0 %v2875_v1 }
 0x814   : > { %v1300_v54 = vpop.f32.mrf.mxu0 }
 0x815   : > { %v1347_v55 = vpop.f32.mrf.mxu1 }
 0x816   : > { %v2726_v56 = vpop.f32.mrf.mxu0  ;;  %v1348_v62 = vadd.f32 %v1347_v55, %v1300_v54 }
 0x817   : > { %v2732_v57 = vpop.f32.mrf.mxu1  ;;  %v2544_v56 = vld [vmem:[%s3353_s6 + $0x4] ss:$0 sm:$0xff] }
 0x818   : > { %v1303_v58 = vpop.f32.mrf.mxu0 }
 0x819   : > { %v1350_v59 = vpop.f32.mrf.mxu1 }
 0x81a   : > { %v2727_v60 = vpop.f32.mrf.mxu0  ;;  %v1351_v4 = vadd.f32 %v1350_v59, %v1303_v58 }
 0x81b   : > { %v2733_v61 = vpop.f32.mrf.mxu1 }
 0x81c   : > { %v1399_v63 = vpop.f32.mrf.mxu0 }
 0x81d   : > { %v1406_v0 = vadd.f32 %v1399_v63, %v1348_v62 }
 0x81e   : > { %v2738_v3 = vpop.f32.mrf.mxu0 }
 0x81f   : > { %v1408_v5 = vmax.f32 %v1406_v0, 0.0 }
 0x820   : > { %v1402_v6 = vpop.f32.mrf.mxu0 }
 0x821   : > { %v1418_v8 = vmul.f32 %v2532_v2, %v1408_v5  ;;  %v1407_v9 = vadd.f32 %v1402_v6, %v1351_v4  ;;  %v2546_v5 = vld [vmem:[%s3351_s4 + $0x40] sm:$0xf]  ;;  %v2545_v6 = vld [vmem:[%s3351_s4 + $0x3c] sm:$0xf] }
 0x822   : > { %v2739_v10 = vpop.f32.mrf.mxu0 }
 0x823   : > { %v1409_v11 = vmax.f32 %v1407_v9, 0.0  ;;  %v1428_v12 = vadd.f32 %v2534_v7, %v1418_v8  ;;  %v1737_v8 = vsel %vm634_vm3, %v2545_v6, 0 }
 0x825   : > { %v1419_v13 = vmul.f32 %v2532_v2, %v1409_v11  ;;  %1432 = vrot.lane.b32.xlu0 %v1428_v12, %s2882_s22 }
 0x827   : > { %v1429_v14 = vadd.f32 %v2534_v7, %v1419_v13  ;;  %v1690_v7 = vsel %vm634_vm3, %v2546_v5, 0 }
 0x829   : > { %1434 = vrot.lane.b32.xlu1 %v1429_v14, %s2882_s22 }
 0x897   : > { %v1433_v15 = vpop.permute.xlu0 %1432 }
 0x898   : > { %1439 = vst.msk [vmem:[#allocation3] sm:$0xff] %vm1438_vm6, %v1433_v15  ;;  %v2549_v15 = vld [vmem:[%s3351_s4 + $0x44] sm:$0xf] }
 0x899   : > { %v1789_v22 = vsel %vm634_vm3, %v2549_v15, 0 }
 0x89b   : > { %v1435_v16 = vpop.permute.xlu1 %1434 }
 0x89c   : > { %1440 = vst.msk [vmem:[#allocation3 + $0x8] sm:$0xff] %vm1438_vm6, %v1435_v16 }
 0x89f   : > { %v1441_v17 = vld [vmem:[#allocation3] sm:$0xff] }
 0x8a0   : > { %1445 = vrot.lane.b32.xlu0 %v1441_v17, %s2877_s20 }
 0x8a3   : > { %v1442_v18 = vld [vmem:[#allocation3 + $0x8] sm:$0xff] }
 0x8a4   : > { %1447 = vrot.lane.b32.xlu1 %v1442_v18, %s2877_s20 }
 0x912   : > { %v1446_v23 = vpop.permute.xlu0 %1445 }
 0x913   : > { %v1451_v24 = vadd.f32 %v1446_v23, %v1441_v17 }
 0x915   : > { %1455 = vrot.lane.b32.xlu0 %v1451_v24, %s2883_s28 }
 0x916   : > { %v1448_v25 = vpop.permute.xlu1 %1447 }
 0x917   : > { %v1452_v26 = vadd.f32 %v1448_v25, %v1442_v18 }
 0x919   : > { %1457 = vrot.lane.b32.xlu1 %v1452_v26, %s2883_s28  ;;  %s502_s28 = scalar_lea.vmem %s3361_s14, %s2993_s26 }
 0x987   : > { %v1456_v27 = vpop.permute.xlu0 %1455 }
 0x988   : > { %1461 = vst.msk [vmem:[#allocation2 + $0x8] sm:$0xff] %vm615_vm2, %v1456_v27 }
 0x98b   : > { %v1458_v28 = vpop.permute.xlu1 %1457 }
 0x98c   : > { %1462 = vst.msk [vmem:[#allocation2 + $0x10] sm:$0xff] %vm615_vm2, %v1458_v28 }
 0x98f   : > { %v1468_v30 = vld [vmem:[#allocation2 + $0x8] sm:$0xff] }
 0x990   : > { %v1463_v32 = vld [vmem:[#allocation2 + $0x5] sm:$0xff] }
 0x993   : > { %v1469_v31 = vld [vmem:[#allocation2 + $0x10] sm:$0xff] }
 0x994   : > { %v1464_v33 = vld [vmem:[#allocation2 + $0xd] sm:$0xff]  ;;  %v1470_v34 = vpack.c.bf16 %v1469_v31, %v1468_v30 }
 0x995   : > { %v1465_v35 = vpack.c.bf16 %v1464_v33, %v1463_v32  ;;  %v1567_v37 = vld [vmem:[#allocation2 + $0xb] sm:$0xff]  ;;  %v1568_v38 = vld [vmem:[#allocation2 + $0x13] sm:$0xff] }
 0x996   : > { %2743 = vmatmul.mubr.msk.bf16.vlgmr.msra.gmra.mxu1 %vm615_vm2, %v1470_v34  ;;  %v1569_v39 = vpack.c.bf16 %v1568_v38, %v1567_v37  ;;  %v2552_v37 = vld [vmem:[%s3352_s5 + $0x5] ss:$0 sm:$0xff] }
 0x997   : > { %2749 = vmatmul.mubr.msk.bf16.vlgmr.msra.gmra.mxu0 %vm615_vm2, %v1465_v35  ;;  %2753 = vmatpush3.bf16.msra.mxu1 %v1576_v36 }
 0x998   : > { %2754 = vmatprep.mubr.msk.bf16.mxu1 %vm2876_vm0, %v2875_v1  ;;  %2764 = vmatprep.subr.bf16.mxu1 %v2875_v1 }
 0x999   : > { %2760 = vmatprep.mubr.msk.bf16.mxu0 %vm2876_vm0, %v2875_v1  ;;  %2759 = vmatpush3.bf16.msra.mxu0 %v1690_v7 }
 0x99a   : > { %2770 = vmatprep.subr.bf16.mxu0 %v2875_v1 }
 0x99e   : > { %2755 = vmatmul.mubr.msk.bf16.vlgmr.msra.gmra.mxu1 %vm615_vm2, %v1569_v39 }
 0x99f   : > { %2766 = vmatprep.mubr.msk.bf16.mxu1 %vm2876_vm0, %v2875_v1  ;;  %2765 = vmatpush3.bf16.msra.mxu1 %v1737_v8 }
 0x9a0   : > { %2776 = vmatprep.subr.bf16.mxu1 %v2875_v1 }
 0xa56   : > { %v1513_v40 = vpop.f32.mrf.mxu1 }
 0xa57   : > { %v1560_v41 = vpop.f32.mrf.mxu0 }
 0xa58   : > { %v2744_v42 = vpop.f32.mrf.mxu1  ;;  %v1561_v48 = vadd.f32 %v1560_v41, %v1513_v40 }
 0xa59   : > { %v2750_v43 = vpop.f32.mrf.mxu0  ;;  %v2554_v42 = vld [vmem:[%s3353_s6 + $0x5] ss:$0 sm:$0xff] }
 0xa5a   : > { %v1516_v44 = vpop.f32.mrf.mxu1 }
 0xa5b   : > { %v1563_v45 = vpop.f32.mrf.mxu0 }
 0xa5c   : > { %v2745_v46 = vpop.f32.mrf.mxu1  ;;  %v1564_v53 = vadd.f32 %v1563_v45, %v1516_v44 }
 0xa5d   : > { %v2751_v47 = vpop.f32.mrf.mxu0 }
 0xa5e   : > { %v1612_v49 = vpop.f32.mrf.mxu1 }
 0xa5f   : > { %v1619_v50 = vadd.f32 %v1612_v49, %v1561_v48 }
 0xa60   : > { %v2756_v52 = vpop.f32.mrf.mxu1 }
 0xa61   : > { %v1621_v54 = vmax.f32 %v1619_v50, 0.0 }
 0xa62   : > { %v1615_v55 = vpop.f32.mrf.mxu1 }
 0xa63   : > { %v1631_v57 = vmul.f32 %v2542_v51, %v1621_v54  ;;  %v1620_v58 = vadd.f32 %v1615_v55, %v1564_v53  ;;  %v2556_v54 = vld [vmem:[%s3351_s4 + $0x4c] sm:$0xf]  ;;  %v2555_v55 = vld [vmem:[%s3351_s4 + $0x48] sm:$0xf] }
 0xa64   : > { %v2757_v59 = vpop.f32.mrf.mxu1 }
 0xa65   : > { %v1622_v60 = vmax.f32 %v1620_v58, 0.0  ;;  %v1641_v61 = vadd.f32 %v2544_v56, %v1631_v57  ;;  %v1950_v57 = vsel %vm634_vm3, %v2555_v55, 0  ;;  %v2570_v55 = vld [vmem:[%s3355_s8] ss:$0 sm:$0xff] }
 0xa67   : > { %v1632_v62 = vmul.f32 %v2542_v51, %v1622_v60  ;;  %1645 = vrot.lane.b32.xlu0 %v1641_v61, %s2884_s23 }
 0xa69   : > { %v1642_v63 = vadd.f32 %v2544_v56, %v1632_v62  ;;  %v1903_v56 = vsel %vm634_vm3, %v2556_v54, 0 }
 0xa6b   : > { %1647 = vrot.lane.b32.xlu1 %v1642_v63, %s2884_s23 }
 0xad9   : > { %v1646_v0 = vpop.permute.xlu0 %1645 }
 0xada   : > { %1652 = vst.msk [vmem:[#allocation3] sm:$0xff] %vm1651_vm7, %v1646_v0  ;;  %v2559_v0 = vld [vmem:[%s3351_s4 + $0x50] sm:$0xf] }
 0xadb   : > { %v2002_v8 = vsel %vm634_vm3, %v2559_v0, 0 }
 0xadd   : > { %v1648_v2 = vpop.permute.xlu1 %1647 }
 0xade   : > { %1653 = vst.msk [vmem:[#allocation3 + $0x8] sm:$0xff] %vm1651_vm7, %v1648_v2 }
 0xae1   : > { %v1654_v3 = vld [vmem:[#allocation3] sm:$0xff] }
 0xae2   : > { %1658 = vrot.lane.b32.xlu0 %v1654_v3, %s2877_s20 }
 0xae5   : > { %v1655_v4 = vld [vmem:[#allocation3 + $0x8] sm:$0xff] }
 0xae6   : > { %1660 = vrot.lane.b32.xlu1 %v1655_v4, %s2877_s20 }
 0xb54   : > { %v1659_v9 = vpop.permute.xlu0 %1658 }
 0xb55   : > { %v1664_v10 = vadd.f32 %v1659_v9, %v1654_v3 }
 0xb57   : > { %1668 = vrot.lane.b32.xlu0 %v1664_v10, %s2885_s30 }
 0xb58   : > { %v1661_v11 = vpop.permute.xlu1 %1660 }
 0xb59   : > { %v1665_v12 = vadd.f32 %v1661_v11, %v1655_v4 }
 0xb5b   : > { %1670 = vrot.lane.b32.xlu1 %v1665_v12, %s2885_s30  ;;  %v2859_v12 = vld [vmem:[%s3354_s7 + $0x18] sm:$0xff]  }
 0xbc9   : > { %v1669_v13 = vpop.permute.xlu0 %1668 }
 0xbca   : > { %1674 = vst.msk [vmem:[#allocation2 + $0x8] sm:$0xff] %vm615_vm2, %v1669_v13 }
 0xbcd   : > { %v1671_v14 = vpop.permute.xlu1 %1670 }
 0xbce   : > { %1675 = vst.msk [vmem:[#allocation2 + $0x10] sm:$0xff] %vm615_vm2, %v1671_v14 }
 0xbd1   : > { %v1681_v16 = vld [vmem:[#allocation2 + $0x8] sm:$0xff] }
 0xbd2   : > { %v1676_v18 = vld [vmem:[#allocation2 + $0x5] sm:$0xff] }
 0xbd5   : > { %v1682_v17 = vld [vmem:[#allocation2 + $0x10] sm:$0xff] }
 0xbd6   : > { %v1677_v19 = vld [vmem:[#allocation2 + $0xd] sm:$0xff]  ;;  %v1683_v20 = vpack.c.bf16 %v1682_v17, %v1681_v16 }
 0xbd7   : > { %v1678_v21 = vpack.c.bf16 %v1677_v19, %v1676_v18  ;;  %v1780_v23 = vld [vmem:[#allocation2 + $0xb] sm:$0xff]  ;;  %v1781_v24 = vld [vmem:[#allocation2 + $0x13] sm:$0xff] }
 0xbd8   : > { %2761 = vmatmul.mubr.msk.bf16.vlgmr.msra.gmra.mxu0 %vm615_vm2, %v1683_v20  ;;  %v1782_v25 = vpack.c.bf16 %v1781_v24, %v1780_v23  ;;  %v2860_v19 = vld [vmem:[%s3354_s7 + $0x10] sm:$0xff]   ;;  %v2861_v24 = vld [vmem:[%s3354_s7 + $0x8] sm:$0xff]  }
 0xbd9   : > { %2767 = vmatmul.mubr.msk.bf16.vlgmr.msra.gmra.mxu1 %vm615_vm2, %v1678_v21  ;;  %2771 = vmatpush3.bf16.msra.mxu0 %v1789_v22 }
 0xbda   : > { %2772 = vmatprep.mubr.msk.bf16.mxu0 %vm2876_vm0, %v2875_v1  ;;  %2782 = vmatprep.subr.bf16.mxu0 %v2875_v1 }
 0xbdb   : > { %2778 = vmatprep.mubr.msk.bf16.mxu1 %vm2876_vm0, %v2875_v1  ;;  %2777 = vmatpush3.bf16.msra.mxu1 %v1903_v56 }
 0xbdc   : > { %2788 = vmatprep.subr.bf16.mxu1 %v2875_v1 }
 0xbe0   : > { %2773 = vmatmul.mubr.msk.bf16.vlgmr.msra.gmra.mxu0 %vm615_vm2, %v1782_v25 }
 0xbe1   : > { %2784 = vmatprep.mubr.msk.bf16.mxu0 %vm2876_vm0, %v2875_v1  ;;  %2783 = vmatpush3.bf16.msra.mxu0 %v1950_v57 }
 0xbe2   : > { %2794 = vmatprep.subr.bf16.mxu0 %v2875_v1 }
 0xc98   : > { %v1726_v26 = vpop.f32.mrf.mxu0 }
 0xc99   : > { %v1773_v27 = vpop.f32.mrf.mxu1 }
 0xc9a   : > { %v2762_v28 = vpop.f32.mrf.mxu0  ;;  %v1774_v34 = vadd.f32 %v1773_v27, %v1726_v26  ;;  %v2562_v26 = vld [vmem:[%s3352_s5 + $0x6] ss:$0 sm:$0xff] }
 0xc9b   : > { %v2768_v29 = vpop.f32.mrf.mxu1  ;;  %v2862_v28 = vld [vmem:[%s3354_s7] sm:$0xff]  }
 0xc9c   : > { %v1729_v30 = vpop.f32.mrf.mxu0 }
 0xc9d   : > { %v1776_v31 = vpop.f32.mrf.mxu1 }
 0xc9e   : > { %v2763_v32 = vpop.f32.mrf.mxu0  ;;  %v1777_v39 = vadd.f32 %v1776_v31, %v1729_v30 }
 0xc9f   : > { %v2769_v33 = vpop.f32.mrf.mxu1  ;;  %v2564_v32 = vld [vmem:[%s3353_s6 + $0x6] ss:$0 sm:$0xff] }
 0xca0   : > { %v1825_v35 = vpop.f32.mrf.mxu0 }
 0xca1   : > { %v1832_v36 = vadd.f32 %v1825_v35, %v1774_v34 }
 0xca2   : > { %v2774_v38 = vpop.f32.mrf.mxu0 }
 0xca3   : > { %v1834_v40 = vmax.f32 %v1832_v36, 0.0 }
 0xca4   : > { %v1828_v41 = vpop.f32.mrf.mxu0 }
 0xca5   : > { %v1844_v43 = vmul.f32 %v2552_v37, %v1834_v40  ;;  %v1833_v44 = vadd.f32 %v1828_v41, %v1777_v39 }
 0xca6   : > { %v2775_v45 = vpop.f32.mrf.mxu0 }
 0xca7   : > { %v1835_v46 = vmax.f32 %v1833_v44, 0.0  ;;  %v1854_v47 = vadd.f32 %v2554_v42, %v1844_v43  ;;  %v2197_v45 = vld [vmem:[%s3357_s10 + $0x38] sm:$0xff] }
 0xca9   : > { %v1845_v48 = vmul.f32 %v2552_v37, %v1835_v46  ;;  %1858 = vrot.lane.b32.xlu0 %v1854_v47, %s2886_s24  ;;  %v2196_v46 = vld [vmem:[%s3357_s10 + $0x30] sm:$0xff]  ;;  %v2195_v47 = vld [vmem:[%s3357_s10 + $0x28] sm:$0xff] }
 0xcab   : > { %v1855_v49 = vadd.f32 %v2554_v42, %v1845_v48  ;;  %v2194_v48 = vld [vmem:[%s3357_s10 + $0x20] sm:$0xff] }
 0xcad   : > { %1860 = vrot.lane.b32.xlu1 %v1855_v49, %s2886_s24  ;;  %v2193_v49 = vld [vmem:[%s3357_s10 + $0x18] sm:$0xff] }
 0xd1b   : > { %v1859_v50 = vpop.permute.xlu0 %1858 }
 0xd1c   : > { %1865 = vst.msk [vmem:[#allocation3] sm:$0xff] %vm1864_vm8, %v1859_v50  ;;  %v2192_v50 = vld [vmem:[%s3357_s10 + $0x10] sm:$0xff] }
 0xd1f   : > { %v1861_v51 = vpop.permute.xlu1 %1860 }
 0xd20   : > { %1866 = vst.msk [vmem:[#allocation3 + $0x8] sm:$0xff] %vm1864_vm8, %v1861_v51  ;;  %v2191_v51 = vld [vmem:[%s3357_s10 + $0x8] sm:$0xff] }
 0xd23   : > { %v1867_v52 = vld [vmem:[#allocation3] sm:$0xff] }
 0xd24   : > { %1871 = vrot.lane.b32.xlu0 %v1867_v52, %s2877_s20 }
 0xd27   : > { %v1868_v53 = vld [vmem:[#allocation3 + $0x8] sm:$0xff] }
 0xd28   : > { %1873 = vrot.lane.b32.xlu1 %v1868_v53, %s2877_s20  ;;  %s2887_s20 = smov 80  }
 0xd96   : > { %v1872_v58 = vpop.permute.xlu0 %1871 }
 0xd97   : > { %v1877_v59 = vadd.f32 %v1872_v58, %v1867_v52  ;;  %v2190_v52 = vld [vmem:[%s3357_s10] sm:$0xff] }
 0xd99   : > { %1881 = vrot.lane.b32.xlu0 %v1877_v59, %s2887_s20  ;;  %v2571_v59 = vld [vmem:[%s3356_s9] ss:$0 sm:$0xff] }
 0xd9a   : > { %v1874_v60 = vpop.permute.xlu1 %1873 }
 0xd9b   : > { %v1878_v61 = vadd.f32 %v1874_v60, %v1868_v53  ;;  %v2274_v53 = vld [vmem:[%s3359_s12 + $0x8] sm:$0xff] }
 0xd9d   : > { %1883 = vrot.lane.b32.xlu1 %v1878_v61, %s2887_s20 }
 0xe0b   : > { %v1882_v62 = vpop.permute.xlu0 %1881 }
 0xe0c   : > { %1887 = vst.msk [vmem:[#allocation2 + $0x8] sm:$0xff] %vm615_vm2, %v1882_v62 }
 0xe0f   : > { %v1884_v63 = vpop.permute.xlu1 %1883 }
 0xe10   : > { %1888 = vst.msk [vmem:[#allocation2 + $0x10] sm:$0xff] %vm615_vm2, %v1884_v63 }
 0xe13   : > { %v1894_v2 = vld [vmem:[#allocation2 + $0x8] sm:$0xff] }
 0xe14   : > { %v1889_v4 = vld [vmem:[#allocation2 + $0x5] sm:$0xff] }
 0xe17   : > { %v1895_v3 = vld [vmem:[#allocation2 + $0x10] sm:$0xff] }
 0xe18   : > { %v1890_v5 = vld [vmem:[#allocation2 + $0xd] sm:$0xff]  ;;  %v1896_v6 = vpack.c.bf16 %v1895_v3, %v1894_v2 }
 0xe19   : > { %v1891_v7 = vpack.c.bf16 %v1890_v5, %v1889_v4  ;;  %v1993_v9 = vld [vmem:[#allocation2 + $0xb] sm:$0xff]  ;;  %v1994_v10 = vld [vmem:[#allocation2 + $0x13] sm:$0xff] }
 0xe1a   : > { %2779 = vmatmul.mubr.msk.bf16.vlgmr.msra.gmra.mxu1 %vm615_vm2, %v1896_v6  ;;  %v1995_v11 = vpack.c.bf16 %v1994_v10, %v1993_v9 }
 0xe1b   : > { %2785 = vmatmul.mubr.msk.bf16.vlgmr.msra.gmra.mxu0 %vm615_vm2, %v1891_v7  ;;  %2789 = vmatpush3.bf16.msra.mxu1 %v2002_v8 }
 0xe1c   : > { %2790 = vmatprep.mubr.msk.bf16.mxu1 %vm2876_vm0, %v2875_v1  ;;  %2802 = vmatprep.mubr.msk.bf16.mxu0 %vm2876_vm0, %v2875_v1 }
 0xe1d   : > { %2806 = vmatprep.subr.mxu1 %v2875_v1  ;;  %2795 = vmatpush3.bf16.msra.mxu0 %v2859_v12  ;;  %v2273_v12 = vld [vmem:[%s3359_s12] sm:$0xff] }
 0xe1e   : > { %2796 = vmatprep.subr.bf16.mxu0 %v2875_v1 }
 0xe21   : > { %2797 = vmatpush3.bf16.msra.mxu0 %v2860_v19 }
 0xe22   : > { %2791 = vmatmul.mubr.msk.bf16.vlgmr.msra.gmra.mxu1 %vm615_vm2, %v1995_v11  ;;  %2798 = vmatprep.subr.bf16.mxu0 %v2875_v1 }
 0xe23   : > { %2822 = vmatprep.mubr.msk.f32.mxu1 %vm2876_vm0, %v2875_v1  ;;  %2807 = vmatpush3.msra.mxu1 %v2197_v45 }
 0xe24   : > { %2808 = vmatprep.subr.mxu1 %v2875_v1 }
 0xe25   : > { %2799 = vmatpush3.bf16.msra.mxu0 %v2861_v24  ;;  %2809 = vmatpush3.msra.mxu1 %v2196_v46 }
 0xe26   : > { %2800 = vmatprep.subr.bf16.mxu0 %v2875_v1  ;;  %2810 = vmatprep.subr.mxu1 %v2875_v1 }
 0xe27   : > { %2811 = vmatpush3.msra.mxu1 %v2195_v47 }
 0xe28   : > { %2812 = vmatprep.subr.mxu1 %v2875_v1 }
 0xe29   : > { %2801 = vmatpush3.bf16.msra.mxu0 %v2862_v28  ;;  %2813 = vmatpush3.msra.mxu1 %v2194_v48  ;;  %v2589_v28 = vld [vmem:[%s3000_s29] sm:$0xff]   ;;  %s507_s29 = scalar_lea.vmem %s3362_s15, %s2993_s26 }
 0xe2a   : > { %2825 = vmatprep.subr.mxu0 %v2875_v1  ;;  %2814 = vmatprep.subr.mxu1 %v2875_v1 }
 0xe2b   : > { %2815 = vmatpush3.msra.mxu1 %v2193_v49 }
 0xe2c   : > { %2816 = vmatprep.subr.mxu1 %v2875_v1 }
 0xe2d   : > { %2817 = vmatpush3.msra.mxu1 %v2192_v50 }
 0xe2e   : > { %2818 = vmatprep.subr.mxu1 %v2875_v1 }
 0xe2f   : > { %2819 = vmatpush3.msra.mxu1 %v2191_v51 }
 0xe30   : > { %2820 = vmatprep.subr.mxu1 %v2875_v1 }
 0xe31   : > { %2821 = vmatpush3.msra.mxu1 %v2190_v52 }
 0xeda   : > { %v1939_v13 = vpop.f32.mrf.mxu1 }
 0xedb   : > { %v1986_v14 = vpop.f32.mrf.mxu0 }
 0xedc   : > { %v2780_v15 = vpop.f32.mrf.mxu1  ;;  %v1987_v22 = vadd.f32 %v1986_v14, %v1939_v13  ;;  %v2198_v13 = vld [vmem:[%s3358_s11] sm:$0x1] }
 0xedd   : > { %v2786_v16 = vpop.f32.mrf.mxu0 }
 0xede   : > { %v1942_v17 = vpop.f32.mrf.mxu1 }
 0xedf   : > { %v1989_v18 = vpop.f32.mrf.mxu0 }
 0xee0   : > { %v2781_v20 = vpop.f32.mrf.mxu1  ;;  %v1990_v29 = vadd.f32 %v1989_v18, %v1942_v17  ;;  %v2275_v18 = vld [vmem:[%s3360_s13] sm:$0x1] }
 0xee1   : > { %v2787_v21 = vpop.f32.mrf.mxu0 }
 0xee2   : > { %v2038_v23 = vpop.f32.mrf.mxu1 }
 0xee3   : > { %v2045_v25 = vadd.f32 %v2038_v23, %v1987_v22 }
 0xee4   : > { %v2792_v27 = vpop.f32.mrf.mxu1 }
 0xee5   : > { %v2047_v30 = vmax.f32 %v2045_v25, 0.0  ;;  %v2360_v25 = vlaneseq }
 0xee6   : > { %v2041_v31 = vpop.f32.mrf.mxu1 }
 0xee7   : > { %v2057_v33 = vmul.f32 %v2562_v26, %v2047_v30  ;;  %v2046_v34 = vadd.f32 %v2041_v31, %v1990_v29  ;;  %v2590_v30 = vunpack.c.l.bf16 %v2589_v28  ;;  %v2591_v31 = vunpack.c.h.bf16 %v2589_v28 }
 0xee8   : > { %v2793_v35 = vpop.f32.mrf.mxu1 }
 0xee9   : > { %v2048_v36 = vmax.f32 %v2046_v34, 0.0  ;;  %v2067_v37 = vadd.f32 %v2564_v32, %v2057_v33 }
 0xeeb   : > { %v2058_v38 = vmul.f32 %v2562_v26, %v2048_v36  ;;  %2071 = vrot.lane.b32.xlu0 %v2067_v37, %s2888_s19  ;;  %v2361_v26 = vshrl.u32 %v2360_v25, 7 }
 0xeed   : > { %v2068_v39 = vadd.f32 %v2564_v32, %v2058_v38  ;;  %v2362_v27 = vsub.s32 0, %v2361_v26 }
 0xeef   : > { %2073 = vrot.lane.b32.xlu1 %v2068_v39, %s2888_s19 }
 0xf5d   : > { %v2072_v40 = vpop.permute.xlu0 %2071 }
 0xf5e   : > { %2078 = vst.msk [vmem:[#allocation3] sm:$0xff] %vm2077_vm9, %v2072_v40 }
 0xf61   : > { %v2074_v41 = vpop.permute.xlu1 %2073 }
 0xf62   : > { %2079 = vst.msk [vmem:[#allocation3 + $0x8] sm:$0xff] %vm2077_vm9, %v2074_v41 }
 0xf65   : > { %v2080_v42 = vld [vmem:[#allocation3] sm:$0xff] }
 0xf69   : > { %v2081_v43 = vld [vmem:[#allocation3 + $0x8] sm:$0xff] }
 0xf6a   : > { %v2082_v44 = vpack.c.bf16 %v2081_v43, %v2080_v42 }
 0xf6c   : > { %2803 = vmatmul.mubr.msk.bf16.vlgmr.msra.gmra.mxu0 %vm548_vm1, %v2082_v44 }
 0xf6d   : > { %2829 = vmatprep.mubr.msk.f32.mxu0 %vm2876_vm0, %v2875_v1  ;;  %2826 = vmatpush3.msra.mxu0 %v2274_v53 }
 0xf6e   : > { %2827 = vmatprep.subr.mxu0 %v2875_v1 }
 0xf6f   : > { %2828 = vmatpush3.msra.mxu0 %v2273_v12 }
0x102c   : > { %v2152_v54 = vpop.f32.mrf.mxu0 }
0x102d   : > { %v2159_v56 = vmax.f32 %v2152_v54, 0.0 }
0x102e   : > { %v2804_v57 = vpop.f32.mrf.mxu0 }
0x102f   : > { %v2168_v58 = vmul.f32 %v2570_v55, %v2159_v56 }
0x1030   : > { %v2155_v60 = vpop.f32.mrf.mxu0 }
0x1031   : > { %v2160_v61 = vmax.f32 %v2155_v60, 0.0  ;;  %v2177_v63 = vadd.f32 %v2571_v59, %v2168_v58 }
0x1032   : > { %v2805_v62 = vpop.f32.mrf.mxu0 }
0x1033   : > { %v2169_v0 = vmul.f32 %v2570_v55, %v2160_v61  ;;  %v2179_v1 = vsel %vm548_vm1, %v2177_v63, 0.0 }
0x1035   : > { %v2178_v2 = vadd.f32 %v2571_v59, %v2169_v0 }
0x1037   : > { %v2180_v3 = vsel %vm548_vm1, %v2178_v2, 0.0 }
0x1038   : > { %v2181_v4 = vadd.f32 %v2180_v3, %v2179_v1 }
0x103a   : > { %v2182_v5 = vrot.slane %v2181_v4, 4 }
0x103c   : > { %v2183_v6 = vadd.f32 %v2182_v5, %v2181_v4 }
0x103e   : > { %v2184_v7 = vrot.slane %v2183_v6, 2 }
0x1040   : > { %v2185_v8 = vadd.f32 %v2184_v7, %v2183_v6 }
0x1042   : > { %v2186_v9 = vrot.slane %v2185_v8, 1 }
0x1044   : > { %v2187_v10 = vadd.f32 %v2186_v9, %v2185_v8 }
0x1046   : > { %v2189_v11 = vmul.f32 0.0625, %v2187_v10 }
0x1048   : > { %2823 = vmatmul.mubr.msk.f32.vlgmr.msra.gmra.mxu1 %vm548_vm1, %v2189_v11 }
0x1108   : > { %v2268_v14 = vpop.f32.mrf.mxu1 }
0x1109   : > { %v2269_v15 = vadd.f32 %v2268_v14, %v2198_v13 }
0x110a   : > { %v2824_v16 = vpop.f32.mrf.mxu1 }
0x110b   : > { %v2272_v17 = vmax.f32 %v2269_v15, 0.0 }
0x110d   : > { %2830 = vmatmul.mubr.msk.f32.vlgmr.msra.gmra.mxu0 %vm2276_vm10, %v2272_v17 }
0x11cd   : > { %v2346_v19 = vpop.f32.mrf.mxu0 }
0x11ce   : > { %v2347_v20 = vadd.f32 %v2346_v19, %v2275_v18 }
0x11cf   : > { %v2831_v21 = vpop.f32.mrf.mxu0 }
0x11d0   : > { %v2574_v22 = vmul.f32 -1.442695, %v2347_v20 }
0x11d2   : > { %2863 = vpow2.f32 %v2574_v22 }
0x11df   : > { %v2864_v23 = vpop.eup %2863 }
0x11e0   : > { %v2353_v24 = vadd.f32 1.0, %v2864_v23 }
0x11e2   : > { %2865 = vrcp.f32 %v2353_v24 }
0x11ef   : > { %v2866_v29 = vpop.eup %2865 }
0x11f0   : > { %v2363_v32 = vrot.slane %v2866_v29, %v2362_v27 }
0x11f2   : > { %v2364_v33 = vmul.f32 %v2363_v32, %v2177_v63  ;;  %v2365_v34 = vmul.f32 %v2363_v32, %v2178_v2 }
0x11f4   : > { %v2366_v35 = vadd.f32 %v2590_v30, %v2364_v33  ;;  %v2367_v36 = vadd.f32 %v2591_v31, %v2365_v34 }
0x11f6   : > { %v2584_v37 = vpack.c.bf16 %v2366_v35, %v2366_v35  ;;  %v2585_v38 = vpack.c.bf16 %v2367_v36, %v2367_v36  ;;  %v2379_v39 = vadd.f32 %v2590_v30, %v2366_v35  ;;  %v2380_v40 = vadd.f32 %v2591_v31, %v2367_v36 }
0x11f8   : > { %2377 = vst.msk [vmem:[%s502_s28] sm:$0xf] %vm2376_vm11, %v2584_v37  ;;  %2378 = vst.msk [vmem:[%s502_s28 + $0x4] sm:$0xf] %vm2376_vm11, %v2585_v38  ;;  %v2586_v41 = vpack.c.bf16 %v2379_v39, %v2379_v39  ;;  %v2587_v42 = vpack.c.bf16 %v2380_v40, %v2380_v40 }
0x11fa   : > { %2389 = vst.msk [vmem:[%s507_s29] sm:$0xf] %vm2376_vm11, %v2586_v41  ;;  %2390 = vst.msk [vmem:[%s507_s29 + $0x4] sm:$0xf] %vm2376_vm11, %v2587_v42 }
0x11fb PF: > { %s26_s18 = sadd.s32 1, %s2873_s18  }
0x11fc   : > { %p23_p4 = scmp.ge.s32.totalorder %s26_s18, 4  }
0x11fe   :  { %25 = sbr.rel (!%p23_p4) target bundleno = 1 (0x1), region = 150 }

// kernel: ecapa_forward.8
= control target key start
LH: loop header
LB: loop body
LE: loop exit
PB: predicated region body
PF: predicated region fallthrough
CT: control target
= control target key end

     0   :  { %s2872_s29 = smov 0   ;;  %s3249_s0 = inlined_call_operand.vmem [shape: bf16[2,16,64], index: 0, kind: input, shape index: {}]   ;;  %s3250_s1 = inlined_call_operand.vmem [shape: bf16[64,64], index: 1, kind: input, shape index: {}]   ;;  %s3251_s2 = inlined_call_operand.vmem [shape: f32[1,64], index: 2, kind: input, shape index: {}]   ;;  %s3252_s3 = inlined_call_operand.vmem [shape: f32[1,64], index: 3, kind: input, shape index: {}]   ;;  %s3253_s4 = inlined_call_operand.vmem [shape: bf16[7,3,8,8], index: 4, kind: input, shape index: {}]   ;;  %s3254_s5 = inlined_call_operand.vmem [shape: f32[7,1,8], index: 5, kind: input, shape index: {}]   ;;  %s3255_s6 = inlined_call_operand.vmem [shape: f32[7,1,8], index: 6, kind: input, shape index: {}]   ;;  %s3256_s7 = inlined_call_operand.vmem [shape: bf16[64,64], index: 7, kind: input, shape index: {}]   ;;  %s3257_s8 = inlined_call_operand.vmem [shape: f32[1,64], index: 8, kind: input, shape index: {}]   ;;  %s3258_s9 = inlined_call_operand.vmem [shape: f32[1,64], index: 9, kind: input, shape index: {}]   ;;  %s3259_s10 = inlined_call_operand.vmem [shape: f32[64,16], index: 10, kind: input, shape index: {}]   ;;  %s3260_s11 = inlined_call_operand.vmem [shape: f32[1,16], index: 11, kind: input, shape index: {}]   ;;  %s3261_s12 = inlined_call_operand.vmem [shape: f32[16,64], index: 12, kind: input, shape index: {}]   ;;  %s3262_s13 = inlined_call_operand.vmem [shape: f32[1,64], index: 13, kind: input, shape index: {}]   ;;  %s3263_s14 = inlined_call_operand.vmem [shape: bf16[2,16,64], index: 14, kind: output, shape index: {}]  }
   0x1 LB: > { %s2394_s30 = sadd.s32 4294967295, %s2781_s29   ;;  %p2398_p0 = scmp.ge.s32.totalorder %s2781_s29, 1  ;;  %s2781_s29 = sphi %s2872_s29, %s24_s29  }
   0x2   : > { %p412_p1 = scmp.lt.s32.totalorder %s2781_s29, 3 }
   0x4   : > { %p413_p2 = pnand %p2398_p0, %p412_p1 }
   0x5   : > { %p458_p3 = scmp.lt.s32.totalorder (!%p413_p2), %s2394_s30, 1  ;;  %s2785_s15 = smov (!%p413_p2), 8  }
   0x6   : > { %416 = sbr.rel (%p413_p2) target bundleno = 4601 (0x11f9), region = 76  ;;  %s2786_s20 = smov (!%p413_p2), 120  }
   0x7   : > { %s2788_s16 = smov (!%p413_p2), 16   ;;  %s2789_s22 = smov (!%p413_p2), 104  }
   0x8   : > { %s2790_s17 = smov (!%p413_p2), 24   ;;  %s2791_s23 = smov (!%p413_p2), 96  }
   0x9   : > { %s2792_s18 = smov (!%p413_p2), 32   ;;  %s2793_s25 = smov (!%p413_p2), 88  }
   0xa   : > { %s2794_s19 = smov (!%p413_p2), 40   ;;  %s2796_s28 = smov (!%p413_p2), 48  }
   0xb   : > { %v2762_v0 = vld [vmem:[%s3250_s1 + $0x18] sm:$0xff]   ;;  %v2783_v1 = vmov 0.0   ;;  %v2763_v2 = vld [vmem:[%s3250_s1 + $0x10] sm:$0xff]   ;;  %vm2784_vm0 = vmmov 0   ;;  %s3265_s30 = smov (!%p458_p3, %s2394_s30), 1  ;;  %v2764_v3 = vld [vmem:[%s3250_s1 + $0x8] sm:$0xff]  }
   0xc   : > { %2564 = vmatprep.subr.bf16.mxu0 %v2783_v1  ;;  %2576 = vmatprep.subr.bf16.mxu1 %v2783_v1  ;;  %s2492_s21 = sshll.u32 %s3265_s30, 3  ;;  %v2765_v4 = vld [vmem:[%s3250_s1] sm:$0xff]   ;;  %vm508_vm1 = vcmask 523264   ;;  %vm575_vm2 = vcmask 64512   ;;  %vm594_vm3 = vcmask 1043456   ;;  %vm972_vm4 = vcmask 130112  }
   0xd   : > { %2565 = vmatpush3.bf16.msra.mxu0 %v2762_v0  ;;  %2572 = vmatprep.mubr.msk.bf16.mxu0 %vm2784_vm0, %v2783_v1  ;;  %s2905_s24 = scalar_lea.vmem %s3249_s0, %s2492_s21  ;;  %576 = vst.msk [vmem:[#allocation2] sm:$0xff] %vm575_vm2, %v2783_v1  ;;  %577 = vst.msk [vmem:[#allocation2 + $0x18] sm:$0xff] %vm575_vm2, %v2783_v1  ;;  %v2411_v6 = vld [vmem:[%s3253_s4 + $0x4] sm:$0xf]  ;;  %v2409_v9 = vld [vmem:[%s3251_s2] ss:$0 sm:$0xff] }
   0xe   : > { %2566 = vmatprep.subr.bf16.mxu0 %v2783_v1  ;;  %2578 = vmatprep.mubr.msk.bf16.mxu1 %vm2784_vm0, %v2783_v1  ;;  %v2766_v5 = vld [vmem:[%s2905_s24] sm:$0xff]   ;;  %v596_v7 = vsel %vm594_vm3, %v2411_v6, 0  ;;  %v2414_v28 = vld [vmem:[%s3253_s4 + $0x8] sm:$0xf]  ;;  %v2419_v60 = vld [vmem:[%s3253_s4 + $0x10] sm:$0xf] }
   0xf   : > { %2577 = vmatpush3.bf16.msra.mxu1 %v596_v7  ;;  %v2410_v11 = vld [vmem:[%s3252_s3] ss:$0 sm:$0xff]  ;;  %v695_v31 = vsel %vm594_vm3, %v2414_v28, 0  ;;  %v2418_v61 = vld [vmem:[%s3253_s4 + $0xc] sm:$0xf]  ;;  %v798_v62 = vsel %vm594_vm3, %v2419_v60, 0 }
  0x10   : > { %2582 = vmatprep.subr.bf16.mxu1 %v2783_v1  ;;  %v585_v22 = vld [vmem:[%s3253_s4] sm:$0xf]  ;;  %v845_v63 = vsel %vm594_vm3, %v2418_v61, 0  ;;  %v2422_v7 = vld [vmem:[%s3253_s4 + $0x14] sm:$0xf]  ;;  %vm1185_vm5 = vcmask 195712  }
  0x11   : > { %2567 = vmatpush3.bf16.msra.mxu0 %v2763_v2  ;;  %v643_v26 = vsel %vm594_vm3, %v585_v22, 0  ;;  %v2416_v45 = vld [vmem:[%s3254_s5] ss:$0 sm:$0xff]  ;;  %v2425_v28 = vld [vmem:[%s3254_s5 + $0x1] ss:$0 sm:$0xff]  ;;  %vm1398_vm6 = vcmask 261312  }
  0x12   : > { %2568 = vmatprep.subr.bf16.mxu0 %v2783_v1  ;;  %v2417_v49 = vld [vmem:[%s3255_s6] ss:$0 sm:$0xff]  ;;  %vm1611_vm7 = vcmask 326912   ;;  %vm1824_vm8 = vcmask 392512   ;;  %vm2037_vm9 = vcmask 458112   ;;  %vm2236_vm10 = vcmask 130048  }
  0x13   : > { %vm2336_vm11 = vcmask 519168  }
  0x15   : > { %2569 = vmatpush3.bf16.msra.mxu0 %v2764_v3 }
  0x16   : > { %2570 = vmatprep.subr.bf16.mxu0 %v2783_v1 }
  0x19   : > { %2571 = vmatpush3.bf16.msra.mxu0 %v2765_v4 }
  0x1a   : > { %2594 = vmatprep.subr.bf16.mxu0 %v2783_v1 }
  0x1c   : > { %2573 = vmatmul.mubr.msk.bf16.vlgmr.msra.gmra.mxu0 %vm508_vm1, %v2766_v5 }
  0x1d   : > { %2596 = vmatprep.mubr.msk.bf16.mxu0 %vm2784_vm0, %v2783_v1  ;;  %2595 = vmatpush3.bf16.msra.mxu0 %v798_v62 }
  0x1e   : > { %2606 = vmatprep.subr.bf16.mxu0 %v2783_v1 }
  0xdc   : > { %v546_v8 = vpop.f32.mrf.mxu0 }
  0xdd   : > { %v553_v10 = vmax.f32 %v546_v8, 0.0 }
  0xde   : > { %v2574_v12 = vpop.f32.mrf.mxu0 }
  0xdf   : > { %v562_v13 = vmul.f32 %v2409_v9, %v553_v10 }
  0xe0   : > { %v549_v14 = vpop.f32.mrf.mxu0 }
  0xe1   : > { %v571_v15 = vadd.f32 %v2410_v11, %v562_v13  ;;  %v554_v16 = vmax.f32 %v549_v14, 0.0  ;;  %v897_v14 = vsel %vm594_vm3, %v2422_v7, 0 }
  0xe2   : > { %v2575_v17 = vpop.f32.mrf.mxu0 }
  0xe3   : > { %573 = vst.msk [vmem:[#allocation3] sm:$0xff] %vm508_vm1, %v571_v15  ;;  %v563_v18 = vmul.f32 %v2409_v9, %v554_v16 }
  0xe5   : > { %v572_v19 = vadd.f32 %v2410_v11, %v563_v18 }
  0xe7   : > { %574 = vst.msk [vmem:[#allocation3 + $0x8] sm:$0xff] %vm508_vm1, %v572_v19 }
  0xea   : > { %v578_v20 = vld [vmem:[#allocation3] sm:$0xff] }
  0xeb   : > { %580 = vst.msk [vmem:[#allocation2 + $0x8] sm:$0xff] %vm575_vm2, %v578_v20 }
  0xee   : > { %v579_v21 = vld [vmem:[#allocation3 + $0x8] sm:$0xff] }
  0xef   : > { %581 = vst.msk [vmem:[#allocation2 + $0x10] sm:$0xff] %vm575_vm2, %v579_v21 }
  0xf2   : > { %v586_v23 = vld [vmem:[#allocation2 + $0x8] sm:$0xff] }
  0xf3   : > { %v582_v29 = vld [vmem:[#allocation2 + $0x4] sm:$0xff] }
  0xf6   : > { %v587_v24 = vld [vmem:[#allocation2 + $0x10] sm:$0xff] }
  0xf7   : > { %v588_v25 = vpack.c.bf16 %v587_v24, %v586_v23  ;;  %v583_v27 = vld [vmem:[#allocation2 + $0xc] sm:$0xff]  ;;  %v687_v32 = vld [vmem:[#allocation2 + $0x14] sm:$0xff] }
  0xf8   : > { %v584_v30 = vpack.c.bf16 %v583_v27, %v582_v29  ;;  %v688_v33 = vpack.c.bf16 %v687_v32, %v583_v27 }
  0xf9   : > { %2579 = vmatmul.mubr.msk.bf16.vlgmr.msra.gmra.mxu1 %vm575_vm2, %v588_v25 }
  0xfa   : > { %2583 = vmatpush3.bf16.msra.mxu1 %v643_v26  ;;  %2584 = vmatprep.mubr.msk.bf16.mxu1 %vm2784_vm0, %v2783_v1 }
  0xfb   : > { %2588 = vmatprep.subr.bf16.mxu1 %v2783_v1 }
 0x101   : > { %2585 = vmatmul.mubr.msk.bf16.vlgmr.msra.gmra.mxu1 %vm575_vm2, %v584_v30 }
 0x102   : > { %2589 = vmatpush3.bf16.msra.mxu1 %v695_v31  ;;  %2590 = vmatprep.mubr.msk.bf16.mxu1 %vm2784_vm0, %v2783_v1 }
 0x103   : > { %2600 = vmatprep.subr.bf16.mxu1 %v2783_v1 }
 0x109   : > { %2591 = vmatmul.mubr.msk.bf16.vlgmr.msra.gmra.mxu1 %vm575_vm2, %v688_v33  ;;  %v2427_v33 = vld [vmem:[%s3255_s6 + $0x1] ss:$0 sm:$0xff] }
 0x10a   : > { %2602 = vmatprep.mubr.msk.bf16.mxu1 %vm2784_vm0, %v2783_v1  ;;  %2601 = vmatpush3.bf16.msra.mxu1 %v845_v63 }
 0x10b   : > { %2612 = vmatprep.subr.bf16.mxu1 %v2783_v1 }
 0x1b9   : > { %v632_v34 = vpop.f32.mrf.mxu1 }
 0x1bb   : > { %v2580_v35 = vpop.f32.mrf.mxu1 }
 0x1bd   : > { %v635_v36 = vpop.f32.mrf.mxu1 }
 0x1bf   : > { %v2581_v37 = vpop.f32.mrf.mxu1 }
 0x1c1   : > { %v679_v38 = vpop.f32.mrf.mxu1 }
 0x1c2   : > { %v680_v42 = vadd.f32 %v679_v38, %v632_v34 }
 0x1c3   : > { %v2586_v39 = vpop.f32.mrf.mxu1 }
 0x1c5   : > { %v682_v40 = vpop.f32.mrf.mxu1 }
 0x1c6   : > { %v683_v47 = vadd.f32 %v682_v40, %v635_v36 }
 0x1c7   : > { %v2587_v41 = vpop.f32.mrf.mxu1 }
 0x1c9   : > { %v731_v43 = vpop.f32.mrf.mxu1 }
 0x1ca   : > { %v738_v44 = vadd.f32 %v731_v43, %v680_v42 }
 0x1cb   : > { %v2592_v46 = vpop.f32.mrf.mxu1 }
 0x1cc   : > { %v740_v48 = vmax.f32 %v738_v44, 0.0  ;;  %v2428_v46 = vld [vmem:[%s3253_s4 + $0x18] sm:$0xf] }
 0x1cd   : > { %v734_v50 = vpop.f32.mrf.mxu1 }
 0x1ce   : > { %v749_v51 = vmul.f32 %v2416_v45, %v740_v48  ;;  %v739_v52 = vadd.f32 %v734_v50, %v683_v47  ;;  %v1058_v48 = vsel %vm594_vm3, %v2428_v46, 0 }
 0x1cf   : > { %v2593_v53 = vpop.f32.mrf.mxu1 }
 0x1d0   : > { %v758_v54 = vadd.f32 %v2417_v49, %v749_v51  ;;  %v741_v55 = vmax.f32 %v739_v52, 0.0 }
 0x1d2   : > { %760 = vst.msk [vmem:[#allocation3] sm:$0xff] %vm575_vm2, %v758_v54  ;;  %v750_v56 = vmul.f32 %v2416_v45, %v741_v55  ;;  %v2429_v45 = vld [vmem:[%s3253_s4 + $0x1c] sm:$0xf]  ;;  %v2432_v55 = vld [vmem:[%s3253_s4 + $0x20] sm:$0xf] }
 0x1d3   : > { %v1011_v47 = vsel %vm594_vm3, %v2429_v45, 0  ;;  %v1110_v62 = vsel %vm594_vm3, %v2432_v55, 0 }
 0x1d4   : > { %v759_v57 = vadd.f32 %v2417_v49, %v750_v56 }
 0x1d6   : > { %761 = vst.msk [vmem:[#allocation3 + $0x8] sm:$0xff] %vm575_vm2, %v759_v57 }
 0x1d9   : > { %v762_v58 = vld [vmem:[#allocation3] sm:$0xff] }
 0x1da   : > { %766 = vrot.lane.b32.xlu0 %v762_v58, %s2785_s15 }
 0x1dd   : > { %v763_v59 = vld [vmem:[#allocation3 + $0x8] sm:$0xff] }
 0x1de   : > { %768 = vrot.lane.b32.xlu0 %v763_v59, %s2785_s15 }
 0x24c   : > { %v767_v0 = vpop.permute.xlu0 %766 }
 0x24d   : > { %v772_v2 = vadd.f32 %v767_v0, %v762_v58 }
 0x24f   : > { %776 = vrot.lane.b32.xlu1 %v772_v2, %s2786_s20 }
 0x250   : > { %v769_v3 = vpop.permute.xlu0 %768 }
 0x251   : > { %v773_v4 = vadd.f32 %v769_v3, %v763_v59 }
 0x253   : > { %778 = vrot.lane.b32.xlu1 %v773_v4, %s2786_s20  ;;  %s2787_s20 = smov 112  }
 0x2c1   : > { %v777_v5 = vpop.permute.xlu1 %776 }
 0x2c2   : > { %782 = vst.msk [vmem:[#allocation2 + $0x8] sm:$0xff] %vm575_vm2, %v777_v5 }
 0x2c5   : > { %v779_v6 = vpop.permute.xlu1 %778 }
 0x2c6   : > { %783 = vst.msk [vmem:[#allocation2 + $0x10] sm:$0xff] %vm575_vm2, %v779_v6 }
 0x2c9   : > { %v789_v8 = vld [vmem:[#allocation2 + $0x8] sm:$0xff] }
 0x2ca   : > { %v784_v10 = vld [vmem:[#allocation2 + $0x4] sm:$0xff] }
 0x2cd   : > { %v790_v9 = vld [vmem:[#allocation2 + $0x10] sm:$0xff] }
 0x2ce   : > { %v785_v11 = vld [vmem:[#allocation2 + $0xc] sm:$0xff]  ;;  %v791_v12 = vpack.c.bf16 %v790_v9, %v789_v8  ;;  %v889_v15 = vld [vmem:[#allocation2 + $0x14] sm:$0xff] }
 0x2cf   : > { %v786_v13 = vpack.c.bf16 %v785_v11, %v784_v10  ;;  %v890_v16 = vpack.c.bf16 %v889_v15, %v785_v11 }
 0x2d0   : > { %2597 = vmatmul.mubr.msk.bf16.vlgmr.msra.gmra.mxu0 %vm575_vm2, %v791_v12 }
 0x2d1   : > { %2603 = vmatmul.mubr.msk.bf16.vlgmr.msra.gmra.mxu1 %vm575_vm2, %v786_v13  ;;  %2607 = vmatpush3.bf16.msra.mxu0 %v897_v14  ;;  %v2435_v13 = vld [vmem:[%s3254_s5 + $0x2] ss:$0 sm:$0xff] }
 0x2d2   : > { %2608 = vmatprep.mubr.msk.bf16.mxu0 %vm2784_vm0, %v2783_v1  ;;  %2618 = vmatprep.subr.bf16.mxu0 %v2783_v1 }
 0x2d3   : > { %2614 = vmatprep.mubr.msk.bf16.mxu1 %vm2784_vm0, %v2783_v1  ;;  %2613 = vmatpush3.bf16.msra.mxu1 %v1011_v47 }
 0x2d4   : > { %2624 = vmatprep.subr.bf16.mxu1 %v2783_v1 }
 0x2d8   : > { %2609 = vmatmul.mubr.msk.bf16.vlgmr.msra.gmra.mxu0 %vm575_vm2, %v890_v16 }
 0x2d9   : > { %2620 = vmatprep.mubr.msk.bf16.mxu0 %vm2784_vm0, %v2783_v1  ;;  %2619 = vmatpush3.bf16.msra.mxu0 %v1058_v48 }
 0x2da   : > { %2630 = vmatprep.subr.bf16.mxu0 %v2783_v1 }
 0x390   : > { %v834_v17 = vpop.f32.mrf.mxu0 }
 0x391   : > { %v881_v18 = vpop.f32.mrf.mxu1 }
 0x392   : > { %v2598_v19 = vpop.f32.mrf.mxu0  ;;  %v882_v25 = vadd.f32 %v881_v18, %v834_v17  ;;  %v2437_v18 = vld [vmem:[%s3255_s6 + $0x2] ss:$0 sm:$0xff] }
 0x393   : > { %v2604_v20 = vpop.f32.mrf.mxu1 }
 0x394   : > { %v837_v21 = vpop.f32.mrf.mxu0 }
 0x395   : > { %v884_v22 = vpop.f32.mrf.mxu1 }
 0x396   : > { %v2599_v23 = vpop.f32.mrf.mxu0  ;;  %v885_v30 = vadd.f32 %v884_v22, %v837_v21 }
 0x397   : > { %v2605_v24 = vpop.f32.mrf.mxu1 }
 0x398   : > { %v933_v26 = vpop.f32.mrf.mxu0 }
 0x399   : > { %v940_v27 = vadd.f32 %v933_v26, %v882_v25 }
 0x39a   : > { %v2610_v29 = vpop.f32.mrf.mxu0 }
 0x39b   : > { %v942_v31 = vmax.f32 %v940_v27, 0.0 }
 0x39c   : > { %v936_v32 = vpop.f32.mrf.mxu0 }
 0x39d   : > { %v952_v34 = vmul.f32 %v2425_v28, %v942_v31  ;;  %v941_v35 = vadd.f32 %v936_v32, %v885_v30  ;;  %v2439_v30 = vld [vmem:[%s3253_s4 + $0x28] sm:$0xf]  ;;  %v2438_v31 = vld [vmem:[%s3253_s4 + $0x24] sm:$0xf] }
 0x39e   : > { %v2611_v36 = vpop.f32.mrf.mxu0  ;;  %v1224_v32 = vsel %vm594_vm3, %v2439_v30, 0 }
 0x39f   : > { %v943_v37 = vmax.f32 %v941_v35, 0.0  ;;  %v962_v38 = vadd.f32 %v2427_v33, %v952_v34 }
 0x3a1   : > { %v953_v39 = vmul.f32 %v2425_v28, %v943_v37  ;;  %966 = vrot.lane.b32.xlu0 %v962_v38, %s2785_s15 }
 0x3a3   : > { %v963_v40 = vadd.f32 %v2427_v33, %v953_v39  ;;  %v1271_v33 = vsel %vm594_vm3, %v2438_v31, 0 }
 0x3a5   : > { %968 = vrot.lane.b32.xlu1 %v963_v40, %s2785_s15  ;;  %v2442_v40 = vld [vmem:[%s3253_s4 + $0x2c] sm:$0xf] }
 0x3a6   : > { %v1323_v47 = vsel %vm594_vm3, %v2442_v40, 0 }
 0x413   : > { %v967_v41 = vpop.permute.xlu0 %966 }
 0x414   : > { %973 = vst.msk [vmem:[#allocation3] sm:$0xff] %vm972_vm4, %v967_v41 }
 0x417   : > { %v969_v42 = vpop.permute.xlu1 %968 }
 0x418   : > { %974 = vst.msk [vmem:[#allocation3 + $0x8] sm:$0xff] %vm972_vm4, %v969_v42 }
 0x41b   : > { %v975_v43 = vld [vmem:[#allocation3] sm:$0xff] }
 0x41c   : > { %979 = vrot.lane.b32.xlu0 %v975_v43, %s2785_s15 }
 0x41f   : > { %v976_v44 = vld [vmem:[#allocation3 + $0x8] sm:$0xff] }
 0x420   : > { %981 = vrot.lane.b32.xlu1 %v976_v44, %s2785_s15 }
 0x48e   : > { %v980_v49 = vpop.permute.xlu0 %979 }
 0x48f   : > { %v985_v50 = vadd.f32 %v980_v49, %v975_v43 }
 0x491   : > { %989 = vrot.lane.b32.xlu0 %v985_v50, %s2787_s20 }
 0x492   : > { %v982_v51 = vpop.permute.xlu1 %981 }
 0x493   : > { %v986_v52 = vadd.f32 %v982_v51, %v976_v44 }
 0x495   : > { %991 = vrot.lane.b32.xlu1 %v986_v52, %s2787_s20 }
 0x503   : > { %v990_v53 = vpop.permute.xlu0 %989 }
 0x504   : > { %995 = vst.msk [vmem:[#allocation2 + $0x8] sm:$0xff] %vm575_vm2, %v990_v53 }
 0x507   : > { %v992_v54 = vpop.permute.xlu1 %991 }
 0x508   : > { %996 = vst.msk [vmem:[#allocation2 + $0x10] sm:$0xff] %vm575_vm2, %v992_v54 }
 0x50b   : > { %v1002_v56 = vld [vmem:[#allocation2 + $0x8] sm:$0xff] }
 0x50c   : > { %v997_v58 = vld [vmem:[#allocation2 + $0x4] sm:$0xff] }
 0x50f   : > { %v1003_v57 = vld [vmem:[#allocation2 + $0x10] sm:$0xff] }
 0x510   : > { %v998_v59 = vld [vmem:[#allocation2 + $0xc] sm:$0xff]  ;;  %v1004_v60 = vpack.c.bf16 %v1003_v57, %v1002_v56  ;;  %v1102_v63 = vld [vmem:[#allocation2 + $0x14] sm:$0xff] }
 0x511   : > { %v999_v61 = vpack.c.bf16 %v998_v59, %v997_v58  ;;  %v1103_v0 = vpack.c.bf16 %v1102_v63, %v998_v59 }
 0x512   : > { %2615 = vmatmul.mubr.msk.bf16.vlgmr.msra.gmra.mxu1 %vm575_vm2, %v1004_v60 }
 0x513   : > { %2621 = vmatmul.mubr.msk.bf16.vlgmr.msra.gmra.mxu0 %vm575_vm2, %v999_v61  ;;  %2625 = vmatpush3.bf16.msra.mxu1 %v1110_v62  ;;  %v2445_v61 = vld [vmem:[%s3254_s5 + $0x3] ss:$0 sm:$0xff] }
 0x514   : > { %2626 = vmatprep.mubr.msk.bf16.mxu1 %vm2784_vm0, %v2783_v1  ;;  %2636 = vmatprep.subr.bf16.mxu1 %v2783_v1 }
 0x515   : > { %2632 = vmatprep.mubr.msk.bf16.mxu0 %vm2784_vm0, %v2783_v1  ;;  %2631 = vmatpush3.bf16.msra.mxu0 %v1224_v32 }
 0x516   : > { %2642 = vmatprep.subr.bf16.mxu0 %v2783_v1 }
 0x51a   : > { %2627 = vmatmul.mubr.msk.bf16.vlgmr.msra.gmra.mxu1 %vm575_vm2, %v1103_v0 }
 0x51b   : > { %2638 = vmatprep.mubr.msk.bf16.mxu1 %vm2784_vm0, %v2783_v1  ;;  %2637 = vmatpush3.bf16.msra.mxu1 %v1271_v33 }
 0x51c   : > { %2648 = vmatprep.subr.bf16.mxu1 %v2783_v1 }
 0x5d2   : > { %v1047_v2 = vpop.f32.mrf.mxu1 }
 0x5d3   : > { %v1094_v3 = vpop.f32.mrf.mxu0 }
 0x5d4   : > { %v2616_v4 = vpop.f32.mrf.mxu1  ;;  %v1095_v10 = vadd.f32 %v1094_v3, %v1047_v2  ;;  %v2447_v3 = vld [vmem:[%s3255_s6 + $0x3] ss:$0 sm:$0xff] }
 0x5d5   : > { %v2622_v5 = vpop.f32.mrf.mxu0 }
 0x5d6   : > { %v1050_v6 = vpop.f32.mrf.mxu1 }
 0x5d7   : > { %v1097_v7 = vpop.f32.mrf.mxu0 }
 0x5d8   : > { %v2617_v8 = vpop.f32.mrf.mxu1  ;;  %v1098_v15 = vadd.f32 %v1097_v7, %v1050_v6 }
 0x5d9   : > { %v2623_v9 = vpop.f32.mrf.mxu0 }
 0x5da   : > { %v1146_v11 = vpop.f32.mrf.mxu1 }
 0x5db   : > { %v1153_v12 = vadd.f32 %v1146_v11, %v1095_v10 }
 0x5dc   : > { %v2628_v14 = vpop.f32.mrf.mxu1 }
 0x5dd   : > { %v1155_v16 = vmax.f32 %v1153_v12, 0.0 }
 0x5de   : > { %v1149_v17 = vpop.f32.mrf.mxu1 }
 0x5df   : > { %v1165_v19 = vmul.f32 %v2435_v13, %v1155_v16  ;;  %v1154_v20 = vadd.f32 %v1149_v17, %v1098_v15  ;;  %v2449_v15 = vld [vmem:[%s3253_s4 + $0x34] sm:$0xf]  ;;  %v2448_v16 = vld [vmem:[%s3253_s4 + $0x30] sm:$0xf] }
 0x5e0   : > { %v2629_v21 = vpop.f32.mrf.mxu1  ;;  %v1437_v17 = vsel %vm594_vm3, %v2449_v15, 0 }
 0x5e1   : > { %v1156_v22 = vmax.f32 %v1154_v20, 0.0  ;;  %v1175_v23 = vadd.f32 %v2437_v18, %v1165_v19 }
 0x5e3   : > { %v1166_v24 = vmul.f32 %v2435_v13, %v1156_v22  ;;  %1179 = vrot.lane.b32.xlu0 %v1175_v23, %s2788_s16 }
 0x5e5   : > { %v1176_v25 = vadd.f32 %v2437_v18, %v1166_v24  ;;  %v1484_v18 = vsel %vm594_vm3, %v2448_v16, 0 }
 0x5e7   : > { %1181 = vrot.lane.b32.xlu1 %v1176_v25, %s2788_s16  ;;  %v2452_v25 = vld [vmem:[%s3253_s4 + $0x38] sm:$0xf] }
 0x5e8   : > { %v1536_v32 = vsel %vm594_vm3, %v2452_v25, 0 }
 0x655   : > { %v1180_v26 = vpop.permute.xlu0 %1179 }
 0x656   : > { %1186 = vst.msk [vmem:[#allocation3] sm:$0xff] %vm1185_vm5, %v1180_v26 }
 0x659   : > { %v1182_v27 = vpop.permute.xlu1 %1181 }
 0x65a   : > { %1187 = vst.msk [vmem:[#allocation3 + $0x8] sm:$0xff] %vm1185_vm5, %v1182_v27 }
 0x65d   : > { %v1188_v28 = vld [vmem:[#allocation3] sm:$0xff] }
 0x65e   : > { %1192 = vrot.lane.b32.xlu0 %v1188_v28, %s2785_s15 }
 0x661   : > { %v1189_v29 = vld [vmem:[#allocation3 + $0x8] sm:$0xff] }
 0x662   : > { %1194 = vrot.lane.b32.xlu1 %v1189_v29, %s2785_s15 }
 0x6d0   : > { %v1193_v34 = vpop.permute.xlu0 %1192 }
 0x6d1   : > { %v1198_v35 = vadd.f32 %v1193_v34, %v1188_v28 }
 0x6d3   : > { %1202 = vrot.lane.b32.xlu0 %v1198_v35, %s2789_s22 }
 0x6d4   : > { %v1195_v36 = vpop.permute.xlu1 %1194 }
 0x6d5   : > { %v1199_v37 = vadd.f32 %v1195_v36, %v1189_v29 }
 0x6d7   : > { %1204 = vrot.lane.b32.xlu1 %v1199_v37, %s2789_s22 }
 0x745   : > { %v1203_v38 = vpop.permute.xlu0 %1202 }
 0x746   : > { %1208 = vst.msk [vmem:[#allocation2 + $0x8] sm:$0xff] %vm575_vm2, %v1203_v38 }
 0x749   : > { %v1205_v39 = vpop.permute.xlu1 %1204 }
 0x74a   : > { %1209 = vst.msk [vmem:[#allocation2 + $0x10] sm:$0xff] %vm575_vm2, %v1205_v39 }
 0x74d   : > { %v1215_v41 = vld [vmem:[#allocation2 + $0x8] sm:$0xff] }
 0x74e   : > { %v1210_v43 = vld [vmem:[#allocation2 + $0x4] sm:$0xff] }
 0x751   : > { %v1216_v42 = vld [vmem:[#allocation2 + $0x10] sm:$0xff] }
 0x752   : > { %v1211_v44 = vld [vmem:[#allocation2 + $0xc] sm:$0xff]  ;;  %v1217_v45 = vpack.c.bf16 %v1216_v42, %v1215_v41  ;;  %v1315_v48 = vld [vmem:[#allocation2 + $0x14] sm:$0xff] }
 0x753   : > { %v1212_v46 = vpack.c.bf16 %v1211_v44, %v1210_v43  ;;  %v1316_v49 = vpack.c.bf16 %v1315_v48, %v1211_v44 }
 0x754   : > { %2633 = vmatmul.mubr.msk.bf16.vlgmr.msra.gmra.mxu0 %vm575_vm2, %v1217_v45 }
 0x755   : > { %2639 = vmatmul.mubr.msk.bf16.vlgmr.msra.gmra.mxu1 %vm575_vm2, %v1212_v46  ;;  %2643 = vmatpush3.bf16.msra.mxu0 %v1323_v47  ;;  %v2455_v46 = vld [vmem:[%s3254_s5 + $0x4] ss:$0 sm:$0xff] }
 0x756   : > { %2644 = vmatprep.mubr.msk.bf16.mxu0 %vm2784_vm0, %v2783_v1  ;;  %2654 = vmatprep.subr.bf16.mxu0 %v2783_v1 }
 0x757   : > { %2650 = vmatprep.mubr.msk.bf16.mxu1 %vm2784_vm0, %v2783_v1  ;;  %2649 = vmatpush3.bf16.msra.mxu1 %v1437_v17 }
 0x758   : > { %2660 = vmatprep.subr.bf16.mxu1 %v2783_v1 }
 0x75c   : > { %2645 = vmatmul.mubr.msk.bf16.vlgmr.msra.gmra.mxu0 %vm575_vm2, %v1316_v49 }
 0x75d   : > { %2656 = vmatprep.mubr.msk.bf16.mxu0 %vm2784_vm0, %v2783_v1  ;;  %2655 = vmatpush3.bf16.msra.mxu0 %v1484_v18 }
 0x75e   : > { %2666 = vmatprep.subr.bf16.mxu0 %v2783_v1 }
 0x814   : > { %v1260_v50 = vpop.f32.mrf.mxu0 }
 0x815   : > { %v1307_v51 = vpop.f32.mrf.mxu1 }
 0x816   : > { %v2634_v52 = vpop.f32.mrf.mxu0  ;;  %v1308_v58 = vadd.f32 %v1307_v51, %v1260_v50  ;;  %v2457_v51 = vld [vmem:[%s3255_s6 + $0x4] ss:$0 sm:$0xff] }
 0x817   : > { %v2640_v53 = vpop.f32.mrf.mxu1 }
 0x818   : > { %v1263_v54 = vpop.f32.mrf.mxu0 }
 0x819   : > { %v1310_v55 = vpop.f32.mrf.mxu1 }
 0x81a   : > { %v2635_v56 = vpop.f32.mrf.mxu0  ;;  %v1311_v63 = vadd.f32 %v1310_v55, %v1263_v54 }
 0x81b   : > { %v2641_v57 = vpop.f32.mrf.mxu1 }
 0x81c   : > { %v1359_v59 = vpop.f32.mrf.mxu0 }
 0x81d   : > { %v1366_v60 = vadd.f32 %v1359_v59, %v1308_v58 }
 0x81e   : > { %v2646_v62 = vpop.f32.mrf.mxu0 }
 0x81f   : > { %v1368_v0 = vmax.f32 %v1366_v60, 0.0 }
 0x820   : > { %v1362_v2 = vpop.f32.mrf.mxu0 }
 0x821   : > { %v1378_v4 = vmul.f32 %v2445_v61, %v1368_v0  ;;  %v1367_v5 = vadd.f32 %v1362_v2, %v1311_v63  ;;  %v2459_v63 = vld [vmem:[%s3253_s4 + $0x40] sm:$0xf]  ;;  %v2458_v0 = vld [vmem:[%s3253_s4 + $0x3c] sm:$0xf] }
 0x822   : > { %v2647_v6 = vpop.f32.mrf.mxu0  ;;  %v1650_v2 = vsel %vm594_vm3, %v2459_v63, 0 }
 0x823   : > { %v1369_v7 = vmax.f32 %v1367_v5, 0.0  ;;  %v1388_v8 = vadd.f32 %v2447_v3, %v1378_v4 }
 0x825   : > { %v1379_v9 = vmul.f32 %v2445_v61, %v1369_v7  ;;  %1392 = vrot.lane.b32.xlu0 %v1388_v8, %s2790_s17 }
 0x827   : > { %v1389_v10 = vadd.f32 %v2447_v3, %v1379_v9  ;;  %v1697_v3 = vsel %vm594_vm3, %v2458_v0, 0 }
 0x829   : > { %1394 = vrot.lane.b32.xlu1 %v1389_v10, %s2790_s17  ;;  %v2462_v10 = vld [vmem:[%s3253_s4 + $0x44] sm:$0xf] }
 0x82a   : > { %v1749_v17 = vsel %vm594_vm3, %v2462_v10, 0 }
 0x897   : > { %v1393_v11 = vpop.permute.xlu0 %1392 }
 0x898   : > { %1399 = vst.msk [vmem:[#allocation3] sm:$0xff] %vm1398_vm6, %v1393_v11 }
 0x89b   : > { %v1395_v12 = vpop.permute.xlu1 %1394 }
 0x89c   : > { %1400 = vst.msk [vmem:[#allocation3 + $0x8] sm:$0xff] %vm1398_vm6, %v1395_v12 }
 0x89f   : > { %v1401_v13 = vld [vmem:[#allocation3] sm:$0xff] }
 0x8a0   : > { %1405 = vrot.lane.b32.xlu0 %v1401_v13, %s2785_s15 }
 0x8a3   : > { %v1402_v14 = vld [vmem:[#allocation3 + $0x8] sm:$0xff] }
 0x8a4   : > { %1407 = vrot.lane.b32.xlu1 %v1402_v14, %s2785_s15 }
 0x912   : > { %v1406_v19 = vpop.permute.xlu0 %1405 }
 0x913   : > { %v1411_v20 = vadd.f32 %v1406_v19, %v1401_v13 }
 0x915   : > { %1415 = vrot.lane.b32.xlu0 %v1411_v20, %s2791_s23 }
 0x916   : > { %v1408_v21 = vpop.permute.xlu1 %1407 }
 0x917   : > { %v1412_v22 = vadd.f32 %v1408_v21, %v1402_v14 }
 0x919   : > { %1417 = vrot.lane.b32.xlu1 %v1412_v22, %s2791_s23  ;;  %s467_s23 = scalar_lea.vmem %s3263_s14, %s2492_s21 }
 0x987   : > { %v1416_v23 = vpop.permute.xlu0 %1415 }
 0x988   : > { %1421 = vst.msk [vmem:[#allocation2 + $0x8] sm:$0xff] %vm575_vm2, %v1416_v23 }
 0x98b   : > { %v1418_v24 = vpop.permute.xlu1 %1417 }
 0x98c   : > { %1422 = vst.msk [vmem:[#allocation2 + $0x10] sm:$0xff] %vm575_vm2, %v1418_v24 }
 0x98f   : > { %v1428_v26 = vld [vmem:[#allocation2 + $0x8] sm:$0xff] }
 0x990   : > { %v1423_v28 = vld [vmem:[#allocation2 + $0x4] sm:$0xff] }
 0x993   : > { %v1429_v27 = vld [vmem:[#allocation2 + $0x10] sm:$0xff] }
 0x994   : > { %v1424_v29 = vld [vmem:[#allocation2 + $0xc] sm:$0xff]  ;;  %v1430_v30 = vpack.c.bf16 %v1429_v27, %v1428_v26  ;;  %v1528_v33 = vld [vmem:[#allocation2 + $0x14] sm:$0xff] }
 0x995   : > { %v1425_v31 = vpack.c.bf16 %v1424_v29, %v1423_v28  ;;  %v1529_v34 = vpack.c.bf16 %v1528_v33, %v1424_v29 }
 0x996   : > { %2651 = vmatmul.mubr.msk.bf16.vlgmr.msra.gmra.mxu1 %vm575_vm2, %v1430_v30 }
 0x997   : > { %2657 = vmatmul.mubr.msk.bf16.vlgmr.msra.gmra.mxu0 %vm575_vm2, %v1425_v31  ;;  %2661 = vmatpush3.bf16.msra.mxu1 %v1536_v32  ;;  %v2465_v31 = vld [vmem:[%s3254_s5 + $0x5] ss:$0 sm:$0xff] }
 0x998   : > { %2662 = vmatprep.mubr.msk.bf16.mxu1 %vm2784_vm0, %v2783_v1  ;;  %2672 = vmatprep.subr.bf16.mxu1 %v2783_v1 }
 0x999   : > { %2668 = vmatprep.mubr.msk.bf16.mxu0 %vm2784_vm0, %v2783_v1  ;;  %2667 = vmatpush3.bf16.msra.mxu0 %v1650_v2 }
 0x99a   : > { %2678 = vmatprep.subr.bf16.mxu0 %v2783_v1 }
 0x99e   : > { %2663 = vmatmul.mubr.msk.bf16.vlgmr.msra.gmra.mxu1 %vm575_vm2, %v1529_v34 }
 0x99f   : > { %2674 = vmatprep.mubr.msk.bf16.mxu1 %vm2784_vm0, %v2783_v1  ;;  %2673 = vmatpush3.bf16.msra.mxu1 %v1697_v3 }
 0x9a0   : > { %2684 = vmatprep.subr.bf16.mxu1 %v2783_v1 }
 0xa56   : > { %v1473_v35 = vpop.f32.mrf.mxu1 }
 0xa57   : > { %v1520_v36 = vpop.f32.mrf.mxu0 }
 0xa58   : > { %v2652_v37 = vpop.f32.mrf.mxu1  ;;  %v1521_v43 = vadd.f32 %v1520_v36, %v1473_v35  ;;  %v2467_v36 = vld [vmem:[%s3255_s6 + $0x5] ss:$0 sm:$0xff] }
 0xa59   : > { %v2658_v38 = vpop.f32.mrf.mxu0 }
 0xa5a   : > { %v1476_v39 = vpop.f32.mrf.mxu1 }
 0xa5b   : > { %v1523_v40 = vpop.f32.mrf.mxu0 }
 0xa5c   : > { %v2653_v41 = vpop.f32.mrf.mxu1  ;;  %v1524_v48 = vadd.f32 %v1523_v40, %v1476_v39 }
 0xa5d   : > { %v2659_v42 = vpop.f32.mrf.mxu0 }
 0xa5e   : > { %v1572_v44 = vpop.f32.mrf.mxu1 }
 0xa5f   : > { %v1579_v45 = vadd.f32 %v1572_v44, %v1521_v43 }
 0xa60   : > { %v2664_v47 = vpop.f32.mrf.mxu1 }
 0xa61   : > { %v1581_v49 = vmax.f32 %v1579_v45, 0.0 }
 0xa62   : > { %v1575_v50 = vpop.f32.mrf.mxu1 }
 0xa63   : > { %v1591_v52 = vmul.f32 %v2455_v46, %v1581_v49  ;;  %v1580_v53 = vadd.f32 %v1575_v50, %v1524_v48  ;;  %v2469_v48 = vld [vmem:[%s3253_s4 + $0x4c] sm:$0xf]  ;;  %v2468_v49 = vld [vmem:[%s3253_s4 + $0x48] sm:$0xf] }
 0xa64   : > { %v2665_v54 = vpop.f32.mrf.mxu1  ;;  %v1863_v50 = vsel %vm594_vm3, %v2469_v48, 0  ;;  %v2483_v48 = vld [vmem:[%s3257_s8] ss:$0 sm:$0xff] }
 0xa65   : > { %v1582_v55 = vmax.f32 %v1580_v53, 0.0  ;;  %v1601_v56 = vadd.f32 %v2457_v51, %v1591_v52 }
 0xa67   : > { %v1592_v57 = vmul.f32 %v2455_v46, %v1582_v55  ;;  %1605 = vrot.lane.b32.xlu0 %v1601_v56, %s2792_s18 }
 0xa69   : > { %v1602_v58 = vadd.f32 %v2457_v51, %v1592_v57  ;;  %v1910_v51 = vsel %vm594_vm3, %v2468_v49, 0 }
 0xa6b   : > { %1607 = vrot.lane.b32.xlu1 %v1602_v58, %s2792_s18  ;;  %v2472_v58 = vld [vmem:[%s3253_s4 + $0x50] sm:$0xf] }
 0xa6c   : > { %v1962_v2 = vsel %vm594_vm3, %v2472_v58, 0 }
 0xad9   : > { %v1606_v59 = vpop.permute.xlu0 %1605 }
 0xada   : > { %1612 = vst.msk [vmem:[#allocation3] sm:$0xff] %vm1611_vm7, %v1606_v59 }
 0xadd   : > { %v1608_v60 = vpop.permute.xlu1 %1607 }
 0xade   : > { %1613 = vst.msk [vmem:[#allocation3 + $0x8] sm:$0xff] %vm1611_vm7, %v1608_v60 }
 0xae1   : > { %v1614_v61 = vld [vmem:[#allocation3] sm:$0xff] }
 0xae2   : > { %1618 = vrot.lane.b32.xlu0 %v1614_v61, %s2785_s15 }
 0xae5   : > { %v1615_v62 = vld [vmem:[#allocation3 + $0x8] sm:$0xff] }
 0xae6   : > { %1620 = vrot.lane.b32.xlu1 %v1615_v62, %s2785_s15 }
 0xb54   : > { %v1619_v4 = vpop.permute.xlu0 %1618 }
 0xb55   : > { %v1624_v5 = vadd.f32 %v1619_v4, %v1614_v61 }
 0xb57   : > { %1628 = vrot.lane.b32.xlu0 %v1624_v5, %s2793_s25  ;;  %v2767_v5 = vld [vmem:[%s3256_s7 + $0x18] sm:$0xff]  }
 0xb58   : > { %v1621_v6 = vpop.permute.xlu1 %1620 }
 0xb59   : > { %v1625_v7 = vadd.f32 %v1621_v6, %v1615_v62 }
 0xb5b   : > { %1630 = vrot.lane.b32.xlu1 %v1625_v7, %s2793_s25 }
 0xbc9   : > { %v1629_v8 = vpop.permute.xlu0 %1628 }
 0xbca   : > { %1634 = vst.msk [vmem:[#allocation2 + $0x8] sm:$0xff] %vm575_vm2, %v1629_v8 }
 0xbcd   : > { %v1631_v9 = vpop.permute.xlu1 %1630 }
 0xbce   : > { %1635 = vst.msk [vmem:[#allocation2 + $0x10] sm:$0xff] %vm575_vm2, %v1631_v9 }
 0xbd1   : > { %v1641_v11 = vld [vmem:[#allocation2 + $0x8] sm:$0xff] }
 0xbd2   : > { %v1636_v13 = vld [vmem:[#allocation2 + $0x4] sm:$0xff] }
 0xbd5   : > { %v1642_v12 = vld [vmem:[#allocation2 + $0x10] sm:$0xff] }
 0xbd6   : > { %v1637_v14 = vld [vmem:[#allocation2 + $0xc] sm:$0xff]  ;;  %v1643_v15 = vpack.c.bf16 %v1642_v12, %v1641_v11  ;;  %v1741_v18 = vld [vmem:[#allocation2 + $0x14] sm:$0xff] }
 0xbd7   : > { %v1638_v16 = vpack.c.bf16 %v1637_v14, %v1636_v13  ;;  %v1742_v19 = vpack.c.bf16 %v1741_v18, %v1637_v14  ;;  %v2768_v12 = vld [vmem:[%s3256_s7 + $0x10] sm:$0xff]  }
 0xbd8   : > { %2669 = vmatmul.mubr.msk.bf16.vlgmr.msra.gmra.mxu0 %vm575_vm2, %v1643_v15 }
 0xbd9   : > { %2675 = vmatmul.mubr.msk.bf16.vlgmr.msra.gmra.mxu1 %vm575_vm2, %v1638_v16  ;;  %2679 = vmatpush3.bf16.msra.mxu0 %v1749_v17  ;;  %v2769_v17 = vld [vmem:[%s3256_s7 + $0x8] sm:$0xff]  }
 0xbda   : > { %2680 = vmatprep.mubr.msk.bf16.mxu0 %vm2784_vm0, %v2783_v1  ;;  %2690 = vmatprep.subr.bf16.mxu0 %v2783_v1 }
 0xbdb   : > { %2686 = vmatprep.mubr.msk.bf16.mxu1 %vm2784_vm0, %v2783_v1  ;;  %2685 = vmatpush3.bf16.msra.mxu1 %v1863_v50 }
 0xbdc   : > { %2696 = vmatprep.subr.bf16.mxu1 %v2783_v1 }
 0xbe0   : > { %2681 = vmatmul.mubr.msk.bf16.vlgmr.msra.gmra.mxu0 %vm575_vm2, %v1742_v19  ;;  %v2475_v19 = vld [vmem:[%s3254_s5 + $0x6] ss:$0 sm:$0xff] }
 0xbe1   : > { %2692 = vmatprep.mubr.msk.bf16.mxu0 %vm2784_vm0, %v2783_v1  ;;  %2691 = vmatpush3.bf16.msra.mxu0 %v1910_v51 }
 0xbe2   : > { %2702 = vmatprep.subr.bf16.mxu0 %v2783_v1 }
 0xc98   : > { %v1686_v20 = vpop.f32.mrf.mxu0 }
 0xc99   : > { %v1733_v21 = vpop.f32.mrf.mxu1 }
 0xc9a   : > { %v2670_v22 = vpop.f32.mrf.mxu0  ;;  %v1734_v28 = vadd.f32 %v1733_v21, %v1686_v20  ;;  %v2770_v21 = vld [vmem:[%s3256_s7] sm:$0xff]  }
 0xc9b   : > { %v2676_v23 = vpop.f32.mrf.mxu1 }
 0xc9c   : > { %v1689_v24 = vpop.f32.mrf.mxu0 }
 0xc9d   : > { %v1736_v25 = vpop.f32.mrf.mxu1 }
 0xc9e   : > { %v2671_v26 = vpop.f32.mrf.mxu0  ;;  %v1737_v33 = vadd.f32 %v1736_v25, %v1689_v24  ;;  %v2477_v25 = vld [vmem:[%s3255_s6 + $0x6] ss:$0 sm:$0xff] }
 0xc9f   : > { %v2677_v27 = vpop.f32.mrf.mxu1 }
 0xca0   : > { %v1785_v29 = vpop.f32.mrf.mxu0 }
 0xca1   : > { %v1792_v30 = vadd.f32 %v1785_v29, %v1734_v28 }
 0xca2   : > { %v2682_v32 = vpop.f32.mrf.mxu0 }
 0xca3   : > { %v1794_v34 = vmax.f32 %v1792_v30, 0.0 }
 0xca4   : > { %v1788_v35 = vpop.f32.mrf.mxu0 }
 0xca5   : > { %v1804_v37 = vmul.f32 %v2465_v31, %v1794_v34  ;;  %v1793_v38 = vadd.f32 %v1788_v35, %v1737_v33 }
 0xca6   : > { %v2683_v39 = vpop.f32.mrf.mxu0 }
 0xca7   : > { %v1795_v40 = vmax.f32 %v1793_v38, 0.0  ;;  %v1814_v41 = vadd.f32 %v2467_v36, %v1804_v37  ;;  %v2157_v38 = vld [vmem:[%s3259_s10 + $0x38] sm:$0xff]  ;;  %v2156_v39 = vld [vmem:[%s3259_s10 + $0x30] sm:$0xff] }
 0xca9   : > { %v1805_v42 = vmul.f32 %v2465_v31, %v1795_v40  ;;  %1818 = vrot.lane.b32.xlu0 %v1814_v41, %s2794_s19  ;;  %v2155_v40 = vld [vmem:[%s3259_s10 + $0x28] sm:$0xff]  ;;  %v2154_v41 = vld [vmem:[%s3259_s10 + $0x20] sm:$0xff] }
 0xcab   : > { %v1815_v43 = vadd.f32 %v2467_v36, %v1805_v42  ;;  %v2153_v42 = vld [vmem:[%s3259_s10 + $0x18] sm:$0xff] }
 0xcad   : > { %1820 = vrot.lane.b32.xlu1 %v1815_v43, %s2794_s19  ;;  %v2152_v43 = vld [vmem:[%s3259_s10 + $0x10] sm:$0xff] }
 0xd1b   : > { %v1819_v44 = vpop.permute.xlu0 %1818 }
 0xd1c   : > { %1825 = vst.msk [vmem:[#allocation3] sm:$0xff] %vm1824_vm8, %v1819_v44  ;;  %v2151_v44 = vld [vmem:[%s3259_s10 + $0x8] sm:$0xff] }
 0xd1f   : > { %v1821_v45 = vpop.permute.xlu1 %1820 }
 0xd20   : > { %1826 = vst.msk [vmem:[#allocation3 + $0x8] sm:$0xff] %vm1824_vm8, %v1821_v45  ;;  %v2150_v45 = vld [vmem:[%s3259_s10] sm:$0xff] }
 0xd23   : > { %v1827_v46 = vld [vmem:[#allocation3] sm:$0xff] }
 0xd24   : > { %1831 = vrot.lane.b32.xlu0 %v1827_v46, %s2785_s15 }
 0xd27   : > { %v1828_v47 = vld [vmem:[#allocation3 + $0x8] sm:$0xff] }
 0xd28   : > { %1833 = vrot.lane.b32.xlu1 %v1828_v47, %s2785_s15  ;;  %s2795_s15 = smov 80  }
 0xd96   : > { %v1832_v52 = vpop.permute.xlu0 %1831 }
 0xd97   : > { %v1837_v53 = vadd.f32 %v1832_v52, %v1827_v46  ;;  %v2234_v46 = vld [vmem:[%s3261_s12 + $0x8] sm:$0xff]  ;;  %v2484_v52 = vld [vmem:[%s3258_s9] ss:$0 sm:$0xff] }
 0xd99   : > { %1841 = vrot.lane.b32.xlu0 %v1837_v53, %s2795_s15 }
 0xd9a   : > { %v1834_v54 = vpop.permute.xlu1 %1833 }
 0xd9b   : > { %v1838_v55 = vadd.f32 %v1834_v54, %v1828_v47 }
 0xd9d   : > { %1843 = vrot.lane.b32.xlu1 %v1838_v55, %s2795_s15 }
 0xe0b   : > { %v1842_v56 = vpop.permute.xlu0 %1841 }
 0xe0c   : > { %1847 = vst.msk [vmem:[#allocation2 + $0x8] sm:$0xff] %vm575_vm2, %v1842_v56 }
 0xe0f   : > { %v1844_v57 = vpop.permute.xlu1 %1843 }
 0xe10   : > { %1848 = vst.msk [vmem:[#allocation2 + $0x10] sm:$0xff] %vm575_vm2, %v1844_v57 }
 0xe13   : > { %v1854_v59 = vld [vmem:[#allocation2 + $0x8] sm:$0xff] }
 0xe14   : > { %v1849_v61 = vld [vmem:[#allocation2 + $0x4] sm:$0xff] }
 0xe17   : > { %v1855_v60 = vld [vmem:[#allocation2 + $0x10] sm:$0xff] }
 0xe18   : > { %v1850_v62 = vld [vmem:[#allocation2 + $0xc] sm:$0xff]  ;;  %v1856_v63 = vpack.c.bf16 %v1855_v60, %v1854_v59  ;;  %v1954_v3 = vld [vmem:[#allocation2 + $0x14] sm:$0xff] }
 0xe19   : > { %v1851_v0 = vpack.c.bf16 %v1850_v62, %v1849_v61  ;;  %v1955_v4 = vpack.c.bf16 %v1954_v3, %v1850_v62 }
 0xe1a   : > { %2687 = vmatmul.mubr.msk.bf16.vlgmr.msra.gmra.mxu1 %vm575_vm2, %v1856_v63 }
 0xe1b   : > { %2693 = vmatmul.mubr.msk.bf16.vlgmr.msra.gmra.mxu0 %vm575_vm2, %v1851_v0  ;;  %2697 = vmatpush3.bf16.msra.mxu1 %v1962_v2 }
 0xe1c   : > { %2698 = vmatprep.mubr.msk.bf16.mxu1 %vm2784_vm0, %v2783_v1  ;;  %2710 = vmatprep.mubr.msk.bf16.mxu0 %vm2784_vm0, %v2783_v1 }
 0xe1d   : > { %2714 = vmatprep.subr.mxu1 %v2783_v1  ;;  %2703 = vmatpush3.bf16.msra.mxu0 %v2767_v5  ;;  %v2233_v5 = vld [vmem:[%s3261_s12] sm:$0xff] }
 0xe1e   : > { %2704 = vmatprep.subr.bf16.mxu0 %v2783_v1 }
 0xe21   : > { %2705 = vmatpush3.bf16.msra.mxu0 %v2768_v12 }
 0xe22   : > { %2699 = vmatmul.mubr.msk.bf16.vlgmr.msra.gmra.mxu1 %vm575_vm2, %v1955_v4  ;;  %2706 = vmatprep.subr.bf16.mxu0 %v2783_v1 }
 0xe23   : > { %2730 = vmatprep.mubr.msk.f32.mxu1 %vm2784_vm0, %v2783_v1  ;;  %2715 = vmatpush3.msra.mxu1 %v2157_v38 }
 0xe24   : > { %2716 = vmatprep.subr.mxu1 %v2783_v1 }
 0xe25   : > { %2707 = vmatpush3.bf16.msra.mxu0 %v2769_v17  ;;  %2717 = vmatpush3.msra.mxu1 %v2156_v39 }
 0xe26   : > { %2708 = vmatprep.subr.bf16.mxu0 %v2783_v1  ;;  %2718 = vmatprep.subr.mxu1 %v2783_v1 }
 0xe27   : > { %2719 = vmatpush3.msra.mxu1 %v2155_v40 }
 0xe28   : > { %2720 = vmatprep.subr.mxu1 %v2783_v1 }
 0xe29   : > { %2709 = vmatpush3.bf16.msra.mxu0 %v2770_v21  ;;  %2721 = vmatpush3.msra.mxu1 %v2154_v41  ;;  %v2497_v21 = vld [vmem:[%s2905_s24] sm:$0xff]  }
 0xe2a   : > { %2733 = vmatprep.subr.mxu0 %v2783_v1  ;;  %2722 = vmatprep.subr.mxu1 %v2783_v1 }
 0xe2b   : > { %2723 = vmatpush3.msra.mxu1 %v2153_v42 }
 0xe2c   : > { %2724 = vmatprep.subr.mxu1 %v2783_v1 }
 0xe2d   : > { %2725 = vmatpush3.msra.mxu1 %v2152_v43 }
 0xe2e   : > { %2726 = vmatprep.subr.mxu1 %v2783_v1 }
 0xe2f   : > { %2727 = vmatpush3.msra.mxu1 %v2151_v44 }
 0xe30   : > { %2728 = vmatprep.subr.mxu1 %v2783_v1 }
 0xe31   : > { %2729 = vmatpush3.msra.mxu1 %v2150_v45 }
 0xeda   : > { %v1899_v6 = vpop.f32.mrf.mxu1 }
 0xedb   : > { %v1946_v7 = vpop.f32.mrf.mxu0 }
 0xedc   : > { %v2688_v8 = vpop.f32.mrf.mxu1  ;;  %v1947_v15 = vadd.f32 %v1946_v7, %v1899_v6  ;;  %v2158_v6 = vld [vmem:[%s3260_s11] sm:$0x1] }
 0xedd   : > { %v2694_v9 = vpop.f32.mrf.mxu0 }
 0xede   : > { %v1902_v10 = vpop.f32.mrf.mxu1 }
 0xedf   : > { %v1949_v11 = vpop.f32.mrf.mxu0 }
 0xee0   : > { %v2689_v13 = vpop.f32.mrf.mxu1  ;;  %v1950_v22 = vadd.f32 %v1949_v11, %v1902_v10  ;;  %v2235_v11 = vld [vmem:[%s3262_s13] sm:$0x1] }
 0xee1   : > { %v2695_v14 = vpop.f32.mrf.mxu0 }
 0xee2   : > { %v1998_v16 = vpop.f32.mrf.mxu1 }
 0xee3   : > { %v2005_v18 = vadd.f32 %v1998_v16, %v1947_v15 }
 0xee4   : > { %v2700_v20 = vpop.f32.mrf.mxu1 }
 0xee5   : > { %v2007_v23 = vmax.f32 %v2005_v18, 0.0  ;;  %v2320_v18 = vlaneseq }
 0xee6   : > { %v2001_v24 = vpop.f32.mrf.mxu1 }
 0xee7   : > { %v2017_v26 = vmul.f32 %v2475_v19, %v2007_v23  ;;  %v2006_v27 = vadd.f32 %v2001_v24, %v1950_v22  ;;  %v2498_v23 = vunpack.c.l.bf16 %v2497_v21  ;;  %v2499_v24 = vunpack.c.h.bf16 %v2497_v21 }
 0xee8   : > { %v2701_v28 = vpop.f32.mrf.mxu1 }
 0xee9   : > { %v2008_v29 = vmax.f32 %v2006_v27, 0.0  ;;  %v2027_v30 = vadd.f32 %v2477_v25, %v2017_v26 }
 0xeeb   : > { %v2018_v31 = vmul.f32 %v2475_v19, %v2008_v29  ;;  %2031 = vrot.lane.b32.xlu0 %v2027_v30, %s2796_s28  ;;  %v2321_v19 = vshrl.u32 %v2320_v18, 7 }
 0xeed   : > { %v2028_v32 = vadd.f32 %v2477_v25, %v2018_v31  ;;  %v2322_v20 = vsub.s32 0, %v2321_v19 }
 0xeef   : > { %2033 = vrot.lane.b32.xlu1 %v2028_v32, %s2796_s28 }
 0xf5d   : > { %v2032_v33 = vpop.permute.xlu0 %2031 }
 0xf5e   : > { %2038 = vst.msk [vmem:[#allocation3] sm:$0xff] %vm2037_vm9, %v2032_v33 }
 0xf61   : > { %v2034_v34 = vpop.permute.xlu1 %2033 }
 0xf62   : > { %2039 = vst.msk [vmem:[#allocation3 + $0x8] sm:$0xff] %vm2037_vm9, %v2034_v34 }
 0xf65   : > { %v2040_v35 = vld [vmem:[#allocation3] sm:$0xff] }
 0xf69   : > { %v2041_v36 = vld [vmem:[#allocation3 + $0x8] sm:$0xff] }
 0xf6a   : > { %v2042_v37 = vpack.c.bf16 %v2041_v36, %v2040_v35 }
 0xf6c   : > { %2711 = vmatmul.mubr.msk.bf16.vlgmr.msra.gmra.mxu0 %vm508_vm1, %v2042_v37 }
 0xf6d   : > { %2737 = vmatprep.mubr.msk.f32.mxu0 %vm2784_vm0, %v2783_v1  ;;  %2734 = vmatpush3.msra.mxu0 %v2234_v46 }
 0xf6e   : > { %2735 = vmatprep.subr.mxu0 %v2783_v1 }
 0xf6f   : > { %2736 = vmatpush3.msra.mxu0 %v2233_v5 }
0x102c   : > { %v2112_v47 = vpop.f32.mrf.mxu0 }
0x102d   : > { %v2119_v49 = vmax.f32 %v2112_v47, 0.0 }
0x102e   : > { %v2712_v50 = vpop.f32.mrf.mxu0 }
0x102f   : > { %v2128_v51 = vmul.f32 %v2483_v48, %v2119_v49 }
0x1030   : > { %v2115_v53 = vpop.f32.mrf.mxu0 }
0x1031   : > { %v2120_v54 = vmax.f32 %v2115_v53, 0.0  ;;  %v2137_v56 = vadd.f32 %v2484_v52, %v2128_v51 }
0x1032   : > { %v2713_v55 = vpop.f32.mrf.mxu0 }
0x1033   : > { %v2129_v57 = vmul.f32 %v2483_v48, %v2120_v54  ;;  %v2139_v1 = vsel %vm508_vm1, %v2137_v56, 0.0 }
0x1035   : > { %v2138_v58 = vadd.f32 %v2484_v52, %v2129_v57 }
0x1037   : > { %v2140_v59 = vsel %vm508_vm1, %v2138_v58, 0.0 }
0x1038   : > { %v2141_v60 = vadd.f32 %v2140_v59, %v2139_v1 }
0x103a   : > { %v2142_v61 = vrot.slane %v2141_v60, 4 }
0x103c   : > { %v2143_v62 = vadd.f32 %v2142_v61, %v2141_v60 }
0x103e   : > { %v2144_v63 = vrot.slane %v2143_v62, 2 }
0x1040   : > { %v2145_v0 = vadd.f32 %v2144_v63, %v2143_v62 }
0x1042   : > { %v2146_v2 = vrot.slane %v2145_v0, 1 }
0x1044   : > { %v2147_v3 = vadd.f32 %v2146_v2, %v2145_v0 }
0x1046   : > { %v2149_v4 = vmul.f32 0.0625, %v2147_v3 }
0x1048   : > { %2731 = vmatmul.mubr.msk.f32.vlgmr.msra.gmra.mxu1 %vm508_vm1, %v2149_v4 }
0x1108   : > { %v2228_v7 = vpop.f32.mrf.mxu1 }
0x1109   : > { %v2229_v8 = vadd.f32 %v2228_v7, %v2158_v6 }
0x110a   : > { %v2732_v9 = vpop.f32.mrf.mxu1 }
0x110b   : > { %v2232_v10 = vmax.f32 %v2229_v8, 0.0 }
0x110d   : > { %2738 = vmatmul.mubr.msk.f32.vlgmr.msra.gmra.mxu0 %vm2236_vm10, %v2232_v10 }
0x11cd   : > { %v2306_v12 = vpop.f32.mrf.mxu0 }
0x11ce   : > { %v2307_v13 = vadd.f32 %v2306_v12, %v2235_v11 }
0x11cf   : > { %v2739_v14 = vpop.f32.mrf.mxu0 }
0x11d0   : > { %v2487_v15 = vmul.f32 -1.442695, %v2307_v13 }
0x11d2   : > { %2771 = vpow2.f32 %v2487_v15 }
0x11df   : > { %v2772_v16 = vpop.eup %2771 }
0x11e0   : > { %v2313_v17 = vadd.f32 1.0, %v2772_v16 }
0x11e2   : > { %2773 = vrcp.f32 %v2313_v17 }
0x11ef   : > { %v2774_v22 = vpop.eup %2773 }
0x11f0   : > { %v2323_v25 = vrot.slane %v2774_v22, %v2322_v20 }
0x11f2   : > { %v2324_v26 = vmul.f32 %v2323_v25, %v2137_v56  ;;  %v2325_v27 = vmul.f32 %v2323_v25, %v2138_v58 }
0x11f4   : > { %v2326_v28 = vadd.f32 %v2498_v23, %v2324_v26  ;;  %v2327_v29 = vadd.f32 %v2499_v24, %v2325_v27 }
0x11f6   : > { %v2494_v30 = vpack.c.bf16 %v2326_v28, %v2326_v28  ;;  %v2495_v31 = vpack.c.bf16 %v2327_v29, %v2327_v29 }
0x11f8   : > { %2337 = vst.msk [vmem:[%s467_s23] sm:$0xf] %vm2336_vm11, %v2494_v30  ;;  %2338 = vst.msk [vmem:[%s467_s23 + $0x4] sm:$0xf] %vm2336_vm11, %v2495_v31 }
0x11f9 PF: > { %s24_s29 = sadd.s32 1, %s2781_s29  }
0x11fa   : > { %p21_p4 = scmp.ge.s32.totalorder %s24_s29, 4  }
0x11fc   :  { %23 = sbr.rel (!%p21_p4) target bundleno = 1 (0x1), region = 138 }

// kernel: ecapa_forward.9
= control target key start
LH: loop header
LB: loop body
LE: loop exit
PB: predicated region body
PF: predicated region fallthrough
CT: control target
= control target key end

     0   :  { %s2273_s30 = smov 0   ;;  %s2275_s10 = smov 0   ;;  %s2967_s0 = inlined_call_operand.vmem [shape: bf16[2,16,64], index: 0, kind: input, shape index: {}]   ;;  %s2968_s1 = inlined_call_operand.vmem [shape: bf16[2,16,64], index: 1, kind: input, shape index: {}]   ;;  %s2969_s2 = inlined_call_operand.vmem [shape: bf16[2,16,64], index: 2, kind: input, shape index: {}]   ;;  %s2970_s3 = inlined_call_operand.vmem [shape: bf16[192,64], index: 3, kind: input, shape index: {}]   ;;  %s2971_s4 = inlined_call_operand.vmem [shape: bf16[192,64], index: 4, kind: input, shape index: {}]   ;;  %s2972_s5 = inlined_call_operand.vmem [shape: bf16[192,64], index: 5, kind: input, shape index: {}]   ;;  %s2973_s6 = inlined_call_operand.vmem [shape: f32[192,1], index: 6, kind: input, shape index: {}]   ;;  %s2974_s7 = inlined_call_operand.vmem [shape: f32[192,1], index: 7, kind: input, shape index: {}]   ;;  %s2975_s8 = inlined_call_operand.vmem [shape: f32[192,1], index: 8, kind: input, shape index: {}]   ;;  %s2976_s9 = inlined_call_operand.vmem [shape: f32[2,192,16], index: 9, kind: output, shape index: {}]  }
   0x1   :  { %s2277_s11 = smov 0  }
   0x2 LB: > { %s31_s12 = sadd.s32 1, %s2216_s10  ;;  %p1920_p0 = scmp.ge.s32.totalorder %s2220_s11, 1  ;;  %s2220_s11 = sphi %s2277_s11, %s19_s11   ;;  %s2216_s10 = sphi %s2275_s10, %s3044_s10   ;;  %s2212_s30 = sphi %s2273_s30, %s3043_s30  }
   0x3   : > { %p33_p1 = scmp.ge.s32.totalorder %s31_s12, 2  ;;  %p342_p2 = scmp.lt.s32.totalorder %s2220_s11, 3 }
   0x5   : > { %s3046_s12 = smov (%p33_p1, %s31_s12), 0  ;;  %p343_p3 = pnand %p1920_p0, %p342_p2 }
   0x7   : > { %346 = sbr.rel (%p343_p3) target bundleno = 305 (0x131), region = 56 }
   0xc   : > { %v1246_v0 = vld [vmem:[%s2973_s6 + $0x10] sm:$0xff]  ;;  %v1244_v1 = vld [vmem:[%s2973_s6] sm:$0xff]  ;;  %p404_p4 = scmp.lt.s32.totalorder %s2212_s30, 1  ;;  %v2222_v2 = vmov 0   ;;  %v1247_v3 = vld [vmem:[%s2973_s6 + $0x18] sm:$0xff]  ;;  %vm559_vm0 = vcmask 523264  }
   0xd   : > { %2158 = vset.pattern.permute.xlu1 %v2222_v2  ;;  %2157 = vset.pattern.permute.xlu0 %v2222_v2  ;;  %v1245_v4 = vld [vmem:[%s2973_s6 + $0x8] sm:$0xff]  ;;  %v2160_v5 = vld [vmem:[%s2971_s4] sm:$0xff]   ;;  %v2161_v6 = vld [vmem:[%s2971_s4 + $0x30] sm:$0xff]   ;;  %vm1772_vm1 = vcmask 130048  }
   0xe   : > { %1280 = vperm.xlu1 %2158, %v1246_v0   ;;  %1270 = vperm.xlu0 %2157, %v1244_v1   ;;  %s3048_s30 = smov (!%p404_p4, %s2212_s30), 1  ;;  %v1249_v7 = vld [vmem:[%s2973_s6 + $0x28] sm:$0xff]  ;;  %v1248_v9 = vld [vmem:[%s2973_s6 + $0x20] sm:$0xff]  ;;  %v1251_v12 = vld [vmem:[%s2973_s6 + $0x38] sm:$0xff] }
   0xf   : > { %s2005_s23 = sshll.u32 %s3048_s30, 3  ;;  %2049 = vmatprep.mubr.msk.bf16.mxu0 %vm559_vm0, %v2160_v5  ;;  %2061 = vmatprep.mubr.msk.bf16.mxu1 %vm559_vm0, %v2161_v6  ;;  %v1250_v13 = vld [vmem:[%s2973_s6 + $0x30] sm:$0xff]  ;;  %v2162_v15 = vld [vmem:[%s2971_s4 + $0x8] sm:$0xff]   ;;  %v2163_v16 = vld [vmem:[%s2971_s4 + $0x38] sm:$0xff]   ;;  %s2131_s18 = smul.u32 192, %s3048_s30 }
  0x10   : > { %s421_s28 = scalar_lea.vmem %s2968_s1, %s2005_s23  ;;  %s411_s16 = scalar_lea.vmem %s2967_s0, %s2005_s23  ;;  %v1253_v17 = vld [vmem:[%s2973_s6 + $0x48] sm:$0xff]  ;;  %v1252_v20 = vld [vmem:[%s2973_s6 + $0x40] sm:$0xff]  ;;  %v2166_v21 = vld [vmem:[%s2971_s4 + $0x10] sm:$0xff]  }
  0x11   : > { %v2159_v8 = vld [vmem:[%s421_s28] sm:$0xff]   ;;  %s431_s21 = scalar_lea.vmem %s2969_s2, %s2005_s23  ;;  %v1255_v23 = vld [vmem:[%s2973_s6 + $0x58] sm:$0xff]  ;;  %v1254_v24 = vld [vmem:[%s2973_s6 + $0x50] sm:$0xff]  ;;  %s2822_s20 = scalar_lea.vmem %s2976_s9, %s2131_s18 }
  0x12   : > { %1285 = vperm.xlu1 %2158, %v1247_v3   ;;  %1275 = vperm.xlu0 %2157, %v1245_v4   ;;  %v597_v10 = vsel %vm559_vm0, %v2159_v8, 0  ;;  %v2164_v11 = vld [vmem:[%s411_s16] sm:$0xff]   ;;  %v2168_v25 = vld [vmem:[%s2971_s4 + $0x18] sm:$0xff]   ;;  %v2169_v26 = vld [vmem:[%s2971_s4 + $0x48] sm:$0xff]  }
  0x13   : > { %2127 = vmatprep.subr.msk.bf16.mxu0 %vm559_vm0, %v2159_v8  ;;  %2128 = vmatprep.subr.msk.bf16.mxu1 %vm559_vm0, %v2159_v8  ;;  %v2165_v14 = vld [vmem:[%s431_s21] sm:$0xff]   ;;  %v830_v18 = vsel %vm559_vm0, %v2164_v11, 0  ;;  %v2171_v28 = vld [vmem:[%s2971_s4 + $0x50] sm:$0xff]   ;;  %v1257_v29 = vld [vmem:[%s2973_s6 + $0x68] sm:$0xff] }
  0x14   : > { %2048 = vmatpush3.bf16.xpose.msra.mxu0 %v597_v10  ;;  %2126 = vmatpush3.bf16.xpose.msra.mxu1 %v597_v10  ;;  %v1089_v19 = vsel %vm559_vm0, %v2165_v14, 0  ;;  %v2167_v22 = vld [vmem:[%s2971_s4 + $0x40] sm:$0xff]   ;;  %v1259_v31 = vld [vmem:[%s2973_s6 + $0x78] sm:$0xff]  ;;  %v1258_v32 = vld [vmem:[%s2973_s6 + $0x70] sm:$0xff] }
  0x15   : > { %2129 = vmatprep.subr.msk.bf16.mxu1 %vm559_vm0, %v2164_v11  ;;  %2130 = vmatprep.subr.msk.bf16.mxu0 %vm559_vm0, %v2165_v14  ;;  %v2170_v27 = vld [vmem:[%s2971_s4 + $0x20] sm:$0xff]   ;;  %v2172_v33 = vld [vmem:[%s2971_s4 + $0x28] sm:$0xff]   ;;  %v2173_v34 = vld [vmem:[%s2971_s4 + $0x58] sm:$0xff]  }
  0x16   : > { %1295 = vperm.xlu1 %2158, %v1249_v7   ;;  %1290 = vperm.xlu0 %2157, %v1248_v9   ;;  %v1256_v30 = vld [vmem:[%s2973_s6 + $0x60] sm:$0xff]  ;;  %v1261_v37 = vld [vmem:[%s2973_s6 + $0x88] sm:$0xff]  ;;  %v1263_v39 = vld [vmem:[%s2973_s6 + $0x98] sm:$0xff] }
  0x17   : > { %v2174_v35 = vld [vmem:[%s2970_s3] sm:$0xff]   ;;  %v1262_v40 = vld [vmem:[%s2973_s6 + $0x90] sm:$0xff]  ;;  %v2176_v41 = vld [vmem:[%s2970_s3 + $0x8] sm:$0xff]  }
  0x18   : > { %v2175_v36 = vld [vmem:[%s2972_s5] sm:$0xff]   ;;  %v2177_v42 = vld [vmem:[%s2972_s5 + $0x8] sm:$0xff]   ;;  %v2178_v43 = vld [vmem:[%s2970_s3 + $0x10] sm:$0xff]  }
  0x19   : > { %v1260_v38 = vld [vmem:[%s2973_s6 + $0x80] sm:$0xff]  ;;  %v2179_v44 = vld [vmem:[%s2972_s5 + $0x10] sm:$0xff]   ;;  %v1265_v45 = vld [vmem:[%s2973_s6 + $0xa8] sm:$0xff] }
  0x1a   : > { %1305 = vperm.xlu1 %2158, %v1251_v12   ;;  %1300 = vperm.xlu0 %2157, %v1250_v13   ;;  %v1264_v46 = vld [vmem:[%s2973_s6 + $0xa0] sm:$0xff]  ;;  %v1267_v47 = vld [vmem:[%s2973_s6 + $0xb8] sm:$0xff]  ;;  %v1266_v48 = vld [vmem:[%s2973_s6 + $0xb0] sm:$0xff] }
  0x1b   : > { %2050 = vmatmul.mubr.msk.bf16.vlgmr.msra.gmra.mxu0 %vm559_vm0, %v2162_v15  ;;  %2062 = vmatmul.mubr.msk.bf16.vlgmr.msra.gmra.mxu1 %vm559_vm0, %v2163_v16  ;;  %v2180_v49 = vld [vmem:[%s2970_s3 + $0x18] sm:$0xff]   ;;  %v2182_v51 = vld [vmem:[%s2970_s3 + $0x20] sm:$0xff]   ;;  %v1437_v53 = vld [vmem:[%s2974_s7 + $0x8] sm:$0xff] }
  0x1c   : > { %2074 = vmatpush3.bf16.xpose.msra.mxu1 %v830_v18  ;;  %2100 = vmatpush3.bf16.xpose.msra.mxu0 %v1089_v19  ;;  %v2181_v50 = vld [vmem:[%s2972_s5 + $0x18] sm:$0xff]   ;;  %v2183_v52 = vld [vmem:[%s2972_s5 + $0x20] sm:$0xff]   ;;  %v1438_v56 = vld [vmem:[%s2974_s7 + $0x10] sm:$0xff] }
  0x1d   : > { %2053 = vmatprep.mubr.msk.bf16.mxu0 %vm559_vm0, %v2166_v21  ;;  %2065 = vmatprep.mubr.msk.bf16.mxu1 %vm559_vm0, %v2167_v22  ;;  %v1436_v54 = vld [vmem:[%s2974_s7] sm:$0xff]  ;;  %v1439_v55 = vld [vmem:[%s2974_s7 + $0x18] sm:$0xff]  ;;  %v2184_v57 = vld [vmem:[%s2970_s3 + $0x28] sm:$0xff]  }
  0x1e   : > { %1315 = vperm.xlu1 %2158, %v1253_v17   ;;  %1310 = vperm.xlu0 %2157, %v1252_v20   ;;  %v2185_v58 = vld [vmem:[%s2972_s5 + $0x28] sm:$0xff]   ;;  %v2186_v59 = vld [vmem:[%s2970_s3 + $0x30] sm:$0xff]   ;;  %v1440_v62 = vld [vmem:[%s2974_s7 + $0x20] sm:$0xff] }
  0x1f   : > { %v2187_v60 = vld [vmem:[%s2972_s5 + $0x30] sm:$0xff]   ;;  %v1441_v61 = vld [vmem:[%s2974_s7 + $0x28] sm:$0xff]  ;;  %v1443_v63 = vld [vmem:[%s2974_s7 + $0x38] sm:$0xff] }
  0x20   : > { %v1442_v0 = vld [vmem:[%s2974_s7 + $0x30] sm:$0xff]  ;;  %v2188_v1 = vld [vmem:[%s2970_s3 + $0x38] sm:$0xff]   ;;  %v2190_v3 = vld [vmem:[%s2970_s3 + $0x40] sm:$0xff]  }
  0x21   : > { %v2189_v2 = vld [vmem:[%s2972_s5 + $0x38] sm:$0xff]   ;;  %v2191_v4 = vld [vmem:[%s2972_s5 + $0x40] sm:$0xff]   ;;  %v1445_v5 = vld [vmem:[%s2974_s7 + $0x48] sm:$0xff] }
  0x22   : > { %1325 = vperm.xlu1 %2158, %v1255_v23   ;;  %1320 = vperm.xlu0 %2157, %v1254_v24   ;;  %v1444_v6 = vld [vmem:[%s2974_s7 + $0x40] sm:$0xff]  ;;  %v1447_v7 = vld [vmem:[%s2974_s7 + $0x58] sm:$0xff]  ;;  %v1446_v8 = vld [vmem:[%s2974_s7 + $0x50] sm:$0xff] }
  0x23   : > { %2054 = vmatmul.mubr.msk.bf16.gmra.mxu0 %vm559_vm0, %v2168_v25  ;;  %2066 = vmatmul.mubr.msk.bf16.gmra.mxu1 %vm559_vm0, %v2169_v26  ;;  %v2192_v9 = vld [vmem:[%s2970_s3 + $0x48] sm:$0xff]   ;;  %v2194_v11 = vld [vmem:[%s2970_s3 + $0x50] sm:$0xff]   ;;  %v1448_v14 = vld [vmem:[%s2974_s7 + $0x60] sm:$0xff] }
  0x24   : > { %2057 = vmatprep.mubr.msk.bf16.mxu0 %vm559_vm0, %v2170_v27  ;;  %2069 = vmatprep.mubr.msk.bf16.mxu1 %vm559_vm0, %v2171_v28  ;;  %v2193_v10 = vld [vmem:[%s2972_s5 + $0x48] sm:$0xff]   ;;  %v2195_v12 = vld [vmem:[%s2972_s5 + $0x50] sm:$0xff]   ;;  %v1451_v15 = vld [vmem:[%s2974_s7 + $0x78] sm:$0xff] }
  0x25   : > { %v1449_v13 = vld [vmem:[%s2974_s7 + $0x68] sm:$0xff]  ;;  %v1450_v16 = vld [vmem:[%s2974_s7 + $0x70] sm:$0xff]  ;;  %v2196_v17 = vld [vmem:[%s2970_s3 + $0x58] sm:$0xff]  }
  0x26   : > { %1335 = vperm.xlu1 %2158, %v1257_v29   ;;  %1330 = vperm.xlu0 %2157, %v1256_v30   ;;  %v2197_v18 = vld [vmem:[%s2972_s5 + $0x58] sm:$0xff]   ;;  %v1453_v19 = vld [vmem:[%s2974_s7 + $0x88] sm:$0xff]  ;;  %v1452_v20 = vld [vmem:[%s2974_s7 + $0x80] sm:$0xff] }
  0x27   : > { %v1455_v21 = vld [vmem:[%s2974_s7 + $0x98] sm:$0xff]  ;;  %v1454_v22 = vld [vmem:[%s2974_s7 + $0x90] sm:$0xff]  ;;  %v1457_v23 = vld [vmem:[%s2974_s7 + $0xa8] sm:$0xff] }
  0x28   : > { %v1456_v24 = vld [vmem:[%s2974_s7 + $0xa0] sm:$0xff]  ;;  %v1459_v25 = vld [vmem:[%s2974_s7 + $0xb8] sm:$0xff]  ;;  %v1458_v26 = vld [vmem:[%s2974_s7 + $0xb0] sm:$0xff] }
  0x29   : > { %v1605_v27 = vld [vmem:[%s2975_s8 + $0x8] sm:$0xff]  ;;  %v1604_v28 = vld [vmem:[%s2975_s8] sm:$0xff]  ;;  %v1607_v29 = vld [vmem:[%s2975_s8 + $0x18] sm:$0xff] }
  0x2a   : > { %1345 = vperm.xlu1 %2158, %v1259_v31   ;;  %1340 = vperm.xlu0 %2157, %v1258_v32   ;;  %v1606_v30 = vld [vmem:[%s2975_s8 + $0x10] sm:$0xff]  ;;  %v1609_v31 = vld [vmem:[%s2975_s8 + $0x28] sm:$0xff]  ;;  %v1608_v32 = vld [vmem:[%s2975_s8 + $0x20] sm:$0xff] }
  0x2b   : > { %2058 = vmatmul.mubr.msk.bf16.gmra.mxu0 %vm559_vm0, %v2172_v33  ;;  %2070 = vmatmul.mubr.msk.bf16.gmra.mxu1 %vm559_vm0, %v2173_v34  ;;  %v1611_v33 = vld [vmem:[%s2975_s8 + $0x38] sm:$0xff]  ;;  %v1610_v34 = vld [vmem:[%s2975_s8 + $0x30] sm:$0xff] }
  0x2c   : > { %2075 = vmatprep.mubr.msk.bf16.mxu1 %vm559_vm0, %v2174_v35  ;;  %2101 = vmatprep.mubr.msk.bf16.mxu0 %vm559_vm0, %v2175_v36  ;;  %v1613_v35 = vld [vmem:[%s2975_s8 + $0x48] sm:$0xff]  ;;  %v1612_v36 = vld [vmem:[%s2975_s8 + $0x40] sm:$0xff] }
  0x2e   : > { %1355 = vperm.xlu1 %2158, %v1261_v37   ;;  %1350 = vperm.xlu0 %2157, %v1260_v38   ;;  %v1615_v37 = vld [vmem:[%s2975_s8 + $0x58] sm:$0xff]  ;;  %v1614_v38 = vld [vmem:[%s2975_s8 + $0x50] sm:$0xff] }
  0x32   : > { %1365 = vperm.xlu1 %2158, %v1263_v39   ;;  %1360 = vperm.xlu0 %2157, %v1262_v40   ;;  %v1617_v39 = vld [vmem:[%s2975_s8 + $0x68] sm:$0xff]  ;;  %v1616_v40 = vld [vmem:[%s2975_s8 + $0x60] sm:$0xff] }
  0x33   : > { %2076 = vmatmul.mubr.msk.bf16.vlgmr.msra.gmra.mxu1 %vm559_vm0, %v2176_v41  ;;  %2102 = vmatmul.mubr.msk.bf16.vlgmr.msra.gmra.mxu0 %vm559_vm0, %v2177_v42  ;;  %v1619_v41 = vld [vmem:[%s2975_s8 + $0x78] sm:$0xff]  ;;  %v1618_v42 = vld [vmem:[%s2975_s8 + $0x70] sm:$0xff] }
  0x34   : > { %2079 = vmatprep.mubr.msk.bf16.mxu1 %vm559_vm0, %v2178_v43  ;;  %2105 = vmatprep.mubr.msk.bf16.mxu0 %vm559_vm0, %v2179_v44 }
  0x36   : > { %1375 = vperm.xlu1 %2158, %v1265_v45   ;;  %1370 = vperm.xlu0 %2157, %v1264_v46   ;;  %v1621_v45 = vld [vmem:[%s2975_s8 + $0x88] sm:$0xff]  ;;  %v1620_v46 = vld [vmem:[%s2975_s8 + $0x80] sm:$0xff] }
  0x3a   : > { %1385 = vperm.xlu1 %2158, %v1267_v47   ;;  %1380 = vperm.xlu0 %2157, %v1266_v48  }
  0x3b   : > { %2080 = vmatmul.mubr.msk.bf16.gmra.mxu1 %vm559_vm0, %v2180_v49  ;;  %2106 = vmatmul.mubr.msk.bf16.gmra.mxu0 %vm559_vm0, %v2181_v50  ;;  %v1623_v49 = vld [vmem:[%s2975_s8 + $0x98] sm:$0xff]  ;;  %v1622_v50 = vld [vmem:[%s2975_s8 + $0x90] sm:$0xff] }
  0x3c   : > { %2083 = vmatprep.mubr.msk.bf16.mxu1 %vm559_vm0, %v2182_v51  ;;  %2109 = vmatprep.mubr.msk.bf16.mxu0 %vm559_vm0, %v2183_v52 }
  0x3e   : > { %1467 = vperm.xlu1 %2158, %v1437_v53   ;;  %1462 = vperm.xlu0 %2157, %v1436_v54   ;;  %v1625_v53 = vld [vmem:[%s2975_s8 + $0xa8] sm:$0xff]  ;;  %v1624_v54 = vld [vmem:[%s2975_s8 + $0xa0] sm:$0xff] }
  0x42   : > { %1477 = vperm.xlu1 %2158, %v1439_v55   ;;  %1472 = vperm.xlu0 %2157, %v1438_v56  }
  0x43   : > { %2084 = vmatmul.mubr.msk.bf16.gmra.mxu1 %vm559_vm0, %v2184_v57  ;;  %2110 = vmatmul.mubr.msk.bf16.gmra.mxu0 %vm559_vm0, %v2185_v58  ;;  %v1627_v57 = vld [vmem:[%s2975_s8 + $0xb8] sm:$0xff]  ;;  %v1626_v58 = vld [vmem:[%s2975_s8 + $0xb0] sm:$0xff] }
  0x44   : > { %2087 = vmatprep.mubr.msk.bf16.mxu1 %vm559_vm0, %v2186_v59  ;;  %2113 = vmatprep.mubr.msk.bf16.mxu0 %vm559_vm0, %v2187_v60 }
  0x46   : > { %1487 = vperm.xlu1 %2158, %v1441_v61   ;;  %1482 = vperm.xlu0 %2157, %v1440_v62  }
  0x4a   : > { %1497 = vperm.xlu1 %2158, %v1443_v63   ;;  %1492 = vperm.xlu0 %2157, %v1442_v0  }
  0x4b   : > { %2088 = vmatmul.mubr.msk.bf16.gmra.mxu1 %vm559_vm0, %v2188_v1  ;;  %2114 = vmatmul.mubr.msk.bf16.gmra.mxu0 %vm559_vm0, %v2189_v2 }
  0x4c   : > { %2091 = vmatprep.mubr.msk.bf16.mxu1 %vm559_vm0, %v2190_v3  ;;  %2117 = vmatprep.mubr.msk.bf16.mxu0 %vm559_vm0, %v2191_v4 }
  0x4e   : > { %1507 = vperm.xlu1 %2158, %v1445_v5   ;;  %1502 = vperm.xlu0 %2157, %v1444_v6  }
  0x52   : > { %1517 = vperm.xlu1 %2158, %v1447_v7   ;;  %1512 = vperm.xlu0 %2157, %v1446_v8  }
  0x53   : > { %2092 = vmatmul.mubr.msk.bf16.gmra.mxu1 %vm559_vm0, %v2192_v9  ;;  %2118 = vmatmul.mubr.msk.bf16.gmra.mxu0 %vm559_vm0, %v2193_v10 }
  0x54   : > { %2095 = vmatprep.mubr.msk.bf16.mxu1 %vm559_vm0, %v2194_v11  ;;  %2121 = vmatprep.mubr.msk.bf16.mxu0 %vm559_vm0, %v2195_v12 }
  0x56   : > { %1527 = vperm.xlu1 %2158, %v1449_v13   ;;  %1522 = vperm.xlu0 %2157, %v1448_v14  }
  0x5a   : > { %1537 = vperm.xlu1 %2158, %v1451_v15   ;;  %1532 = vperm.xlu0 %2157, %v1450_v16  }
  0x5b   : > { %2096 = vmatmul.mubr.msk.bf16.gmra.mxu1 %vm559_vm0, %v2196_v17  ;;  %2122 = vmatmul.mubr.msk.bf16.gmra.mxu0 %vm559_vm0, %v2197_v18 }
  0x5e   : > { %1547 = vperm.xlu1 %2158, %v1453_v19   ;;  %1542 = vperm.xlu0 %2157, %v1452_v20  }
  0x62   : > { %1557 = vperm.xlu1 %2158, %v1455_v21   ;;  %1552 = vperm.xlu0 %2157, %v1454_v22  }
  0x66   : > { %1567 = vperm.xlu1 %2158, %v1457_v23   ;;  %1562 = vperm.xlu0 %2157, %v1456_v24  }
  0x6a   : > { %1577 = vperm.xlu1 %2158, %v1459_v25   ;;  %1572 = vperm.xlu0 %2157, %v1458_v26  }
  0x6e   : > { %1635 = vperm.xlu1 %2158, %v1605_v27   ;;  %1630 = vperm.xlu0 %2157, %v1604_v28  }
  0x72   : > { %1645 = vperm.xlu1 %2158, %v1607_v29   ;;  %1640 = vperm.xlu0 %2157, %v1606_v30  }
  0x76   : > { %1655 = vperm.xlu1 %2158, %v1609_v31   ;;  %1650 = vperm.xlu0 %2157, %v1608_v32  }
  0x7a   : > { %1665 = vperm.xlu1 %2158, %v1611_v33   ;;  %1660 = vperm.xlu0 %2157, %v1610_v34  }
  0x7e   : > { %1675 = vperm.xlu1 %2158, %v1613_v35   ;;  %1670 = vperm.xlu0 %2157, %v1612_v36  }
  0x82   : > { %1685 = vperm.xlu1 %2158, %v1615_v37   ;;  %1680 = vperm.xlu0 %2157, %v1614_v38  }
  0x86   : > { %1695 = vperm.xlu1 %2158, %v1617_v39   ;;  %1690 = vperm.xlu0 %2157, %v1616_v40  }
  0x89   : > { %v2646_v43 = vpop.permute.xlu1 %1280  ;;  %v2648_v44 = vpop.permute.xlu0 %1270 }
  0x8a   : > { %1705 = vperm.xlu1 %2158, %v1619_v41   ;;  %1700 = vperm.xlu0 %2157, %v1618_v42  }
  0x8d   : > { %v2656_v47 = vpop.permute.xlu1 %1285  ;;  %v2658_v48 = vpop.permute.xlu0 %1275 }
  0x8e   : > { %1715 = vperm.xlu1 %2158, %v1621_v45   ;;  %1710 = vperm.xlu0 %2157, %v1620_v46  }
  0x91   : > { %v2666_v51 = vpop.permute.xlu1 %1295  ;;  %v2668_v52 = vpop.permute.xlu0 %1290 }
  0x92   : > { %1725 = vperm.xlu1 %2158, %v1623_v49   ;;  %1720 = vperm.xlu0 %2157, %v1622_v50  }
  0x95   : > { %v2676_v55 = vpop.permute.xlu1 %1305  ;;  %v2678_v56 = vpop.permute.xlu0 %1300 }
  0x96   : > { %1735 = vperm.xlu1 %2158, %v1625_v53   ;;  %1730 = vperm.xlu0 %2157, %v1624_v54  }
  0x99   : > { %v2686_v59 = vpop.permute.xlu1 %1315  ;;  %v2688_v60 = vpop.permute.xlu0 %1310 }
  0x9a   : > { %1745 = vperm.xlu1 %2158, %v1627_v57   ;;  %1740 = vperm.xlu0 %2157, %v1626_v58  }
  0x9d   : > { %v2690_v61 = vpop.permute.xlu1 %1325  ;;  %v2692_v62 = vpop.permute.xlu0 %1320 }
  0xa1   : > { %v2694_v63 = vpop.permute.xlu1 %1335  ;;  %v2696_v0 = vpop.permute.xlu0 %1330 }
  0xa2   : > { %2977 = vst [vmem:[#allocation2_spill] sm:$0xff] %v2694_v63  ;;  %2978 = vst [vmem:[#allocation3_spill] sm:$0xff] %v2696_v0 }
  0xa5   : > { %v2698_v1 = vpop.permute.xlu1 %1345  ;;  %v2700_v2 = vpop.permute.xlu0 %1340 }
  0xa6   : > { %2979 = vst [vmem:[#allocation4_spill] sm:$0xff] %v2698_v1 }
  0xa9   : > { %v2702_v3 = vpop.permute.xlu1 %1355  ;;  %v2704_v4 = vpop.permute.xlu0 %1350 }
  0xaa   : > { %2980 = vst [vmem:[#allocation5_spill] sm:$0xff] %v2702_v3  ;;  %2981 = vst [vmem:[#allocation6_spill] sm:$0xff] %v2704_v4 }
  0xad   : > { %v2706_v5 = vpop.permute.xlu1 %1365  ;;  %v2708_v6 = vpop.permute.xlu0 %1360 }
  0xae   : > { %2982 = vst [vmem:[#allocation7_spill] sm:$0xff] %v2706_v5  ;;  %2983 = vst [vmem:[#allocation8_spill] sm:$0xff] %v2708_v6 }
  0xb1   : > { %v2710_v7 = vpop.permute.xlu1 %1375  ;;  %v2712_v8 = vpop.permute.xlu0 %1370 }
  0xb2   : > { %2984 = vst [vmem:[#allocation9_spill] sm:$0xff] %v2710_v7  ;;  %2985 = vst [vmem:[#allocation10_spill] sm:$0xff] %v2712_v8 }
  0xb5   : > { %v2714_v9 = vpop.permute.xlu1 %1385  ;;  %v2716_v10 = vpop.permute.xlu0 %1380 }
  0xb6   : > { %2986 = vst [vmem:[#allocation11_spill] sm:$0xff] %v2714_v9  ;;  %2987 = vst [vmem:[#allocation12_spill] sm:$0xff] %v2716_v10 }
  0xb9   : > { %v2718_v11 = vpop.permute.xlu1 %1467  ;;  %v2720_v12 = vpop.permute.xlu0 %1462 }
  0xbd   : > { %v2722_v13 = vpop.permute.xlu1 %1477  ;;  %v2724_v14 = vpop.permute.xlu0 %1472 }
  0xc1   : > { %v2726_v15 = vpop.permute.xlu1 %1487  ;;  %v2728_v16 = vpop.permute.xlu0 %1482 }
  0xc5   : > { %v2730_v17 = vpop.permute.xlu1 %1497  ;;  %v2732_v18 = vpop.permute.xlu0 %1492 }
  0xc9   : > { %v2734_v19 = vpop.permute.xlu1 %1507  ;;  %v2736_v20 = vpop.permute.xlu0 %1502 }
  0xca   : > { %2988 = vst [vmem:[#allocation13_spill] sm:$0xff] %v2734_v19 }
  0xcd   : > { %v2738_v21 = vpop.permute.xlu1 %1517  ;;  %v2740_v22 = vpop.permute.xlu0 %1512 }
  0xd1   : > { %v2742_v23 = vpop.permute.xlu1 %1527  ;;  %v2744_v24 = vpop.permute.xlu0 %1522 }
  0xd2   : > { %2989 = vst [vmem:[#allocation14_spill] sm:$0xff] %v2742_v23  ;;  %2990 = vst [vmem:[#allocation15_spill] sm:$0xff] %v2744_v24 }
  0xd5   : > { %v2746_v25 = vpop.permute.xlu1 %1537  ;;  %v2748_v26 = vpop.permute.xlu0 %1532 }
  0xd6   : > { %2991 = vst [vmem:[#allocation16_spill] sm:$0xff] %v2746_v25  ;;  %2992 = vst [vmem:[#allocation17_spill] sm:$0xff] %v2748_v26 }
  0xd9   : > { %v2750_v27 = vpop.permute.xlu1 %1547  ;;  %v2752_v28 = vpop.permute.xlu0 %1542 }
  0xda   : > { %2993 = vst [vmem:[#allocation18_spill] sm:$0xff] %v2750_v27  ;;  %2994 = vst [vmem:[#allocation19_spill] sm:$0xff] %v2752_v28 }
  0xdb   : > { %v2051_v29 = vpop.f32.mrf.mxu0  ;;  %v2754_v30 = vpop.f32.mrf.mxu1 }
  0xdd   : > { %v2756_v31 = vpop.permute.xlu1 %1557  ;;  %v2758_v32 = vpop.permute.xlu0 %1552 }
  0xde   : > { %2995 = vst [vmem:[#allocation20_spill] sm:$0xff] %v2756_v31  ;;  %2996 = vst [vmem:[#allocation21_spill] sm:$0xff] %v2758_v32  ;;  %v633_v33 = vpop.f32.mrf.mxu0  ;;  %v2760_v34 = vpop.f32.mrf.mxu1 }
  0xe0   : > { %v2052_v35 = vpop.f32.mrf.mxu0  ;;  %v2762_v36 = vpop.f32.mrf.mxu1 }
  0xe1   : > { %v2764_v37 = vpop.permute.xlu1 %1567  ;;  %v2766_v38 = vpop.permute.xlu0 %1562 }
  0xe2   : > { %2997 = vst [vmem:[#allocation22_spill] sm:$0xff] %v2764_v37  ;;  %2998 = vst [vmem:[#allocation23_spill] sm:$0xff] %v2766_v38  ;;  %v636_v39 = vpop.f32.mrf.mxu0  ;;  %v2768_v40 = vpop.f32.mrf.mxu1 }
  0xe3   : > { %2999 = vst [vmem:[#allocation24_spill] sm:$0xff] %v2768_v40 }
  0xe4   : > { %v2055_v41 = vpop.f32.mrf.mxu0  ;;  %v2770_v42 = vpop.f32.mrf.mxu1 }
  0xe5   : > { %3000 = vst [vmem:[#allocation25_spill] sm:$0xff] %v2770_v42  ;;  %v2772_v45 = vpop.permute.xlu1 %1577  ;;  %v2774_v46 = vpop.permute.xlu0 %1572 }
  0xe6   : > { %3001 = vst [vmem:[#allocation26_spill] sm:$0xff] %v2772_v45  ;;  %3002 = vst [vmem:[#allocation27_spill] sm:$0xff] %v2774_v46  ;;  %v649_v49 = vpop.f32.mrf.mxu0  ;;  %v2776_v50 = vpop.f32.mrf.mxu1 }
  0xe7   : > { %3003 = vst [vmem:[#allocation28_spill] sm:$0xff] %v2776_v50 }
  0xe8   : > { %v2778_v53 = vpop.f32.mrf.mxu0  ;;  %v2780_v54 = vpop.f32.mrf.mxu1 }
  0xe9   : > { %3004 = vst [vmem:[#allocation29_spill] sm:$0xff] %v2780_v54  ;;  %v2782_v57 = vpop.permute.xlu1 %1635  ;;  %v1631_v58 = vpop.permute.xlu0 %1630 }
  0xea   : > { %v2784_v37 = vpop.f32.mrf.mxu0  ;;  %v2786_v7 = vpop.f32.mrf.mxu1 }
  0xeb   : > { %3005 = vst [vmem:[#allocation30_spill] sm:$0xff] %v2786_v7 }
  0xec   : > { %v2788_v38 = vpop.f32.mrf.mxu0  ;;  %v2790_v9 = vpop.f32.mrf.mxu1 }
  0xed   : > { %3006 = vst [vmem:[#allocation31_spill] sm:$0xff] %v2790_v9  ;;  %v1641_v45 = vpop.permute.xlu0 %1640  ;;  %v1646_v27 = vpop.permute.xlu1 %1645 }
  0xee   : > { %v2792_v46 = vpop.f32.mrf.mxu0  ;;  %v2794_v8 = vpop.f32.mrf.mxu1 }
  0xef   : > { %3007 = vst [vmem:[#allocation32_spill] sm:$0xff] %v2794_v8 }
  0xf0   : > { %v2796_v10 = vpop.f32.mrf.mxu0  ;;  %v2798_v31 = vpop.f32.mrf.mxu1 }
  0xf1   : > { %3008 = vst [vmem:[#allocation33_spill] sm:$0xff] %v2798_v31  ;;  %v2800_v28 = vpop.permute.xlu0 %1650  ;;  %v2806_v9 = vpop.permute.xlu1 %1655 }
  0xf2   : > { %v2802_v3 = vpop.f32.mrf.mxu0  ;;  %v2804_v32 = vpop.f32.mrf.mxu1 }
  0xf3   : > { %3009 = vst [vmem:[#allocation34_spill] sm:$0xff] %v2804_v32 }
  0xf4   : > { %v2077_v5 = vpop.f32.mrf.mxu1  ;;  %v2103_v4 = vpop.f32.mrf.mxu0 }
  0xf5   : > { %v2808_v7 = vpop.permute.xlu0 %1660  ;;  %v875_v23 = vadd.f32 %v2077_v5, %v2051_v29  ;;  %v2812_v26 = vpop.permute.xlu1 %1665 }
  0xf6   : > { %v866_v8 = vpop.f32.mrf.mxu1  ;;  %v1125_v6 = vpop.f32.mrf.mxu0 }
  0xf7   : > { %v1222_v54 = vadd.f32 %v2103_v4, %v875_v23  ;;  %v867_v25 = vadd.f32 %v866_v8, %v633_v33 }
  0xf8   : > { %v2078_v50 = vpop.f32.mrf.mxu1  ;;  %v2104_v31 = vpop.f32.mrf.mxu0 }
  0xf9   : > { %v1390_v63 = vadd.f32 %v2646_v43, %v1222_v54  ;;  %v1220_v24 = vadd.f32 %v1125_v6, %v867_v25  ;;  %v878_v42 = vadd.f32 %v2078_v50, %v2052_v35  ;;  %v2815_v0 = vpop.permute.xlu0 %1670 }
  0xfa   : > { %v869_v1 = vpop.f32.mrf.mxu1  ;;  %v1128_v32 = vpop.f32.mrf.mxu0 }
  0xfb   : > { %v1414_v19 = vmax.f32 %v1390_v63, 0.0  ;;  %v1388_v40 = vadd.f32 %v2648_v44, %v1220_v24  ;;  %v1223_v5 = vadd.f32 %v2104_v31, %v878_v42  ;;  %v870_v29 = vadd.f32 %v869_v1, %v636_v39 }
  0xfc   : > { %v2081_v4 = vpop.f32.mrf.mxu1  ;;  %v2107_v8 = vpop.f32.mrf.mxu0 }
  0xfd   : > { %v1582_v23 = vmul.f32 %v2724_v14, %v1414_v19  ;;  %v1412_v33 = vmax.f32 %v1388_v40, 0.0  ;;  %v1391_v43 = vadd.f32 %v2656_v47, %v1223_v5  ;;  %v1221_v6 = vadd.f32 %v1128_v32, %v870_v29  ;;  %v2828_v40 = vpop.permute.xlu1 %1675 }
  0xfe   : > { %v891_v44 = vadd.f32 %v2081_v4, %v2055_v41  ;;  %v882_v63 = vpop.f32.mrf.mxu1  ;;  %v1141_v24 = vpop.f32.mrf.mxu0 }
  0xff   : > { %v1750_v25 = vadd.f32 %v1641_v45, %v1582_v23  ;;  %v1580_v1 = vmul.f32 %v2720_v12, %v1412_v33  ;;  %v1415_v31 = vmax.f32 %v1391_v43, 0.0  ;;  %v1389_v14 = vadd.f32 %v2658_v48, %v1221_v6  ;;  %v2831_v45 = vpop.permute.xlu0 %1680 }
 0x100   : > { %v1226_v19 = vadd.f32 %v2107_v8, %v891_v44  ;;  %v883_v47 = vadd.f32 %v882_v63, %v649_v49  ;;  %v2082_v32 = vpop.f32.mrf.mxu1  ;;  %v2108_v35 = vpop.f32.mrf.mxu0 }
 0x101   : > { %1775 = vst.msk [vmem:[%s2822_s20 + $0x10] sm:$0xff] %vm1772_vm1, %v1750_v25  ;;  %v1748_v39 = vadd.f32 %v1631_v58, %v1580_v1  ;;  %v1583_v41 = vmul.f32 %v2722_v13, %v1415_v31  ;;  %v1413_v42 = vmax.f32 %v1389_v14, 0.0  ;;  %v894_v12 = vadd.f32 %v2082_v32, %v2778_v53 }
 0x102   : > { %v1394_v48 = vadd.f32 %v2678_v56, %v1226_v19  ;;  %v1224_v50 = vadd.f32 %v1141_v24, %v883_v47  ;;  %v885_v54 = vpop.f32.mrf.mxu1  ;;  %v1144_v49 = vpop.f32.mrf.mxu0 }
 0x103   : > { %1773 = vst.msk [vmem:[%s2822_s20] sm:$0xff] %vm1772_vm1, %v1748_v39  ;;  %v1751_v5 = vadd.f32 %v1646_v27, %v1583_v41  ;;  %v1581_v58 = vmul.f32 %v2718_v11, %v1413_v42  ;;  %v1227_v29 = vadd.f32 %v2108_v35, %v894_v12  ;;  %v886_v13 = vadd.f32 %v885_v54, %v2784_v37  ;;  %v2850_v37 = vpop.permute.xlu0 %1690 }
 0x104   : > { %v1418_v4 = vmax.f32 %v1394_v48, 0.0  ;;  %v1392_v8 = vadd.f32 %v2668_v52, %v1224_v50  ;;  %v2085_v23 = vpop.f32.mrf.mxu1  ;;  %v2111_v33 = vpop.f32.mrf.mxu0 }
 0x105   : > { %1776 = vst.msk [vmem:[%s2822_s20 + $0x18] sm:$0xff] %vm1772_vm1, %v1751_v5  ;;  %v1749_v56 = vadd.f32 %v2782_v57, %v1581_v58  ;;  %v1395_v53 = vadd.f32 %v2676_v55, %v1227_v29  ;;  %v1225_v43 = vadd.f32 %v1144_v49, %v886_v13  ;;  %v907_v27 = vadd.f32 %v2085_v23, %v2788_v38  ;;  %v2848_v52 = vpop.permute.xlu1 %1685 }
 0x106   : > { %v1586_v11 = vmul.f32 %v2732_v18, %v1418_v4  ;;  %v1416_v6 = vmax.f32 %v1392_v8, 0.0  ;;  %v898_v44 = vpop.f32.mrf.mxu1  ;;  %v1157_v63 = vpop.f32.mrf.mxu0 }
 0x107   : > { %1774 = vst.msk [vmem:[%s2822_s20 + $0x8] sm:$0xff] %vm1772_vm1, %v1749_v56  ;;  %v1419_v24 = vmax.f32 %v1395_v53, 0.0  ;;  %v1393_v57 = vadd.f32 %v2666_v51, %v1225_v43  ;;  %v1230_v25 = vadd.f32 %v2111_v33, %v907_v27  ;;  %v899_v55 = vadd.f32 %v898_v44, %v2792_v46  ;;  %v3011_v44 = vld [vmem:[#allocation24_spill] sm:$0xff] }
 0x108   : > { %v1754_v38 = vadd.f32 %v2808_v7, %v1586_v11  ;;  %v1584_v18 = vmul.f32 %v2728_v16, %v1416_v6  ;;  %v2086_v1 = vpop.f32.mrf.mxu1  ;;  %v2112_v31 = vpop.f32.mrf.mxu0  ;;  %v3010_v11 = vld [vmem:[#allocation3_spill] sm:$0xff] }
 0x109   : > { %v1587_v14 = vmul.f32 %v2730_v17, %v1419_v24  ;;  %v1417_v19 = vmax.f32 %v1393_v57, 0.0  ;;  %v1398_v47 = vadd.f32 %v2692_v62, %v1230_v25  ;;  %v1228_v32 = vadd.f32 %v1157_v63, %v899_v55  ;;  %v3013_v25 = vld [vmem:[#allocation17_spill] sm:$0xff] }
 0x10a   : > { %1779 = vst.msk [vmem:[%s2822_s20 + $0x30] sm:$0xff] %vm1772_vm1, %v1754_v38  ;;  %v1752_v51 = vadd.f32 %v2800_v28, %v1584_v18  ;;  %v910_v46 = vadd.f32 %v2086_v1, %v2796_v10  ;;  %v901_v35 = vpop.f32.mrf.mxu1  ;;  %v1160_v7 = vpop.f32.mrf.mxu0  ;;  %v3014_v18 = vld [vmem:[#allocation4_spill] sm:$0xff] }
 0x10b   : > { %v1755_v16 = vadd.f32 %v2812_v26, %v1587_v14  ;;  %v1585_v39 = vmul.f32 %v2726_v15, %v1417_v19  ;;  %v1422_v41 = vmax.f32 %v1398_v47, 0.0  ;;  %v1396_v17 = vadd.f32 %v2688_v60, %v1228_v32  ;;  %v2868_v28 = vpop.permute.xlu1 %1695  ;;  %v1701_v26 = vpop.permute.xlu0 %1700  ;;  %v3015_v19 = vld [vmem:[#allocation25_spill] sm:$0xff] }
 0x10c   : > { %1777 = vst.msk [vmem:[%s2822_s20 + $0x20] sm:$0xff] %vm1772_vm1, %v1752_v51  ;;  %v1231_v62 = vadd.f32 %v2112_v31, %v910_v46  ;;  %v902_v42 = vadd.f32 %v901_v35, %v2802_v3  ;;  %v2089_v12 = vpop.f32.mrf.mxu1  ;;  %v2115_v48 = vpop.f32.mrf.mxu0  ;;  %v3016_v46 = vld [vmem:[#allocation15_spill] sm:$0xff] }
 0x10d   : > { %1780 = vst.msk [vmem:[%s2822_s20 + $0x38] sm:$0xff] %vm1772_vm1, %v1755_v16  ;;  %v1753_v10 = vadd.f32 %v2806_v9, %v1585_v39  ;;  %v1590_v15 = vmul.f32 %v2740_v22, %v1422_v41  ;;  %v1420_v50 = vmax.f32 %v1396_v17, 0.0  ;;  %v923_v60 = vadd.f32 %v2089_v12, %v2754_v30  ;;  %v3017_v16 = vld [vmem:[#allocation2_spill] sm:$0xff]  ;;  %v3018_v17 = vld [vmem:[#allocation28_spill] sm:$0xff] }
 0x10e   : > { %v1399_v54 = vadd.f32 %v2690_v61, %v1231_v62  ;;  %v1229_v49 = vadd.f32 %v1160_v7, %v902_v42  ;;  %v914_v5 = vpop.f32.mrf.mxu1  ;;  %v1173_v3 = vpop.f32.mrf.mxu0 }
 0x10f   : > { %1778 = vst.msk [vmem:[%s2822_s20 + $0x28] sm:$0xff] %vm1772_vm1, %v1753_v10  ;;  %v1758_v58 = vadd.f32 %v2831_v45, %v1590_v15  ;;  %v1588_v29 = vmul.f32 %v2736_v20, %v1420_v50  ;;  %v1234_v13 = vadd.f32 %v2115_v48, %v923_v60  ;;  %v915_v9 = vadd.f32 %v914_v5, %v2760_v34  ;;  %v1706_v34 = vpop.permute.xlu1 %1705  ;;  %v3020_v60 = vld [vmem:[#allocation29_spill] sm:$0xff] }
 0x110   : > { %v1423_v22 = vmax.f32 %v1399_v54, 0.0  ;;  %v1397_v4 = vadd.f32 %v2686_v59, %v1229_v49  ;;  %v2090_v8 = vpop.f32.mrf.mxu1  ;;  %v2116_v30 = vpop.f32.mrf.mxu0  ;;  %v3021_v49 = vld [vmem:[#allocation8_spill] sm:$0xff] }
 0x111   : > { %1783 = vst.msk [vmem:[%s2822_s20 + $0x50] sm:$0xff] %vm1772_vm1, %v1758_v58  ;;  %v1756_v61 = vadd.f32 %v2815_v0, %v1588_v29  ;;  %v1402_v23 = vadd.f32 %v2700_v2, %v1234_v13  ;;  %v1232_v33 = vadd.f32 %v1173_v3, %v915_v9  ;;  %v926_v45 = vadd.f32 %v2090_v8, %v2762_v36  ;;  %v2890_v59 = vpop.permute.xlu0 %1710  ;;  %v3012_v36 = vld [vmem:[#allocation13_spill] sm:$0xff]  ;;  %v3022_v9 = vld [vmem:[#allocation14_spill] sm:$0xff] }
 0x112   : > { %v1591_v20 = vmul.f32 %v2738_v21, %v1423_v22  ;;  %v1421_v56 = vmax.f32 %v1397_v4, 0.0  ;;  %v917_v53 = vpop.f32.mrf.mxu1  ;;  %v1176_v43 = vpop.f32.mrf.mxu0  ;;  %v3023_v8 = vld [vmem:[#allocation30_spill] sm:$0xff] }
 0x113   : > { %1781 = vst.msk [vmem:[%s2822_s20 + $0x40] sm:$0xff] %vm1772_vm1, %v1756_v61  ;;  %v1426_v27 = vmax.f32 %v1402_v23, 0.0  ;;  %v1400_v6 = vadd.f32 %v3010_v11, %v1232_v33  ;;  %v1235_v0 = vadd.f32 %v2116_v30, %v926_v45  ;;  %v918_v2 = vadd.f32 %v917_v53, %v3011_v44  ;;  %v1716_v48 = vpop.permute.xlu1 %1715  ;;  %v3024_v61 = vld [vmem:[#allocation6_spill] sm:$0xff]  ;;  %v3027_v11 = vld [vmem:[#allocation21_spill] sm:$0xff] }
 0x114   : > { %v1759_v63 = vadd.f32 %v2848_v52, %v1591_v20  ;;  %v1589_v24 = vmul.f32 %v3012_v36, %v1421_v56  ;;  %v2093_v21 = vpop.f32.mrf.mxu1  ;;  %v2119_v57 = vpop.f32.mrf.mxu0  ;;  %v3025_v56 = vld [vmem:[#allocation7_spill] sm:$0xff] }
 0x115   : > { %v1594_v55 = vmul.f32 %v3013_v25, %v1426_v27  ;;  %v1424_v38 = vmax.f32 %v1400_v6, 0.0  ;;  %v1403_v1 = vadd.f32 %v3014_v18, %v1235_v0  ;;  %v1233_v31 = vadd.f32 %v1176_v43, %v918_v2  ;;  %v3026_v27 = vld [vmem:[#allocation31_spill] sm:$0xff]  ;;  %v3029_v25 = vld [vmem:[#allocation32_spill] sm:$0xff] }
 0x116   : > { %1784 = vst.msk [vmem:[%s2822_s20 + $0x58] sm:$0xff] %vm1772_vm1, %v1759_v63  ;;  %v1757_v14 = vadd.f32 %v2828_v40, %v1589_v24  ;;  %v939_v47 = vadd.f32 %v2093_v21, %v3015_v19  ;;  %v930_v32 = vpop.f32.mrf.mxu1  ;;  %v1189_v52 = vpop.f32.mrf.mxu0  ;;  %v3028_v24 = vld [vmem:[#allocation5_spill] sm:$0xff]  ;;  %v3030_v18 = vld [vmem:[#allocation19_spill] sm:$0xff] }
 0x117   : > { %v1762_v51 = vadd.f32 %v1701_v26, %v1594_v55  ;;  %v1592_v35 = vmul.f32 %v3016_v46, %v1424_v38  ;;  %v1427_v7 = vmax.f32 %v1403_v1, 0.0  ;;  %v1401_v39 = vadd.f32 %v3017_v16, %v1233_v31  ;;  %v1721_v40 = vpop.permute.xlu0 %1720  ;;  %v3019_v26 = vld [vmem:[#allocation16_spill] sm:$0xff]  ;;  %v1726_v63 = vpop.permute.xlu1 %1725 }
 0x118   : > { %1782 = vst.msk [vmem:[%s2822_s20 + $0x48] sm:$0xff] %vm1772_vm1, %v1757_v14  ;;  %v1238_v41 = vadd.f32 %v2119_v57, %v939_v47  ;;  %v931_v62 = vadd.f32 %v930_v32, %v3018_v17  ;;  %v2094_v42 = vpop.f32.mrf.mxu1  ;;  %v2120_v12 = vpop.f32.mrf.mxu0  ;;  %v3031_v14 = vld [vmem:[#allocation20_spill] sm:$0xff]  ;;  %v3034_v17 = vld [vmem:[#allocation18_spill] sm:$0xff] }
 0x119   : > { %1787 = vst.msk [vmem:[%s2822_s20 + $0x70] sm:$0xff] %vm1772_vm1, %v1762_v51  ;;  %v1760_v10 = vadd.f32 %v2850_v37, %v1592_v35  ;;  %v1595_v15 = vmul.f32 %v3019_v26, %v1427_v7  ;;  %v1425_v50 = vmax.f32 %v1401_v39, 0.0  ;;  %v942_v54 = vadd.f32 %v2094_v42, %v3020_v60  ;;  %v3032_v32 = vld [vmem:[#allocation12_spill] sm:$0xff]  ;;  %v3033_v7 = vld [vmem:[#allocation33_spill] sm:$0xff]  ;;  %v3036_v26 = vld [vmem:[#allocation34_spill] sm:$0xff] }
 0x11a   : > { %v1406_v5 = vadd.f32 %v3021_v49, %v1238_v41  ;;  %v1236_v3 = vadd.f32 %v1189_v52, %v931_v62  ;;  %v933_v58 = vpop.f32.mrf.mxu1  ;;  %v1192_v29 = vpop.f32.mrf.mxu0  ;;  %v3037_v60 = vld [vmem:[#allocation27_spill] sm:$0xff] }
 0x11b   : > { %1785 = vst.msk [vmem:[%s2822_s20 + $0x60] sm:$0xff] %vm1772_vm1, %v1760_v10  ;;  %v1763_v13 = vadd.f32 %v1706_v34, %v1595_v15  ;;  %v1593_v22 = vmul.f32 %v3022_v9, %v1425_v50  ;;  %v1239_v4 = vadd.f32 %v2120_v12, %v942_v54  ;;  %v934_v37 = vadd.f32 %v933_v58, %v3023_v8  ;;  %v1731_v55 = vpop.permute.xlu0 %1730  ;;  %v3035_v12 = vld [vmem:[#allocation10_spill] sm:$0xff]  ;;  %v1736_v50 = vpop.permute.xlu1 %1735  ;;  %v3038_v58 = vld [vmem:[#allocation11_spill] sm:$0xff] }
 0x11c   : > { %v1430_v30 = vmax.f32 %v1406_v5, 0.0  ;;  %v1404_v23 = vadd.f32 %v3024_v61, %v1236_v3  ;;  %v2097_v33 = vpop.f32.mrf.mxu1  ;;  %v2123_v45 = vpop.f32.mrf.mxu0  ;;  %v3041_v61 = vld [vmem:[#allocation26_spill] sm:$0xff] }
 0x11d   : > { %1788 = vst.msk [vmem:[%s2822_s20 + $0x78] sm:$0xff] %vm1772_vm1, %v1763_v13  ;;  %v1761_v20 = vadd.f32 %v2868_v28, %v1593_v22  ;;  %v1407_v53 = vadd.f32 %v3025_v56, %v1239_v4  ;;  %v1237_v43 = vadd.f32 %v1192_v29, %v934_v37  ;;  %v955_v34 = vadd.f32 %v2097_v33, %v3026_v27  ;;  %v3039_v22 = vld [vmem:[#allocation23_spill] sm:$0xff]  ;;  %v3040_v37 = vld [vmem:[#allocation9_spill] sm:$0xff]  ;;  %v3042_v56 = vld [vmem:[#allocation22_spill] sm:$0xff] }
 0x11e   : > { %v1598_v6 = vmul.f32 %v3027_v11, %v1430_v30  ;;  %v1428_v0 = vmax.f32 %v1404_v23, 0.0  ;;  %v946_v44 = vpop.f32.mrf.mxu1  ;;  %v1205_v2 = vpop.f32.mrf.mxu0 }
 0x11f   : > { %1786 = vst.msk [vmem:[%s2822_s20 + $0x68] sm:$0xff] %vm1772_vm1, %v1761_v20  ;;  %v1431_v36 = vmax.f32 %v1407_v53, 0.0  ;;  %v1405_v21 = vadd.f32 %v3028_v24, %v1237_v43  ;;  %v1242_v57 = vadd.f32 %v2123_v45, %v955_v34  ;;  %v947_v28 = vadd.f32 %v946_v44, %v3029_v25  ;;  %v1741_v3 = vpop.permute.xlu0 %1740  ;;  %v1746_v45 = vpop.permute.xlu1 %1745 }
 0x120   : > { %v1766_v38 = vadd.f32 %v1721_v40, %v1598_v6  ;;  %v1596_v1 = vmul.f32 %v3030_v18, %v1428_v0  ;;  %v2098_v31 = vpop.f32.mrf.mxu1  ;;  %v2124_v46 = vpop.f32.mrf.mxu0 }
 0x121   : > { %v1599_v19 = vmul.f32 %v3031_v14, %v1431_v36  ;;  %v1429_v47 = vmax.f32 %v1405_v21, 0.0  ;;  %v1410_v52 = vadd.f32 %v3032_v32, %v1242_v57  ;;  %v1240_v51 = vadd.f32 %v1205_v2, %v947_v28 }
 0x122   : > { %1791 = vst.msk [vmem:[%s2822_s20 + $0x90] sm:$0xff] %vm1772_vm1, %v1766_v38  ;;  %v1764_v35 = vadd.f32 %v2890_v59, %v1596_v1  ;;  %v958_v16 = vadd.f32 %v2098_v31, %v3033_v7  ;;  %v949_v39 = vpop.f32.mrf.mxu1  ;;  %v1208_v5 = vpop.f32.mrf.mxu0 }
 0x123   : > { %v1767_v41 = vadd.f32 %v1726_v63, %v1599_v19  ;;  %v1597_v62 = vmul.f32 %v3034_v17, %v1429_v47  ;;  %v1434_v42 = vmax.f32 %v1410_v52, 0.0  ;;  %v1408_v40 = vadd.f32 %v3035_v12, %v1240_v51 }
 0x124   : > { %1789 = vst.msk [vmem:[%s2822_s20 + $0x80] sm:$0xff] %vm1772_vm1, %v1764_v35  ;;  %v1243_v10 = vadd.f32 %v2124_v46, %v958_v16  ;;  %v950_v15 = vadd.f32 %v949_v39, %v3036_v26 }
 0x125   : > { %1792 = vst.msk [vmem:[%s2822_s20 + $0x98] sm:$0xff] %vm1772_vm1, %v1767_v41  ;;  %v1765_v59 = vadd.f32 %v1716_v48, %v1597_v62  ;;  %v1602_v54 = vmul.f32 %v3037_v60, %v1434_v42  ;;  %v1432_v49 = vmax.f32 %v1408_v40, 0.0 }
 0x126   : > { %v1411_v29 = vadd.f32 %v3038_v58, %v1243_v10  ;;  %v1241_v13 = vadd.f32 %v1208_v5, %v950_v15 }
 0x127   : > { %1790 = vst.msk [vmem:[%s2822_s20 + $0x88] sm:$0xff] %vm1772_vm1, %v1765_v59  ;;  %v1770_v9 = vadd.f32 %v1741_v3, %v1602_v54  ;;  %v1600_v4 = vmul.f32 %v3039_v22, %v1432_v49 }
 0x128   : > { %v1435_v8 = vmax.f32 %v1411_v29, 0.0  ;;  %v1409_v30 = vadd.f32 %v3040_v37, %v1241_v13 }
 0x129   : > { %1795 = vst.msk [vmem:[%s2822_s20 + $0xb0] sm:$0xff] %vm1772_vm1, %v1770_v9  ;;  %v1768_v48 = vadd.f32 %v1731_v55, %v1600_v4 }
 0x12a   : > { %v1603_v23 = vmul.f32 %v3041_v61, %v1435_v8  ;;  %v1433_v33 = vmax.f32 %v1409_v30, 0.0 }
 0x12b   : > { %1793 = vst.msk [vmem:[%s2822_s20 + $0xa0] sm:$0xff] %vm1772_vm1, %v1768_v48 }
 0x12c   : > { %v1771_v20 = vadd.f32 %v1746_v45, %v1603_v23  ;;  %v1601_v53 = vmul.f32 %v3042_v56, %v1433_v33 }
 0x12e   : > { %1796 = vst.msk [vmem:[%s2822_s20 + $0xb8] sm:$0xff] %vm1772_vm1, %v1771_v20  ;;  %v1769_v43 = vadd.f32 %v1736_v50, %v1601_v53 }
 0x130   : > { %1794 = vst.msk [vmem:[%s2822_s20 + $0xa8] sm:$0xff] %vm1772_vm1, %v1769_v43 }
 0x131 PF: > { %s19_s11 = sadd.s32 1, %s2220_s11   ;;  %s3043_s30 = smov %s2216_s10 }
 0x132   : > { %p16_p5 = scmp.ge.s32.totalorder %s19_s11, 4   ;;  %s3044_s10 = smov %s3046_s12 }
 0x134   :  { %18 = sbr.rel (!%p16_p5) target bundleno = 2 (0x2), region = 92 }

</bundles_post_ra>
